<compile_context>
chip_gen: v6e
topology: v6e:2x2x1
jax: 0.10.0
libtpu: 0.0.40
codegen_flags: <defaults>
</compile_context>

<pallas_src>
import jax
import jax.numpy as jnp
from jax.experimental import pallas as pl
from jax.experimental.pallas import tpu as pltpu

# ----------------------------- config --------------------------------------
PASTA_NAMES = ["foot", "hand", "head"]
NUM_PASTAS = {"FOOT": 4, "HAND": 5, "HEAD": 6}
NUM_PASTAS_LIST = [NUM_PASTAS[n.upper()] for n in PASTA_NAMES]
NUM_VERBS = 10
NUM_PARTS = 4
PART_AGG_RULE = [[0, 1], [2], [3]]
NUM_FC = 32
POOLING_SIZE = 7
SCENE_DIM = 1024
HUMAN_DIM = 2048
ROI_DIM = 1024
LANG_DIM = 64
NUM_FC_PARTS = [len(rule) * ROI_DIM + SCENE_DIM + HUMAN_DIM for rule in PART_AGG_RULE]
KMAX = max(NUM_FC_PARTS)          # 5120
CLS_PAD = 128                     # padded cls output width (lane-aligned)
IMG_HW = 64
PATCH = 16                        # surrogate backbone stride / kernel
HEAD_H = IMG_HW // PATCH          # 4
HEAD_W = IMG_HW // PATCH          # 4
HEAD_HW = HEAD_H * HEAD_W         # 16
RP = 8                            # padded ROI row count (sublane multiple)


def _round_up(x, m):
    return (x + m - 1) // m * m


# --------------------------- Pallas kernels ---------------------------------
def _backbone_sample_kernel(x_ref, w_ref, b_ref, ws_ref, o_ref):
    """conv1-as-matmul + ReLU, then all ROI/scene bilinear sampling rows."""
    head = jnp.dot(x_ref[...], w_ref[...], preferred_element_type=jnp.float32)
    head = jnp.maximum(head + b_ref[...], 0.0)                    # [HW, 1024]
    o_ref[...] = jnp.dot(ws_ref[...], head, preferred_element_type=jnp.float32)


def _layer4_mean_kernel(x_ref, w_ref, b_ref, m_ref, o_ref):
    """1x1 stride-2 layer4 surrogate (matmul + ReLU) fused with per-ROI mean."""
    y = jnp.dot(x_ref[...], w_ref[...], preferred_element_type=jnp.float32)
    y = jnp.maximum(y + b_ref[...], 0.0)                          # [16R, 2048]
    o_ref[...] = jnp.dot(m_ref[...], y, preferred_element_type=jnp.float32)


def _heads_kernel(x_ref, w1_ref, b1_ref, w2_ref, b2_ref, wc_ref, bc_ref,
                  f_ref, p_ref):
    """One part head: fc7(w1)+ReLU -> fc7(w2)+ReLU -> cls -> sigmoid."""
    h = jnp.dot(x_ref[...], w1_ref[...], preferred_element_type=jnp.float32)
    h = jnp.maximum(h + b1_ref[...], 0.0)
    h2 = jnp.dot(h.astype(jnp.bfloat16), w2_ref[...],
                 preferred_element_type=jnp.float32)
    h2 = jnp.maximum(h2 + b2_ref[...], 0.0)
    s = jnp.dot(h2.astype(jnp.bfloat16), wc_ref[...],
                preferred_element_type=jnp.float32) + bc_ref[...]
    f_ref[...] = h2
    p_ref[...] = jax.nn.sigmoid(s)


def _verb_lang_kernel(fv_ref, vw_ref, vb_ref, pp_ref, lw_ref, pv_ref, fl_ref):
    """verb classifier (+sigmoid) and pasta-language projection."""
    s = jnp.dot(fv_ref[...], vw_ref[...], preferred_element_type=jnp.float32)
    pv_ref[...] = jax.nn.sigmoid(s + vb_ref[...])
    fl_ref[...] = jnp.dot(pp_ref[...], lw_ref[...],
                          preferred_element_type=jnp.float32)


# ---------------- bilinear sampling weights (affine_grid + grid_sample) ------
# TODO(synk): F.affine_grid/F.grid_sample is a data-dependent bilinear gather;
# it is expressed here as a small sampling-weight matrix built in JAX glue and
# applied inside the Pallas kernel as a matmul (no Pallas gather primitive).
def _bilinear_weights(rois, H, W, P):
    """rois: [R, 5] = [batch_idx, x1, y1, x2, y2] (image px). -> [R, P, P, H*W]."""
    rois = rois.astype(jnp.float32)
    R = rois.shape[0]
    x1 = rois[:, 1] / 16.0
    y1 = rois[:, 2] / 16.0
    x2 = rois[:, 3] / 16.0
    y2 = rois[:, 4] / 16.0
    theta00 = (x2 - x1) / (W - 1)
    theta02 = (x1 + x2 - W + 1) / (W - 1)
    theta11 = (y2 - y1) / (H - 1)
    theta12 = (y1 + y2 - H + 1) / (H - 1)
    # F.affine_grid base coordinates, align_corners=False (matches reference code)
    base = (jnp.arange(P, dtype=jnp.float32) * 2.0 + 1.0) / P - 1.0
    gx = base[None, None, :] * theta00[:, None, None] + theta02[:, None, None]
    gy = base[None, :, None] * theta11[:, None, None] + theta12[:, None, None]
    gx = jnp.broadcast_to(gx, (R, P, P))
    gy = jnp.broadcast_to(gy, (R, P, P))
    # F.grid_sample (bilinear, padding_mode='zeros', align_corners=False)
    ix = ((gx + 1.0) * W - 1.0) / 2.0
    iy = ((gy + 1.0) * H - 1.0) / 2.0
    ix0 = jnp.floor(ix)
    iy0 = jnp.floor(iy)
    ix1 = ix0 + 1.0
    iy1 = iy0 + 1.0
    wx1 = ix - ix0
    wx0 = 1.0 - wx1
    wy1 = iy - iy0
    wy0 = 1.0 - wy1

    def tap(yi, xi, wt):
        valid = ((xi >= 0) & (xi <= W - 1) & (yi >= 0) & (yi <= H - 1))
        valid = valid.astype(jnp.float32)
        xc = jnp.clip(xi, 0, W - 1).astype(jnp.int32)
        yc = jnp.clip(yi, 0, H - 1).astype(jnp.int32)
        oh = jax.nn.one_hot(yc * W + xc, H * W, dtype=jnp.float32)  # [R,P,P,HW]
        return oh * (wt * valid)[..., None]

    return (tap(iy0, ix0, wy0 * wx0) + tap(iy0, ix1, wy0 * wx1)
            + tap(iy1, ix0, wy1 * wx0) + tap(iy1, ix1, wy1 * wx1))


# ------------------------------ parameters ----------------------------------
def init_params(key):
    keys = iter(jax.random.split(key, 64))

    def nrm(shape, scale=0.02):
        return jax.random.normal(next(keys), shape, jnp.float32) * scale

    # TODO(synk): surrogate for ResNet-50 conv1..layer3 (stride-16, 1024 ch):
    # a single 16x16/16 conv + ReLU. Full bottleneck stack not replicated.
    conv1_w = nrm((1024, 3, PATCH, PATCH))
    conv1_b = nrm((1024,))
    # TODO(synk): surrogate for resnet_layer4 (7x7 -> 4x4, 1024 -> 2048 ch):
    # a 1x1 stride-2 conv + ReLU.
    layer4_w = nrm((2048, 1024, 1, 1))
    layer4_b = nrm((2048,))

    w1s, b1s, w2s, b2s, wcs, bcs = [], [], [], [], [], []
    for i in range(len(PASTA_NAMES)):
        din = NUM_FC_PARTS[i]
        w1 = nrm((din, NUM_FC))
        b1 = nrm((NUM_FC,))
        w2 = nrm((NUM_FC, NUM_FC))
        b2 = nrm((NUM_FC,))
        wc = nrm((NUM_FC, NUM_PASTAS_LIST[i]))
        bc = nrm((NUM_PASTAS_LIST[i],))
        w1s.append(jnp.pad(w1, ((0, KMAX - din), (0, 0))))
        b1s.append(b1[None, :])
        w2s.append(w2)
        b2s.append(b2[None, :])
        wcs.append(jnp.pad(wc, ((0, 0), (0, CLS_PAD - NUM_PASTAS_LIST[i]))))
        bcs.append(jnp.pad(bc, (0, CLS_PAD - NUM_PASTAS_LIST[i]))[None, :])

    verb_w = nrm((len(PASTA_NAMES) * NUM_FC, NUM_VERBS))
    verb_b = nrm((NUM_VERBS,))
    lang = nrm((sum(NUM_PASTAS_LIST), LANG_DIM))

    # All padding / stacking / bf16 casting done once here (not per-forward).
    return {
        "conv1_wmat": conv1_w.reshape(1024, 3 * PATCH * PATCH).T.astype(jnp.bfloat16),
        "conv1_b": conv1_b[None, :],
        "layer4_wmat": layer4_w.reshape(2048, 1024).T.astype(jnp.bfloat16),
        "layer4_b": layer4_b[None, :],
        "w1_stack": jnp.stack(w1s).astype(jnp.bfloat16),   # [3, 5120, 32]
        "b1_stack": jnp.stack(b1s),                        # [3, 1, 32]
        "w2_stack": jnp.stack(w2s).astype(jnp.bfloat16),   # [3, 32, 32]
        "b2_stack": jnp.stack(b2s),                        # [3, 1, 32]
        "wc_stack": jnp.stack(wcs).astype(jnp.bfloat16),   # [3, 32, 128]
        "bc_stack": jnp.stack(bcs),                        # [3, 1, 128]
        "verb_w": verb_w.astype(jnp.bfloat16),             # [96, 10]
        "verb_b": verb_b[None, :],                         # [1, 10]
        "lang": lang,                                      # [15, 64]
    }


# -------------------------------- forward -----------------------------------
@jax.jit
def pasta_res50_forward(params, image, human_bboxes, part_bboxes):
    R = human_bboxes.shape[0]
    P = POOLING_SIZE
    H, W, HW = HEAD_H, HEAD_W, HEAD_HW

    # ---- conv1 im2col: non-overlapping 16x16 patches -> one reshape/transpose
    N, Cin, IH, IW = image.shape
    Ho, Wo = IH // PATCH, IW // PATCH
    patches = image.reshape(N, Cin, Ho, PATCH, Wo, PATCH)
    patches = patches.transpose(0, 2, 4, 1, 3, 5).reshape(N * Ho * Wo,
                                                          Cin * PATCH * PATCH)
    patches = patches.astype(jnp.bfloat16)                        # [16, 768]

    # ---- bilinear sampling matrix: scene mean + human stride-2 grid + part means
    wb_h = _bilinear_weights(human_bboxes, H, W, P)               # [R,7,7,HW]
    # layer4 surrogate is 1x1 stride-2, so only the (0,2,4,6) grid points matter.
    w_human = wb_h[:, ::2, ::2, :].reshape(R * 16, HW)            # [16R, HW]
    wb_p = _bilinear_weights(part_bboxes.reshape(R * NUM_PARTS, 5), H, W, P)
    w_parts = wb_p.mean(axis=(1, 2)).reshape(R, NUM_PARTS, HW)    # mean fused in
    w_parts = w_parts.transpose(1, 0, 2).reshape(NUM_PARTS * R, HW)
    w_scene = jnp.full((1, HW), 1.0 / HW, jnp.float32)
    w_samp = jnp.concatenate([w_scene, w_human, w_parts], axis=0)
    n_samp = w_samp.shape[0]                                      # 1 + 16R + 4R
    n_samp_pad = _round_up(n_samp, 8)
    w_samp = jnp.pad(w_samp, ((0, n_samp_pad - n_samp), (0, 0)))  # [48, 16]

    # ---- kernel 1: backbone conv + ReLU + all ROI/scene sampling -------------
    samp = pl.pallas_call(
        _backbone_sample_kernel,
        out_shape=jax.ShapeDtypeStruct((n_samp_pad, SCENE_DIM), jnp.float32),
    )(patches, params["conv1_wmat"], params["conv1_b"], w_samp)

    f_scene = samp[0:1]                                           # [1, 1024]
    human_rows = samp[1:1 + 16 * R].astype(jnp.bfloat16)          # [16R, 1024]
    part_rows = samp[1 + 16 * R:1 + 16 * R + NUM_PARTS * R]       # [4R, 1024]
    f_parts_roi = [part_rows[p * R:(p + 1) * R] for p in range(NUM_PARTS)]

    # ---- kernel 2: layer4 surrogate + fused per-ROI spatial mean -------------
    eye = jnp.eye(R, dtype=jnp.float32)
    mean_mat = jnp.repeat(eye, 16, axis=1) / 16.0                 # [R, 16R]
    mean_mat = jnp.pad(mean_mat, ((0, RP - R), (0, 0)))           # [8, 16R]
    f_human_pad = pl.pallas_call(
        _layer4_mean_kernel,
        out_shape=jax.ShapeDtypeStruct((RP, HUMAN_DIM), jnp.float32),
    )(human_rows, params["layer4_wmat"], params["layer4_b"], mean_mat)
    f_human = f_human_pad[:R]                                     # [R, 2048]

    # ---- stack per-part aggregated features (dropout = identity in eval) -----
    f_scene_for_part = jnp.broadcast_to(f_scene, (R, SCENE_DIM))
    x_stack = []
    for rule in PART_AGG_RULE:
        pieces = [f_parts_roi[p] for p in rule] + [f_human, f_scene_for_part]
        agg = jnp.concatenate(pieces, axis=1)                     # [R, din]
        agg = jnp.pad(agg, ((0, RP - R), (0, KMAX - agg.shape[1])))
        x_stack.append(agg)
    x_stack = jnp.stack(x_stack, axis=0).astype(jnp.bfloat16)     # [3, 8, 5120]

    # ---- kernel 3: fused part heads, parts batched on a parallel grid axis ---
    n_heads = len(PASTA_NAMES)
    fc7_stack, p_stack = pl.pallas_call(
        _heads_kernel,
        grid=(n_heads,),
        in_specs=[
            pl.BlockSpec((None, RP, KMAX), lambda i: (i, 0, 0)),
            pl.BlockSpec((None, KMAX, NUM_FC), lambda i: (i, 0, 0)),
            pl.BlockSpec((None, 1, NUM_FC), lambda i: (i, 0, 0)),
            pl.BlockSpec((None, NUM_FC, NUM_FC), lambda i: (i, 0, 0)),
            pl.BlockSpec((None, 1, NUM_FC), lambda i: (i, 0, 0)),
            pl.BlockSpec((None, NUM_FC, CLS_PAD), lambda i: (i, 0, 0)),
            pl.BlockSpec((None, 1, CLS_PAD), lambda i: (i, 0, 0)),
        ],
        out_specs=(
            pl.BlockSpec((None, RP, NUM_FC), lambda i: (i, 0, 0)),
            pl.BlockSpec((None, RP, CLS_PAD), lambda i: (i, 0, 0)),
        ),
        out_shape=(
            jax.ShapeDtypeStruct((n_heads, RP, NUM_FC), jnp.float32),
            jax.ShapeDtypeStruct((n_heads, RP, CLS_PAD), jnp.float32),
        ),
        compiler_params=pltpu.CompilerParams(dimension_semantics=("parallel",)),
    )(x_stack, params["w1_stack"], params["b1_stack"],
      params["w2_stack"], params["b2_stack"],
      params["wc_stack"], params["bc_stack"])

    f_pasta_visual = jnp.concatenate(
        [fc7_stack[i, :R, :] for i in range(n_heads)], axis=1)    # [R, 96]
    p_pasta = jnp.concatenate(
        [p_stack[i, :R, :NUM_PASTAS_LIST[i]] for i in range(n_heads)], axis=1)

    # ---- kernel 4: verb classifier + pasta-language projection ---------------
    fvis_pad = jnp.pad(f_pasta_visual, ((0, RP - R), (0, 0))).astype(jnp.bfloat16)
    pp_pad = jnp.pad(p_pasta, ((0, RP - R), (0, 0)))
    p_verb_pad, f_lang_pad = pl.pallas_call(
        _verb_lang_kernel,
        out_shape=(
            jax.ShapeDtypeStruct((RP, NUM_VERBS), jnp.float32),
            jax.ShapeDtypeStruct((RP, LANG_DIM), jnp.float32),
        ),
    )(fvis_pad, params["verb_w"], params["verb_b"], pp_pad, params["lang"])

    p_verb = p_verb_pad[:R]
    f_pasta = jnp.concatenate([f_pasta_visual, f_lang_pad[:R]], axis=1)
    return f_pasta, p_pasta, p_verb


# --------------------------------- main --------------------------------------
if __name__ == "__main__":
    key = jax.random.PRNGKey(0)
    pkey, ikey = jax.random.split(key)
    params = init_params(pkey)

    image = jax.random.normal(ikey, (1, 3, IMG_HW, IMG_HW), jnp.float32)
    # rois: [batch_idx, x1, y1, x2, y2] in image pixel coordinates
    human_bboxes = jnp.array([[0., 0., 0., 48., 48.],
                              [0., 16., 16., 63., 63.]], jnp.float32)
    part_bboxes = jnp.array([[[0., 0., 0., 32., 32.],
                              [0., 8., 8., 40., 40.],
                              [0., 16., 0., 48., 32.],
                              [0., 0., 16., 32., 48.]],
                             [[0., 16., 16., 48., 48.],
                              [0., 24., 24., 56., 56.],
                              [0., 32., 16., 63., 48.],
                              [0., 16., 32., 48., 63.]]], jnp.float32)

    f_pasta, p_pasta, p_verb = pasta_res50_forward(params, image,
                                                   human_bboxes, part_bboxes)
    jax.block_until_ready((f_pasta, p_pasta, p_verb))

    assert f_pasta.shape == (2, len(PASTA_NAMES) * NUM_FC + LANG_DIM)
    assert p_pasta.shape == (2, sum(NUM_PASTAS_LIST))
    assert p_verb.shape == (2, NUM_VERBS)
    print("KERNEL_OK")
</pallas_src>

<mosaic_0001>
module attributes {stable_mosaic.version = 11 : i64} {
  func.func @_backbone_sample_kernel(%arg0: memref<16x768xbf16, #tpu.memory_space<vmem>>, %arg1: memref<768x1024xbf16, #tpu.memory_space<vmem>>, %arg2: memref<1x1024xf32, #tpu.memory_space<vmem>>, %arg3: memref<48x16xf32, #tpu.memory_space<vmem>>, %arg4: memref<48x1024xf32, #tpu.memory_space<vmem>>) attributes {dimension_semantics = [], scalar_prefetch = 0 : i64, scratch_operands = 0 : i64, tpu.core_type = #tpu.core_type<tc>} {
    %c0 = arith.constant 0 : index
    %c0_0 = arith.constant 0 : index
    %0 = vector.load %arg0[%c0, %c0_0] : memref<16x768xbf16, #tpu.memory_space<vmem>>, vector<16x768xbf16>
    %c0_1 = arith.constant 0 : index
    %c0_2 = arith.constant 0 : index
    %1 = vector.load %arg1[%c0_1, %c0_2] : memref<768x1024xbf16, #tpu.memory_space<vmem>>, vector<768x1024xbf16>
    %cst = arith.constant dense<0.000000e+00> : vector<16x1024xf32>
    %2 = tpu.matmul %0, %1, %cst {dimension_numbers = #tpu.dot_dimension_numbers<[1], [0], [0], [1], [0, 0, 1, 1], [], []>} : vector<16x768xbf16>, vector<768x1024xbf16>, vector<16x1024xf32> -> vector<16x1024xf32>
    %c0_3 = arith.constant 0 : index
    %c0_4 = arith.constant 0 : index
    %3 = vector.load %arg2[%c0_3, %c0_4] : memref<1x1024xf32, #tpu.memory_space<vmem>>, vector<1x1024xf32>
    %4 = vector.broadcast %3 : vector<1x1024xf32> to vector<16x1024xf32>
    %5 = arith.addf %2, %4 : vector<16x1024xf32>
    %cst_5 = arith.constant 0.000000e+00 : f32
    %6 = vector.broadcast %cst_5 : f32 to vector<16x1024xf32>
    %7 = arith.maximumf %5, %6 : vector<16x1024xf32>
    %c0_6 = arith.constant 0 : index
    %c0_7 = arith.constant 0 : index
    %8 = vector.load %arg3[%c0_6, %c0_7] : memref<48x16xf32, #tpu.memory_space<vmem>>, vector<48x16xf32>
    %cst_8 = arith.constant dense<0.000000e+00> : vector<48x1024xf32>
    %9 = tpu.matmul %8, %7, %cst_8 {dimension_numbers = #tpu.dot_dimension_numbers<[1], [0], [0], [1], [0, 0, 1, 1], [], []>} : vector<48x16xf32>, vector<16x1024xf32>, vector<48x1024xf32> -> vector<48x1024xf32>
    %c0_9 = arith.constant 0 : index
    %c0_10 = arith.constant 0 : index
    %10 = vector.load %arg4[%c0_9, %c0_10] : memref<48x1024xf32, #tpu.memory_space<vmem>>, vector<48x1024xf32>
    tpu.vector_store %arg4[%c0_9, %c0_10], %9 {strides = array<i32>} : memref<48x1024xf32, #tpu.memory_space<vmem>>, vector<48x1024xf32>,
    return
  }
}

module attributes {stable_mosaic.version = 11 : i64} {
  func.func @_layer4_mean_kernel(%arg0: memref<32x1024xbf16, #tpu.memory_space<vmem>>, %arg1: memref<1024x2048xbf16, #tpu.memory_space<vmem>>, %arg2: memref<1x2048xf32, #tpu.memory_space<vmem>>, %arg3: memref<8x32xf32, #tpu.memory_space<vmem>>, %arg4: memref<8x2048xf32, #tpu.memory_space<vmem>>) attributes {dimension_semantics = [], scalar_prefetch = 0 : i64, scratch_operands = 0 : i64, tpu.core_type = #tpu.core_type<tc>} {
    %c0 = arith.constant 0 : index
    %c0_0 = arith.constant 0 : index
    %0 = vector.load %arg0[%c0, %c0_0] : memref<32x1024xbf16, #tpu.memory_space<vmem>>, vector<32x1024xbf16>
    %c0_1 = arith.constant 0 : index
    %c0_2 = arith.constant 0 : index
    %1 = vector.load %arg1[%c0_1, %c0_2] : memref<1024x2048xbf16, #tpu.memory_space<vmem>>, vector<1024x2048xbf16>
    %cst = arith.constant dense<0.000000e+00> : vector<32x2048xf32>
    %2 = tpu.matmul %0, %1, %cst {dimension_numbers = #tpu.dot_dimension_numbers<[1], [0], [0], [1], [0, 0, 1, 1], [], []>} : vector<32x1024xbf16>, vector<1024x2048xbf16>, vector<32x2048xf32> -> vector<32x2048xf32>
    %c0_3 = arith.constant 0 : index
    %c0_4 = arith.constant 0 : index
    %3 = vector.load %arg2[%c0_3, %c0_4] : memref<1x2048xf32, #tpu.memory_space<vmem>>, vector<1x2048xf32>
    %4 = vector.broadcast %3 : vector<1x2048xf32> to vector<32x2048xf32>
    %5 = arith.addf %2, %4 : vector<32x2048xf32>
    %cst_5 = arith.constant 0.000000e+00 : f32
    %6 = vector.broadcast %cst_5 : f32 to vector<32x2048xf32>
    %7 = arith.maximumf %5, %6 : vector<32x2048xf32>
    %c0_6 = arith.constant 0 : index
    %c0_7 = arith.constant 0 : index
    %8 = vector.load %arg3[%c0_6, %c0_7] : memref<8x32xf32, #tpu.memory_space<vmem>>, vector<8x32xf32>
    %cst_8 = arith.constant dense<0.000000e+00> : vector<8x2048xf32>
    %9 = tpu.matmul %8, %7, %cst_8 {dimension_numbers = #tpu.dot_dimension_numbers<[1], [0], [0], [1], [0, 0, 1, 1], [], []>} : vector<8x32xf32>, vector<32x2048xf32>, vector<8x2048xf32> -> vector<8x2048xf32>
    %c0_9 = arith.constant 0 : index
    %c0_10 = arith.constant 0 : index
    %10 = vector.load %arg4[%c0_9, %c0_10] : memref<8x2048xf32, #tpu.memory_space<vmem>>, vector<8x2048xf32>
    tpu.vector_store %arg4[%c0_9, %c0_10], %9 {strides = array<i32>} : memref<8x2048xf32, #tpu.memory_space<vmem>>, vector<8x2048xf32>,
    return
  }
}

module attributes {stable_mosaic.version = 11 : i64} {
  func.func @_heads_kernel(%arg0: i32, %arg1: memref<1x8x5120xbf16, #tpu.memory_space<vmem>>, %arg2: memref<1x5120x32xbf16, #tpu.memory_space<vmem>>, %arg3: memref<1x1x32xf32, #tpu.memory_space<vmem>>, %arg4: memref<1x32x32xbf16, #tpu.memory_space<vmem>>, %arg5: memref<1x1x32xf32, #tpu.memory_space<vmem>>, %arg6: memref<1x32x128xbf16, #tpu.memory_space<vmem>>, %arg7: memref<1x1x128xf32, #tpu.memory_space<vmem>>, %arg8: memref<1x8x32xf32, #tpu.memory_space<vmem>>, %arg9: memref<1x8x128xf32, #tpu.memory_space<vmem>>) attributes {dimension_semantics = [#tpu.dimension_semantics<parallel>], iteration_bounds = array<i64: 3>, scalar_prefetch = 0 : i64, scratch_operands = 0 : i64, tpu.core_type = #tpu.core_type<tc>, window_params = [{transform_indices = @transform_0, window_bounds = array<i64: 1, 8, 5120>}, {transform_indices = @transform_1, window_bounds = array<i64: 1, 5120, 32>}, {transform_indices = @transform_2, window_bounds = array<i64: 1, 1, 32>}, {transform_indices = @transform_3, window_bounds = array<i64: 1, 32, 32>}, {transform_indices = @transform_4, window_bounds = array<i64: 1, 1, 32>}, {transform_indices = @transform_5, window_bounds = array<i64: 1, 32, 128>}, {transform_indices = @transform_6, window_bounds = array<i64: 1, 1, 128>}, {transform_indices = @transform_7, window_bounds = array<i64: 1, 8, 32>}, {transform_indices = @transform_8, window_bounds = array<i64: 1, 8, 128>}]} {
    %c0 = arith.constant 0 : index
    %c0_0 = arith.constant 0 : index
    %c0_1 = arith.constant 0 : index
    %0 = vector.load %arg1[%c0, %c0_0, %c0_1] : memref<1x8x5120xbf16, #tpu.memory_space<vmem>>, vector<1x8x5120xbf16>
    %1 = vector.shape_cast %0 : vector<1x8x5120xbf16> to vector<8x5120xbf16>
    %c0_2 = arith.constant 0 : index
    %c0_3 = arith.constant 0 : index
    %c0_4 = arith.constant 0 : index
    %2 = vector.load %arg2[%c0_2, %c0_3, %c0_4] : memref<1x5120x32xbf16, #tpu.memory_space<vmem>>, vector<1x5120x32xbf16>
    %3 = vector.shape_cast %2 : vector<1x5120x32xbf16> to vector<5120x32xbf16>
    %cst = arith.constant dense<0.000000e+00> : vector<8x32xf32>
    %4 = tpu.matmul %1, %3, %cst {dimension_numbers = #tpu.dot_dimension_numbers<[1], [0], [0], [1], [0, 0, 1, 1], [], []>} : vector<8x5120xbf16>, vector<5120x32xbf16>, vector<8x32xf32> -> vector<8x32xf32>
    %c0_5 = arith.constant 0 : index
    %c0_6 = arith.constant 0 : index
    %c0_7 = arith.constant 0 : index
    %5 = vector.load %arg3[%c0_5, %c0_6, %c0_7] : memref<1x1x32xf32, #tpu.memory_space<vmem>>, vector<1x1x32xf32>
    %6 = vector.shape_cast %5 : vector<1x1x32xf32> to vector<1x32xf32>
    %7 = vector.broadcast %6 : vector<1x32xf32> to vector<8x32xf32>
    %8 = arith.addf %4, %7 : vector<8x32xf32>
    %cst_8 = arith.constant 0.000000e+00 : f32
    %9 = vector.broadcast %cst_8 : f32 to vector<8x32xf32>
    %10 = arith.maximumf %8, %9 : vector<8x32xf32>
    %11 = arith.truncf %10 : vector<8x32xf32> to vector<8x32xbf16>
    %c0_9 = arith.constant 0 : index
    %c0_10 = arith.constant 0 : index
    %c0_11 = arith.constant 0 : index
    %12 = vector.load %arg4[%c0_9, %c0_10, %c0_11] : memref<1x32x32xbf16, #tpu.memory_space<vmem>>, vector<1x32x32xbf16>
    %13 = vector.shape_cast %12 : vector<1x32x32xbf16> to vector<32x32xbf16>
    %cst_12 = arith.constant dense<0.000000e+00> : vector<8x32xf32>
    %14 = tpu.matmul %11, %13, %cst_12 {dimension_numbers = #tpu.dot_dimension_numbers<[1], [0], [0], [1], [0, 0, 1, 1], [], []>} : vector<8x32xbf16>, vector<32x32xbf16>, vector<8x32xf32> -> vector<8x32xf32>
    %c0_13 = arith.constant 0 : index
    %c0_14 = arith.constant 0 : index
    %c0_15 = arith.constant 0 : index
    %15 = vector.load %arg5[%c0_13, %c0_14, %c0_15] : memref<1x1x32xf32, #tpu.memory_space<vmem>>, vector<1x1x32xf32>
    %16 = vector.shape_cast %15 : vector<1x1x32xf32> to vector<1x32xf32>
    %17 = vector.broadcast %16 : vector<1x32xf32> to vector<8x32xf32>
    %18 = arith.addf %14, %17 : vector<8x32xf32>
    %cst_16 = arith.constant 0.000000e+00 : f32
    %19 = vector.broadcast %cst_16 : f32 to vector<8x32xf32>
    %20 = arith.maximumf %18, %19 : vector<8x32xf32>
    %21 = arith.truncf %20 : vector<8x32xf32> to vector<8x32xbf16>
    %c0_17 = arith.constant 0 : index
    %c0_18 = arith.constant 0 : index
    %c0_19 = arith.constant 0 : index
    %22 = vector.load %arg6[%c0_17, %c0_18, %c0_19] : memref<1x32x128xbf16, #tpu.memory_space<vmem>>, vector<1x32x128xbf16>
    %23 = vector.shape_cast %22 : vector<1x32x128xbf16> to vector<32x128xbf16>
    %cst_20 = arith.constant dense<0.000000e+00> : vector<8x128xf32>
    %24 = tpu.matmul %21, %23, %cst_20 {dimension_numbers = #tpu.dot_dimension_numbers<[1], [0], [0], [1], [0, 0, 1, 1], [], []>} : vector<8x32xbf16>, vector<32x128xbf16>, vector<8x128xf32> -> vector<8x128xf32>
    %c0_21 = arith.constant 0 : index
    %c0_22 = arith.constant 0 : index
    %c0_23 = arith.constant 0 : index
    %25 = vector.load %arg7[%c0_21, %c0_22, %c0_23] : memref<1x1x128xf32, #tpu.memory_space<vmem>>, vector<1x1x128xf32>
    %26 = vector.shape_cast %25 : vector<1x1x128xf32> to vector<1x128xf32>
    %27 = vector.broadcast %26 : vector<1x128xf32> to vector<8x128xf32>
    %28 = arith.addf %24, %27 : vector<8x128xf32>
    %c0_24 = arith.constant 0 : index
    %c0_25 = arith.constant 0 : index
    %c0_26 = arith.constant 0 : index
    %29 = vector.load %arg8[%c0_24, %c0_25, %c0_26] : memref<1x8x32xf32, #tpu.memory_space<vmem>>, vector<1x8x32xf32>
    %30 = vector.shape_cast %29 : vector<1x8x32xf32> to vector<8x32xf32>
    %31 = vector.shape_cast %20 : vector<8x32xf32> to vector<1x8x32xf32>
    tpu.vector_store %arg8[%c0_24, %c0_25, %c0_26], %31 {strides = array<i32>} : memref<1x8x32xf32, #tpu.memory_space<vmem>>, vector<1x8x32xf32>,
    %32 = arith.negf %28 : vector<8x128xf32>
    %33 = math.exp %32 : vector<8x128xf32>
    %cst_27 = arith.constant 1.000000e+00 : f32
    %34 = vector.broadcast %cst_27 : f32 to vector<8x128xf32>
    %35 = arith.addf %34, %33 : vector<8x128xf32>
    %36 = arith.divf %34, %35 : vector<8x128xf32>
    %c0_28 = arith.constant 0 : index
    %c0_29 = arith.constant 0 : index
    %c0_30 = arith.constant 0 : index
    %37 = vector.load %arg9[%c0_28, %c0_29, %c0_30] : memref<1x8x128xf32, #tpu.memory_space<vmem>>, vector<1x8x128xf32>
    %38 = vector.shape_cast %37 : vector<1x8x128xf32> to vector<8x128xf32>
    %39 = vector.shape_cast %36 : vector<8x128xf32> to vector<1x8x128xf32>
    tpu.vector_store %arg9[%c0_28, %c0_29, %c0_30], %39 {strides = array<i32>} : memref<1x8x128xf32, #tpu.memory_space<vmem>>, vector<1x8x128xf32>,
    return
  }
  func.func @transform_0(%arg0: i32) -> (i32, i32, i32) {
    %c0_i32 = arith.constant 0 : i32
    %c0_i32_0 = arith.constant 0 : i32
    %c0_i32_1 = arith.constant 0 : i32
    return %arg0, %c0_i32, %c0_i32_0 : i32, i32, i32
  }
  func.func @transform_1(%arg0: i32) -> (i32, i32, i32) {
    %c0_i32 = arith.constant 0 : i32
    %c0_i32_0 = arith.constant 0 : i32
    %c0_i32_1 = arith.constant 0 : i32
    return %arg0, %c0_i32, %c0_i32_0 : i32, i32, i32
  }
  func.func @transform_2(%arg0: i32) -> (i32, i32, i32) {
    %c0_i32 = arith.constant 0 : i32
    %c0_i32_0 = arith.constant 0 : i32
    %c0_i32_1 = arith.constant 0 : i32
    return %arg0, %c0_i32, %c0_i32_0 : i32, i32, i32
  }
  func.func @transform_3(%arg0: i32) -> (i32, i32, i32) {
    %c0_i32 = arith.constant 0 : i32
    %c0_i32_0 = arith.constant 0 : i32
    %c0_i32_1 = arith.constant 0 : i32
    return %arg0, %c0_i32, %c0_i32_0 : i32, i32, i32
  }
  func.func @transform_4(%arg0: i32) -> (i32, i32, i32) {
    %c0_i32 = arith.constant 0 : i32
    %c0_i32_0 = arith.constant 0 : i32
    %c0_i32_1 = arith.constant 0 : i32
    return %arg0, %c0_i32, %c0_i32_0 : i32, i32, i32
  }
  func.func @transform_5(%arg0: i32) -> (i32, i32, i32) {
    %c0_i32 = arith.constant 0 : i32
    %c0_i32_0 = arith.constant 0 : i32
    %c0_i32_1 = arith.constant 0 : i32
    return %arg0, %c0_i32, %c0_i32_0 : i32, i32, i32
  }
  func.func @transform_6(%arg0: i32) -> (i32, i32, i32) {
    %c0_i32 = arith.constant 0 : i32
    %c0_i32_0 = arith.constant 0 : i32
    %c0_i32_1 = arith.constant 0 : i32
    return %arg0, %c0_i32, %c0_i32_0 : i32, i32, i32
  }
  func.func @transform_7(%arg0: i32) -> (i32, i32, i32) {
    %c0_i32 = arith.constant 0 : i32
    %c0_i32_0 = arith.constant 0 : i32
    %c0_i32_1 = arith.constant 0 : i32
    return %arg0, %c0_i32, %c0_i32_0 : i32, i32, i32
  }
  func.func @transform_8(%arg0: i32) -> (i32, i32, i32) {
    %c0_i32 = arith.constant 0 : i32
    %c0_i32_0 = arith.constant 0 : i32
    %c0_i32_1 = arith.constant 0 : i32
    return %arg0, %c0_i32, %c0_i32_0 : i32, i32, i32
  }
}

module attributes {stable_mosaic.version = 11 : i64} {
  func.func @_verb_lang_kernel(%arg0: memref<8x96xbf16, #tpu.memory_space<vmem>>, %arg1: memref<96x10xbf16, #tpu.memory_space<vmem>>, %arg2: memref<1x10xf32, #tpu.memory_space<vmem>>, %arg3: memref<8x15xf32, #tpu.memory_space<vmem>>, %arg4: memref<15x64xf32, #tpu.memory_space<vmem>>, %arg5: memref<8x10xf32, #tpu.memory_space<vmem>>, %arg6: memref<8x64xf32, #tpu.memory_space<vmem>>) attributes {dimension_semantics = [], scalar_prefetch = 0 : i64, scratch_operands = 0 : i64, tpu.core_type = #tpu.core_type<tc>} {
    %c0 = arith.constant 0 : index
    %c0_0 = arith.constant 0 : index
    %0 = vector.load %arg0[%c0, %c0_0] : memref<8x96xbf16, #tpu.memory_space<vmem>>, vector<8x96xbf16>
    %c0_1 = arith.constant 0 : index
    %c0_2 = arith.constant 0 : index
    %1 = vector.load %arg1[%c0_1, %c0_2] : memref<96x10xbf16, #tpu.memory_space<vmem>>, vector<96x10xbf16>
    %cst = arith.constant dense<0.000000e+00> : vector<8x10xf32>
    %2 = tpu.matmul %0, %1, %cst {dimension_numbers = #tpu.dot_dimension_numbers<[1], [0], [0], [1], [0, 0, 1, 1], [], []>} : vector<8x96xbf16>, vector<96x10xbf16>, vector<8x10xf32> -> vector<8x10xf32>
    %c0_3 = arith.constant 0 : index
    %c0_4 = arith.constant 0 : index
    %3 = vector.load %arg2[%c0_3, %c0_4] : memref<1x10xf32, #tpu.memory_space<vmem>>, vector<1x10xf32>
    %4 = vector.broadcast %3 : vector<1x10xf32> to vector<8x10xf32>
    %5 = arith.addf %2, %4 : vector<8x10xf32>
    %6 = arith.negf %5 : vector<8x10xf32>
    %7 = math.exp %6 : vector<8x10xf32>
    %cst_5 = arith.constant 1.000000e+00 : f32
    %8 = vector.broadcast %cst_5 : f32 to vector<8x10xf32>
    %9 = arith.addf %8, %7 : vector<8x10xf32>
    %10 = arith.divf %8, %9 : vector<8x10xf32>
    %c0_6 = arith.constant 0 : index
    %c0_7 = arith.constant 0 : index
    %11 = vector.load %arg5[%c0_6, %c0_7] : memref<8x10xf32, #tpu.memory_space<vmem>>, vector<8x10xf32>
    tpu.vector_store %arg5[%c0_6, %c0_7], %10 {strides = array<i32>} : memref<8x10xf32, #tpu.memory_space<vmem>>, vector<8x10xf32>,
    %c0_8 = arith.constant 0 : index
    %c0_9 = arith.constant 0 : index
    %12 = vector.load %arg3[%c0_8, %c0_9] : memref<8x15xf32, #tpu.memory_space<vmem>>, vector<8x15xf32>
    %c0_10 = arith.constant 0 : index
    %c0_11 = arith.constant 0 : index
    %13 = vector.load %arg4[%c0_10, %c0_11] : memref<15x64xf32, #tpu.memory_space<vmem>>, vector<15x64xf32>
    %cst_12 = arith.constant dense<0.000000e+00> : vector<8x64xf32>
    %14 = tpu.matmul %12, %13, %cst_12 {dimension_numbers = #tpu.dot_dimension_numbers<[1], [0], [0], [1], [0, 0, 1, 1], [], []>} : vector<8x15xf32>, vector<15x64xf32>, vector<8x64xf32> -> vector<8x64xf32>
    %c0_13 = arith.constant 0 : index
    %c0_14 = arith.constant 0 : index
    %15 = vector.load %arg6[%c0_13, %c0_14] : memref<8x64xf32, #tpu.memory_space<vmem>>, vector<8x64xf32>
    tpu.vector_store %arg6[%c0_13, %c0_14], %14 {strides = array<i32>} : memref<8x64xf32, #tpu.memory_space<vmem>>, vector<8x64xf32>,
    return
  }
}

</mosaic_0001>

<bundles_post_ra>
// kernel: pasta_res50_forward.4
= control target key start
LH: loop header
LB: loop body
LE: loop exit
PB: predicated region body
PF: predicated region fallthrough
CT: control target
= control target key end

     0   :  { %9 = vsyncpa [#allocation3], 0  ;;  %s4322_s0 = inlined_call_operand.vmem [shape: bf16[16,768], index: 0, kind: input, shape index: {}]   ;;  %s4323_s1 = inlined_call_operand.hbm [shape: bf16[768,1024], index: 1, kind: input, shape index: {}]   ;;  %s4324_s2 = inlined_call_operand.hbm [shape: f32[1,1024], index: 2, kind: input, shape index: {}]   ;;  %s4325_s3 = inlined_call_operand.vmem [shape: f32[48,16], index: 3, kind: input, shape index: {}]   ;;  %s4326_s4 = inlined_call_operand.vmem [shape: f32[48,1024], index: 4, kind: output, shape index: {}]  }
   0x1   :  { %10 = vsyncpa [#allocation5], 0  ;;  %s3918_s15 = smov [#allocation2]  }
   0x2   :  { %s18_s16 = sshll.u32 %s3918_s15, 4  ;;  %s19_s16 = int_to_ptr.vmem [resolvable:$true] %s18_s16 }
   0x3   :  { %s3882_s17 = scalar_lea.vmem %s19_s16, 49152  ;;  %p3887_p1 = scmp.lt.s32.totalorder %s19_s16, %s19_s16 }
   0x4   :  { %p3883_p0 = scmp.ne.s32.totalorder %s19_s16, %s3882_s17  ;;  %p3888_p2 = scmp.lt.s32.totalorder %s3882_s17, %s3882_s17 }
   0x6   :  { %p3889_p3 = por %p3888_p2, %p3887_p1 }
   0x8   :  { %p3890_p4 = pnand %p3889_p3, %p3883_p0 }
   0xa   :  { %3893 = shalt.err (!%p3890_p4)
}
   0xb   :  { %s3919_s18 = smov 512   ;;  %s3920_s19 = smov 32  }
   0xc   :  { %24 = dma.hbm_to_vmem [thread:$0]  %s4323_s1, 49152, %s19_s16, [#allocation3], %s3919_s18, %s3919_s18, %s3920_s19  }
   0xd   :  { %s3921_s22 = smov [#allocation4]  }
   0xe   :  { %s31_s23 = sshll.u32 %s3921_s22, 4  ;;  %s32_s23 = int_to_ptr.vmem [resolvable:$true] %s31_s23 }
   0xf   :  { %s3902_s24 = scalar_lea.vmem %s32_s23, 128  ;;  %p3907_p6 = scmp.lt.s32.totalorder %s32_s23, %s32_s23 }
  0x10   :  { %p3903_p5 = scmp.ne.s32.totalorder %s32_s23, %s3902_s24  ;;  %p3908_p7 = scmp.lt.s32.totalorder %s3902_s24, %s3902_s24 }
  0x12   :  { %p3909_p8 = por %p3908_p7, %p3907_p6 }
  0x14   :  { %p3910_p9 = pnand %p3909_p8, %p3903_p5 }
  0x16   :  { %3913 = shalt.err (!%p3910_p9)
}
  0x17   :  { %34 = dma.hbm_to_vmem [thread:$0]  %s4324_s2, 128, %s32_s23, [#allocation5]  }
  0x18   :  { %3914 = dma.done.wait [#allocation3], 49152  }
  0x19   :  { %3915 = vsyncadd [#allocation3], 4294918144 }
  0x1a   :  { %3916 = dma.done.wait [#allocation5], 128  }
  0x1b   :  { %3917 = vsyncadd [#allocation5], 4294967168  ;;  %v105_v0 = vld [vmem:[#allocation2 + $0x1c0] sm:$0xff]  ;;  %vm2963_vm0 = vcmask 130048  }
  0x1c   :  { %v109_v1 = vld [vmem:[#allocation2 + $0x1e0] sm:$0xff] }
  0x1d   :  { %v233_v2 = vld [vmem:[#allocation2 + $0x5c0] sm:$0xff]  ;;  %v3503_v3 = vcombine.high %v105_v0, %v109_v1  ;;  %v3502_v5 = vcombine.low %v105_v0, %v109_v1 }
  0x1e   :  { %v237_v4 = vld [vmem:[#allocation2 + $0x5e0] sm:$0xff] }
  0x1f   :  { %v97_v6 = vld [vmem:[#allocation2 + $0x180] sm:$0xff]  ;;  %v3631_v8 = vcombine.high %v233_v2, %v237_v4  ;;  %v3630_v9 = vcombine.low %v233_v2, %v237_v4  ;;  %2425 = vmatprep.subr.bf16.mxu0 %v3503_v3 }
  0x20   :  { %v101_v7 = vld [vmem:[#allocation2 + $0x1a0] sm:$0xff]  ;;  %2426 = vmatpush1.bf16.msra.mxu0 %v3502_v5 }
  0x21   :  { %v3495_v10 = vcombine.high %v97_v6, %v101_v7  ;;  %v225_v11 = vld [vmem:[#allocation2 + $0x580] sm:$0xff]  ;;  %2468 = vmatprep.subr.bf16.mxu1 %v3631_v8  ;;  %v3494_v18 = vcombine.low %v97_v6, %v101_v7 }
  0x22   :  { %v229_v12 = vld [vmem:[#allocation2 + $0x5a0] sm:$0xff]  ;;  %2469 = vmatpush1.bf16.msra.mxu1 %v3630_v9 }
  0x23   :  { %v89_v13 = vld [vmem:[#allocation2 + $0x140] sm:$0xff]  ;;  %v3623_v14 = vcombine.high %v225_v11, %v229_v12  ;;  %2427 = vmatprep.subr.bf16.mxu0 %v3495_v10  ;;  %v3622_v19 = vcombine.low %v225_v11, %v229_v12 }
  0x24   :  { %v93_v15 = vld [vmem:[#allocation2 + $0x160] sm:$0xff]  ;;  %2428 = vmatpush1.bf16.msra.mxu0 %v3494_v18 }
  0x25   :  { %v217_v16 = vld [vmem:[#allocation2 + $0x540] sm:$0xff]  ;;  %v3487_v20 = vcombine.high %v89_v13, %v93_v15  ;;  %2470 = vmatprep.subr.bf16.mxu1 %v3623_v14  ;;  %v3486_v26 = vcombine.low %v89_v13, %v93_v15 }
  0x26   :  { %v221_v17 = vld [vmem:[#allocation2 + $0x560] sm:$0xff]  ;;  %2471 = vmatpush1.bf16.msra.mxu1 %v3622_v19 }
  0x27   :  { %v3615_v21 = vcombine.high %v217_v16, %v221_v17  ;;  %v81_v22 = vld [vmem:[#allocation2 + $0x100] sm:$0xff]  ;;  %2429 = vmatprep.subr.bf16.mxu0 %v3487_v20  ;;  %v3614_v27 = vcombine.low %v217_v16, %v221_v17 }
  0x28   :  { %v85_v23 = vld [vmem:[#allocation2 + $0x120] sm:$0xff]  ;;  %2430 = vmatpush1.bf16.msra.mxu0 %v3486_v26 }
  0x29   :  { %v209_v24 = vld [vmem:[#allocation2 + $0x500] sm:$0xff]  ;;  %v3479_v28 = vcombine.high %v81_v22, %v85_v23  ;;  %2472 = vmatprep.subr.bf16.mxu1 %v3615_v21  ;;  %v3478_v34 = vcombine.low %v81_v22, %v85_v23 }
  0x2a   :  { %v213_v25 = vld [vmem:[#allocation2 + $0x520] sm:$0xff]  ;;  %2473 = vmatpush1.bf16.msra.mxu1 %v3614_v27 }
  0x2b   :  { %v3607_v29 = vcombine.high %v209_v24, %v213_v25  ;;  %v73_v30 = vld [vmem:[#allocation2 + $0xc0] sm:$0xff]  ;;  %2431 = vmatprep.subr.bf16.mxu0 %v3479_v28  ;;  %v3606_v35 = vcombine.low %v209_v24, %v213_v25 }
  0x2c   :  { %v77_v31 = vld [vmem:[#allocation2 + $0xe0] sm:$0xff]  ;;  %2432 = vmatpush1.bf16.msra.mxu0 %v3478_v34 }
  0x2d   :  { %v201_v32 = vld [vmem:[#allocation2 + $0x4c0] sm:$0xff]  ;;  %v3471_v36 = vcombine.high %v73_v30, %v77_v31  ;;  %2474 = vmatprep.subr.bf16.mxu1 %v3607_v29  ;;  %v3470_v42 = vcombine.low %v73_v30, %v77_v31 }
  0x2e   :  { %v205_v33 = vld [vmem:[#allocation2 + $0x4e0] sm:$0xff]  ;;  %2475 = vmatpush1.bf16.msra.mxu1 %v3606_v35 }
  0x2f   :  { %v3599_v37 = vcombine.high %v201_v32, %v205_v33  ;;  %v65_v38 = vld [vmem:[#allocation2 + $0x80] sm:$0xff]  ;;  %2433 = vmatprep.subr.bf16.mxu0 %v3471_v36  ;;  %v3598_v43 = vcombine.low %v201_v32, %v205_v33 }
  0x30   :  { %v69_v39 = vld [vmem:[#allocation2 + $0xa0] sm:$0xff]  ;;  %2434 = vmatpush1.bf16.msra.mxu0 %v3470_v42 }
  0x31   :  { %v193_v40 = vld [vmem:[#allocation2 + $0x480] sm:$0xff]  ;;  %v3463_v44 = vcombine.high %v65_v38, %v69_v39  ;;  %2476 = vmatprep.subr.bf16.mxu1 %v3599_v37  ;;  %v3462_v50 = vcombine.low %v65_v38, %v69_v39 }
  0x32   :  { %v197_v41 = vld [vmem:[#allocation2 + $0x4a0] sm:$0xff]  ;;  %2477 = vmatpush1.bf16.msra.mxu1 %v3598_v43 }
  0x33   :  { %v3591_v45 = vcombine.high %v193_v40, %v197_v41  ;;  %v57_v46 = vld [vmem:[#allocation2 + $0x40] sm:$0xff]  ;;  %2435 = vmatprep.subr.bf16.mxu0 %v3463_v44  ;;  %v3590_v52 = vcombine.low %v193_v40, %v197_v41 }
  0x34   :  { %v61_v47 = vld [vmem:[#allocation2 + $0x60] sm:$0xff]  ;;  %2436 = vmatpush1.bf16.msra.mxu0 %v3462_v50 }
  0x35   :  { %v185_v48 = vld [vmem:[#allocation2 + $0x440] sm:$0xff]  ;;  %v3455_v53 = vcombine.high %v57_v46, %v61_v47  ;;  %2478 = vmatprep.subr.bf16.mxu1 %v3591_v45  ;;  %v3454_v60 = vcombine.low %v57_v46, %v61_v47 }
  0x36   :  { %v189_v49 = vld [vmem:[#allocation2 + $0x460] sm:$0xff]  ;;  %2479 = vmatpush1.bf16.msra.mxu1 %v3590_v52 }
  0x37   :  { %v49_v51 = vld [vmem:[#allocation2] sm:$0xff]  ;;  %v3583_v55 = vcombine.high %v185_v48, %v189_v49  ;;  %2437 = vmatprep.subr.bf16.mxu0 %v3455_v53  ;;  %v3582_v61 = vcombine.low %v185_v48, %v189_v49 }
  0x38   :  { %v53_v54 = vld [vmem:[#allocation2 + $0x20] sm:$0xff]  ;;  %2438 = vmatpush1.bf16.msra.mxu0 %v3454_v60 }
  0x39   :  { %v3957_v56 = vld [vmem:[%s4322_s0 + $0x4] ss:$24 sps:$4 sm:$0xff]   ;;  %v3447_v62 = vcombine.high %v49_v51, %v53_v54  ;;  %2480 = vmatprep.subr.bf16.mxu1 %v3583_v55  ;;  %v3446_v4 = vcombine.low %v49_v51, %v53_v54 }
  0x3a   :  { %v177_v57 = vld [vmem:[#allocation2 + $0x400] sm:$0xff]  ;;  %2457 = vmatprep.mubr.bf16.mxu0 %v3957_v56  ;;  %2481 = vmatpush1.bf16.msra.mxu1 %v3582_v61 }
  0x3b   :  { %v181_v58 = vld [vmem:[#allocation2 + $0x420] sm:$0xff]  ;;  %2439 = vmatprep.subr.bf16.mxu0 %v3447_v62 }
  0x3c   :  { %v3962_v59 = vld [vmem:[%s4322_s0 + $0xc] ss:$24 sps:$4 sm:$0xff]   ;;  %v3575_v63 = vcombine.high %v177_v57, %v181_v58  ;;  %v3574_v5 = vcombine.low %v177_v57, %v181_v58  ;;  %2440 = vmatpush1.bf16.msra.mxu0 %v3446_v4 }
  0x3d   :  { %v169_v0 = vld [vmem:[#allocation2 + $0x3c0] sm:$0xff]  ;;  %2500 = vmatprep.mubr.bf16.mxu1 %v3962_v59  ;;  %v106_v4 = vld [vmem:[#allocation2 + $0x1c8] sm:$0xff] }
  0x3e   :  { %v173_v1 = vld [vmem:[#allocation2 + $0x3e0] sm:$0xff]  ;;  %2482 = vmatprep.subr.bf16.mxu1 %v3575_v63 }
  0x3f   :  { %v297_v2 = vld [vmem:[#allocation2 + $0x7c0] sm:$0xff]  ;;  %v3567_v6 = vcombine.high %v169_v0, %v173_v1  ;;  %v3566_v12 = vcombine.low %v169_v0, %v173_v1  ;;  %2483 = vmatpush1.bf16.msra.mxu1 %v3574_v5  ;;  %v110_v5 = vld [vmem:[#allocation2 + $0x1e8] sm:$0xff] }
  0x40   :  { %v301_v3 = vld [vmem:[#allocation2 + $0x7e0] sm:$0xff] }
  0x41   :  { %v3695_v7 = vcombine.high %v297_v2, %v301_v3  ;;  %v161_v8 = vld [vmem:[#allocation2 + $0x380] sm:$0xff]  ;;  %2441 = vmatprep.subr.bf16.mxu0 %v3567_v6  ;;  %v3694_v13 = vcombine.low %v297_v2, %v301_v3 }
  0x42   :  { %v165_v9 = vld [vmem:[#allocation2 + $0x3a0] sm:$0xff]  ;;  %2442 = vmatpush2.bf16.msra.mxu0 %v3566_v12 }
  0x43   :  { %v289_v10 = vld [vmem:[#allocation2 + $0x780] sm:$0xff]  ;;  %v3559_v14 = vcombine.high %v161_v8, %v165_v9  ;;  %2484 = vmatprep.subr.bf16.mxu1 %v3695_v7  ;;  %v3558_v20 = vcombine.low %v161_v8, %v165_v9  ;;  %v3505_v9 = vcombine.high %v106_v4, %v110_v5 }
  0x44   :  { %v293_v11 = vld [vmem:[#allocation2 + $0x7a0] sm:$0xff]  ;;  %2485 = vmatpush2.bf16.msra.mxu1 %v3694_v13  ;;  %v98_v13 = vld [vmem:[#allocation2 + $0x188] sm:$0xff] }
  0x45   :  { %v3687_v15 = vcombine.high %v289_v10, %v293_v11  ;;  %v153_v16 = vld [vmem:[#allocation2 + $0x340] sm:$0xff]  ;;  %2443 = vmatprep.subr.bf16.mxu0 %v3559_v14  ;;  %v3686_v21 = vcombine.low %v289_v10, %v293_v11  ;;  %v102_v14 = vld [vmem:[#allocation2 + $0x1a8] sm:$0xff] }
  0x46   :  { %v157_v17 = vld [vmem:[#allocation2 + $0x360] sm:$0xff]  ;;  %2444 = vmatpush2.bf16.msra.mxu0 %v3558_v20 }
  0x47   :  { %v281_v18 = vld [vmem:[#allocation2 + $0x740] sm:$0xff]  ;;  %v3551_v22 = vcombine.high %v153_v16, %v157_v17  ;;  %2486 = vmatprep.subr.bf16.mxu1 %v3687_v15  ;;  %v3550_v28 = vcombine.low %v153_v16, %v157_v17  ;;  %v3504_v17 = vcombine.low %v106_v4, %v110_v5 }
  0x48   :  { %v285_v19 = vld [vmem:[#allocation2 + $0x760] sm:$0xff]  ;;  %2487 = vmatpush2.bf16.msra.mxu1 %v3686_v21 }
  0x49   :  { %v3679_v23 = vcombine.high %v281_v18, %v285_v19  ;;  %v145_v24 = vld [vmem:[#allocation2 + $0x300] sm:$0xff]  ;;  %2445 = vmatprep.subr.bf16.mxu0 %v3551_v22  ;;  %v3678_v29 = vcombine.low %v281_v18, %v285_v19  ;;  %v3497_v19 = vcombine.high %v98_v13, %v102_v14  ;;  %v3979_v22 = vld [vmem:[%s4322_s0 + $0x14] ss:$24 sps:$4 sm:$0xff]  }
  0x4a   :  { %v149_v25 = vld [vmem:[#allocation2 + $0x320] sm:$0xff]  ;;  %2446 = vmatpush2.bf16.msra.mxu0 %v3550_v28 }
  0x4b   :  { %v273_v26 = vld [vmem:[#allocation2 + $0x700] sm:$0xff]  ;;  %v3543_v30 = vcombine.high %v145_v24, %v149_v25  ;;  %2488 = vmatprep.subr.bf16.mxu1 %v3679_v23  ;;  %v3542_v36 = vcombine.low %v145_v24, %v149_v25  ;;  %v90_v23 = vld [vmem:[#allocation2 + $0x148] sm:$0xff] }
  0x4c   :  { %v277_v27 = vld [vmem:[#allocation2 + $0x720] sm:$0xff]  ;;  %2489 = vmatpush2.bf16.msra.mxu1 %v3678_v29  ;;  %v94_v24 = vld [vmem:[#allocation2 + $0x168] sm:$0xff] }
  0x4d   :  { %v3671_v31 = vcombine.high %v273_v26, %v277_v27  ;;  %v137_v32 = vld [vmem:[#allocation2 + $0x2c0] sm:$0xff]  ;;  %2447 = vmatprep.subr.bf16.mxu0 %v3543_v30  ;;  %v3670_v37 = vcombine.low %v273_v26, %v277_v27  ;;  %v3496_v26 = vcombine.low %v98_v13, %v102_v14  ;;  %v3489_v28 = vcombine.high %v90_v23, %v94_v24 }
  0x4e   :  { %v141_v33 = vld [vmem:[#allocation2 + $0x2e0] sm:$0xff]  ;;  %2448 = vmatpush2.bf16.msra.mxu0 %v3542_v36 }
  0x4f   :  { %v265_v34 = vld [vmem:[#allocation2 + $0x6c0] sm:$0xff]  ;;  %v3535_v38 = vcombine.high %v137_v32, %v141_v33  ;;  %2490 = vmatprep.subr.bf16.mxu1 %v3671_v31  ;;  %v3534_v44 = vcombine.low %v137_v32, %v141_v33  ;;  %v82_v31 = vld [vmem:[#allocation2 + $0x108] sm:$0xff] }
  0x50   :  { %v269_v35 = vld [vmem:[#allocation2 + $0x6e0] sm:$0xff]  ;;  %2491 = vmatpush2.bf16.msra.mxu1 %v3670_v37  ;;  %v86_v32 = vld [vmem:[#allocation2 + $0x128] sm:$0xff] }
  0x51   :  { %v3663_v39 = vcombine.high %v265_v34, %v269_v35  ;;  %v129_v40 = vld [vmem:[#allocation2 + $0x280] sm:$0xff]  ;;  %2449 = vmatprep.subr.bf16.mxu0 %v3535_v38  ;;  %v3662_v45 = vcombine.low %v265_v34, %v269_v35  ;;  %v3488_v34 = vcombine.low %v90_v23, %v94_v24  ;;  %v3481_v36 = vcombine.high %v82_v31, %v86_v32 }
  0x52   :  { %v133_v41 = vld [vmem:[#allocation2 + $0x2a0] sm:$0xff]  ;;  %2450 = vmatpush2.bf16.msra.mxu0 %v3534_v44 }
  0x53   :  { %v257_v42 = vld [vmem:[#allocation2 + $0x680] sm:$0xff]  ;;  %v3527_v46 = vcombine.high %v129_v40, %v133_v41  ;;  %2492 = vmatprep.subr.bf16.mxu1 %v3663_v39  ;;  %v3526_v52 = vcombine.low %v129_v40, %v133_v41  ;;  %v74_v39 = vld [vmem:[#allocation2 + $0xc8] sm:$0xff] }
  0x54   :  { %v261_v43 = vld [vmem:[#allocation2 + $0x6a0] sm:$0xff]  ;;  %2493 = vmatpush2.bf16.msra.mxu1 %v3662_v45  ;;  %v78_v40 = vld [vmem:[#allocation2 + $0xe8] sm:$0xff] }
  0x55   :  { %v3655_v47 = vcombine.high %v257_v42, %v261_v43  ;;  %v121_v48 = vld [vmem:[#allocation2 + $0x240] sm:$0xff]  ;;  %2451 = vmatprep.subr.bf16.mxu0 %v3527_v46  ;;  %v3654_v53 = vcombine.low %v257_v42, %v261_v43  ;;  %v3480_v42 = vcombine.low %v82_v31, %v86_v32  ;;  %v66_v46 = vld [vmem:[#allocation2 + $0x88] sm:$0xff] }
  0x56   :  { %v125_v49 = vld [vmem:[#allocation2 + $0x260] sm:$0xff]  ;;  %2452 = vmatpush2.bf16.msra.mxu0 %v3526_v52 }
  0x57   :  { %v249_v50 = vld [vmem:[#allocation2 + $0x640] sm:$0xff]  ;;  %v3519_v54 = vcombine.high %v121_v48, %v125_v49  ;;  %2494 = vmatprep.subr.bf16.mxu1 %v3655_v47  ;;  %v3518_v62 = vcombine.low %v121_v48, %v125_v49  ;;  %v70_v47 = vld [vmem:[#allocation2 + $0xa8] sm:$0xff]  ;;  %v3472_v49 = vcombine.low %v74_v39, %v78_v40 }
  0x58   :  { %v253_v51 = vld [vmem:[#allocation2 + $0x660] sm:$0xff]  ;;  %2495 = vmatpush2.bf16.msra.mxu1 %v3654_v53 }
  0x59   :  { %v3647_v55 = vcombine.high %v249_v50, %v253_v51  ;;  %v113_v57 = vld [vmem:[#allocation2 + $0x200] sm:$0xff]  ;;  %2453 = vmatprep.subr.bf16.mxu0 %v3519_v54  ;;  %v3646_v63 = vcombine.low %v249_v50, %v253_v51  ;;  %v3465_v51 = vcombine.high %v66_v46, %v70_v47  ;;  %v58_v54 = vld [vmem:[#allocation2 + $0x48] sm:$0xff] }
  0x5a   :  { %v117_v58 = vld [vmem:[#allocation2 + $0x220] sm:$0xff]  ;;  %2454 = vmatpush2.bf16.msra.mxu0 %v3518_v62 }
  0x5b   :  { %v241_v60 = vld [vmem:[#allocation2 + $0x600] sm:$0xff]  ;;  %v3511_v0 = vcombine.high %v113_v57, %v117_v58  ;;  %2496 = vmatprep.subr.bf16.mxu1 %v3647_v55  ;;  %v3510_v6 = vcombine.low %v113_v57, %v117_v58  ;;  %v62_v55 = vld [vmem:[#allocation2 + $0x68] sm:$0xff]  ;;  %v3464_v58 = vcombine.low %v66_v46, %v70_v47 }
  0x5c   :  { %v245_v61 = vld [vmem:[#allocation2 + $0x620] sm:$0xff]  ;;  %2497 = vmatpush2.bf16.msra.mxu1 %v3646_v63 }
  0x5d   :  { %v3639_v1 = vcombine.high %v241_v60, %v245_v61  ;;  %v361_v2 = vld [vmem:[#allocation2 + $0x9c0] sm:$0xff]  ;;  %2455 = vmatprep.subr.bf16.mxu0 %v3511_v0  ;;  %v3638_v7 = vcombine.low %v241_v60, %v245_v61  ;;  %v3457_v61 = vcombine.high %v58_v54, %v62_v55  ;;  %v50_v0 = vld [vmem:[#allocation2 + $0x8] sm:$0xff] }
  0x5e   :  { %v365_v3 = vld [vmem:[#allocation2 + $0x9e0] sm:$0xff]  ;;  %2456 = vmatpush2.bf16.msra.mxu0 %v3510_v6 }
  0x5f   :  { %v3759_v8 = vcombine.high %v361_v2, %v365_v3  ;;  %2498 = vmatprep.subr.bf16.mxu1 %v3639_v1  ;;  %v353_v10 = vld [vmem:[#allocation2 + $0x980] sm:$0xff]  ;;  %v3758_v16 = vcombine.low %v361_v2, %v365_v3  ;;  %v54_v1 = vld [vmem:[#allocation2 + $0x28] sm:$0xff]  ;;  %v3456_v3 = vcombine.low %v58_v54, %v62_v55 }
  0x60   :  { %v357_v11 = vld [vmem:[#allocation2 + $0x9a0] sm:$0xff]  ;;  %2499 = vmatpush2.bf16.msra.mxu1 %v3638_v7  ;;  %v3449_v5 = vcombine.high %v50_v0, %v54_v1 }
  0x61   :  { %v3969_v12 = vld [vmem:[%s4322_s0] ss:$24 sps:$4 sm:$0xff]   ;;  %2511 = vmatprep.subr.bf16.mxu0 %v3759_v8  ;;  %v3751_v18 = vcombine.high %v353_v10, %v357_v11  ;;  %2554 = vmatprep.subr.bf16.mxu1 %v3505_v9  ;;  %v3750_v25 = vcombine.low %v353_v10, %v357_v11  ;;  %v170_v8 = vld [vmem:[#allocation2 + $0x3c8] sm:$0xff]  ;;  %v3448_v11 = vcombine.low %v50_v0, %v54_v1 }
  0x62   :  { %v3974_v15 = vld [vmem:[%s4322_s0 + $0x8] ss:$24 sps:$4 sm:$0xff]   ;;  %2458 = vmatmul.mubr.bf16.vlgmr.msra.gmra.mxu0 %v3969_v12 }
  0x63   :  { %v345_v20 = vld [vmem:[#allocation2 + $0x940] sm:$0xff]  ;;  %2501 = vmatmul.mubr.bf16.vlgmr.msra.gmra.mxu1 %v3974_v15  ;;  %2512 = vmatpush1.bf16.msra.mxu0 %v3758_v16  ;;  %v174_v9 = vld [vmem:[#allocation2 + $0x3e8] sm:$0xff] }
  0x64   :  { %v349_v21 = vld [vmem:[#allocation2 + $0x960] sm:$0xff]  ;;  %2555 = vmatpush1.bf16.msra.mxu1 %v3504_v17  ;;  %2513 = vmatprep.subr.bf16.mxu0 %v3751_v18  ;;  %v3569_v14 = vcombine.high %v170_v8, %v174_v9  ;;  %v162_v18 = vld [vmem:[#allocation2 + $0x388] sm:$0xff] }
  0x65   :  { %v3743_v27 = vcombine.high %v345_v20, %v349_v21  ;;  %2556 = vmatprep.subr.bf16.mxu1 %v3497_v19  ;;  %v337_v29 = vld [vmem:[#allocation2 + $0x900] sm:$0xff]  ;;  %2543 = vmatprep.mubr.bf16.mxu0 %v3979_v22  ;;  %v3742_v33 = vcombine.low %v345_v20, %v349_v21  ;;  %v166_v19 = vld [vmem:[#allocation2 + $0x3a8] sm:$0xff]  ;;  %v3568_v21 = vcombine.low %v170_v8, %v174_v9 }
  0x66   :  { %v341_v30 = vld [vmem:[#allocation2 + $0x920] sm:$0xff]  ;;  %2586 = vmatprep.mubr.bf16.mxu1 %v3957_v56  ;;  %v3473_v56 = vcombine.high %v74_v39, %v78_v40  ;;  %v3561_v24 = vcombine.high %v162_v18, %v166_v19 }
  0x67   :  { %2514 = vmatpush1.bf16.msra.mxu0 %v3750_v25  ;;  %v3735_v35 = vcombine.high %v337_v29, %v341_v30  ;;  %v329_v37 = vld [vmem:[#allocation2 + $0x8c0] sm:$0xff]  ;;  %v3734_v41 = vcombine.low %v337_v29, %v341_v30  ;;  %v3560_v30 = vcombine.low %v162_v18, %v166_v19 }
  0x68   :  { %2557 = vmatpush1.bf16.msra.mxu1 %v3496_v26  ;;  %2515 = vmatprep.subr.bf16.mxu0 %v3743_v27  ;;  %v333_v38 = vld [vmem:[#allocation2 + $0x8e0] sm:$0xff]  ;;  %v154_v27 = vld [vmem:[#allocation2 + $0x348] sm:$0xff] }
  0x69   :  { %2558 = vmatprep.subr.bf16.mxu1 %v3489_v28  ;;  %v3727_v43 = vcombine.high %v329_v37, %v333_v38  ;;  %v321_v44 = vld [vmem:[#allocation2 + $0x880] sm:$0xff]  ;;  %v3726_v48 = vcombine.low %v329_v37, %v333_v38  ;;  %v158_v28 = vld [vmem:[#allocation2 + $0x368] sm:$0xff] }
  0x6a   :  { %v325_v45 = vld [vmem:[#allocation2 + $0x8a0] sm:$0xff]  ;;  %v3553_v32 = vcombine.high %v154_v27, %v158_v28  ;;  %v3552_v38 = vcombine.low %v154_v27, %v158_v28 }
  0x6b   :  { %2516 = vmatpush1.bf16.msra.mxu0 %v3742_v33  ;;  %v3719_v50 = vcombine.high %v321_v44, %v325_v45  ;;  %v313_v52 = vld [vmem:[#allocation2 + $0x840] sm:$0xff]  ;;  %v3718_v57 = vcombine.low %v321_v44, %v325_v45 }
  0x6c   :  { %2559 = vmatpush1.bf16.msra.mxu1 %v3488_v34  ;;  %2517 = vmatprep.subr.bf16.mxu0 %v3735_v35  ;;  %v317_v53 = vld [vmem:[#allocation2 + $0x860] sm:$0xff]  ;;  %v146_v35 = vld [vmem:[#allocation2 + $0x308] sm:$0xff] }
  0x6d   :  { %2560 = vmatprep.subr.bf16.mxu1 %v3481_v36  ;;  %v3711_v60 = vcombine.high %v313_v52, %v317_v53  ;;  %v305_v62 = vld [vmem:[#allocation2 + $0x800] sm:$0xff]  ;;  %v3710_v2 = vcombine.low %v313_v52, %v317_v53  ;;  %v150_v36 = vld [vmem:[#allocation2 + $0x328] sm:$0xff] }
  0x6e   :  { %v309_v63 = vld [vmem:[#allocation2 + $0x820] sm:$0xff]  ;;  %v3545_v40 = vcombine.high %v146_v35, %v150_v36  ;;  %v3544_v45 = vcombine.low %v146_v35, %v150_v36 }
  0x6f   :  { %2518 = vmatpush1.bf16.msra.mxu0 %v3734_v41  ;;  %v3703_v4 = vcombine.high %v305_v62, %v309_v63  ;;  %v425_v6 = vld [vmem:[#allocation2 + $0xbc0] sm:$0xff]  ;;  %v3702_v10 = vcombine.low %v305_v62, %v309_v63 }
  0x70   :  { %2561 = vmatpush1.bf16.msra.mxu1 %v3480_v42  ;;  %2519 = vmatprep.subr.bf16.mxu0 %v3727_v43  ;;  %v429_v7 = vld [vmem:[#allocation2 + $0xbe0] sm:$0xff]  ;;  %v138_v43 = vld [vmem:[#allocation2 + $0x2c8] sm:$0xff] }
  0x71   :  { %2562 = vmatprep.subr.bf16.mxu1 %v3473_v56  ;;  %v3823_v13 = vcombine.high %v425_v6, %v429_v7  ;;  %v417_v16 = vld [vmem:[#allocation2 + $0xb80] sm:$0xff]  ;;  %v3822_v20 = vcombine.low %v425_v6, %v429_v7  ;;  %v142_v56 = vld [vmem:[#allocation2 + $0x2e8] sm:$0xff] }
  0x72   :  { %v421_v17 = vld [vmem:[#allocation2 + $0xba0] sm:$0xff]  ;;  %v3537_v47 = vcombine.high %v138_v43, %v142_v56  ;;  %v3536_v53 = vcombine.low %v138_v43, %v142_v56 }
  0x73   :  { %2520 = vmatpush1.bf16.msra.mxu0 %v3726_v48  ;;  %v3815_v23 = vcombine.high %v417_v16, %v421_v17  ;;  %v409_v25 = vld [vmem:[#allocation2 + $0xb40] sm:$0xff]  ;;  %v3814_v29 = vcombine.low %v417_v16, %v421_v17 }
  0x74   :  { %2563 = vmatpush1.bf16.msra.mxu1 %v3472_v49  ;;  %2521 = vmatprep.subr.bf16.mxu0 %v3719_v50  ;;  %v413_v26 = vld [vmem:[#allocation2 + $0xb60] sm:$0xff]  ;;  %v130_v50 = vld [vmem:[#allocation2 + $0x288] sm:$0xff] }
  0x75   :  { %2564 = vmatprep.subr.bf16.mxu1 %v3465_v51  ;;  %v3807_v31 = vcombine.high %v409_v25, %v413_v26  ;;  %v401_v33 = vld [vmem:[#allocation2 + $0xb00] sm:$0xff]  ;;  %v3806_v37 = vcombine.low %v409_v25, %v413_v26  ;;  %v134_v51 = vld [vmem:[#allocation2 + $0x2a8] sm:$0xff] }
  0x76   :  { %v405_v34 = vld [vmem:[#allocation2 + $0xb20] sm:$0xff]  ;;  %v3529_v55 = vcombine.high %v130_v50, %v134_v51  ;;  %v3528_v63 = vcombine.low %v130_v50, %v134_v51  ;;  %v358_v25 = vld [vmem:[#allocation2 + $0x9a8] sm:$0xff] }
  0x77   :  { %2522 = vmatpush1.bf16.msra.mxu0 %v3718_v57  ;;  %v3799_v39 = vcombine.high %v401_v33, %v405_v34  ;;  %v393_v41 = vld [vmem:[#allocation2 + $0xac0] sm:$0xff]  ;;  %v3798_v44 = vcombine.low %v401_v33, %v405_v34  ;;  %v350_v33 = vld [vmem:[#allocation2 + $0x968] sm:$0xff] }
  0x78   :  { %2565 = vmatpush1.bf16.msra.mxu1 %v3464_v58  ;;  %2523 = vmatprep.subr.bf16.mxu0 %v3711_v60  ;;  %v397_v42 = vld [vmem:[#allocation2 + $0xae0] sm:$0xff]  ;;  %v122_v60 = vld [vmem:[#allocation2 + $0x248] sm:$0xff] }
  0x79   :  { %2566 = vmatprep.subr.bf16.mxu1 %v3457_v61  ;;  %v3791_v46 = vcombine.high %v393_v41, %v397_v42  ;;  %v385_v48 = vld [vmem:[#allocation2 + $0xa80] sm:$0xff]  ;;  %v3790_v52 = vcombine.low %v393_v41, %v397_v42  ;;  %v126_v61 = vld [vmem:[#allocation2 + $0x268] sm:$0xff] }
  0x7a   :  { %v389_v49 = vld [vmem:[#allocation2 + $0xaa0] sm:$0xff]  ;;  %v3521_v1 = vcombine.high %v122_v60, %v126_v61  ;;  %v3520_v7 = vcombine.low %v122_v60, %v126_v61  ;;  %v342_v41 = vld [vmem:[#allocation2 + $0x928] sm:$0xff] }
  0x7b   :  { %2524 = vmatpush1.bf16.msra.mxu0 %v3710_v2  ;;  %v3783_v54 = vcombine.high %v385_v48, %v389_v49  ;;  %v377_v57 = vld [vmem:[#allocation2 + $0xa40] sm:$0xff]  ;;  %v3782_v62 = vcombine.low %v385_v48, %v389_v49  ;;  %v194_v50 = vld [vmem:[#allocation2 + $0x488] sm:$0xff] }
  0x7c   :  { %2567 = vmatpush1.bf16.msra.mxu1 %v3456_v3  ;;  %2525 = vmatprep.subr.bf16.mxu0 %v3703_v4  ;;  %v381_v58 = vld [vmem:[#allocation2 + $0xa60] sm:$0xff]  ;;  %v114_v4 = vld [vmem:[#allocation2 + $0x208] sm:$0xff] }
  0x7d   :  { %2568 = vmatprep.subr.bf16.mxu1 %v3449_v5  ;;  %v3775_v0 = vcombine.high %v377_v57, %v381_v58  ;;  %v369_v2 = vld [vmem:[#allocation2 + $0xa00] sm:$0xff]  ;;  %v118_v5 = vld [vmem:[#allocation2 + $0x228] sm:$0xff]  ;;  %v3774_v6 = vcombine.low %v377_v57, %v381_v58 }
  0x7e   :  { %v373_v3 = vld [vmem:[#allocation2 + $0xa20] sm:$0xff]  ;;  %v3513_v9 = vcombine.high %v114_v4, %v118_v5  ;;  %v3512_v17 = vcombine.low %v114_v4, %v118_v5  ;;  %v198_v51 = vld [vmem:[#allocation2 + $0x4a8] sm:$0xff] }
  0x7f   :  { %2526 = vmatpush1.bf16.msra.mxu0 %v3702_v10  ;;  %v3767_v8 = vcombine.high %v369_v2, %v373_v3  ;;  %v234_v10 = vld [vmem:[#allocation2 + $0x5c8] sm:$0xff]  ;;  %v3766_v16 = vcombine.low %v369_v2, %v373_v3  ;;  %v3593_v57 = vcombine.high %v194_v50, %v198_v51 }
  0x80   :  { %2569 = vmatpush1.bf16.msra.mxu1 %v3448_v11  ;;  %2527 = vmatprep.subr.bf16.mxu0 %v3823_v13  ;;  %v238_v11 = vld [vmem:[#allocation2 + $0x5e8] sm:$0xff] }
  0x81   :  { %2570 = vmatprep.subr.bf16.mxu1 %v3569_v14  ;;  %v362_v13 = vld [vmem:[#allocation2 + $0x9c8] sm:$0xff]  ;;  %v3633_v18 = vcombine.high %v234_v10, %v238_v11  ;;  %v3632_v26 = vcombine.low %v234_v10, %v238_v11 }
  0x82   :  { %v366_v14 = vld [vmem:[#allocation2 + $0x9e8] sm:$0xff] }
  0x83   :  { %2528 = vmatpush2.bf16.msra.mxu0 %v3822_v20  ;;  %v3761_v19 = vcombine.high %v362_v13, %v366_v14  ;;  %v226_v20 = vld [vmem:[#allocation2 + $0x588] sm:$0xff]  ;;  %v3760_v27 = vcombine.low %v362_v13, %v366_v14 }
  0x84   :  { %2571 = vmatpush2.bf16.msra.mxu1 %v3568_v21  ;;  %2529 = vmatprep.subr.bf16.mxu0 %v3815_v23  ;;  %v230_v21 = vld [vmem:[#allocation2 + $0x5a8] sm:$0xff] }
  0x85   :  { %2572 = vmatprep.subr.bf16.mxu1 %v3561_v24  ;;  %v3988_v23 = vld [vmem:[%s4322_s0 + $0x10] ss:$24 sps:$4 sm:$0xff]   ;;  %v3625_v28 = vcombine.high %v226_v20, %v230_v21  ;;  %v3624_v34 = vcombine.low %v226_v20, %v230_v21 }
  0x86   :  { %v354_v24 = vld [vmem:[#allocation2 + $0x988] sm:$0xff] }
  0x87   :  { %2530 = vmatpush2.bf16.msra.mxu0 %v3814_v29  ;;  %v3753_v29 = vcombine.high %v354_v24, %v358_v25  ;;  %v3752_v35 = vcombine.low %v354_v24, %v358_v25  ;;  %v186_v60 = vld [vmem:[#allocation2 + $0x448] sm:$0xff] }
  0x88   :  { %2573 = vmatpush2.bf16.msra.mxu1 %v3560_v30  ;;  %2531 = vmatprep.subr.bf16.mxu0 %v3807_v31  ;;  %v218_v30 = vld [vmem:[#allocation2 + $0x548] sm:$0xff] }
  0x89   :  { %2574 = vmatprep.subr.bf16.mxu1 %v3553_v32  ;;  %v222_v31 = vld [vmem:[#allocation2 + $0x568] sm:$0xff] }
  0x8a   :  { %v346_v32 = vld [vmem:[#allocation2 + $0x948] sm:$0xff]  ;;  %v3617_v36 = vcombine.high %v218_v30, %v222_v31  ;;  %v3616_v42 = vcombine.low %v218_v30, %v222_v31 }
  0x8b   :  { %2532 = vmatpush2.bf16.msra.mxu0 %v3806_v37  ;;  %v3745_v37 = vcombine.high %v346_v32, %v350_v33  ;;  %v190_v61 = vld [vmem:[#allocation2 + $0x468] sm:$0xff] }
  0x8c   :  { %2575 = vmatpush2.bf16.msra.mxu1 %v3552_v38  ;;  %2533 = vmatprep.subr.bf16.mxu0 %v3799_v39  ;;  %v210_v38 = vld [vmem:[#allocation2 + $0x508] sm:$0xff]  ;;  %v3585_v2 = vcombine.high %v186_v60, %v190_v61 }
  0x8d   :  { %2576 = vmatprep.subr.bf16.mxu1 %v3545_v40  ;;  %v214_v39 = vld [vmem:[#allocation2 + $0x528] sm:$0xff] }
  0x8e   :  { %v338_v40 = vld [vmem:[#allocation2 + $0x908] sm:$0xff]  ;;  %v3609_v43 = vcombine.high %v210_v38, %v214_v39  ;;  %v3608_v48 = vcombine.low %v210_v38, %v214_v39 }
  0x8f   :  { %2534 = vmatpush2.bf16.msra.mxu0 %v3798_v44  ;;  %v3737_v56 = vcombine.high %v338_v40, %v342_v41  ;;  %v202_v44 = vld [vmem:[#allocation2 + $0x4c8] sm:$0xff] }
  0x90   :  { %2577 = vmatpush2.bf16.msra.mxu1 %v3544_v45  ;;  %2535 = vmatprep.subr.bf16.mxu0 %v3791_v46  ;;  %v206_v45 = vld [vmem:[#allocation2 + $0x4e8] sm:$0xff] }
  0x91   :  { %2578 = vmatprep.subr.bf16.mxu1 %v3537_v47  ;;  %v330_v46 = vld [vmem:[#allocation2 + $0x8c8] sm:$0xff]  ;;  %v3601_v49 = vcombine.high %v202_v44, %v206_v45 }
  0x92   :  { %v334_v47 = vld [vmem:[#allocation2 + $0x8e8] sm:$0xff] }
  0x93   :  { %2536 = vmatpush2.bf16.msra.mxu0 %v3790_v52  ;;  %v322_v52 = vld [vmem:[#allocation2 + $0x888] sm:$0xff] }
  0x94   :  { %2579 = vmatpush2.bf16.msra.mxu1 %v3536_v53  ;;  %2537 = vmatprep.subr.bf16.mxu0 %v3783_v54  ;;  %v326_v53 = vld [vmem:[#allocation2 + $0x8a8] sm:$0xff]  ;;  %v3600_v54 = vcombine.low %v202_v44, %v206_v45 }
  0x95   :  { %2580 = vmatprep.subr.bf16.mxu1 %v3529_v55  ;;  %v3728_v55 = vcombine.low %v330_v46, %v334_v47  ;;  %v3721_v58 = vcombine.high %v322_v52, %v326_v53  ;;  %v178_v4 = vld [vmem:[#allocation2 + $0x408] sm:$0xff] }
  0x96   :  { %v182_v5 = vld [vmem:[#allocation2 + $0x428] sm:$0xff] }
  0x97   :  { %2538 = vmatpush2.bf16.msra.mxu0 %v3782_v62  ;;  %v314_v62 = vld [vmem:[#allocation2 + $0x848] sm:$0xff]  ;;  %v3577_v10 = vcombine.high %v178_v4, %v182_v5 }
  0x98   :  { %2581 = vmatpush2.bf16.msra.mxu1 %v3528_v63  ;;  %2539 = vmatprep.subr.bf16.mxu0 %v3775_v0  ;;  %v318_v63 = vld [vmem:[#allocation2 + $0x868] sm:$0xff]  ;;  %v3592_v0 = vcombine.low %v194_v50, %v198_v51 }
  0x99   :  { %2582 = vmatprep.subr.bf16.mxu1 %v3521_v1  ;;  %v3720_v1 = vcombine.low %v322_v52, %v326_v53  ;;  %v3713_v3 = vcombine.high %v314_v62, %v318_v63  ;;  %v298_v13 = vld [vmem:[#allocation2 + $0x7c8] sm:$0xff] }
  0x9a   :  { %v302_v14 = vld [vmem:[#allocation2 + $0x7e8] sm:$0xff] }
  0x9b   :  { %2540 = vmatpush2.bf16.msra.mxu0 %v3774_v6  ;;  %v306_v6 = vld [vmem:[#allocation2 + $0x808] sm:$0xff]  ;;  %v3697_v20 = vcombine.high %v298_v13, %v302_v14 }
  0x9c   :  { %2583 = vmatpush2.bf16.msra.mxu1 %v3520_v7  ;;  %2541 = vmatprep.subr.bf16.mxu0 %v3767_v8  ;;  %v310_v7 = vld [vmem:[#allocation2 + $0x828] sm:$0xff]  ;;  %v3584_v8 = vcombine.low %v186_v60, %v190_v61 }
  0x9d   :  { %2584 = vmatprep.subr.bf16.mxu1 %v3513_v9  ;;  %v3712_v9 = vcombine.low %v314_v62, %v318_v63  ;;  %v3705_v11 = vcombine.high %v306_v6, %v310_v7  ;;  %v290_v24 = vld [vmem:[#allocation2 + $0x788] sm:$0xff] }
  0x9e   :  { %v294_v25 = vld [vmem:[#allocation2 + $0x7a8] sm:$0xff] }
  0x9f   :  { %2542 = vmatpush2.bf16.msra.mxu0 %v3766_v16  ;;  %v426_v16 = vld [vmem:[#allocation2 + $0xbc8] sm:$0xff]  ;;  %v3689_v30 = vcombine.high %v290_v24, %v294_v25 }
  0xa0   :  { %2585 = vmatpush2.bf16.msra.mxu1 %v3512_v17  ;;  %2597 = vmatprep.subr.bf16.mxu0 %v3633_v18  ;;  %v430_v17 = vld [vmem:[#allocation2 + $0xbe8] sm:$0xff]  ;;  %v3576_v18 = vcombine.low %v178_v4, %v182_v5 }
  0xa1   :  { %2640 = vmatprep.subr.bf16.mxu1 %v3761_v19  ;;  %v3704_v19 = vcombine.low %v306_v6, %v310_v7  ;;  %v3825_v21 = vcombine.high %v426_v16, %v430_v17  ;;  %v258_v52 = vld [vmem:[#allocation2 + $0x688] sm:$0xff] }
  0xa2   :  { %2544 = vmatmul.mubr.bf16.vlgmr.msra.gmra.mxu0 %v3988_v23  ;;  %v262_v53 = vld [vmem:[#allocation2 + $0x6a8] sm:$0xff] }
  0xa3   :  { %2587 = vmatmul.mubr.bf16.vlgmr.msra.gmra.mxu1 %v3969_v12  ;;  %2598 = vmatpush1.bf16.msra.mxu0 %v3632_v26  ;;  %v3744_v12 = vcombine.low %v346_v32, %v350_v33  ;;  %v418_v26 = vld [vmem:[#allocation2 + $0xb88] sm:$0xff]  ;;  %v3657_v60 = vcombine.high %v258_v52, %v262_v53 }
  0xa4   :  { %2641 = vmatpush1.bf16.msra.mxu1 %v3760_v27  ;;  %2599 = vmatprep.subr.bf16.mxu0 %v3625_v28  ;;  %v422_v27 = vld [vmem:[#allocation2 + $0xba8] sm:$0xff]  ;;  %v3696_v28 = vcombine.low %v298_v13, %v302_v14 }
  0xa5   :  { %2642 = vmatprep.subr.bf16.mxu1 %v3753_v29  ;;  %2629 = vmatprep.mubr.bf16.mxu0 %v3962_v59  ;;  %v3736_v59 = vcombine.low %v338_v40, %v342_v41  ;;  %v3824_v29 = vcombine.low %v426_v16, %v430_v17  ;;  %v3817_v31 = vcombine.high %v418_v26, %v422_v27  ;;  %v282_v32 = vld [vmem:[#allocation2 + $0x748] sm:$0xff]  ;;  %v107_v16 = vld [vmem:[#allocation2 + $0x1d0] sm:$0xff] }
  0xa6   :  { %2672 = vmatprep.mubr.bf16.mxu1 %v3979_v22  ;;  %v3729_v22 = vcombine.high %v330_v46, %v334_v47  ;;  %v286_v33 = vld [vmem:[#allocation2 + $0x768] sm:$0xff]  ;;  %v111_v17 = vld [vmem:[#allocation2 + $0x1f0] sm:$0xff] }
  0xa7   :  { %2600 = vmatpush1.bf16.msra.mxu0 %v3624_v34  ;;  %v410_v34 = vld [vmem:[#allocation2 + $0xb48] sm:$0xff]  ;;  %v3681_v38 = vcombine.high %v282_v32, %v286_v33 }
  0xa8   :  { %2643 = vmatpush1.bf16.msra.mxu1 %v3752_v35  ;;  %2601 = vmatprep.subr.bf16.mxu0 %v3617_v36  ;;  %v414_v35 = vld [vmem:[#allocation2 + $0xb68] sm:$0xff]  ;;  %v3688_v36 = vcombine.low %v290_v24, %v294_v25  ;;  %v3507_v24 = vcombine.high %v107_v16, %v111_v17 }
  0xa9   :  { %2644 = vmatprep.subr.bf16.mxu1 %v3745_v37  ;;  %v3816_v37 = vcombine.low %v418_v26, %v422_v27  ;;  %v3809_v39 = vcombine.high %v410_v34, %v414_v35  ;;  %v274_v40 = vld [vmem:[#allocation2 + $0x708] sm:$0xff]  ;;  %v99_v26 = vld [vmem:[#allocation2 + $0x190] sm:$0xff] }
  0xaa   :  { %v278_v41 = vld [vmem:[#allocation2 + $0x728] sm:$0xff]  ;;  %v103_v27 = vld [vmem:[#allocation2 + $0x1b0] sm:$0xff] }
  0xab   :  { %2602 = vmatpush1.bf16.msra.mxu0 %v3616_v42  ;;  %v402_v42 = vld [vmem:[#allocation2 + $0xb08] sm:$0xff]  ;;  %v3673_v44 = vcombine.high %v274_v40, %v278_v41 }
  0xac   :  { %2645 = vmatpush1.bf16.msra.mxu1 %v3744_v12  ;;  %2603 = vmatprep.subr.bf16.mxu0 %v3609_v43  ;;  %v406_v12 = vld [vmem:[#allocation2 + $0xb28] sm:$0xff]  ;;  %v3680_v43 = vcombine.low %v282_v32, %v286_v33  ;;  %v3499_v32 = vcombine.high %v99_v26, %v103_v27 }
  0xad   :  { %2646 = vmatprep.subr.bf16.mxu1 %v3737_v56  ;;  %v3808_v56 = vcombine.low %v410_v34, %v414_v35  ;;  %v3801_v45 = vcombine.high %v402_v42, %v406_v12  ;;  %v266_v46 = vld [vmem:[#allocation2 + $0x6c8] sm:$0xff]  ;;  %v91_v34 = vld [vmem:[#allocation2 + $0x150] sm:$0xff] }
  0xae   :  { %v270_v47 = vld [vmem:[#allocation2 + $0x6e8] sm:$0xff]  ;;  %v95_v35 = vld [vmem:[#allocation2 + $0x170] sm:$0xff] }
  0xaf   :  { %2604 = vmatpush1.bf16.msra.mxu0 %v3608_v48  ;;  %v394_v48 = vld [vmem:[#allocation2 + $0xac8] sm:$0xff]  ;;  %v3665_v50 = vcombine.high %v266_v46, %v270_v47 }
  0xb0   :  { %2647 = vmatpush1.bf16.msra.mxu1 %v3736_v59  ;;  %2605 = vmatprep.subr.bf16.mxu0 %v3601_v49  ;;  %v398_v59 = vld [vmem:[#allocation2 + $0xae8] sm:$0xff]  ;;  %v3672_v49 = vcombine.low %v274_v40, %v278_v41  ;;  %v3491_v40 = vcombine.high %v91_v34, %v95_v35 }
  0xb1   :  { %2648 = vmatprep.subr.bf16.mxu1 %v3729_v22  ;;  %v3800_v22 = vcombine.low %v402_v42, %v406_v12  ;;  %v3793_v51 = vcombine.high %v394_v48, %v398_v59  ;;  %v250_v62 = vld [vmem:[#allocation2 + $0x648] sm:$0xff]  ;;  %v83_v42 = vld [vmem:[#allocation2 + $0x110] sm:$0xff] }
  0xb2   :  { %v254_v63 = vld [vmem:[#allocation2 + $0x668] sm:$0xff]  ;;  %v87_v12 = vld [vmem:[#allocation2 + $0x130] sm:$0xff] }
  0xb3   :  { %2606 = vmatpush1.bf16.msra.mxu0 %v3600_v54  ;;  %v386_v54 = vld [vmem:[#allocation2 + $0xa88] sm:$0xff]  ;;  %v3649_v4 = vcombine.high %v250_v62, %v254_v63 }
  0xb4   :  { %2649 = vmatpush1.bf16.msra.mxu1 %v3728_v55  ;;  %2607 = vmatprep.subr.bf16.mxu0 %v3593_v57  ;;  %v390_v55 = vld [vmem:[#allocation2 + $0xaa8] sm:$0xff]  ;;  %v3664_v57 = vcombine.low %v266_v46, %v270_v47  ;;  %v3483_v46 = vcombine.high %v83_v42, %v87_v12 }
  0xb5   :  { %2650 = vmatprep.subr.bf16.mxu1 %v3721_v58  ;;  %v3792_v58 = vcombine.low %v394_v48, %v398_v59  ;;  %v3785_v61 = vcombine.high %v386_v54, %v390_v55  ;;  %v242_v6 = vld [vmem:[#allocation2 + $0x608] sm:$0xff]  ;;  %v75_v48 = vld [vmem:[#allocation2 + $0xd0] sm:$0xff] }
  0xb6   :  { %v246_v7 = vld [vmem:[#allocation2 + $0x628] sm:$0xff]  ;;  %v79_v59 = vld [vmem:[#allocation2 + $0xf0] sm:$0xff] }
  0xb7   :  { %2608 = vmatpush1.bf16.msra.mxu0 %v3592_v0  ;;  %v378_v0 = vld [vmem:[#allocation2 + $0xa48] sm:$0xff]  ;;  %v3641_v13 = vcombine.high %v242_v6, %v246_v7 }
  0xb8   :  { %2651 = vmatpush1.bf16.msra.mxu1 %v3720_v1  ;;  %2609 = vmatprep.subr.bf16.mxu0 %v3585_v2  ;;  %v382_v1 = vld [vmem:[#allocation2 + $0xa68] sm:$0xff]  ;;  %v3656_v2 = vcombine.low %v258_v52, %v262_v53  ;;  %v3475_v52 = vcombine.high %v75_v48, %v79_v59 }
  0xb9   :  { %2652 = vmatprep.subr.bf16.mxu1 %v3713_v3  ;;  %v3784_v3 = vcombine.low %v386_v54, %v390_v55  ;;  %v3777_v5 = vcombine.high %v378_v0, %v382_v1  ;;  %v67_v54 = vld [vmem:[#allocation2 + $0x90] sm:$0xff] }
  0xba   :  { %v71_v55 = vld [vmem:[#allocation2 + $0xb0] sm:$0xff] }
  0xbb   :  { %2610 = vmatpush1.bf16.msra.mxu0 %v3584_v8  ;;  %v370_v8 = vld [vmem:[#allocation2 + $0xa08] sm:$0xff] }
  0xbc   :  { %2653 = vmatpush1.bf16.msra.mxu1 %v3712_v9  ;;  %2611 = vmatprep.subr.bf16.mxu0 %v3577_v10  ;;  %v374_v9 = vld [vmem:[#allocation2 + $0xa28] sm:$0xff]  ;;  %v3648_v10 = vcombine.low %v250_v62, %v254_v63  ;;  %v3467_v62 = vcombine.high %v67_v54, %v71_v55 }
  0xbd   :  { %2654 = vmatprep.subr.bf16.mxu1 %v3705_v11  ;;  %v3776_v11 = vcombine.low %v378_v0, %v382_v1  ;;  %v3769_v14 = vcombine.high %v370_v8, %v374_v9  ;;  %v59_v0 = vld [vmem:[#allocation2 + $0x50] sm:$0xff] }
  0xbe   :  { %v63_v1 = vld [vmem:[#allocation2 + $0x70] sm:$0xff] }
  0xbf   :  { %2612 = vmatpush1.bf16.msra.mxu0 %v3576_v18  ;;  %v235_v18 = vld [vmem:[#allocation2 + $0x5d0] sm:$0xff] }
  0xc0   :  { %2655 = vmatpush1.bf16.msra.mxu1 %v3704_v19  ;;  %2613 = vmatprep.subr.bf16.mxu0 %v3697_v20  ;;  %v239_v19 = vld [vmem:[#allocation2 + $0x5f0] sm:$0xff]  ;;  %v3640_v20 = vcombine.low %v242_v6, %v246_v7  ;;  %v3459_v6 = vcombine.high %v59_v0, %v63_v1 }
  0xc1   :  { %2656 = vmatprep.subr.bf16.mxu1 %v3825_v21  ;;  %v3768_v21 = vcombine.low %v370_v8, %v374_v9  ;;  %v3635_v25 = vcombine.high %v235_v18, %v239_v19  ;;  %v51_v8 = vld [vmem:[#allocation2 + $0x10] sm:$0xff] }
  0xc2   :  { %v55_v9 = vld [vmem:[#allocation2 + $0x30] sm:$0xff] }
  0xc3   :  { %2614 = vmatpush2.bf16.msra.mxu0 %v3696_v28  ;;  %v227_v28 = vld [vmem:[#allocation2 + $0x590] sm:$0xff] }
  0xc4   :  { %2657 = vmatpush2.bf16.msra.mxu1 %v3824_v29  ;;  %2615 = vmatprep.subr.bf16.mxu0 %v3689_v30  ;;  %v231_v29 = vld [vmem:[#allocation2 + $0x5b0] sm:$0xff]  ;;  %v3506_v30 = vcombine.low %v107_v16, %v111_v17  ;;  %v3451_v16 = vcombine.high %v51_v8, %v55_v9 }
  0xc5   :  { %2658 = vmatprep.subr.bf16.mxu1 %v3817_v31  ;;  %v3634_v31 = vcombine.low %v235_v18, %v239_v19  ;;  %v3627_v33 = vcombine.high %v227_v28, %v231_v29  ;;  %v171_v18 = vld [vmem:[#allocation2 + $0x3d0] sm:$0xff] }
  0xc6   :  { %v175_v19 = vld [vmem:[#allocation2 + $0x3f0] sm:$0xff] }
  0xc7   :  { %2616 = vmatpush2.bf16.msra.mxu0 %v3688_v36  ;;  %v219_v36 = vld [vmem:[#allocation2 + $0x550] sm:$0xff] }
  0xc8   :  { %2659 = vmatpush2.bf16.msra.mxu1 %v3816_v37  ;;  %2617 = vmatprep.subr.bf16.mxu0 %v3681_v38  ;;  %v223_v37 = vld [vmem:[#allocation2 + $0x570] sm:$0xff]  ;;  %v3498_v38 = vcombine.low %v99_v26, %v103_v27  ;;  %v3571_v26 = vcombine.high %v171_v18, %v175_v19 }
  0xc9   :  { %2660 = vmatprep.subr.bf16.mxu1 %v3809_v39  ;;  %v3626_v39 = vcombine.low %v227_v28, %v231_v29  ;;  %v3619_v41 = vcombine.high %v219_v36, %v223_v37  ;;  %v163_v28 = vld [vmem:[#allocation2 + $0x390] sm:$0xff] }
  0xca   :  { %v167_v29 = vld [vmem:[#allocation2 + $0x3b0] sm:$0xff] }
  0xcb   :  { %2618 = vmatpush2.bf16.msra.mxu0 %v3680_v43  ;;  %v3999_v43 = vld [vmem:[%s4322_s0 + $0x4] ss:$24 sps:$4 sm:$0xff]  }
  0xcc   :  { %2661 = vmatpush2.bf16.msra.mxu1 %v3808_v56  ;;  %2619 = vmatprep.subr.bf16.mxu0 %v3673_v44  ;;  %v215_v56 = vld [vmem:[#allocation2 + $0x530] sm:$0xff]  ;;  %v3490_v44 = vcombine.low %v91_v34, %v95_v35  ;;  %v3563_v34 = vcombine.high %v163_v28, %v167_v29 }
  0xcd   :  { %2662 = vmatprep.subr.bf16.mxu1 %v3801_v45  ;;  %v3618_v45 = vcombine.low %v219_v36, %v223_v37  ;;  %v155_v36 = vld [vmem:[#allocation2 + $0x350] sm:$0xff] }
  0xce   :  { %v159_v37 = vld [vmem:[#allocation2 + $0x370] sm:$0xff] }
  0xcf   :  { %2620 = vmatpush2.bf16.msra.mxu0 %v3672_v49  ;;  %v203_v49 = vld [vmem:[#allocation2 + $0x4d0] sm:$0xff] }
  0xd0   :  { %2663 = vmatpush2.bf16.msra.mxu1 %v3800_v22  ;;  %2621 = vmatprep.subr.bf16.mxu0 %v3665_v50  ;;  %v207_v22 = vld [vmem:[#allocation2 + $0x4f0] sm:$0xff]  ;;  %v3482_v50 = vcombine.low %v83_v42, %v87_v12  ;;  %v3555_v42 = vcombine.high %v155_v36, %v159_v37 }
  0xd1   :  { %2664 = vmatprep.subr.bf16.mxu1 %v3793_v51  ;;  %v3603_v53 = vcombine.high %v203_v49, %v207_v22 }
  0xd3   :  { %2622 = vmatpush2.bf16.msra.mxu0 %v3664_v57  ;;  %v195_v57 = vld [vmem:[#allocation2 + $0x490] sm:$0xff] }
  0xd4   :  { %2665 = vmatpush2.bf16.msra.mxu1 %v3792_v58  ;;  %2623 = vmatprep.subr.bf16.mxu0 %v3657_v60  ;;  %v199_v58 = vld [vmem:[#allocation2 + $0x4b0] sm:$0xff]  ;;  %v3474_v60 = vcombine.low %v75_v48, %v79_v59 }
  0xd5   :  { %2666 = vmatprep.subr.bf16.mxu1 %v3785_v61  ;;  %v3602_v61 = vcombine.low %v203_v49, %v207_v22  ;;  %v3595_v63 = vcombine.high %v195_v57, %v199_v58  ;;  %v139_v49 = vld [vmem:[#allocation2 + $0x2d0] sm:$0xff] }
  0xd6   :  { %v143_v22 = vld [vmem:[#allocation2 + $0x2f0] sm:$0xff] }
  0xd7   :  { %2624 = vmatpush2.bf16.msra.mxu0 %v3656_v2  ;;  %v187_v2 = vld [vmem:[#allocation2 + $0x450] sm:$0xff] }
  0xd8   :  { %2667 = vmatpush2.bf16.msra.mxu1 %v3784_v3  ;;  %2625 = vmatprep.subr.bf16.mxu0 %v3649_v4  ;;  %v191_v3 = vld [vmem:[#allocation2 + $0x470] sm:$0xff]  ;;  %v3466_v4 = vcombine.low %v67_v54, %v71_v55  ;;  %v3539_v54 = vcombine.high %v139_v49, %v143_v22 }
  0xd9   :  { %2668 = vmatprep.subr.bf16.mxu1 %v3777_v5  ;;  %v3594_v5 = vcombine.low %v195_v57, %v199_v58  ;;  %v3587_v7 = vcombine.high %v187_v2, %v191_v3  ;;  %v131_v57 = vld [vmem:[#allocation2 + $0x290] sm:$0xff] }
  0xda   :  { %v135_v58 = vld [vmem:[#allocation2 + $0x2b0] sm:$0xff] }
  0xdb   :  { %2626 = vmatpush2.bf16.msra.mxu0 %v3648_v10  ;;  %v179_v10 = vld [vmem:[#allocation2 + $0x410] sm:$0xff] }
  0xdc   :  { %2669 = vmatpush2.bf16.msra.mxu1 %v3776_v11  ;;  %2627 = vmatprep.subr.bf16.mxu0 %v3641_v13  ;;  %v183_v11 = vld [vmem:[#allocation2 + $0x430] sm:$0xff]  ;;  %v3458_v13 = vcombine.low %v59_v0, %v63_v1  ;;  %v3531_v0 = vcombine.high %v131_v57, %v135_v58 }
  0xdd   :  { %2670 = vmatprep.subr.bf16.mxu1 %v3769_v14  ;;  %v3586_v14 = vcombine.low %v187_v2, %v191_v3  ;;  %v3579_v17 = vcombine.high %v179_v10, %v183_v11  ;;  %v123_v2 = vld [vmem:[#allocation2 + $0x250] sm:$0xff] }
  0xde   :  { %v127_v3 = vld [vmem:[#allocation2 + $0x270] sm:$0xff] }
  0xdf   :  { %2628 = vmatpush2.bf16.msra.mxu0 %v3640_v20  ;;  %v299_v20 = vld [vmem:[#allocation2 + $0x7d0] sm:$0xff] }
  0xe0   :  { %2671 = vmatpush2.bf16.msra.mxu1 %v3768_v21  ;;  %2683 = vmatprep.subr.bf16.mxu0 %v3507_v24  ;;  %v303_v21 = vld [vmem:[#allocation2 + $0x7f0] sm:$0xff]  ;;  %v3450_v24 = vcombine.low %v51_v8, %v55_v9  ;;  %v3523_v8 = vcombine.high %v123_v2, %v127_v3 }
  0xe1   :  { %2726 = vmatprep.subr.bf16.mxu1 %v3635_v25  ;;  %v3578_v25 = vcombine.low %v179_v10, %v183_v11  ;;  %v3699_v27 = vcombine.high %v299_v20, %v303_v21  ;;  %v115_v10 = vld [vmem:[#allocation2 + $0x210] sm:$0xff] }
  0xe2   :  { %2630 = vmatmul.mubr.bf16.vlgmr.msra.gmra.mxu0 %v3974_v15  ;;  %v211_v15 = vld [vmem:[#allocation2 + $0x510] sm:$0xff] }
  0xe3   :  { %2673 = vmatmul.mubr.bf16.vlgmr.msra.gmra.mxu1 %v3988_v23  ;;  %2684 = vmatpush1.bf16.msra.mxu0 %v3506_v30  ;;  %v4005_v23 = vld [vmem:[%s4322_s0 + $0xc] ss:$24 sps:$4 sm:$0xff]   ;;  %v3611_v47 = vcombine.high %v211_v15, %v215_v56  ;;  %v3610_v51 = vcombine.low %v211_v15, %v215_v56  ;;  %v291_v30 = vld [vmem:[#allocation2 + $0x790] sm:$0xff] }
  0xe4   :  { %2727 = vmatpush1.bf16.msra.mxu1 %v3634_v31  ;;  %2685 = vmatprep.subr.bf16.mxu0 %v3499_v32  ;;  %v295_v31 = vld [vmem:[#allocation2 + $0x7b0] sm:$0xff]  ;;  %v3570_v32 = vcombine.low %v171_v18, %v175_v19 }
  0xe5   :  { %2728 = vmatprep.subr.bf16.mxu1 %v3627_v33  ;;  %2715 = vmatprep.mubr.bf16.mxu0 %v3999_v43  ;;  %v3698_v33 = vcombine.low %v299_v20, %v303_v21  ;;  %v3691_v35 = vcombine.high %v291_v30, %v295_v31  ;;  %v147_v15 = vld [vmem:[#allocation2 + $0x310] sm:$0xff] }
  0xe6   :  { %2758 = vmatprep.mubr.bf16.mxu1 %v4005_v23  ;;  %v151_v56 = vld [vmem:[#allocation2 + $0x330] sm:$0xff] }
  0xe7   :  { %2686 = vmatpush1.bf16.msra.mxu0 %v3498_v38  ;;  %v283_v38 = vld [vmem:[#allocation2 + $0x750] sm:$0xff]  ;;  %v3547_v48 = vcombine.high %v147_v15, %v151_v56 }
  0xe8   :  { %2729 = vmatpush1.bf16.msra.mxu1 %v3626_v39  ;;  %2687 = vmatprep.subr.bf16.mxu0 %v3491_v40  ;;  %v287_v39 = vld [vmem:[#allocation2 + $0x770] sm:$0xff]  ;;  %v3562_v40 = vcombine.low %v163_v28, %v167_v29 }
  0xe9   :  { %2730 = vmatprep.subr.bf16.mxu1 %v3619_v41  ;;  %v3690_v41 = vcombine.low %v291_v30, %v295_v31  ;;  %v3683_v12 = vcombine.high %v283_v38, %v287_v39  ;;  %v119_v11 = vld [vmem:[#allocation2 + $0x230] sm:$0xff] }
  0xea   :  { %v3515_v18 = vcombine.high %v115_v10, %v119_v11  ;;  %v363_v20 = vld [vmem:[#allocation2 + $0x9d0] sm:$0xff] }
  0xeb   :  { %2688 = vmatpush1.bf16.msra.mxu0 %v3490_v44  ;;  %v275_v44 = vld [vmem:[#allocation2 + $0x710] sm:$0xff] }
  0xec   :  { %2731 = vmatpush1.bf16.msra.mxu1 %v3618_v45  ;;  %2689 = vmatprep.subr.bf16.mxu0 %v3483_v46  ;;  %v279_v45 = vld [vmem:[#allocation2 + $0x730] sm:$0xff]  ;;  %v3554_v46 = vcombine.low %v155_v36, %v159_v37 }
  0xed   :  { %2732 = vmatprep.subr.bf16.mxu1 %v3611_v47  ;;  %v3682_v47 = vcombine.low %v283_v38, %v287_v39  ;;  %v3675_v59 = vcombine.high %v275_v44, %v279_v45  ;;  %v367_v21 = vld [vmem:[#allocation2 + $0x9f0] sm:$0xff] }
  0xee   :  { %v3763_v28 = vcombine.high %v363_v20, %v367_v21  ;;  %v355_v30 = vld [vmem:[#allocation2 + $0x990] sm:$0xff] }
  0xef   :  { %2690 = vmatpush1.bf16.msra.mxu0 %v3482_v50  ;;  %v267_v50 = vld [vmem:[#allocation2 + $0x6d0] sm:$0xff] }
  0xf0   :  { %2733 = vmatpush1.bf16.msra.mxu1 %v3610_v51  ;;  %2691 = vmatprep.subr.bf16.mxu0 %v3475_v52  ;;  %v271_v51 = vld [vmem:[#allocation2 + $0x6f0] sm:$0xff]  ;;  %v3546_v52 = vcombine.low %v147_v15, %v151_v56 }
  0xf1   :  { %2734 = vmatprep.subr.bf16.mxu1 %v3603_v53  ;;  %v3674_v53 = vcombine.low %v275_v44, %v279_v45  ;;  %v3667_v55 = vcombine.high %v267_v50, %v271_v51  ;;  %v359_v31 = vld [vmem:[#allocation2 + $0x9b0] sm:$0xff] }
  0xf2   :  { %v3755_v36 = vcombine.high %v355_v30, %v359_v31  ;;  %v347_v38 = vld [vmem:[#allocation2 + $0x950] sm:$0xff]  ;;  %v3754_v15 = vcombine.low %v355_v30, %v359_v31 }
  0xf3   :  { %2692 = vmatpush1.bf16.msra.mxu0 %v3474_v60  ;;  %v259_v60 = vld [vmem:[#allocation2 + $0x690] sm:$0xff] }
  0xf4   :  { %2735 = vmatpush1.bf16.msra.mxu1 %v3602_v61  ;;  %2693 = vmatprep.subr.bf16.mxu0 %v3467_v62  ;;  %v263_v61 = vld [vmem:[#allocation2 + $0x6b0] sm:$0xff]  ;;  %v3538_v62 = vcombine.low %v139_v49, %v143_v22  ;;  %v88_v49 = vld [vmem:[#allocation2 + $0x138] sm:$0xff] }
  0xf5   :  { %2736 = vmatprep.subr.bf16.mxu1 %v3595_v63  ;;  %v3666_v63 = vcombine.low %v267_v50, %v271_v51  ;;  %v3659_v1 = vcombine.high %v259_v60, %v263_v61  ;;  %v351_v39 = vld [vmem:[#allocation2 + $0x970] sm:$0xff] }
  0xf6   :  { %v3747_v44 = vcombine.high %v347_v38, %v351_v39  ;;  %v3746_v22 = vcombine.low %v347_v38, %v351_v39 }
  0xf7   :  { %2694 = vmatpush1.bf16.msra.mxu0 %v3466_v4  ;;  %v251_v4 = vld [vmem:[#allocation2 + $0x650] sm:$0xff] }
  0xf8   :  { %2737 = vmatpush1.bf16.msra.mxu1 %v3594_v5  ;;  %2695 = vmatprep.subr.bf16.mxu0 %v3459_v6  ;;  %v255_v5 = vld [vmem:[#allocation2 + $0x670] sm:$0xff]  ;;  %v3530_v6 = vcombine.low %v131_v57, %v135_v58  ;;  %v80_v57 = vld [vmem:[#allocation2 + $0xf8] sm:$0xff] }
  0xf9   :  { %2738 = vmatprep.subr.bf16.mxu1 %v3587_v7  ;;  %v3658_v7 = vcombine.low %v259_v60, %v263_v61  ;;  %v3651_v9 = vcombine.high %v251_v4, %v255_v5 }
  0xfb   :  { %2696 = vmatpush1.bf16.msra.mxu0 %v3458_v13  ;;  %v243_v13 = vld [vmem:[#allocation2 + $0x610] sm:$0xff] }
  0xfc   :  { %2739 = vmatpush1.bf16.msra.mxu1 %v3586_v14  ;;  %2697 = vmatprep.subr.bf16.mxu0 %v3451_v16  ;;  %v247_v14 = vld [vmem:[#allocation2 + $0x630] sm:$0xff]  ;;  %v3522_v16 = vcombine.low %v123_v2, %v127_v3 }
  0xfd   :  { %2740 = vmatprep.subr.bf16.mxu1 %v3579_v17  ;;  %v3650_v17 = vcombine.low %v251_v4, %v255_v5  ;;  %v3643_v19 = vcombine.high %v243_v13, %v247_v14 }
  0xff   :  { %2698 = vmatpush1.bf16.msra.mxu0 %v3450_v24  ;;  %v108_v24 = vld [vmem:[#allocation2 + $0x1d8] sm:$0xff] }
 0x100   :  { %2741 = vmatpush1.bf16.msra.mxu1 %v3578_v25  ;;  %2699 = vmatprep.subr.bf16.mxu0 %v3571_v26  ;;  %v112_v25 = vld [vmem:[#allocation2 + $0x1f8] sm:$0xff]  ;;  %v3514_v26 = vcombine.low %v115_v10, %v119_v11 }
 0x101   :  { %2742 = vmatprep.subr.bf16.mxu1 %v3699_v27  ;;  %v3642_v27 = vcombine.low %v243_v13, %v247_v14  ;;  %v3509_v29 = vcombine.high %v108_v24, %v112_v25 }
 0x103   :  { %2700 = vmatpush2.bf16.msra.mxu0 %v3570_v32  ;;  %v100_v32 = vld [vmem:[#allocation2 + $0x198] sm:$0xff] }
 0x104   :  { %2743 = vmatpush2.bf16.msra.mxu1 %v3698_v33  ;;  %2701 = vmatprep.subr.bf16.mxu0 %v3563_v34  ;;  %v104_v33 = vld [vmem:[#allocation2 + $0x1b8] sm:$0xff]  ;;  %v3762_v34 = vcombine.low %v363_v20, %v367_v21 }
 0x105   :  { %2744 = vmatprep.subr.bf16.mxu1 %v3691_v35  ;;  %v3508_v35 = vcombine.low %v108_v24, %v112_v25  ;;  %v3501_v37 = vcombine.high %v100_v32, %v104_v33  ;;  %v3500_v56 = vcombine.low %v100_v32, %v104_v33 }
 0x107   :  { %2702 = vmatpush2.bf16.msra.mxu0 %v3562_v40  ;;  %v4011_v40 = vld [vmem:[%s4322_s0] ss:$24 sps:$4 sm:$0xff]  }
 0x108   :  { %2745 = vmatpush2.bf16.msra.mxu1 %v3690_v41  ;;  %2703 = vmatprep.subr.bf16.mxu0 %v3555_v42  ;;  %v92_v41 = vld [vmem:[#allocation2 + $0x158] sm:$0xff] }
 0x109   :  { %2746 = vmatprep.subr.bf16.mxu1 %v3683_v12  ;;  %v96_v42 = vld [vmem:[#allocation2 + $0x178] sm:$0xff]  ;;  %v4017_v12 = vld [vmem:[%s4322_s0 + $0x8] ss:$24 sps:$4 sm:$0xff]  }
 0x10a   :  { %v3493_v45 = vcombine.high %v92_v41, %v96_v42  ;;  %v3492_v50 = vcombine.low %v92_v41, %v96_v42 }
 0x10b   :  { %2704 = vmatpush2.bf16.msra.mxu0 %v3554_v46  ;;  %v339_v46 = vld [vmem:[#allocation2 + $0x910] sm:$0xff] }
 0x10c   :  { %2747 = vmatpush2.bf16.msra.mxu1 %v3682_v47  ;;  %2705 = vmatprep.subr.bf16.mxu0 %v3547_v48  ;;  %v343_v47 = vld [vmem:[#allocation2 + $0x930] sm:$0xff] }
 0x10d   :  { %2748 = vmatprep.subr.bf16.mxu1 %v3675_v59  ;;  %v4023_v48 = vld [vmem:[%s4322_s0 + $0x14] ss:$24 sps:$4 sm:$0xff]   ;;  %v84_v59 = vld [vmem:[#allocation2 + $0x118] sm:$0xff]  ;;  %v3739_v51 = vcombine.high %v339_v46, %v343_v47  ;;  %v3738_v58 = vcombine.low %v339_v46, %v343_v47 }
 0x10e   :  { %v3484_v60 = vcombine.low %v84_v59, %v88_v49 }
 0x10f   :  { %2706 = vmatpush2.bf16.msra.mxu0 %v3546_v52  ;;  %v3485_v52 = vcombine.high %v84_v59, %v88_v49 }
 0x110   :  { %2749 = vmatpush2.bf16.msra.mxu1 %v3674_v53  ;;  %2707 = vmatprep.subr.bf16.mxu0 %v3539_v54  ;;  %v331_v53 = vld [vmem:[#allocation2 + $0x8d0] sm:$0xff] }
 0x111   :  { %2750 = vmatprep.subr.bf16.mxu1 %v3667_v55  ;;  %v335_v54 = vld [vmem:[#allocation2 + $0x8f0] sm:$0xff]  ;;  %v76_v55 = vld [vmem:[#allocation2 + $0xd8] sm:$0xff] }
 0x112   :  { %v3731_v61 = vcombine.high %v331_v53, %v335_v54  ;;  %v3730_v2 = vcombine.low %v331_v53, %v335_v54  ;;  %v3476_v3 = vcombine.low %v76_v55, %v80_v57 }
 0x113   :  { %2708 = vmatpush2.bf16.msra.mxu0 %v3538_v62  ;;  %v323_v62 = vld [vmem:[#allocation2 + $0x890] sm:$0xff] }
 0x114   :  { %2751 = vmatpush2.bf16.msra.mxu1 %v3666_v63  ;;  %2709 = vmatprep.subr.bf16.mxu0 %v3531_v0  ;;  %v327_v63 = vld [vmem:[#allocation2 + $0x8b0] sm:$0xff]  ;;  %v68_v0 = vld [vmem:[#allocation2 + $0x98] sm:$0xff] }
 0x115   :  { %2752 = vmatprep.subr.bf16.mxu1 %v3659_v1  ;;  %v72_v1 = vld [vmem:[#allocation2 + $0xb8] sm:$0xff]  ;;  %v3723_v4 = vcombine.high %v323_v62, %v327_v63  ;;  %v3722_v10 = vcombine.low %v323_v62, %v327_v63 }
 0x116   :  { %v3469_v5 = vcombine.high %v68_v0, %v72_v1  ;;  %v3468_v11 = vcombine.low %v68_v0, %v72_v1 }
 0x117   :  { %2710 = vmatpush2.bf16.msra.mxu0 %v3530_v6  ;;  %v315_v6 = vld [vmem:[#allocation2 + $0x850] sm:$0xff] }
 0x118   :  { %2753 = vmatpush2.bf16.msra.mxu1 %v3658_v7  ;;  %2711 = vmatprep.subr.bf16.mxu0 %v3523_v8  ;;  %v319_v7 = vld [vmem:[#allocation2 + $0x870] sm:$0xff]  ;;  %v60_v8 = vld [vmem:[#allocation2 + $0x58] sm:$0xff] }
 0x119   :  { %2754 = vmatprep.subr.bf16.mxu1 %v3651_v9  ;;  %v64_v9 = vld [vmem:[#allocation2 + $0x78] sm:$0xff]  ;;  %v3715_v13 = vcombine.high %v315_v6, %v319_v7  ;;  %v3714_v20 = vcombine.low %v315_v6, %v319_v7 }
 0x11a   :  { %v3461_v14 = vcombine.high %v60_v8, %v64_v9  ;;  %v3460_v21 = vcombine.low %v60_v8, %v64_v9 }
 0x11b   :  { %2712 = vmatpush2.bf16.msra.mxu0 %v3522_v16  ;;  %v307_v16 = vld [vmem:[#allocation2 + $0x810] sm:$0xff] }
 0x11c   :  { %2755 = vmatpush2.bf16.msra.mxu1 %v3650_v17  ;;  %2713 = vmatprep.subr.bf16.mxu0 %v3515_v18  ;;  %v311_v17 = vld [vmem:[#allocation2 + $0x830] sm:$0xff]  ;;  %v52_v18 = vld [vmem:[#allocation2 + $0x18] sm:$0xff] }
 0x11d   :  { %2756 = vmatprep.subr.bf16.mxu1 %v3643_v19  ;;  %v56_v19 = vld [vmem:[#allocation2 + $0x38] sm:$0xff]  ;;  %v3707_v24 = vcombine.high %v307_v16, %v311_v17  ;;  %v3706_v30 = vcombine.low %v307_v16, %v311_v17 }
 0x11e   :  { %v3453_v25 = vcombine.high %v52_v18, %v56_v19  ;;  %v3452_v31 = vcombine.low %v52_v18, %v56_v19 }
 0x11f   :  { %2714 = vmatpush2.bf16.msra.mxu0 %v3514_v26  ;;  %v427_v26 = vld [vmem:[#allocation2 + $0xbd0] sm:$0xff] }
 0x120   :  { %2757 = vmatpush2.bf16.msra.mxu1 %v3642_v27  ;;  %2769 = vmatprep.subr.bf16.mxu0 %v3763_v28  ;;  %v431_v27 = vld [vmem:[#allocation2 + $0xbf0] sm:$0xff]  ;;  %v172_v28 = vld [vmem:[#allocation2 + $0x3d8] sm:$0xff] }
 0x121   :  { %2812 = vmatprep.subr.bf16.mxu1 %v3509_v29  ;;  %v176_v29 = vld [vmem:[#allocation2 + $0x3f8] sm:$0xff]  ;;  %v3827_v32 = vcombine.high %v427_v26, %v431_v27  ;;  %v3826_v38 = vcombine.low %v427_v26, %v431_v27 }
 0x122   :  { %2716 = vmatmul.mubr.bf16.vlgmr.msra.gmra.mxu0 %v4011_v40  ;;  %v3573_v33 = vcombine.high %v172_v28, %v176_v29  ;;  %v3572_v39 = vcombine.low %v172_v28, %v176_v29 }
 0x123   :  { %2759 = vmatmul.mubr.bf16.vlgmr.msra.gmra.mxu1 %v4017_v12  ;;  %2770 = vmatpush1.bf16.msra.mxu0 %v3762_v34  ;;  %v419_v34 = vld [vmem:[#allocation2 + $0xb90] sm:$0xff] }
 0x124   :  { %2813 = vmatpush1.bf16.msra.mxu1 %v3508_v35  ;;  %2771 = vmatprep.subr.bf16.mxu0 %v3755_v36  ;;  %v423_v35 = vld [vmem:[#allocation2 + $0xbb0] sm:$0xff]  ;;  %v164_v36 = vld [vmem:[#allocation2 + $0x398] sm:$0xff] }
 0x125   :  { %2814 = vmatprep.subr.bf16.mxu1 %v3501_v37  ;;  %2801 = vmatprep.mubr.bf16.mxu0 %v4023_v48  ;;  %v168_v37 = vld [vmem:[#allocation2 + $0x3b8] sm:$0xff]  ;;  %v3819_v41 = vcombine.high %v419_v34, %v423_v35  ;;  %v3818_v46 = vcombine.low %v419_v34, %v423_v35 }
 0x126   :  { %2844 = vmatprep.mubr.bf16.mxu1 %v3999_v43  ;;  %v3477_v43 = vcombine.high %v76_v55, %v80_v57  ;;  %v3565_v42 = vcombine.high %v164_v36, %v168_v37  ;;  %v3564_v47 = vcombine.low %v164_v36, %v168_v37 }
 0x127   :  { %2772 = vmatpush1.bf16.msra.mxu0 %v3754_v15  ;;  %v411_v15 = vld [vmem:[#allocation2 + $0xb50] sm:$0xff] }
 0x128   :  { %2815 = vmatpush1.bf16.msra.mxu1 %v3500_v56  ;;  %2773 = vmatprep.subr.bf16.mxu0 %v3747_v44  ;;  %v415_v56 = vld [vmem:[#allocation2 + $0xb70] sm:$0xff]  ;;  %v156_v44 = vld [vmem:[#allocation2 + $0x358] sm:$0xff] }
 0x129   :  { %2816 = vmatprep.subr.bf16.mxu1 %v3493_v45  ;;  %v160_v45 = vld [vmem:[#allocation2 + $0x378] sm:$0xff]  ;;  %v3811_v59 = vcombine.high %v411_v15, %v415_v56  ;;  %v3810_v53 = vcombine.low %v411_v15, %v415_v56 }
 0x12a   :  { %v3557_v49 = vcombine.high %v156_v44, %v160_v45  ;;  %v3556_v54 = vcombine.low %v156_v44, %v160_v45 }
 0x12b   :  { %2774 = vmatpush1.bf16.msra.mxu0 %v3746_v22  ;;  %v403_v22 = vld [vmem:[#allocation2 + $0xb10] sm:$0xff] }
 0x12c   :  { %2817 = vmatpush1.bf16.msra.mxu1 %v3492_v50  ;;  %2775 = vmatprep.subr.bf16.mxu0 %v3739_v51  ;;  %v407_v50 = vld [vmem:[#allocation2 + $0xb30] sm:$0xff]  ;;  %v148_v51 = vld [vmem:[#allocation2 + $0x318] sm:$0xff] }
 0x12d   :  { %2818 = vmatprep.subr.bf16.mxu1 %v3485_v52  ;;  %v152_v52 = vld [vmem:[#allocation2 + $0x338] sm:$0xff]  ;;  %v3803_v55 = vcombine.high %v403_v22, %v407_v50  ;;  %v3802_v62 = vcombine.low %v403_v22, %v407_v50 }
 0x12e   :  { %v3549_v57 = vcombine.high %v148_v51, %v152_v52  ;;  %v3548_v63 = vcombine.low %v148_v51, %v152_v52  ;;  %v352_v22 = vld [vmem:[#allocation2 + $0x978] sm:$0xff] }
 0x12f   :  { %2776 = vmatpush1.bf16.msra.mxu0 %v3738_v58  ;;  %v395_v58 = vld [vmem:[#allocation2 + $0xad0] sm:$0xff] }
 0x130   :  { %2819 = vmatpush1.bf16.msra.mxu1 %v3484_v60  ;;  %2777 = vmatprep.subr.bf16.mxu0 %v3731_v61  ;;  %v399_v60 = vld [vmem:[#allocation2 + $0xaf0] sm:$0xff]  ;;  %v140_v61 = vld [vmem:[#allocation2 + $0x2d8] sm:$0xff] }
 0x131   :  { %2820 = vmatprep.subr.bf16.mxu1 %v3477_v43  ;;  %v144_v43 = vld [vmem:[#allocation2 + $0x2f8] sm:$0xff]  ;;  %v3795_v0 = vcombine.high %v395_v58, %v399_v60  ;;  %v3794_v6 = vcombine.low %v395_v58, %v399_v60 }
 0x132   :  { %v3541_v1 = vcombine.high %v140_v61, %v144_v43  ;;  %v3540_v7 = vcombine.low %v140_v61, %v144_v43  ;;  %v344_v58 = vld [vmem:[#allocation2 + $0x938] sm:$0xff] }
 0x133   :  { %2778 = vmatpush1.bf16.msra.mxu0 %v3730_v2  ;;  %v387_v2 = vld [vmem:[#allocation2 + $0xa90] sm:$0xff] }
 0x134   :  { %2821 = vmatpush1.bf16.msra.mxu1 %v3476_v3  ;;  %2779 = vmatprep.subr.bf16.mxu0 %v3723_v4  ;;  %v391_v3 = vld [vmem:[#allocation2 + $0xab0] sm:$0xff]  ;;  %v132_v4 = vld [vmem:[#allocation2 + $0x298] sm:$0xff] }
 0x135   :  { %2822 = vmatprep.subr.bf16.mxu1 %v3469_v5  ;;  %v136_v5 = vld [vmem:[#allocation2 + $0x2b8] sm:$0xff]  ;;  %v3787_v8 = vcombine.high %v387_v2, %v391_v3  ;;  %v3786_v16 = vcombine.low %v387_v2, %v391_v3 }
 0x136   :  { %v3533_v9 = vcombine.high %v132_v4, %v136_v5  ;;  %v3532_v17 = vcombine.low %v132_v4, %v136_v5  ;;  %v196_v4 = vld [vmem:[#allocation2 + $0x498] sm:$0xff] }
 0x137   :  { %2780 = vmatpush1.bf16.msra.mxu0 %v3722_v10  ;;  %v379_v10 = vld [vmem:[#allocation2 + $0xa50] sm:$0xff]  ;;  %v200_v5 = vld [vmem:[#allocation2 + $0x4b8] sm:$0xff] }
 0x138   :  { %2823 = vmatpush1.bf16.msra.mxu1 %v3468_v11  ;;  %2781 = vmatprep.subr.bf16.mxu0 %v3715_v13  ;;  %v383_v11 = vld [vmem:[#allocation2 + $0xa70] sm:$0xff]  ;;  %v124_v13 = vld [vmem:[#allocation2 + $0x258] sm:$0xff] }
 0x139   :  { %2824 = vmatprep.subr.bf16.mxu1 %v3461_v14  ;;  %v128_v14 = vld [vmem:[#allocation2 + $0x278] sm:$0xff]  ;;  %v3779_v18 = vcombine.high %v379_v10, %v383_v11  ;;  %v3778_v26 = vcombine.low %v379_v10, %v383_v11  ;;  %v3597_v10 = vcombine.high %v196_v4, %v200_v5 }
 0x13a   :  { %v3525_v19 = vcombine.high %v124_v13, %v128_v14  ;;  %v3524_v27 = vcombine.low %v124_v13, %v128_v14  ;;  %v188_v13 = vld [vmem:[#allocation2 + $0x458] sm:$0xff] }
 0x13b   :  { %2782 = vmatpush1.bf16.msra.mxu0 %v3714_v20  ;;  %v371_v20 = vld [vmem:[#allocation2 + $0xa10] sm:$0xff]  ;;  %v192_v14 = vld [vmem:[#allocation2 + $0x478] sm:$0xff] }
 0x13c   :  { %2825 = vmatpush1.bf16.msra.mxu1 %v3460_v21  ;;  %2783 = vmatprep.subr.bf16.mxu0 %v3707_v24  ;;  %v375_v21 = vld [vmem:[#allocation2 + $0xa30] sm:$0xff]  ;;  %v116_v24 = vld [vmem:[#allocation2 + $0x218] sm:$0xff] }
 0x13d   :  { %2826 = vmatprep.subr.bf16.mxu1 %v3453_v25  ;;  %v120_v25 = vld [vmem:[#allocation2 + $0x238] sm:$0xff]  ;;  %v3771_v28 = vcombine.high %v371_v20, %v375_v21  ;;  %v3770_v34 = vcombine.low %v371_v20, %v375_v21  ;;  %v3589_v20 = vcombine.high %v188_v13, %v192_v14 }
 0x13e   :  { %v3517_v29 = vcombine.high %v116_v24, %v120_v25  ;;  %v3516_v35 = vcombine.low %v116_v24, %v120_v25  ;;  %v180_v24 = vld [vmem:[#allocation2 + $0x418] sm:$0xff] }
 0x13f   :  { %2784 = vmatpush1.bf16.msra.mxu0 %v3706_v30  ;;  %v236_v30 = vld [vmem:[#allocation2 + $0x5d8] sm:$0xff] }
 0x140   :  { %2827 = vmatpush1.bf16.msra.mxu1 %v3452_v31  ;;  %2785 = vmatprep.subr.bf16.mxu0 %v3827_v32  ;;  %v240_v31 = vld [vmem:[#allocation2 + $0x5f8] sm:$0xff] }
 0x141   :  { %2828 = vmatprep.subr.bf16.mxu1 %v3573_v33  ;;  %v364_v32 = vld [vmem:[#allocation2 + $0x9d8] sm:$0xff]  ;;  %v3637_v36 = vcombine.high %v236_v30, %v240_v31  ;;  %v3636_v15 = vcombine.low %v236_v30, %v240_v31 }
 0x142   :  { %v368_v33 = vld [vmem:[#allocation2 + $0x9f8] sm:$0xff] }
 0x143   :  { %2786 = vmatpush2.bf16.msra.mxu0 %v3826_v38  ;;  %v3765_v37 = vcombine.high %v364_v32, %v368_v33  ;;  %v228_v38 = vld [vmem:[#allocation2 + $0x598] sm:$0xff]  ;;  %v3764_v56 = vcombine.low %v364_v32, %v368_v33 }
 0x144   :  { %2829 = vmatpush2.bf16.msra.mxu1 %v3572_v39  ;;  %2787 = vmatprep.subr.bf16.mxu0 %v3819_v41  ;;  %v232_v39 = vld [vmem:[#allocation2 + $0x5b8] sm:$0xff] }
 0x145   :  { %2830 = vmatprep.subr.bf16.mxu1 %v3565_v42  ;;  %v356_v41 = vld [vmem:[#allocation2 + $0x998] sm:$0xff]  ;;  %v3629_v44 = vcombine.high %v228_v38, %v232_v39  ;;  %v3628_v50 = vcombine.low %v228_v38, %v232_v39  ;;  %v4036_v39 = vpop.f32.mrf.mxu0 }
 0x146   :  { %v360_v42 = vld [vmem:[#allocation2 + $0x9b8] sm:$0xff] }
 0x147   :  { %2788 = vmatpush2.bf16.msra.mxu0 %v3818_v46  ;;  %v3757_v45 = vcombine.high %v356_v41, %v360_v42  ;;  %v220_v46 = vld [vmem:[#allocation2 + $0x558] sm:$0xff]  ;;  %v3756_v51 = vcombine.low %v356_v41, %v360_v42 }
 0x148   :  { %2831 = vmatpush2.bf16.msra.mxu1 %v3564_v47  ;;  %2789 = vmatprep.subr.bf16.mxu0 %v3811_v59  ;;  %v224_v47 = vld [vmem:[#allocation2 + $0x578] sm:$0xff]  ;;  %v4030_v59 = vld [vmem:[%s4322_s0 + $0x10] ss:$24 sps:$4 sm:$0xff]  }
 0x149   :  { %2832 = vmatprep.subr.bf16.mxu1 %v3557_v49  ;;  %v348_v49 = vld [vmem:[#allocation2 + $0x958] sm:$0xff]  ;;  %v3621_v52 = vcombine.high %v220_v46, %v224_v47  ;;  %v3620_v60 = vcombine.low %v220_v46, %v224_v47 }
 0x14a   :  { %v184_v25 = vld [vmem:[#allocation2 + $0x438] sm:$0xff] }
 0x14b   :  { %2790 = vmatpush2.bf16.msra.mxu0 %v3810_v53  ;;  %v3749_v53 = vcombine.high %v348_v49, %v352_v22  ;;  %v3581_v30 = vcombine.high %v180_v24, %v184_v25  ;;  %v300_v32 = vld [vmem:[#allocation2 + $0x7d8] sm:$0xff] }
 0x14c   :  { %2833 = vmatpush2.bf16.msra.mxu1 %v3556_v54  ;;  %2791 = vmatprep.subr.bf16.mxu0 %v3803_v55  ;;  %v212_v54 = vld [vmem:[#allocation2 + $0x518] sm:$0xff] }
 0x14d   :  { %2834 = vmatprep.subr.bf16.mxu1 %v3549_v57  ;;  %v216_v55 = vld [vmem:[#allocation2 + $0x538] sm:$0xff] }
 0x14e   :  { %v340_v57 = vld [vmem:[#allocation2 + $0x918] sm:$0xff]  ;;  %v3613_v61 = vcombine.high %v212_v54, %v216_v55  ;;  %v3612_v2 = vcombine.low %v212_v54, %v216_v55 }
 0x14f   :  { %2792 = vmatpush2.bf16.msra.mxu0 %v3802_v62  ;;  %v3741_v43 = vcombine.high %v340_v57, %v344_v58  ;;  %v204_v62 = vld [vmem:[#allocation2 + $0x4d8] sm:$0xff] }
 0x150   :  { %2835 = vmatpush2.bf16.msra.mxu1 %v3548_v63  ;;  %2793 = vmatprep.subr.bf16.mxu0 %v3795_v0  ;;  %v208_v63 = vld [vmem:[#allocation2 + $0x4f8] sm:$0xff] }
 0x151   :  { %2836 = vmatprep.subr.bf16.mxu1 %v3541_v1  ;;  %v332_v0 = vld [vmem:[#allocation2 + $0x8d8] sm:$0xff]  ;;  %v3605_v3 = vcombine.high %v204_v62, %v208_v63 }
 0x152   :  { %v336_v1 = vld [vmem:[#allocation2 + $0x8f8] sm:$0xff] }
 0x153   :  { %2794 = vmatpush2.bf16.msra.mxu0 %v3794_v6  ;;  %v324_v6 = vld [vmem:[#allocation2 + $0x898] sm:$0xff] }
 0x154   :  { %2837 = vmatpush2.bf16.msra.mxu1 %v3540_v7  ;;  %2795 = vmatprep.subr.bf16.mxu0 %v3787_v8  ;;  %v328_v7 = vld [vmem:[#allocation2 + $0x8b8] sm:$0xff]  ;;  %v3604_v8 = vcombine.low %v204_v62, %v208_v63 }
 0x155   :  { %2838 = vmatprep.subr.bf16.mxu1 %v3533_v9  ;;  %v3732_v9 = vcombine.low %v332_v0, %v336_v1  ;;  %v3725_v11 = vcombine.high %v324_v6, %v328_v7  ;;  %v304_v33 = vld [vmem:[#allocation2 + $0x7f8] sm:$0xff] }
 0x156   :  { %v3701_v38 = vcombine.high %v300_v32, %v304_v33  ;;  %v292_v42 = vld [vmem:[#allocation2 + $0x798] sm:$0xff] }
 0x157   :  { %2796 = vmatpush2.bf16.msra.mxu0 %v3786_v16  ;;  %v316_v16 = vld [vmem:[#allocation2 + $0x858] sm:$0xff] }
 0x158   :  { %2839 = vmatpush2.bf16.msra.mxu1 %v3532_v17  ;;  %2797 = vmatprep.subr.bf16.mxu0 %v3779_v18  ;;  %v320_v17 = vld [vmem:[#allocation2 + $0x878] sm:$0xff]  ;;  %v3596_v18 = vcombine.low %v196_v4, %v200_v5 }
 0x159   :  { %2840 = vmatprep.subr.bf16.mxu1 %v3525_v19  ;;  %v3724_v19 = vcombine.low %v324_v6, %v328_v7  ;;  %v3717_v21 = vcombine.high %v316_v16, %v320_v17  ;;  %v404_v62 = vld [vmem:[#allocation2 + $0xb18] sm:$0xff] }
 0x15a   :  { %v408_v63 = vld [vmem:[#allocation2 + $0xb38] sm:$0xff] }
 0x15b   :  { %2798 = vmatpush2.bf16.msra.mxu0 %v3778_v26  ;;  %v308_v26 = vld [vmem:[#allocation2 + $0x818] sm:$0xff] }
 0x15c   :  { %2841 = vmatpush2.bf16.msra.mxu1 %v3524_v27  ;;  %2799 = vmatprep.subr.bf16.mxu0 %v3771_v28  ;;  %v312_v27 = vld [vmem:[#allocation2 + $0x838] sm:$0xff]  ;;  %v3588_v28 = vcombine.low %v188_v13, %v192_v14  ;;  %v3804_v13 = vcombine.low %v404_v62, %v408_v63 }
 0x15d   :  { %2842 = vmatprep.subr.bf16.mxu1 %v3517_v29  ;;  %v3716_v29 = vcombine.low %v316_v16, %v320_v17  ;;  %v3709_v31 = vcombine.high %v308_v26, %v312_v27  ;;  %v268_v4 = vld [vmem:[#allocation2 + $0x6d8] sm:$0xff] }
 0x15e   :  { %v272_v5 = vld [vmem:[#allocation2 + $0x6f8] sm:$0xff] }
 0x15f   :  { %2800 = vmatpush2.bf16.msra.mxu0 %v3770_v34  ;;  %v428_v34 = vld [vmem:[#allocation2 + $0xbd8] sm:$0xff]  ;;  %v3669_v14 = vcombine.high %v268_v4, %v272_v5 }
 0x160   :  { %2843 = vmatpush2.bf16.msra.mxu1 %v3516_v35  ;;  %2855 = vmatprep.subr.bf16.mxu0 %v3637_v36  ;;  %v432_v35 = vld [vmem:[#allocation2 + $0xbf8] sm:$0xff]  ;;  %v3580_v36 = vcombine.low %v180_v24, %v184_v25  ;;  %v4051_v24 = vld [vmem:[#allocation4] sm:$0xff] }
 0x161   :  { %2898 = vmatprep.subr.bf16.mxu1 %v3765_v37  ;;  %v3708_v37 = vcombine.low %v308_v26, %v312_v27  ;;  %v3829_v41 = vcombine.high %v428_v34, %v432_v35  ;;  %v3828_v46 = vcombine.low %v428_v34, %v432_v35  ;;  %v396_v7 = vld [vmem:[#allocation2 + $0xad8] sm:$0xff]  ;;  %v3668_v27 = vcombine.low %v268_v4, %v272_v5 }
 0x162   :  { %2802 = vmatmul.mubr.bf16.vlgmr.msra.gmra.mxu0 %v4030_v59  ;;  %v260_v17 = vld [vmem:[#allocation2 + $0x698] sm:$0xff] }
 0x163   :  { %2845 = vmatmul.mubr.bf16.vlgmr.msra.gmra.mxu1 %v4011_v40  ;;  %2856 = vmatpush1.bf16.msra.mxu0 %v3636_v15  ;;  %v3748_v40 = vcombine.low %v348_v49, %v352_v22  ;;  %v296_v15 = vld [vmem:[#allocation2 + $0x7b8] sm:$0xff]  ;;  %v4038_v49 = vpop.f32.mrf.mxu0 }
 0x164   :  { %2899 = vmatpush1.bf16.msra.mxu1 %v3764_v56  ;;  %2857 = vmatprep.subr.bf16.mxu0 %v3629_v44  ;;  %v420_v56 = vld [vmem:[#allocation2 + $0xb98] sm:$0xff]  ;;  %v3693_v47 = vcombine.high %v292_v42, %v296_v15  ;;  %v3692_v54 = vcombine.low %v292_v42, %v296_v15 }
 0x165   :  { %2900 = vmatprep.subr.bf16.mxu1 %v3757_v45  ;;  %2887 = vmatprep.mubr.bf16.mxu0 %v4005_v23  ;;  %v3740_v23 = vcombine.low %v340_v57, %v344_v58  ;;  %v424_v44 = vld [vmem:[#allocation2 + $0xbb8] sm:$0xff]  ;;  %v3700_v45 = vcombine.low %v300_v32, %v304_v33  ;;  %v4040_v58 = vpop.f32.mrf.mxu0 }
 0x166   :  { %2930 = vmatprep.mubr.bf16.mxu1 %v4023_v48  ;;  %v3733_v48 = vcombine.high %v332_v0, %v336_v1  ;;  %v3821_v22 = vcombine.high %v420_v56, %v424_v44  ;;  %v3820_v55 = vcombine.low %v420_v56, %v424_v44  ;;  %v4042_v0 = vpop.f32.mrf.mxu1  ;;  %v252_v32 = vld [vmem:[#allocation2 + $0x658] sm:$0xff] }
 0x167   :  { %2858 = vmatpush1.bf16.msra.mxu0 %v3628_v50  ;;  %v284_v50 = vld [vmem:[#allocation2 + $0x758] sm:$0xff] }
 0x168   :  { %2901 = vmatpush1.bf16.msra.mxu1 %v3756_v51  ;;  %2859 = vmatprep.subr.bf16.mxu0 %v3621_v52  ;;  %v288_v51 = vld [vmem:[#allocation2 + $0x778] sm:$0xff] }
 0x169   :  { %2902 = vmatprep.subr.bf16.mxu1 %v3749_v53  ;;  %v412_v52 = vld [vmem:[#allocation2 + $0xb58] sm:$0xff]  ;;  %v3685_v57 = vcombine.high %v284_v50, %v288_v51  ;;  %v3684_v1 = vcombine.low %v284_v50, %v288_v51 }
 0x16a   :  { %v416_v53 = vld [vmem:[#allocation2 + $0xb78] sm:$0xff] }
 0x16b   :  { %2860 = vmatpush1.bf16.msra.mxu0 %v3620_v60  ;;  %v3813_v60 = vcombine.high %v412_v52, %v416_v53  ;;  %v256_v33 = vld [vmem:[#allocation2 + $0x678] sm:$0xff] }
 0x16c   :  { %2903 = vmatpush1.bf16.msra.mxu1 %v3748_v40  ;;  %2861 = vmatprep.subr.bf16.mxu0 %v3613_v61  ;;  %v276_v40 = vld [vmem:[#allocation2 + $0x718] sm:$0xff]  ;;  %v3653_v56 = vcombine.high %v252_v32, %v256_v33 }
 0x16d   :  { %2904 = vmatprep.subr.bf16.mxu1 %v3741_v43  ;;  %v280_v61 = vld [vmem:[#allocation2 + $0x738] sm:$0xff]  ;;  %v435_v43 = vlaneseq }
 0x16e   :  { %v380_v35 = vld [vmem:[#allocation2 + $0xa58] sm:$0xff] }
 0x16f   :  { %2862 = vmatpush1.bf16.msra.mxu0 %v3612_v2  ;;  %v3812_v2 = vcombine.low %v412_v52, %v416_v53  ;;  %v4044_v6 = vshrl.u32 %v435_v43, 7  ;;  %v372_v50 = vld [vmem:[#allocation2 + $0xa18] sm:$0xff] }
 0x170   :  { %2905 = vmatpush1.bf16.msra.mxu1 %v3740_v23  ;;  %2863 = vmatprep.subr.bf16.mxu0 %v3605_v3  ;;  %v3677_v23 = vcombine.high %v276_v40, %v280_v61  ;;  %v2465_v3 = vpop.f32.mrf.mxu0  ;;  %v376_v51 = vld [vmem:[#allocation2 + $0xa38] sm:$0xff] }
 0x171   :  { %2906 = vmatprep.subr.bf16.mxu1 %v3733_v48  ;;  %v3805_v48 = vcombine.high %v404_v62, %v408_v63  ;;  %v3773_v62 = vcombine.high %v372_v50, %v376_v51 }
 0x173   :  { %2864 = vmatpush1.bf16.msra.mxu0 %v3604_v8  ;;  %v400_v8 = vld [vmem:[#allocation2 + $0xaf8] sm:$0xff] }
 0x174   :  { %2907 = vmatpush1.bf16.msra.mxu1 %v3732_v9  ;;  %2865 = vmatprep.subr.bf16.mxu0 %v3597_v10  ;;  %v4046_v9 = vpop.f32.mrf.mxu1  ;;  %v4048_v10 = vpop.f32.mrf.mxu0  ;;  %v3797_v16 = vcombine.high %v396_v7, %v400_v8 }
 0x175   :  { %2908 = vmatprep.subr.bf16.mxu1 %v3725_v11  ;;  %v3676_v11 = vcombine.low %v276_v40, %v280_v61 }
 0x176   :  { %v2506_v25 = vpop.f32.mrf.mxu1  ;;  %v2547_v26 = vpop.f32.mrf.mxu0 }
 0x177   :  { %2866 = vmatpush1.bf16.msra.mxu0 %v3596_v18  ;;  %v264_v18 = vld [vmem:[#allocation2 + $0x6b8] sm:$0xff] }
 0x178   :  { %2909 = vmatpush1.bf16.msra.mxu1 %v3724_v19  ;;  %2867 = vmatprep.subr.bf16.mxu0 %v3589_v20  ;;  %v441_v19 = vsub.s32 1, %v4044_v6  ;;  %v388_v20 = vld [vmem:[#allocation2 + $0xa98] sm:$0xff] }
 0x179   :  { %2910 = vmatprep.subr.bf16.mxu1 %v3717_v21  ;;  %v392_v21 = vld [vmem:[#allocation2 + $0xab8] sm:$0xff] }
 0x17a   :  { %v442_v34 = vrot.slane %v4051_v24, %v441_v19  ;;  %v3788_v15 = vcombine.low %v388_v20, %v392_v21 }
 0x17b   :  { %2868 = vmatpush1.bf16.msra.mxu0 %v3588_v28  ;;  %v3796_v28 = vcombine.low %v396_v7, %v400_v8 }
 0x17c   :  { %2911 = vmatpush1.bf16.msra.mxu1 %v3716_v29  ;;  %2869 = vmatprep.subr.bf16.mxu0 %v3581_v30  ;;  %v3661_v29 = vcombine.high %v260_v17, %v264_v18  ;;  %v437_v30 = vsub.s32 0, %v4044_v6  ;;  %v2466_v42 = vadd.f32 %v2465_v3, %v442_v34  ;;  %v445_v3 = vsub.s32 2, %v4044_v6 }
 0x17d   :  { %2912 = vmatprep.subr.bf16.mxu1 %v3709_v31  ;;  %v3789_v31 = vcombine.high %v388_v20, %v392_v21 }
 0x17e   :  { %v438_v44 = vrot.slane %v4051_v24, %v437_v30 }
 0x17f   :  { %2870 = vmatpush1.bf16.msra.mxu0 %v3580_v36  ;;  %v384_v36 = vld [vmem:[#allocation2 + $0xa78] sm:$0xff] }
 0x180   :  { %2913 = vmatpush1.bf16.msra.mxu1 %v3708_v37  ;;  %2871 = vmatprep.subr.bf16.mxu0 %v3701_v38  ;;  %v2508_v37 = vpop.f32.mrf.mxu1  ;;  %v2549_v38 = vpop.f32.mrf.mxu0  ;;  %v2464_v52 = vadd.f32 %v4040_v58, %v438_v44  ;;  %v2460_v61 = vadd.f32 %v4036_v39, %v438_v44  ;;  %v4084_v44 = vld [vmem:[%s4325_s3 + $0x8] sm:$0xff] }
 0x181   :  { %2914 = vmatprep.subr.bf16.mxu1 %v3829_v41  ;;  %v3660_v41 = vcombine.low %v260_v17, %v264_v18 }
 0x182   :  { %v2551_v53 = vpop.f32.mrf.mxu0 }
 0x183   :  { %2872 = vmatpush2.bf16.msra.mxu0 %v3700_v45  ;;  %v2588_v45 = vpop.f32.mrf.mxu1 }
 0x184   :  { %2915 = vmatpush2.bf16.msra.mxu1 %v3828_v46  ;;  %2873 = vmatprep.subr.bf16.mxu0 %v3693_v47  ;;  %v3781_v46 = vcombine.high %v380_v35, %v384_v36  ;;  %v244_v47 = vld [vmem:[#allocation2 + $0x618] sm:$0xff] }
 0x185   :  { %2916 = vmatprep.subr.bf16.mxu1 %v3821_v22  ;;  %v248_v22 = vld [vmem:[#allocation2 + $0x638] sm:$0xff]  ;;  %v2590_v43 = vpop.f32.mrf.mxu1 }
 0x186   :  { %v3645_v40 = vcombine.high %v244_v47, %v248_v22 }
 0x187   :  { %2874 = vmatpush2.bf16.msra.mxu0 %v3692_v54  ;;  %v3652_v54 = vcombine.low %v252_v32, %v256_v33  ;;  %v2592_v39 = vpop.f32.mrf.mxu1 }
 0x188   :  { %2917 = vmatpush2.bf16.msra.mxu1 %v3820_v55  ;;  %2875 = vmatprep.subr.bf16.mxu0 %v3685_v57  ;;  %v3780_v55 = vcombine.low %v380_v35, %v384_v36  ;;  %v2462_v57 = vadd.f32 %v4038_v49, %v442_v34  ;;  %v2503_v49 = vadd.f32 %v4042_v0, %v2460_v61 }
 0x189   :  { %2918 = vmatprep.subr.bf16.mxu1 %v3813_v60  ;;  %v2509_v60 = vadd.f32 %v2508_v37, %v2466_v42  ;;  %v2594_v0 = vpop.f32.mrf.mxu1  ;;  %v3922_v37 = vmov 0.0  }
 0x18a   :  { %v2505_v58 = vadd.f32 %v4046_v9, %v2462_v57  ;;  %v2546_v8 = vadd.f32 %v4048_v10, %v2503_v49  ;;  %v446_v9 = vrot.slane %v4051_v24, %v445_v3 }
 0x18b   :  { %2876 = vmatpush2.bf16.msra.mxu0 %v3684_v1  ;;  %v2552_v63 = vadd.f32 %v2551_v53, %v2509_v60  ;;  %v2507_v1 = vadd.f32 %v2506_v25, %v2464_v52  ;;  %v457_v53 = vsub.s32 5, %v4044_v6 }
 0x18c   :  { %2919 = vmatpush2.bf16.msra.mxu1 %v3812_v2  ;;  %2877 = vmatprep.subr.bf16.mxu0 %v3677_v23  ;;  %v3644_v2 = vcombine.low %v244_v47, %v248_v22  ;;  %v3772_v23 = vcombine.low %v372_v50, %v376_v51  ;;  %v2548_v5 = vadd.f32 %v2547_v26, %v2505_v58  ;;  %v2941_v17 = vmax.f32 %v2546_v8, 0.0  ;;  %v4117_v47 = vld [vmem:[%s4325_s3 + $0x20] sm:$0xff]  ;;  %v4128_v22 = vld [vmem:[%s4325_s3 + $0x28] sm:$0xff] }
 0x18d   :  { %2920 = vmatprep.subr.bf16.mxu1 %v3805_v48  ;;  %v449_v48 = vsub.s32 3, %v4044_v6  ;;  %v2550_v4 = vadd.f32 %v2549_v38, %v2507_v1  ;;  %v2950_v7 = vmax.f32 %v2552_v63, 0.0  ;;  %v2593_v20 = vadd.f32 %v2592_v39, %v446_v9 }
 0x18e   :  { %v2589_v25 = vadd.f32 %v2588_v45, %v446_v9  ;;  %v4095_v45 = vld [vmem:[%s4325_s3 + $0x10] sm:$0xff]  ;;  %v458_v60 = vrot.slane %v4051_v24, %v457_v53 }
 0x18f   :  { %2878 = vmatpush2.bf16.msra.mxu0 %v3676_v11  ;;  %v450_v11 = vrot.slane %v4051_v24, %v449_v48 }
 0x190   :  { %2921 = vmatpush2.bf16.msra.mxu1 %v3804_v13  ;;  %2879 = vmatprep.subr.bf16.mxu0 %v3669_v14  ;;  %v2949_v13 = vmax.f32 %v2550_v4, 0.0  ;;  %v2942_v14 = vmax.f32 %v2548_v5, 0.0 }
 0x191   :  { %2922 = vmatprep.subr.bf16.mxu1 %v3797_v16  ;;  %v2591_v10 = vadd.f32 %v2590_v43, %v450_v11 }
 0x193   :  { %2880 = vmatpush2.bf16.msra.mxu0 %v3668_v27  ;;  %v2595_v27 = vadd.f32 %v2594_v0, %v450_v11 }
 0x194   :  { %2923 = vmatpush2.bf16.msra.mxu1 %v3796_v28  ;;  %2881 = vmatprep.subr.bf16.mxu0 %v3661_v29 }
 0x195   :  { %2924 = vmatprep.subr.bf16.mxu1 %v3789_v31 }
 0x197   :  { %2882 = vmatpush2.bf16.msra.mxu0 %v3660_v41  ;;  %v4073_v41 = vld [vmem:[%s4325_s3] sm:$0xff] }
 0x198   :  { %2925 = vmatpush2.bf16.msra.mxu1 %v3788_v15  ;;  %2883 = vmatprep.subr.bf16.mxu0 %v3653_v56 }
 0x199   :  { %2926 = vmatprep.subr.bf16.mxu1 %v3781_v46  ;;  %v4106_v46 = vld [vmem:[%s4325_s3 + $0x18] sm:$0xff] }
 0x19b   :  { %2884 = vmatpush2.bf16.msra.mxu0 %v3652_v54  ;;  %v453_v54 = vsub.s32 4, %v4044_v6 }
 0x19c   :  { %2927 = vmatpush2.bf16.msra.mxu1 %v3780_v55  ;;  %2885 = vmatprep.subr.bf16.mxu0 %v3645_v40 }
 0x19d   :  { %2928 = vmatprep.subr.bf16.mxu1 %v3773_v62  ;;  %v454_v40 = vrot.slane %v4051_v24, %v453_v54 }
 0x19f   :  { %2886 = vmatpush2.bf16.msra.mxu0 %v3644_v2 }
 0x1a0   :  { %2929 = vmatpush2.bf16.msra.mxu1 %v3772_v23  ;;  %3010 = vmatprep.subr.mxu0 %v2950_v7 }
 0x1a2   :  { %v2631_v16 = vpop.f32.mrf.mxu0  ;;  %2888 = vmatmul.mubr.bf16.vlgmr.msra.gmra.mxu0 %v4017_v12 }
 0x1a3   :  { %v2674_v18 = vpop.f32.mrf.mxu1  ;;  %2931 = vmatmul.mubr.bf16.vlgmr.msra.gmra.mxu1 %v4030_v59  ;;  %3011 = vmatpush1.msra.mxu0 %v2949_v13  ;;  %v2632_v31 = vadd.f32 %v2631_v16, %v2589_v25 }
 0x1a4   :  { %v2633_v19 = vpop.f32.mrf.mxu0  ;;  %3012 = vmatprep.subr.mxu0 %v2942_v14  ;;  %3046 = vmatprep.mubr.f32.mxu0 %v3922_v37 }
 0x1a5   :  { %v2676_v21 = vpop.f32.mrf.mxu1  ;;  %3013 = vmatpush1.msra.mxu0 %v2941_v17  ;;  %v2634_v28 = vadd.f32 %v2633_v19, %v2591_v10  ;;  %v2675_v36 = vadd.f32 %v2674_v18, %v2632_v31  ;;  %3147 = vmatprep.mubr.f32.mxu1 %v3922_v37  ;;  %v461_v10 = vsub.s32 6, %v4044_v6 }
 0x1a6   :  { %v2635_v26 = vpop.f32.mrf.mxu0 }
 0x1a7   :  { %v2636_v29 = vadd.f32 %v2635_v26, %v2593_v20  ;;  %v2678_v30 = vpop.f32.mrf.mxu1  ;;  %v2677_v35 = vadd.f32 %v2676_v21, %v2634_v28  ;;  %v2943_v56 = vmax.f32 %v2675_v36, 0.0  ;;  %v465_v20 = vsub.s32 7, %v4044_v6 }
 0x1a8   :  { %v2637_v32 = vpop.f32.mrf.mxu0  ;;  %v462_v25 = vrot.slane %v4051_v24, %v461_v10 }
 0x1a9   :  { %v2638_v12 = vadd.f32 %v2637_v32, %v2595_v27  ;;  %v2679_v33 = vadd.f32 %v2678_v30, %v2636_v29  ;;  %v2680_v34 = vpop.f32.mrf.mxu1  ;;  %v2944_v15 = vmax.f32 %v2677_v35, 0.0  ;;  %v466_v26 = vrot.slane %v4051_v24, %v465_v20 }
 0x1aa   :  { %3830 = vmatmul.mubr.msk.f32.vlgmr.msra.gmra.mxu0 %vm2963_vm0, %v4073_v41 }
 0x1ab   :  { %v2681_v59 = vadd.f32 %v2680_v34, %v2638_v12  ;;  %v2951_v42 = vmax.f32 %v2679_v33, 0.0  ;;  %3052 = vmatprep.mubr.f32.mxu0 %v3922_v37 }
 0x1ad   :  { %v2952_v38 = vmax.f32 %v2681_v59, 0.0 }
 0x1ae   :  { %3831 = vmatmul.mubr.msk.f32.gmra.mxu0 %vm2963_vm0, %v4084_v44 }
 0x1af   :  { %3111 = vmatprep.subr.mxu1 %v2952_v38  ;;  %3058 = vmatprep.mubr.f32.mxu0 %v3922_v37 }
 0x1b0   :  { %3112 = vmatpush1.msra.mxu1 %v2951_v42 }
 0x1b1   :  { %3113 = vmatprep.subr.mxu1 %v2944_v15 }
 0x1b2   :  { %3114 = vmatpush1.msra.mxu1 %v2943_v56  ;;  %3832 = vmatmul.mubr.msk.f32.gmra.mxu0 %vm2963_vm0, %v4095_v45 }
 0x1b3   :  { %3836 = vmatmul.mubr.msk.f32.vlgmr.msra.gmra.mxu1 %vm2963_vm0, %v4073_v41  ;;  %3064 = vmatprep.mubr.f32.mxu0 %v3922_v37 }
 0x1b4   :  { %3153 = vmatprep.mubr.f32.mxu1 %v3922_v37 }
 0x1b6   :  { %3833 = vmatmul.mubr.msk.f32.gmra.mxu0 %vm2963_vm0, %v4106_v46 }
 0x1b7   :  { %3837 = vmatmul.mubr.msk.f32.gmra.mxu1 %vm2963_vm0, %v4084_v44  ;;  %3070 = vmatprep.mubr.f32.mxu0 %v3922_v37 }
 0x1b8   :  { %3159 = vmatprep.mubr.f32.mxu1 %v3922_v37 }
 0x1ba   :  { %3834 = vmatmul.mubr.msk.f32.gmra.mxu0 %vm2963_vm0, %v4117_v47 }
 0x1bb   :  { %3838 = vmatmul.mubr.msk.f32.gmra.mxu1 %vm2963_vm0, %v4095_v45  ;;  %3076 = vmatprep.mubr.f32.mxu0 %v3922_v37 }
 0x1bc   :  { %3165 = vmatprep.mubr.f32.mxu1 %v3922_v37 }
 0x1be   :  { %3835 = vmatmul.mubr.msk.f32.gmra.mxu0 %vm2963_vm0, %v4128_v22 }
 0x1bf   :  { %3839 = vmatmul.mubr.msk.f32.gmra.mxu1 %vm2963_vm0, %v4106_v46  ;;  %3248 = vmatprep.mubr.f32.mxu0 %v3922_v37 }
 0x1c0   :  { %3171 = vmatprep.mubr.f32.mxu1 %v3922_v37 }
 0x1c3   :  { %3840 = vmatmul.mubr.msk.f32.gmra.mxu1 %vm2963_vm0, %v4117_v47 }
 0x1c4   :  { %3177 = vmatprep.mubr.f32.mxu1 %v3922_v37 }
 0x1c7   :  { %3841 = vmatmul.mubr.msk.f32.gmra.mxu1 %vm2963_vm0, %v4128_v22 }
 0x1c8   :  { %3349 = vmatprep.mubr.f32.mxu1 %v3922_v37 }
 0x1e2   :  { %v2717_v50 = vpop.f32.mrf.mxu0 }
 0x1e3   :  { %v2760_v52 = vpop.f32.mrf.mxu1  ;;  %v2718_v58 = vadd.f32 %v2717_v50, %v454_v40 }
 0x1e4   :  { %v2719_v51 = vpop.f32.mrf.mxu0 }
 0x1e5   :  { %v2762_v57 = vpop.f32.mrf.mxu1  ;;  %v2720_v1 = vadd.f32 %v2719_v51, %v458_v60  ;;  %v2761_v5 = vadd.f32 %v2760_v52, %v2718_v58 }
 0x1e6   :  { %v2721_v55 = vpop.f32.mrf.mxu0 }
 0x1e7   :  { %v2722_v43 = vadd.f32 %v2721_v55, %v454_v40  ;;  %v2764_v62 = vpop.f32.mrf.mxu1  ;;  %v2763_v4 = vadd.f32 %v2762_v57, %v2720_v1 }
 0x1e8   :  { %v2723_v61 = vpop.f32.mrf.mxu0 }
 0x1e9   :  { %v2724_v2 = vadd.f32 %v2723_v61, %v458_v60  ;;  %v2765_v49 = vadd.f32 %v2764_v62, %v2722_v43  ;;  %v2766_v3 = vpop.f32.mrf.mxu1 }
 0x1eb   :  { %v2767_v39 = vadd.f32 %v2766_v3, %v2724_v2 }
 0x222   :  { %v2803_v63 = vpop.f32.mrf.mxu0 }
 0x223   :  { %v2804_v13 = vadd.f32 %v2803_v63, %v2761_v5  ;;  %v2846_v18 = vpop.f32.mrf.mxu1 }
 0x224   :  { %v2805_v23 = vpop.f32.mrf.mxu0  ;;  %v2847_v33 = vadd.f32 %v2846_v18, %v462_v25 }
 0x225   :  { %v2806_v9 = vadd.f32 %v2805_v23, %v2763_v4  ;;  %v2945_v17 = vmax.f32 %v2804_v13, 0.0  ;;  %v2848_v19 = vpop.f32.mrf.mxu1 }
 0x226   :  { %v2807_v48 = vpop.f32.mrf.mxu0  ;;  %v2849_v31 = vadd.f32 %v2848_v19, %v466_v26 }
 0x227   :  { %v2808_v7 = vadd.f32 %v2807_v48, %v2765_v49  ;;  %v2946_v16 = vmax.f32 %v2806_v9, 0.0  ;;  %v2850_v21 = vpop.f32.mrf.mxu1 }
 0x228   :  { %v2809_v8 = vpop.f32.mrf.mxu0  ;;  %v2851_v32 = vadd.f32 %v2850_v21, %v462_v25 }
 0x229   :  { %v2810_v11 = vadd.f32 %v2809_v8, %v2767_v39  ;;  %v2953_v14 = vmax.f32 %v2808_v7, 0.0  ;;  %v2852_v27 = vpop.f32.mrf.mxu1 }
 0x22a   :  { %v2853_v35 = vadd.f32 %v2852_v27, %v466_v26 }
 0x22b   :  { %v2954_v0 = vmax.f32 %v2810_v11, 0.0 }
 0x22d   :  { %3212 = vmatprep.subr.mxu0 %v2954_v0 }
 0x22e   :  { %3213 = vmatpush1.msra.mxu0 %v2953_v14 }
 0x22f   :  { %3214 = vmatprep.subr.mxu0 %v2946_v16 }
 0x230   :  { %3215 = vmatpush1.msra.mxu0 %v2945_v17 }
 0x231   :  { %3842 = vmatmul.mubr.msk.f32.vlgmr.msra.gmra.mxu0 %vm2963_vm0, %v4073_v41 }
 0x232   :  { %3254 = vmatprep.mubr.f32.mxu0 %v3922_v37 }
 0x235   :  { %3843 = vmatmul.mubr.msk.f32.gmra.mxu0 %vm2963_vm0, %v4084_v44 }
 0x236   :  { %3260 = vmatprep.mubr.f32.mxu0 %v3922_v37 }
 0x239   :  { %3844 = vmatmul.mubr.msk.f32.gmra.mxu0 %vm2963_vm0, %v4095_v45 }
 0x23a   :  { %3266 = vmatprep.mubr.f32.mxu0 %v3922_v37 }
 0x23d   :  { %3845 = vmatmul.mubr.msk.f32.gmra.mxu0 %vm2963_vm0, %v4106_v46 }
 0x23e   :  { %3272 = vmatprep.mubr.f32.mxu0 %v3922_v37 }
 0x241   :  { %3846 = vmatmul.mubr.msk.f32.gmra.mxu0 %vm2963_vm0, %v4117_v47 }
 0x242   :  { %3278 = vmatprep.mubr.f32.mxu0 %v3922_v37 }
 0x245   :  { %3847 = vmatmul.mubr.msk.f32.gmra.mxu0 %vm2963_vm0, %v4128_v22 }
 0x262   :  { %v2889_v28 = vpop.f32.mrf.mxu0 }
 0x263   :  { %v2932_v29 = vpop.f32.mrf.mxu1  ;;  %v2890_v42 = vadd.f32 %v2889_v28, %v2847_v33 }
 0x264   :  { %v2891_v30 = vpop.f32.mrf.mxu0 }
 0x265   :  { %v2934_v12 = vpop.f32.mrf.mxu1  ;;  %v2892_v59 = vadd.f32 %v2891_v30, %v2849_v31  ;;  %v2933_v52 = vadd.f32 %v2932_v29, %v2890_v42 }
 0x266   :  { %v2893_v34 = vpop.f32.mrf.mxu0 }
 0x267   :  { %v2894_v36 = vadd.f32 %v2893_v34, %v2851_v32  ;;  %v2936_v38 = vpop.f32.mrf.mxu1  ;;  %v2935_v51 = vadd.f32 %v2934_v12, %v2892_v59  ;;  %v2947_v60 = vmax.f32 %v2933_v52, 0.0 }
 0x268   :  { %v2895_v6 = vpop.f32.mrf.mxu0 }
 0x269   :  { %v2896_v15 = vadd.f32 %v2895_v6, %v2853_v35  ;;  %v2937_v56 = vadd.f32 %v2936_v38, %v2894_v36  ;;  %v2938_v50 = vpop.f32.mrf.mxu1  ;;  %v2948_v57 = vmax.f32 %v2935_v51, 0.0 }
 0x26a   :  { %v3048_v55 = vpop.f32.mrf.mxu0 }
 0x26b   :  { %v2939_v24 = vadd.f32 %v2938_v50, %v2896_v15  ;;  %v2955_v54 = vmax.f32 %v2937_v56, 0.0  ;;  %3386 = vst [vmem:[%s4326_s4] sm:$0xff] %v3048_v55 }
 0x26c   :  { %v3050_v40 = vpop.f32.mrf.mxu0 }
 0x26d   :  { %v2956_v53 = vmax.f32 %v2939_v24, 0.0  ;;  %3387 = vst [vmem:[%s4326_s4 + $0x8] sm:$0xff] %v3050_v40 }
 0x26f   :  { %3313 = vmatprep.subr.mxu1 %v2956_v53 }
 0x270   :  { %3314 = vmatpush1.msra.mxu1 %v2955_v54 }
 0x271   :  { %3315 = vmatprep.subr.mxu1 %v2948_v57 }
 0x272   :  { %3316 = vmatpush1.msra.mxu1 %v2947_v60 }
 0x273   :  { %3848 = vmatmul.mubr.msk.f32.vlgmr.msra.gmra.mxu1 %vm2963_vm0, %v4073_v41  ;;  %v3149_v61 = vpop.f32.mrf.mxu1  ;;  %v3054_v41 = vpop.f32.mrf.mxu0 }
 0x274   :  { %3355 = vmatprep.mubr.f32.mxu1 %v3922_v37  ;;  %3388 = vst [vmem:[%s4326_s4 + $0x10] sm:$0xff] %v3149_v61  ;;  %3394 = vst [vmem:[%s4326_s4 + $0x40] sm:$0xff] %v3054_v41 }
 0x275   :  { %v3151_v43 = vpop.f32.mrf.mxu1 }
 0x276   :  { %3389 = vst [vmem:[%s4326_s4 + $0x18] sm:$0xff] %v3151_v43 }
 0x277   :  { %3849 = vmatmul.mubr.msk.f32.gmra.mxu1 %vm2963_vm0, %v4084_v44  ;;  %v3155_v44 = vpop.f32.mrf.mxu1 }
 0x278   :  { %3361 = vmatprep.mubr.f32.mxu1 %v3922_v37  ;;  %3396 = vst [vmem:[%s4326_s4 + $0x50] sm:$0xff] %v3155_v44 }
 0x27b   :  { %3850 = vmatmul.mubr.msk.f32.gmra.mxu1 %vm2963_vm0, %v4095_v45  ;;  %v3056_v45 = vpop.f32.mrf.mxu0 }
 0x27c   :  { %3367 = vmatprep.mubr.f32.mxu1 %v3922_v37  ;;  %3395 = vst [vmem:[%s4326_s4 + $0x48] sm:$0xff] %v3056_v45 }
 0x27f   :  { %3851 = vmatmul.mubr.msk.f32.gmra.mxu1 %vm2963_vm0, %v4106_v46  ;;  %v3157_v46 = vpop.f32.mrf.mxu1 }
 0x280   :  { %3373 = vmatprep.mubr.f32.mxu1 %v3922_v37  ;;  %3397 = vst [vmem:[%s4326_s4 + $0x58] sm:$0xff] %v3157_v46 }
 0x283   :  { %3852 = vmatmul.mubr.msk.f32.gmra.mxu1 %vm2963_vm0, %v4117_v47  ;;  %v3161_v47 = vpop.f32.mrf.mxu1 }
 0x284   :  { %3379 = vmatprep.mubr.f32.mxu1 %v3922_v37  ;;  %v3060_v37 = vpop.f32.mrf.mxu0  ;;  %3404 = vst [vmem:[%s4326_s4 + $0x90] sm:$0xff] %v3161_v47 }
 0x285   :  { %3402 = vst [vmem:[%s4326_s4 + $0x80] sm:$0xff] %v3060_v37  ;;  %v3163_v62 = vpop.f32.mrf.mxu1 }
 0x286   :  { %3405 = vst [vmem:[%s4326_s4 + $0x98] sm:$0xff] %v3163_v62 }
 0x287   :  { %3853 = vmatmul.mubr.msk.f32.gmra.mxu1 %vm2963_vm0, %v4128_v22  ;;  %v3062_v22 = vpop.f32.mrf.mxu0  ;;  %v3167_v1 = vpop.f32.mrf.mxu1 }
 0x288   :  { %3403 = vst [vmem:[%s4326_s4 + $0x88] sm:$0xff] %v3062_v22  ;;  %3412 = vst [vmem:[%s4326_s4 + $0xd0] sm:$0xff] %v3167_v1 }
 0x289   :  { %v3066_v63 = vpop.f32.mrf.mxu0  ;;  %v3169_v58 = vpop.f32.mrf.mxu1 }
 0x28a   :  { %3410 = vst [vmem:[%s4326_s4 + $0xc0] sm:$0xff] %v3066_v63  ;;  %3413 = vst [vmem:[%s4326_s4 + $0xd8] sm:$0xff] %v3169_v58 }
 0x28b   :  { %v3068_v2 = vpop.f32.mrf.mxu0  ;;  %v3173_v49 = vpop.f32.mrf.mxu1 }
 0x28c   :  { %3411 = vst [vmem:[%s4326_s4 + $0xc8] sm:$0xff] %v3068_v2  ;;  %3420 = vst [vmem:[%s4326_s4 + $0x110] sm:$0xff] %v3173_v49 }
 0x28d   :  { %v3072_v23 = vpop.f32.mrf.mxu0  ;;  %v3175_v48 = vpop.f32.mrf.mxu1 }
 0x28e   :  { %3418 = vst [vmem:[%s4326_s4 + $0x100] sm:$0xff] %v3072_v23  ;;  %3421 = vst [vmem:[%s4326_s4 + $0x118] sm:$0xff] %v3175_v48 }
 0x28f   :  { %v3074_v3 = vpop.f32.mrf.mxu0  ;;  %v3179_v39 = vpop.f32.mrf.mxu1 }
 0x290   :  { %3419 = vst [vmem:[%s4326_s4 + $0x108] sm:$0xff] %v3074_v3  ;;  %3428 = vst [vmem:[%s4326_s4 + $0x150] sm:$0xff] %v3179_v39 }
 0x291   :  { %v3078_v4 = vpop.f32.mrf.mxu0  ;;  %v3181_v7 = vpop.f32.mrf.mxu1 }
 0x292   :  { %3426 = vst [vmem:[%s4326_s4 + $0x140] sm:$0xff] %v3078_v4  ;;  %3429 = vst [vmem:[%s4326_s4 + $0x158] sm:$0xff] %v3181_v7 }
 0x293   :  { %v3080_v5 = vpop.f32.mrf.mxu0 }
 0x294   :  { %3427 = vst [vmem:[%s4326_s4 + $0x148] sm:$0xff] %v3080_v5 }
 0x2f1   :  { %v3250_v8 = vpop.f32.mrf.mxu0 }
 0x2f2   :  { %3390 = vst [vmem:[%s4326_s4 + $0x20] sm:$0xff] %v3250_v8 }
 0x2f3   :  { %v3252_v9 = vpop.f32.mrf.mxu0 }
 0x2f4   :  { %3391 = vst [vmem:[%s4326_s4 + $0x28] sm:$0xff] %v3252_v9 }
 0x2f5   :  { %v3256_v11 = vpop.f32.mrf.mxu0 }
 0x2f6   :  { %3398 = vst [vmem:[%s4326_s4 + $0x60] sm:$0xff] %v3256_v11 }
 0x2f7   :  { %v3258_v13 = vpop.f32.mrf.mxu0 }
 0x2f8   :  { %3399 = vst [vmem:[%s4326_s4 + $0x68] sm:$0xff] %v3258_v13 }
 0x2f9   :  { %v3262_v0 = vpop.f32.mrf.mxu0 }
 0x2fa   :  { %3406 = vst [vmem:[%s4326_s4 + $0xa0] sm:$0xff] %v3262_v0 }
 0x2fb   :  { %v3264_v14 = vpop.f32.mrf.mxu0 }
 0x2fc   :  { %3407 = vst [vmem:[%s4326_s4 + $0xa8] sm:$0xff] %v3264_v14 }
 0x2fd   :  { %v3268_v16 = vpop.f32.mrf.mxu0 }
 0x2fe   :  { %3414 = vst [vmem:[%s4326_s4 + $0xe0] sm:$0xff] %v3268_v16 }
 0x2ff   :  { %v3270_v17 = vpop.f32.mrf.mxu0 }
 0x300   :  { %3415 = vst [vmem:[%s4326_s4 + $0xe8] sm:$0xff] %v3270_v17 }
 0x301   :  { %v3274_v18 = vpop.f32.mrf.mxu0 }
 0x302   :  { %3422 = vst [vmem:[%s4326_s4 + $0x120] sm:$0xff] %v3274_v18 }
 0x303   :  { %v3276_v19 = vpop.f32.mrf.mxu0 }
 0x304   :  { %3423 = vst [vmem:[%s4326_s4 + $0x128] sm:$0xff] %v3276_v19 }
 0x305   :  { %v3280_v10 = vpop.f32.mrf.mxu0 }
 0x306   :  { %3430 = vst [vmem:[%s4326_s4 + $0x160] sm:$0xff] %v3280_v10 }
 0x307   :  { %v3282_v20 = vpop.f32.mrf.mxu0 }
 0x308   :  { %3431 = vst [vmem:[%s4326_s4 + $0x168] sm:$0xff] %v3282_v20 }
 0x333   :  { %v3351_v21 = vpop.f32.mrf.mxu1 }
 0x334   :  { %3392 = vst [vmem:[%s4326_s4 + $0x30] sm:$0xff] %v3351_v21 }
 0x335   :  { %v3353_v25 = vpop.f32.mrf.mxu1 }
 0x336   :  { %3393 = vst [vmem:[%s4326_s4 + $0x38] sm:$0xff] %v3353_v25 }
 0x337   :  { %v3357_v26 = vpop.f32.mrf.mxu1 }
 0x338   :  { %3400 = vst [vmem:[%s4326_s4 + $0x70] sm:$0xff] %v3357_v26 }
 0x339   :  { %v3359_v27 = vpop.f32.mrf.mxu1 }
 0x33a   :  { %3401 = vst [vmem:[%s4326_s4 + $0x78] sm:$0xff] %v3359_v27 }
 0x33b   :  { %v3363_v28 = vpop.f32.mrf.mxu1 }
 0x33c   :  { %3408 = vst [vmem:[%s4326_s4 + $0xb0] sm:$0xff] %v3363_v28 }
 0x33d   :  { %v3365_v29 = vpop.f32.mrf.mxu1 }
 0x33e   :  { %3409 = vst [vmem:[%s4326_s4 + $0xb8] sm:$0xff] %v3365_v29 }
 0x33f   :  { %v3369_v30 = vpop.f32.mrf.mxu1 }
 0x340   :  { %3416 = vst [vmem:[%s4326_s4 + $0xf0] sm:$0xff] %v3369_v30 }
 0x341   :  { %v3371_v31 = vpop.f32.mrf.mxu1 }
 0x342   :  { %3417 = vst [vmem:[%s4326_s4 + $0xf8] sm:$0xff] %v3371_v31 }
 0x343   :  { %v3375_v32 = vpop.f32.mrf.mxu1 }
 0x344   :  { %3424 = vst [vmem:[%s4326_s4 + $0x130] sm:$0xff] %v3375_v32 }
 0x345   :  { %v3377_v12 = vpop.f32.mrf.mxu1 }
 0x346   :  { %3425 = vst [vmem:[%s4326_s4 + $0x138] sm:$0xff] %v3377_v12 }
 0x347   :  { %v3381_v33 = vpop.f32.mrf.mxu1 }
 0x348   :  { %3432 = vst [vmem:[%s4326_s4 + $0x170] sm:$0xff] %v3381_v33 }
 0x349   :  { %v3383_v34 = vpop.f32.mrf.mxu1 }
 0x34a   :  { %3433 = vst [vmem:[%s4326_s4 + $0x178] sm:$0xff] %v3383_v34 }
 0x34b   :  { %3438 = vsyncpa [#allocation3], 1 }
 0x34c   :  { %3439 = vsyncpa [#allocation5], 1 }

// kernel: pasta_res50_forward.7
= control target key start
LH: loop header
LB: loop body
LE: loop exit
PB: predicated region body
PF: predicated region fallthrough
CT: control target
= control target key end

     0   :  { %v278_v0 = vmov 0.0   ;;  %vm279_vm0 = vmmov 0   ;;  %vm138_vm1 = vcmask 1046528   ;;  %vm134_vm2 = vcmask 121856   ;;  %s354_s1 = inlined_call_operand.vmem [shape: bf16[96,10], index: 1, kind: input, shape index: {}]   ;;  %s355_s4 = inlined_call_operand.vmem [shape: f32[15,64], index: 4, kind: input, shape index: {}]   ;;  %s356_s3 = inlined_call_operand.vmem [shape: f32[8,15], index: 3, kind: input, shape index: {}]   ;;  %s357_s0 = inlined_call_operand.vmem [shape: bf16[8,96], index: 0, kind: input, shape index: {}]   ;;  %s358_s6 = inlined_call_operand.vmem [shape: f32[8,64], index: 6, kind: output, shape index: {1}]   ;;  %s359_s2 = inlined_call_operand.vmem [shape: f32[1,10], index: 2, kind: input, shape index: {}]   ;;  %s360_s5 = inlined_call_operand.vmem [shape: f32[8,10], index: 5, kind: output, shape index: {0}]  }
   0x1   :  { %243 = vmatprep.subr.bf16.mxu0 %v278_v0  ;;  %v268_v1 = vld [vmem:[%s354_s1 + $0x28] sm:$0xff]   ;;  %255 = vmatprep.mubr.msk.bf16.mxu0 %vm279_vm0, %v278_v0  ;;  %v269_v2 = vld [vmem:[%s354_s1 + $0x20] sm:$0xff]   ;;  %v270_v3 = vld [vmem:[%s354_s1 + $0x18] sm:$0xff]   ;;  %vm79_vm3 = vcmask 785408   ;;  %vm212_vm4 = vcmask 523264   ;;  %vm129_vm5 = vcmask 80896  }
   0x2   :  { %259 = vmatprep.subr.mxu1 %v278_v0  ;;  %263 = vmatprep.mubr.msk.f32.mxu1 %vm279_vm0, %v278_v0  ;;  %v133_v4 = vld [vmem:[%s355_s4 + $0x8] sm:$0x7f]  ;;  %v132_v5 = vld [vmem:[%s355_s4] sm:$0xff]  ;;  %v271_v7 = vld [vmem:[%s354_s1 + $0x10] sm:$0xff]  }
   0x3   :  { %244 = vmatpush3.bf16.msra.mxu0 %v268_v1  ;;  %260 = vmatpush3.msk.msra.mxu1 %vm138_vm1, %v133_v4  ;;  %v131_v6 = vld [vmem:[%s356_s3] sm:$0xff]  ;;  %v272_v8 = vld [vmem:[%s354_s1 + $0x8] sm:$0xff]  }
   0x4   :  { %245 = vmatprep.subr.bf16.mxu0 %v278_v0  ;;  %261 = vmatprep.subr.mxu1 %v278_v0  ;;  %v273_v9 = vld [vmem:[%s354_s1] sm:$0xff]  }
   0x5   :  { %262 = vmatpush3.msra.mxu1 %v132_v5  ;;  %v23_v10 = vld [vmem:[%s357_s0] sm:$0xf] }
   0x6   :  { %264 = vmatmul.mubr.msk.f32.vlgmr.msra.gmra.mxu1 %vm134_vm2, %v131_v6  ;;  %v222_v13 = vld [vmem:[%s359_s2] ss:$0 sm:$0xff] }
   0x7   :  { %246 = vmatpush3.bf16.msra.mxu0 %v269_v2 }
   0x8   :  { %247 = vmatprep.subr.bf16.mxu0 %v278_v0 }
   0xb   :  { %248 = vmatpush3.bf16.msra.mxu0 %v270_v3 }
   0xc   :  { %249 = vmatprep.subr.bf16.mxu0 %v278_v0 }
   0xf   :  { %250 = vmatpush3.bf16.msra.mxu0 %v271_v7 }
  0x10   :  { %251 = vmatprep.subr.bf16.mxu0 %v278_v0 }
  0x13   :  { %252 = vmatpush3.bf16.msra.mxu0 %v272_v8 }
  0x14   :  { %253 = vmatprep.subr.bf16.mxu0 %v278_v0 }
  0x17   :  { %254 = vmatpush3.bf16.msra.mxu0 %v273_v9 }
  0x1a   :  { %256 = vmatmul.mubr.msk.bf16.vlgmr.msra.gmra.mxu0 %vm79_vm3, %v23_v10 }
  0xc6   :  { %v208_v11 = vpop.f32.mrf.mxu1 }
  0xc7   :  { %213 = vst.msk [vmem:[%s358_s6] sm:$0xff] %vm212_vm4, %v208_v11 }
  0xc8   :  { %v265_v12 = vpop.f32.mrf.mxu1 }
  0xda   :  { %v117_v14 = vpop.f32.mrf.mxu0 }
  0xdb   :  { %v118_v15 = vadd.f32 %v222_v13, %v117_v14 }
  0xdc   :  { %v257_v16 = vpop.f32.mrf.mxu0 }
  0xdd   :  { %v230_v17 = vmul.f32 -1.442695, %v118_v15 }
  0xde   :  { %v120_v18 = vpop.f32.mrf.mxu0 }
  0xdf   :  { %274 = vpow2.f32 %v230_v17 }
  0xe0   :  { %v258_v19 = vpop.f32.mrf.mxu0 }
  0xec   :  { %v275_v20 = vpop.eup %274 }
  0xed   :  { %v126_v21 = vadd.f32 1.0, %v275_v20 }
  0xef   :  { %276 = vrcp.f32 %v126_v21 }
  0xfc   :  { %v277_v22 = vpop.eup %276 }
  0xfd   :  { %130 = vst.msk [vmem:[%s360_s5] sm:$0xff] %vm129_vm5, %v277_v22 }

// kernel: pasta_res50_forward.6
= control target key start
LH: loop header
LB: loop body
LE: loop exit
PB: predicated region body
PF: predicated region fallthrough
CT: control target
= control target key end

     0   :  { %s5521_s27 = smov 0   ;;  %s5928_s0 = inlined_call_operand.vmem [shape: bf16[3,8,5120], index: 0, kind: input, shape index: {}]   ;;  %s5929_s1 = inlined_call_operand.vmem [shape: bf16[3,5120,32], index: 1, kind: input, shape index: {}]   ;;  %s5930_s2 = inlined_call_operand.vmem [shape: f32[3,1,32], index: 2, kind: input, shape index: {}]   ;;  %s5931_s3 = inlined_call_operand.vmem [shape: bf16[3,32,32], index: 3, kind: input, shape index: {}]   ;;  %s5932_s4 = inlined_call_operand.vmem [shape: f32[3,1,32], index: 4, kind: input, shape index: {}]   ;;  %s5933_s5 = inlined_call_operand.vmem [shape: bf16[3,32,128], index: 5, kind: input, shape index: {}]   ;;  %s5934_s6 = inlined_call_operand.vmem [shape: f32[3,1,128], index: 6, kind: input, shape index: {}]   ;;  %s5935_s7 = inlined_call_operand.vmem [shape: f32[3,8,32], index: 7, kind: output, shape index: {0}]   ;;  %s5936_s8 = inlined_call_operand.vmem [shape: f32[3,8,128], index: 8, kind: output, shape index: {1}]  }
   0x1 LB: > { %s4237_s28 = sadd.s32 4294967295, %s5472_s27   ;;  %p4241_p0 = scmp.ge.s32.totalorder %s5472_s27, 1  ;;  %s5472_s27 = sphi %s5521_s27, %s19_s27  }
   0x2   : > { %p319_p1 = scmp.lt.s32.totalorder %s5472_s27, 4 }
   0x4   : > { %p320_p2 = pnand %p4241_p0, %p319_p1 }
   0x5   : > { %p380_p3 = scmp.lt.s32.totalorder (!%p320_p2), %s4237_s28, 2 }
   0x6   : > { %323 = sbr.rel (%p320_p2) target bundleno = 969 (0x3c9), region = 48 }
   0xb   : > { %s5938_s28 = smov (!%p380_p3, %s4237_s28), 2  ;;  %vm5475_vm0 = vmmov 0   ;;  %vm3970_vm1 = vcmask 261120  }
   0xc   : > { %s5087_s29 = smul.u32 2560, %s5938_s28  ;;  %s392_s17 = scalar_lea.vmem %s5930_s2, %s5938_s28 }
   0xd   : > { %s5086_s11 = smul.u32 160, %s5938_s28  ;;  %s4622_s18 = sshll.u32 %s5938_s28, 4 }
   0xe   : > { %s5535_s10 = scalar_lea.vmem %s5929_s1, %s5087_s29  ;;  %s397_s21 = scalar_lea.vmem %s5931_s3, %s4622_s18 }
   0xf   : > { %v5098_v0 = vld [vmem:[%s5535_s10 + $0x78] sm:$0xff]   ;;  %v5102_v4 = vld [vmem:[%s5535_s10 + $0x70] sm:$0xff]   ;;  %v5106_v8 = vld [vmem:[%s5535_s10 + $0x68] sm:$0xff]   ;;  %s5571_s14 = scalar_lea.vmem %s5928_s0, %s5086_s11  ;;  %s5903_s24 = scalar_lea.vmem %s5933_s5, %s4622_s18 }
  0x10   : > { %v5099_v1 = vld [vmem:[%s5535_s10 + $0xf8] sm:$0xff]   ;;  %4624 = vmatprep.subr.bf16.mxu0 %v5098_v0  ;;  %v5103_v5 = vld [vmem:[%s5535_s10 + $0xf0] sm:$0xff]   ;;  %v5107_v9 = vld [vmem:[%s5535_s10 + $0xe8] sm:$0xff]   ;;  %s400_s29 = scalar_lea.vmem %s5932_s4, %s5938_s28  ;;  %s4248_s30 = sshll.u32 %s5938_s28, 3 }
  0x11   : > { %v5100_v2 = vld [vmem:[%s5535_s10 + $0x38] sm:$0xff]   ;;  %4646 = vmatprep.subr.bf16.mxu1 %v5099_v1  ;;  %v5104_v6 = vld [vmem:[%s5535_s10 + $0x30] sm:$0xff]   ;;  %v5108_v10 = vld [vmem:[%s5535_s10 + $0x28] sm:$0xff]   ;;  %s412_s11 = scalar_lea.vmem %s5935_s7, %s4248_s30 }
  0x12   : > { %v5101_v3 = vld [vmem:[%s5535_s10 + $0xb8] sm:$0xff]   ;;  %4625 = vmatpush3.bf16.msra.mxu0 %v5100_v2  ;;  %v5105_v7 = vld [vmem:[%s5535_s10 + $0xb0] sm:$0xff]   ;;  %v5109_v11 = vld [vmem:[%s5535_s10 + $0xa8] sm:$0xff]  }
  0x13   : > { %4647 = vmatpush3.bf16.msra.mxu1 %v5101_v3  ;;  %4626 = vmatprep.subr.bf16.mxu0 %v5102_v4  ;;  %v5110_v12 = vld [vmem:[%s5535_s10 + $0x60] sm:$0xff]   ;;  %v5114_v16 = vld [vmem:[%s5535_s10 + $0x58] sm:$0xff]   ;;  %v5118_v20 = vld [vmem:[%s5535_s10 + $0x50] sm:$0xff]  }
  0x14   : > { %4648 = vmatprep.subr.bf16.mxu1 %v5103_v5  ;;  %v5111_v13 = vld [vmem:[%s5535_s10 + $0xe0] sm:$0xff]   ;;  %v5115_v17 = vld [vmem:[%s5535_s10 + $0xd8] sm:$0xff]   ;;  %v5119_v21 = vld [vmem:[%s5535_s10 + $0xd0] sm:$0xff]  }
  0x15   : > { %v5112_v14 = vld [vmem:[%s5535_s10 + $0x20] sm:$0xff]   ;;  %v5116_v18 = vld [vmem:[%s5535_s10 + $0x18] sm:$0xff]   ;;  %v5120_v22 = vld [vmem:[%s5535_s10 + $0x10] sm:$0xff]  }
  0x16   : > { %4627 = vmatpush3.bf16.msra.mxu0 %v5104_v6  ;;  %v5113_v15 = vld [vmem:[%s5535_s10 + $0xa0] sm:$0xff]   ;;  %v5117_v19 = vld [vmem:[%s5535_s10 + $0x98] sm:$0xff]   ;;  %v5121_v23 = vld [vmem:[%s5535_s10 + $0x90] sm:$0xff]  }
  0x17   : > { %4649 = vmatpush3.bf16.msra.mxu1 %v5105_v7  ;;  %4628 = vmatprep.subr.bf16.mxu0 %v5106_v8  ;;  %v5122_v24 = vld [vmem:[%s5535_s10 + $0x48] sm:$0xff]   ;;  %v5126_v28 = vld [vmem:[%s5535_s10 + $0x40] sm:$0xff]   ;;  %v5134_v38 = vld [vmem:[%s5535_s10 + $0x178] sm:$0xff]  }
  0x18   : > { %4650 = vmatprep.subr.bf16.mxu1 %v5107_v9  ;;  %v5123_v25 = vld [vmem:[%s5535_s10 + $0xc8] sm:$0xff]   ;;  %v5127_v29 = vld [vmem:[%s5535_s10 + $0xc0] sm:$0xff]   ;;  %v5135_v39 = vld [vmem:[%s5535_s10 + $0x1f8] sm:$0xff]  }
  0x19   : > { %v5124_v26 = vld [vmem:[%s5535_s10 + $0x8] sm:$0xff]   ;;  %v5128_v30 = vld [vmem:[%s5535_s10] sm:$0xff]   ;;  %v5136_v40 = vld [vmem:[%s5535_s10 + $0x138] sm:$0xff]  }
  0x1a   : > { %4629 = vmatpush3.bf16.msra.mxu0 %v5108_v10  ;;  %v5125_v27 = vld [vmem:[%s5535_s10 + $0x88] sm:$0xff]   ;;  %v5129_v31 = vld [vmem:[%s5535_s10 + $0x80] sm:$0xff]   ;;  %v5137_v41 = vld [vmem:[%s5535_s10 + $0x1b8] sm:$0xff]  }
  0x1b   : > { %4651 = vmatpush3.bf16.msra.mxu1 %v5109_v11  ;;  %4630 = vmatprep.subr.bf16.mxu0 %v5110_v12  ;;  %v418_v32 = vld [vmem:[%s5571_s14] sm:$0xff]  ;;  %v419_v33 = vld [vmem:[%s5571_s14 + $0x8] sm:$0xff]  ;;  %v5138_v42 = vld [vmem:[%s5535_s10 + $0x170] sm:$0xff]  }
  0x1c   : > { %4652 = vmatprep.subr.bf16.mxu1 %v5111_v13  ;;  %v4251_v34 = vcombine.low %v418_v32, %v418_v32  ;;  %v4252_v35 = vcombine.high %v418_v32, %v418_v32  ;;  %v4253_v36 = vcombine.low %v419_v33, %v419_v33  ;;  %v4254_v37 = vcombine.high %v419_v33, %v419_v33  ;;  %v5139_v43 = vld [vmem:[%s5535_s10 + $0x1f0] sm:$0xff]   ;;  %v5142_v46 = vld [vmem:[%s5535_s10 + $0x168] sm:$0xff]   ;;  %v5146_v50 = vld [vmem:[%s5535_s10 + $0x160] sm:$0xff]  }
  0x1d   : > { %v5140_v44 = vld [vmem:[%s5535_s10 + $0x130] sm:$0xff]   ;;  %v5143_v47 = vld [vmem:[%s5535_s10 + $0x1e8] sm:$0xff]   ;;  %v5147_v51 = vld [vmem:[%s5535_s10 + $0x1e0] sm:$0xff]  }
  0x1e   : > { %4631 = vmatpush3.bf16.msra.mxu0 %v5112_v14  ;;  %3177 = vmatprep.mubr.bf16.mxu0 %v4252_v35  ;;  %v5141_v45 = vld [vmem:[%s5535_s10 + $0x1b0] sm:$0xff]   ;;  %v5144_v48 = vld [vmem:[%s5535_s10 + $0x128] sm:$0xff]   ;;  %v5148_v52 = vld [vmem:[%s5535_s10 + $0x120] sm:$0xff]  }
  0x1f   : > { %4653 = vmatpush3.bf16.msra.mxu1 %v5113_v15  ;;  %4632 = vmatprep.subr.bf16.mxu0 %v5114_v16  ;;  %v5145_v49 = vld [vmem:[%s5535_s10 + $0x1a8] sm:$0xff]   ;;  %v5149_v53 = vld [vmem:[%s5535_s10 + $0x1a0] sm:$0xff]   ;;  %v5150_v54 = vld [vmem:[%s5535_s10 + $0x158] sm:$0xff]  }
  0x20   : > { %4654 = vmatprep.subr.bf16.mxu1 %v5115_v17  ;;  %3217 = vmatprep.mubr.bf16.mxu1 %v4254_v37  ;;  %v5151_v55 = vld [vmem:[%s5535_s10 + $0x1d8] sm:$0xff]   ;;  %v5154_v58 = vld [vmem:[%s5535_s10 + $0x150] sm:$0xff]   ;;  %v5158_v62 = vld [vmem:[%s5535_s10 + $0x148] sm:$0xff]  }
  0x21   : > { %v5152_v56 = vld [vmem:[%s5535_s10 + $0x118] sm:$0xff]   ;;  %v5155_v59 = vld [vmem:[%s5535_s10 + $0x1d0] sm:$0xff]   ;;  %v5159_v63 = vld [vmem:[%s5535_s10 + $0x1c8] sm:$0xff]  }
  0x22   : > { %4633 = vmatpush3.bf16.msra.mxu0 %v5116_v18  ;;  %v5153_v57 = vld [vmem:[%s5535_s10 + $0x198] sm:$0xff]   ;;  %v5156_v60 = vld [vmem:[%s5535_s10 + $0x110] sm:$0xff]   ;;  %v5160_v0 = vld [vmem:[%s5535_s10 + $0x108] sm:$0xff]  }
  0x23   : > { %4655 = vmatpush3.bf16.msra.mxu1 %v5117_v19  ;;  %4634 = vmatprep.subr.bf16.mxu0 %v5118_v20  ;;  %v5157_v61 = vld [vmem:[%s5535_s10 + $0x190] sm:$0xff]   ;;  %v5161_v1 = vld [vmem:[%s5535_s10 + $0x188] sm:$0xff]   ;;  %v5162_v2 = vld [vmem:[%s5535_s10 + $0x140] sm:$0xff]  }
  0x24   : > { %4656 = vmatprep.subr.bf16.mxu1 %v5119_v21  ;;  %v5163_v3 = vld [vmem:[%s5535_s10 + $0x1c0] sm:$0xff]   ;;  %v420_v6 = vld [vmem:[%s5571_s14 + $0x10] sm:$0xff]  ;;  %v421_v9 = vld [vmem:[%s5571_s14 + $0x18] sm:$0xff] }
  0x25   : > { %v5164_v4 = vld [vmem:[%s5535_s10 + $0x100] sm:$0xff]   ;;  %v4255_v7 = vcombine.low %v420_v6, %v420_v6  ;;  %v4256_v8 = vcombine.high %v420_v6, %v420_v6  ;;  %v4257_v10 = vcombine.low %v421_v9, %v421_v9  ;;  %v4258_v11 = vcombine.high %v421_v9, %v421_v9  ;;  %v5170_v12 = vld [vmem:[%s5535_s10 + $0x278] sm:$0xff]   ;;  %v5174_v16 = vld [vmem:[%s5535_s10 + $0x270] sm:$0xff]  }
  0x26   : > { %4635 = vmatpush3.bf16.msra.mxu0 %v5120_v22  ;;  %v5165_v5 = vld [vmem:[%s5535_s10 + $0x180] sm:$0xff]   ;;  %v5171_v13 = vld [vmem:[%s5535_s10 + $0x2f8] sm:$0xff]   ;;  %v5175_v17 = vld [vmem:[%s5535_s10 + $0x2f0] sm:$0xff]  }
  0x27   : > { %4657 = vmatpush3.bf16.msra.mxu1 %v5121_v23  ;;  %4636 = vmatprep.subr.bf16.mxu0 %v5122_v24  ;;  %v5172_v14 = vld [vmem:[%s5535_s10 + $0x238] sm:$0xff]   ;;  %v5176_v18 = vld [vmem:[%s5535_s10 + $0x230] sm:$0xff]   ;;  %v5178_v20 = vld [vmem:[%s5535_s10 + $0x268] sm:$0xff]  }
  0x28   : > { %4658 = vmatprep.subr.bf16.mxu1 %v5123_v25  ;;  %v5173_v15 = vld [vmem:[%s5535_s10 + $0x2b8] sm:$0xff]   ;;  %v5177_v19 = vld [vmem:[%s5535_s10 + $0x2b0] sm:$0xff]   ;;  %v5179_v21 = vld [vmem:[%s5535_s10 + $0x2e8] sm:$0xff]  }
  0x29   : > { %v5180_v22 = vld [vmem:[%s5535_s10 + $0x228] sm:$0xff]   ;;  %v5182_v24 = vld [vmem:[%s5535_s10 + $0x260] sm:$0xff]   ;;  %v5190_v32 = vld [vmem:[%s5535_s10 + $0x250] sm:$0xff]  }
  0x2a   : > { %4637 = vmatpush3.bf16.msra.mxu0 %v5124_v26  ;;  %v5181_v23 = vld [vmem:[%s5535_s10 + $0x2a8] sm:$0xff]   ;;  %v5183_v25 = vld [vmem:[%s5535_s10 + $0x2e0] sm:$0xff]   ;;  %v5191_v33 = vld [vmem:[%s5535_s10 + $0x2d0] sm:$0xff]  }
  0x2b   : > { %4659 = vmatpush3.bf16.msra.mxu1 %v5125_v27  ;;  %4638 = vmatprep.subr.bf16.mxu0 %v5126_v28  ;;  %v5184_v26 = vld [vmem:[%s5535_s10 + $0x220] sm:$0xff]   ;;  %v5186_v28 = vld [vmem:[%s5535_s10 + $0x258] sm:$0xff]   ;;  %v5193_v35 = vld [vmem:[%s5535_s10 + $0x290] sm:$0xff]  }
  0x2c   : > { %4660 = vmatprep.subr.bf16.mxu1 %v5127_v29  ;;  %v5185_v27 = vld [vmem:[%s5535_s10 + $0x2a0] sm:$0xff]   ;;  %v5187_v29 = vld [vmem:[%s5535_s10 + $0x2d8] sm:$0xff]   ;;  %v5195_v37 = vld [vmem:[%s5535_s10 + $0x2c8] sm:$0xff]  }
  0x2d   : > { %v5226_v6 = vld [vmem:[%s5535_s10 + $0x350] sm:$0xff]  }
  0x2e   : > { %4639 = vmatpush3.bf16.msra.mxu0 %v5128_v30  ;;  %v5188_v30 = vld [vmem:[%s5535_s10 + $0x218] sm:$0xff]   ;;  %v5229_v9 = vld [vmem:[%s5535_s10 + $0x390] sm:$0xff]  }
  0x2f   : > { %4661 = vmatpush3.bf16.msra.mxu1 %v5129_v31  ;;  %4668 = vmatprep.subr.bf16.mxu0 %v5134_v38  ;;  %v5189_v31 = vld [vmem:[%s5535_s10 + $0x298] sm:$0xff]   ;;  %v5196_v38 = vld [vmem:[%s5535_s10 + $0x208] sm:$0xff]  }
  0x30   : > { %4690 = vmatprep.subr.bf16.mxu1 %v5135_v39  ;;  %v5197_v39 = vld [vmem:[%s5535_s10 + $0x288] sm:$0xff]  }
  0x31   : > { %3178 = vmatmul.mubr.bf16.vlgmr.msra.gmra.mxu0 %v4251_v34  ;;  %v5192_v34 = vld [vmem:[%s5535_s10 + $0x210] sm:$0xff]  }
  0x32   : > { %3218 = vmatmul.mubr.bf16.vlgmr.msra.gmra.mxu1 %v4253_v36  ;;  %4669 = vmatpush3.bf16.msra.mxu0 %v5136_v40  ;;  %v5194_v36 = vld [vmem:[%s5535_s10 + $0x248] sm:$0xff]   ;;  %v5198_v40 = vld [vmem:[%s5535_s10 + $0x240] sm:$0xff]  }
  0x33   : > { %4691 = vmatpush3.bf16.msra.mxu1 %v5137_v41  ;;  %4670 = vmatprep.subr.bf16.mxu0 %v5138_v42  ;;  %v5199_v41 = vld [vmem:[%s5535_s10 + $0x2c0] sm:$0xff]  }
  0x34   : > { %4692 = vmatprep.subr.bf16.mxu1 %v5139_v43  ;;  %3257 = vmatprep.mubr.bf16.mxu0 %v4256_v8  ;;  %v5200_v42 = vld [vmem:[%s5535_s10 + $0x200] sm:$0xff]   ;;  %v5228_v8 = vld [vmem:[%s5535_s10 + $0x310] sm:$0xff]  }
  0x35   : > { %3297 = vmatprep.mubr.bf16.mxu1 %v4258_v11  ;;  %v5201_v43 = vld [vmem:[%s5535_s10 + $0x280] sm:$0xff]   ;;  %v5231_v11 = vld [vmem:[%s5535_s10 + $0x3c8] sm:$0xff]  }
  0x36   : > { %4671 = vmatpush3.bf16.msra.mxu0 %v5140_v44  ;;  %v422_v44 = vld [vmem:[%s5571_s14 + $0x20] sm:$0xff] }
  0x37   : > { %4693 = vmatpush3.bf16.msra.mxu1 %v5141_v45  ;;  %4672 = vmatprep.subr.bf16.mxu0 %v5142_v46  ;;  %v423_v45 = vld [vmem:[%s5571_s14 + $0x28] sm:$0xff]  ;;  %v4259_v46 = vcombine.low %v422_v44, %v422_v44 }
  0x38   : > { %4694 = vmatprep.subr.bf16.mxu1 %v5143_v47  ;;  %v4260_v47 = vcombine.high %v422_v44, %v422_v44  ;;  %v5262_v44 = vld [vmem:[%s5535_s10 + $0x450] sm:$0xff]  }
  0x3a   : > { %4673 = vmatpush3.bf16.msra.mxu0 %v5144_v48  ;;  %v4261_v48 = vcombine.low %v423_v45, %v423_v45 }
  0x3b   : > { %4695 = vmatpush3.bf16.msra.mxu1 %v5145_v49  ;;  %4674 = vmatprep.subr.bf16.mxu0 %v5146_v50  ;;  %v4262_v49 = vcombine.high %v423_v45, %v423_v45  ;;  %v5206_v50 = vld [vmem:[%s5535_s10 + $0x378] sm:$0xff]   ;;  %v5263_v45 = vld [vmem:[%s5535_s10 + $0x4d0] sm:$0xff]  }
  0x3c   : > { %4696 = vmatprep.subr.bf16.mxu1 %v5147_v51  ;;  %v5207_v51 = vld [vmem:[%s5535_s10 + $0x3f8] sm:$0xff]  }
  0x3e   : > { %4675 = vmatpush3.bf16.msra.mxu0 %v5148_v52  ;;  %v5208_v52 = vld [vmem:[%s5535_s10 + $0x338] sm:$0xff]  }
  0x3f   : > { %4697 = vmatpush3.bf16.msra.mxu1 %v5149_v53  ;;  %4676 = vmatprep.subr.bf16.mxu0 %v5150_v54  ;;  %v5209_v53 = vld [vmem:[%s5535_s10 + $0x3b8] sm:$0xff]   ;;  %v5210_v54 = vld [vmem:[%s5535_s10 + $0x370] sm:$0xff]  }
  0x40   : > { %4698 = vmatprep.subr.bf16.mxu1 %v5151_v55  ;;  %v5211_v55 = vld [vmem:[%s5535_s10 + $0x3f0] sm:$0xff]  }
  0x42   : > { %4677 = vmatpush3.bf16.msra.mxu0 %v5152_v56  ;;  %v5212_v56 = vld [vmem:[%s5535_s10 + $0x330] sm:$0xff]  }
  0x43   : > { %4699 = vmatpush3.bf16.msra.mxu1 %v5153_v57  ;;  %4678 = vmatprep.subr.bf16.mxu0 %v5154_v58  ;;  %v5213_v57 = vld [vmem:[%s5535_s10 + $0x3b0] sm:$0xff]   ;;  %v5214_v58 = vld [vmem:[%s5535_s10 + $0x368] sm:$0xff]  }
  0x44   : > { %4700 = vmatprep.subr.bf16.mxu1 %v5155_v59  ;;  %v5215_v59 = vld [vmem:[%s5535_s10 + $0x3e8] sm:$0xff]  }
  0x46   : > { %4679 = vmatpush3.bf16.msra.mxu0 %v5156_v60  ;;  %v5216_v60 = vld [vmem:[%s5535_s10 + $0x328] sm:$0xff]  }
  0x47   : > { %4701 = vmatpush3.bf16.msra.mxu1 %v5157_v61  ;;  %4680 = vmatprep.subr.bf16.mxu0 %v5158_v62  ;;  %v5217_v61 = vld [vmem:[%s5535_s10 + $0x3a8] sm:$0xff]   ;;  %v5218_v62 = vld [vmem:[%s5535_s10 + $0x360] sm:$0xff]  }
  0x48   : > { %4702 = vmatprep.subr.bf16.mxu1 %v5159_v63  ;;  %v5219_v63 = vld [vmem:[%s5535_s10 + $0x3e0] sm:$0xff]  }
  0x4a   : > { %4681 = vmatpush3.bf16.msra.mxu0 %v5160_v0  ;;  %v5220_v0 = vld [vmem:[%s5535_s10 + $0x320] sm:$0xff]  }
  0x4b   : > { %4703 = vmatpush3.bf16.msra.mxu1 %v5161_v1  ;;  %4682 = vmatprep.subr.bf16.mxu0 %v5162_v2  ;;  %v5221_v1 = vld [vmem:[%s5535_s10 + $0x3a0] sm:$0xff]   ;;  %v5222_v2 = vld [vmem:[%s5535_s10 + $0x358] sm:$0xff]  }
  0x4c   : > { %4704 = vmatprep.subr.bf16.mxu1 %v5163_v3  ;;  %v5223_v3 = vld [vmem:[%s5535_s10 + $0x3d8] sm:$0xff]  }
  0x4e   : > { %4683 = vmatpush3.bf16.msra.mxu0 %v5164_v4  ;;  %v5224_v4 = vld [vmem:[%s5535_s10 + $0x318] sm:$0xff]  }
  0x4f   : > { %4705 = vmatpush3.bf16.msra.mxu1 %v5165_v5  ;;  %4712 = vmatprep.subr.bf16.mxu0 %v5170_v12  ;;  %v5225_v5 = vld [vmem:[%s5535_s10 + $0x398] sm:$0xff]   ;;  %v5232_v12 = vld [vmem:[%s5535_s10 + $0x308] sm:$0xff]  }
  0x50   : > { %4734 = vmatprep.subr.bf16.mxu1 %v5171_v13  ;;  %v5233_v13 = vld [vmem:[%s5535_s10 + $0x388] sm:$0xff]  }
  0x51   : > { %3258 = vmatmul.mubr.bf16.vlgmr.msra.gmra.mxu0 %v4255_v7  ;;  %v5227_v7 = vld [vmem:[%s5535_s10 + $0x3d0] sm:$0xff]  }
  0x52   : > { %3298 = vmatmul.mubr.bf16.vlgmr.msra.gmra.mxu1 %v4257_v10  ;;  %4713 = vmatpush3.bf16.msra.mxu0 %v5172_v14  ;;  %v5230_v10 = vld [vmem:[%s5535_s10 + $0x348] sm:$0xff]   ;;  %v5234_v14 = vld [vmem:[%s5535_s10 + $0x340] sm:$0xff]  }
  0x53   : > { %4735 = vmatpush3.bf16.msra.mxu1 %v5173_v15  ;;  %4714 = vmatprep.subr.bf16.mxu0 %v5174_v16  ;;  %v5235_v15 = vld [vmem:[%s5535_s10 + $0x3c0] sm:$0xff]  }
  0x54   : > { %4736 = vmatprep.subr.bf16.mxu1 %v5175_v17  ;;  %3337 = vmatprep.mubr.bf16.mxu0 %v4260_v47  ;;  %v5236_v16 = vld [vmem:[%s5535_s10 + $0x300] sm:$0xff]   ;;  %v5265_v47 = vld [vmem:[%s5535_s10 + $0x490] sm:$0xff]  }
  0x55   : > { %3377 = vmatprep.mubr.bf16.mxu1 %v4262_v49  ;;  %v5237_v17 = vld [vmem:[%s5535_s10 + $0x380] sm:$0xff]   ;;  %v5267_v49 = vld [vmem:[%s5535_s10 + $0x4c8] sm:$0xff]  }
  0x56   : > { %4715 = vmatpush3.bf16.msra.mxu0 %v5176_v18  ;;  %v424_v18 = vld [vmem:[%s5571_s14 + $0x30] sm:$0xff] }
  0x57   : > { %4737 = vmatpush3.bf16.msra.mxu1 %v5177_v19  ;;  %4716 = vmatprep.subr.bf16.mxu0 %v5178_v20  ;;  %v425_v19 = vld [vmem:[%s5571_s14 + $0x38] sm:$0xff]  ;;  %v4263_v20 = vcombine.low %v424_v18, %v424_v18 }
  0x58   : > { %4738 = vmatprep.subr.bf16.mxu1 %v5179_v21  ;;  %v4264_v21 = vcombine.high %v424_v18, %v424_v18  ;;  %v5298_v18 = vld [vmem:[%s5535_s10 + $0x550] sm:$0xff]  }
  0x5a   : > { %4717 = vmatpush3.bf16.msra.mxu0 %v5180_v22  ;;  %v4265_v22 = vcombine.low %v425_v19, %v425_v19 }
  0x5b   : > { %4739 = vmatpush3.bf16.msra.mxu1 %v5181_v23  ;;  %4718 = vmatprep.subr.bf16.mxu0 %v5182_v24  ;;  %v5242_v23 = vld [vmem:[%s5535_s10 + $0x478] sm:$0xff]   ;;  %v4266_v24 = vcombine.high %v425_v19, %v425_v19  ;;  %v5299_v19 = vld [vmem:[%s5535_s10 + $0x5d0] sm:$0xff]  }
  0x5c   : > { %4740 = vmatprep.subr.bf16.mxu1 %v5183_v25  ;;  %v5243_v25 = vld [vmem:[%s5535_s10 + $0x4f8] sm:$0xff]  }
  0x5e   : > { %4719 = vmatpush3.bf16.msra.mxu0 %v5184_v26  ;;  %v5244_v26 = vld [vmem:[%s5535_s10 + $0x438] sm:$0xff]  }
  0x5f   : > { %4741 = vmatpush3.bf16.msra.mxu1 %v5185_v27  ;;  %4720 = vmatprep.subr.bf16.mxu0 %v5186_v28  ;;  %v5245_v27 = vld [vmem:[%s5535_s10 + $0x4b8] sm:$0xff]   ;;  %v5246_v28 = vld [vmem:[%s5535_s10 + $0x470] sm:$0xff]  }
  0x60   : > { %4742 = vmatprep.subr.bf16.mxu1 %v5187_v29  ;;  %v5247_v29 = vld [vmem:[%s5535_s10 + $0x4f0] sm:$0xff]  }
  0x62   : > { %4721 = vmatpush3.bf16.msra.mxu0 %v5188_v30  ;;  %v5248_v30 = vld [vmem:[%s5535_s10 + $0x430] sm:$0xff]  }
  0x63   : > { %4743 = vmatpush3.bf16.msra.mxu1 %v5189_v31  ;;  %4722 = vmatprep.subr.bf16.mxu0 %v5190_v32  ;;  %v5249_v31 = vld [vmem:[%s5535_s10 + $0x4b0] sm:$0xff]   ;;  %v5250_v32 = vld [vmem:[%s5535_s10 + $0x468] sm:$0xff]  }
  0x64   : > { %4744 = vmatprep.subr.bf16.mxu1 %v5191_v33  ;;  %v5251_v33 = vld [vmem:[%s5535_s10 + $0x4e8] sm:$0xff]  }
  0x66   : > { %4723 = vmatpush3.bf16.msra.mxu0 %v5192_v34  ;;  %v5252_v34 = vld [vmem:[%s5535_s10 + $0x428] sm:$0xff]  }
  0x67   : > { %4745 = vmatpush3.bf16.msra.mxu1 %v5193_v35  ;;  %4724 = vmatprep.subr.bf16.mxu0 %v5194_v36  ;;  %v5253_v35 = vld [vmem:[%s5535_s10 + $0x4a8] sm:$0xff]   ;;  %v5254_v36 = vld [vmem:[%s5535_s10 + $0x460] sm:$0xff]  }
  0x68   : > { %4746 = vmatprep.subr.bf16.mxu1 %v5195_v37  ;;  %v5255_v37 = vld [vmem:[%s5535_s10 + $0x4e0] sm:$0xff]  }
  0x6a   : > { %4725 = vmatpush3.bf16.msra.mxu0 %v5196_v38  ;;  %v5256_v38 = vld [vmem:[%s5535_s10 + $0x420] sm:$0xff]  }
  0x6b   : > { %4747 = vmatpush3.bf16.msra.mxu1 %v5197_v39  ;;  %4726 = vmatprep.subr.bf16.mxu0 %v5198_v40  ;;  %v5257_v39 = vld [vmem:[%s5535_s10 + $0x4a0] sm:$0xff]   ;;  %v5258_v40 = vld [vmem:[%s5535_s10 + $0x458] sm:$0xff]  }
  0x6c   : > { %4748 = vmatprep.subr.bf16.mxu1 %v5199_v41  ;;  %v5259_v41 = vld [vmem:[%s5535_s10 + $0x4d8] sm:$0xff]  }
  0x6e   : > { %4727 = vmatpush3.bf16.msra.mxu0 %v5200_v42  ;;  %v5260_v42 = vld [vmem:[%s5535_s10 + $0x418] sm:$0xff]  }
  0x6f   : > { %4749 = vmatpush3.bf16.msra.mxu1 %v5201_v43  ;;  %4756 = vmatprep.subr.bf16.mxu0 %v5206_v50  ;;  %v5261_v43 = vld [vmem:[%s5535_s10 + $0x498] sm:$0xff]   ;;  %v5268_v50 = vld [vmem:[%s5535_s10 + $0x408] sm:$0xff]  }
  0x70   : > { %4778 = vmatprep.subr.bf16.mxu1 %v5207_v51  ;;  %v5269_v51 = vld [vmem:[%s5535_s10 + $0x488] sm:$0xff]  }
  0x71   : > { %3338 = vmatmul.mubr.bf16.vlgmr.msra.gmra.mxu0 %v4259_v46  ;;  %v5264_v46 = vld [vmem:[%s5535_s10 + $0x410] sm:$0xff]  }
  0x72   : > { %3378 = vmatmul.mubr.bf16.vlgmr.msra.gmra.mxu1 %v4261_v48  ;;  %4757 = vmatpush3.bf16.msra.mxu0 %v5208_v52  ;;  %v5266_v48 = vld [vmem:[%s5535_s10 + $0x448] sm:$0xff]   ;;  %v5270_v52 = vld [vmem:[%s5535_s10 + $0x440] sm:$0xff]  }
  0x73   : > { %4779 = vmatpush3.bf16.msra.mxu1 %v5209_v53  ;;  %4758 = vmatprep.subr.bf16.mxu0 %v5210_v54  ;;  %v5271_v53 = vld [vmem:[%s5535_s10 + $0x4c0] sm:$0xff]  }
  0x74   : > { %4780 = vmatprep.subr.bf16.mxu1 %v5211_v55  ;;  %3417 = vmatprep.mubr.bf16.mxu0 %v4264_v21  ;;  %v5272_v54 = vld [vmem:[%s5535_s10 + $0x400] sm:$0xff]   ;;  %v5301_v21 = vld [vmem:[%s5535_s10 + $0x590] sm:$0xff]  }
  0x75   : > { %3457 = vmatprep.mubr.bf16.mxu1 %v4266_v24  ;;  %v5273_v55 = vld [vmem:[%s5535_s10 + $0x480] sm:$0xff]   ;;  %v5304_v24 = vld [vmem:[%s5535_s10 + $0x508] sm:$0xff]  }
  0x76   : > { %4759 = vmatpush3.bf16.msra.mxu0 %v5212_v56  ;;  %v426_v56 = vld [vmem:[%s5571_s14 + $0x40] sm:$0xff] }
  0x77   : > { %4781 = vmatpush3.bf16.msra.mxu1 %v5213_v57  ;;  %4760 = vmatprep.subr.bf16.mxu0 %v5214_v58  ;;  %v4267_v57 = vcombine.low %v426_v56, %v426_v56  ;;  %v4268_v58 = vcombine.high %v426_v56, %v426_v56  ;;  %v5334_v56 = vld [vmem:[%s5535_s10 + $0x650] sm:$0xff]  }
  0x78   : > { %4782 = vmatprep.subr.bf16.mxu1 %v5215_v59  ;;  %v427_v59 = vld [vmem:[%s5571_s14 + $0x48] sm:$0xff] }
  0x7a   : > { %4761 = vmatpush3.bf16.msra.mxu0 %v5216_v60  ;;  %v4269_v60 = vcombine.low %v427_v59, %v427_v59 }
  0x7b   : > { %4783 = vmatpush3.bf16.msra.mxu1 %v5217_v61  ;;  %4762 = vmatprep.subr.bf16.mxu0 %v5218_v62  ;;  %v4270_v61 = vcombine.high %v427_v59, %v427_v59  ;;  %v5278_v62 = vld [vmem:[%s5535_s10 + $0x578] sm:$0xff]   ;;  %v5337_v59 = vld [vmem:[%s5535_s10 + $0x690] sm:$0xff]  }
  0x7c   : > { %4784 = vmatprep.subr.bf16.mxu1 %v5219_v63  ;;  %v5279_v63 = vld [vmem:[%s5535_s10 + $0x5f8] sm:$0xff]  }
  0x7e   : > { %4763 = vmatpush3.bf16.msra.mxu0 %v5220_v0  ;;  %v5280_v0 = vld [vmem:[%s5535_s10 + $0x538] sm:$0xff]  }
  0x7f   : > { %4785 = vmatpush3.bf16.msra.mxu1 %v5221_v1  ;;  %4764 = vmatprep.subr.bf16.mxu0 %v5222_v2  ;;  %v5281_v1 = vld [vmem:[%s5535_s10 + $0x5b8] sm:$0xff]   ;;  %v5282_v2 = vld [vmem:[%s5535_s10 + $0x570] sm:$0xff]  }
  0x80   : > { %4786 = vmatprep.subr.bf16.mxu1 %v5223_v3  ;;  %v5283_v3 = vld [vmem:[%s5535_s10 + $0x5f0] sm:$0xff]  }
  0x82   : > { %4765 = vmatpush3.bf16.msra.mxu0 %v5224_v4  ;;  %v5284_v4 = vld [vmem:[%s5535_s10 + $0x530] sm:$0xff]  }
  0x83   : > { %4787 = vmatpush3.bf16.msra.mxu1 %v5225_v5  ;;  %4766 = vmatprep.subr.bf16.mxu0 %v5226_v6  ;;  %v5285_v5 = vld [vmem:[%s5535_s10 + $0x5b0] sm:$0xff]   ;;  %v5286_v6 = vld [vmem:[%s5535_s10 + $0x568] sm:$0xff]  }
  0x84   : > { %4788 = vmatprep.subr.bf16.mxu1 %v5227_v7  ;;  %v5287_v7 = vld [vmem:[%s5535_s10 + $0x5e8] sm:$0xff]  }
  0x86   : > { %4767 = vmatpush3.bf16.msra.mxu0 %v5228_v8  ;;  %v5288_v8 = vld [vmem:[%s5535_s10 + $0x528] sm:$0xff]  }
  0x87   : > { %4789 = vmatpush3.bf16.msra.mxu1 %v5229_v9  ;;  %4768 = vmatprep.subr.bf16.mxu0 %v5230_v10  ;;  %v5289_v9 = vld [vmem:[%s5535_s10 + $0x5a8] sm:$0xff]   ;;  %v5290_v10 = vld [vmem:[%s5535_s10 + $0x560] sm:$0xff]  }
  0x88   : > { %4790 = vmatprep.subr.bf16.mxu1 %v5231_v11  ;;  %v5291_v11 = vld [vmem:[%s5535_s10 + $0x5e0] sm:$0xff]  }
  0x8a   : > { %4769 = vmatpush3.bf16.msra.mxu0 %v5232_v12  ;;  %v5292_v12 = vld [vmem:[%s5535_s10 + $0x520] sm:$0xff]  }
  0x8b   : > { %4791 = vmatpush3.bf16.msra.mxu1 %v5233_v13  ;;  %4770 = vmatprep.subr.bf16.mxu0 %v5234_v14  ;;  %v5293_v13 = vld [vmem:[%s5535_s10 + $0x5a0] sm:$0xff]   ;;  %v5294_v14 = vld [vmem:[%s5535_s10 + $0x558] sm:$0xff]  }
  0x8c   : > { %4792 = vmatprep.subr.bf16.mxu1 %v5235_v15  ;;  %v5295_v15 = vld [vmem:[%s5535_s10 + $0x5d8] sm:$0xff]  }
  0x8e   : > { %4771 = vmatpush3.bf16.msra.mxu0 %v5236_v16  ;;  %v5296_v16 = vld [vmem:[%s5535_s10 + $0x518] sm:$0xff]  }
  0x8f   : > { %4793 = vmatpush3.bf16.msra.mxu1 %v5237_v17  ;;  %4800 = vmatprep.subr.bf16.mxu0 %v5242_v23  ;;  %v5297_v17 = vld [vmem:[%s5535_s10 + $0x598] sm:$0xff]   ;;  %v5303_v23 = vld [vmem:[%s5535_s10 + $0x5c8] sm:$0xff]  }
  0x90   : > { %4822 = vmatprep.subr.bf16.mxu1 %v5243_v25  ;;  %v5305_v25 = vld [vmem:[%s5535_s10 + $0x588] sm:$0xff]  }
  0x91   : > { %3418 = vmatmul.mubr.bf16.vlgmr.msra.gmra.mxu0 %v4263_v20  ;;  %v5300_v20 = vld [vmem:[%s5535_s10 + $0x510] sm:$0xff]  }
  0x92   : > { %3458 = vmatmul.mubr.bf16.vlgmr.msra.gmra.mxu1 %v4265_v22  ;;  %4801 = vmatpush3.bf16.msra.mxu0 %v5244_v26  ;;  %v5302_v22 = vld [vmem:[%s5535_s10 + $0x548] sm:$0xff]   ;;  %v5306_v26 = vld [vmem:[%s5535_s10 + $0x540] sm:$0xff]  }
  0x93   : > { %4823 = vmatpush3.bf16.msra.mxu1 %v5245_v27  ;;  %4802 = vmatprep.subr.bf16.mxu0 %v5246_v28  ;;  %v5307_v27 = vld [vmem:[%s5535_s10 + $0x5c0] sm:$0xff]  }
  0x94   : > { %4824 = vmatprep.subr.bf16.mxu1 %v5247_v29  ;;  %3497 = vmatprep.mubr.bf16.mxu0 %v4268_v58  ;;  %v5308_v28 = vld [vmem:[%s5535_s10 + $0x500] sm:$0xff]   ;;  %v5336_v58 = vld [vmem:[%s5535_s10 + $0x610] sm:$0xff]  }
  0x95   : > { %3537 = vmatprep.mubr.bf16.mxu1 %v4270_v61  ;;  %v5309_v29 = vld [vmem:[%s5535_s10 + $0x580] sm:$0xff]   ;;  %v5339_v61 = vld [vmem:[%s5535_s10 + $0x6c8] sm:$0xff]  }
  0x96   : > { %4803 = vmatpush3.bf16.msra.mxu0 %v5248_v30  ;;  %v428_v30 = vld [vmem:[%s5571_s14 + $0x50] sm:$0xff] }
  0x97   : > { %4825 = vmatpush3.bf16.msra.mxu1 %v5249_v31  ;;  %4804 = vmatprep.subr.bf16.mxu0 %v5250_v32  ;;  %v429_v31 = vld [vmem:[%s5571_s14 + $0x58] sm:$0xff]  ;;  %v4271_v32 = vcombine.low %v428_v30, %v428_v30 }
  0x98   : > { %4826 = vmatprep.subr.bf16.mxu1 %v5251_v33  ;;  %v4272_v33 = vcombine.high %v428_v30, %v428_v30  ;;  %v5357_v30 = vld [vmem:[%s5535_s10 + $0x7b0] sm:$0xff]  }
  0x9a   : > { %4805 = vmatpush3.bf16.msra.mxu0 %v5252_v34  ;;  %v4273_v34 = vcombine.low %v429_v31, %v429_v31 }
  0x9b   : > { %4827 = vmatpush3.bf16.msra.mxu1 %v5253_v35  ;;  %4806 = vmatprep.subr.bf16.mxu0 %v5254_v36  ;;  %v4274_v35 = vcombine.high %v429_v31, %v429_v31  ;;  %v5314_v36 = vld [vmem:[%s5535_s10 + $0x678] sm:$0xff]   ;;  %v5358_v31 = vld [vmem:[%s5535_s10 + $0x768] sm:$0xff]  }
  0x9c   : > { %4828 = vmatprep.subr.bf16.mxu1 %v5255_v37  ;;  %v5315_v37 = vld [vmem:[%s5535_s10 + $0x6f8] sm:$0xff]  }
  0x9e   : > { %4807 = vmatpush3.bf16.msra.mxu0 %v5256_v38  ;;  %v5316_v38 = vld [vmem:[%s5535_s10 + $0x638] sm:$0xff]  }
  0x9f   : > { %4829 = vmatpush3.bf16.msra.mxu1 %v5257_v39  ;;  %4808 = vmatprep.subr.bf16.mxu0 %v5258_v40  ;;  %v5317_v39 = vld [vmem:[%s5535_s10 + $0x6b8] sm:$0xff]   ;;  %v5318_v40 = vld [vmem:[%s5535_s10 + $0x670] sm:$0xff]  }
  0xa0   : > { %4830 = vmatprep.subr.bf16.mxu1 %v5259_v41  ;;  %v5319_v41 = vld [vmem:[%s5535_s10 + $0x6f0] sm:$0xff]  }
  0xa2   : > { %4809 = vmatpush3.bf16.msra.mxu0 %v5260_v42  ;;  %v5320_v42 = vld [vmem:[%s5535_s10 + $0x630] sm:$0xff]  }
  0xa3   : > { %4831 = vmatpush3.bf16.msra.mxu1 %v5261_v43  ;;  %4810 = vmatprep.subr.bf16.mxu0 %v5262_v44  ;;  %v5321_v43 = vld [vmem:[%s5535_s10 + $0x6b0] sm:$0xff]   ;;  %v5322_v44 = vld [vmem:[%s5535_s10 + $0x668] sm:$0xff]  }
  0xa4   : > { %4832 = vmatprep.subr.bf16.mxu1 %v5263_v45  ;;  %v5323_v45 = vld [vmem:[%s5535_s10 + $0x6e8] sm:$0xff]  }
  0xa6   : > { %4811 = vmatpush3.bf16.msra.mxu0 %v5264_v46  ;;  %v5324_v46 = vld [vmem:[%s5535_s10 + $0x628] sm:$0xff]  }
  0xa7   : > { %4833 = vmatpush3.bf16.msra.mxu1 %v5265_v47  ;;  %4812 = vmatprep.subr.bf16.mxu0 %v5266_v48  ;;  %v5325_v47 = vld [vmem:[%s5535_s10 + $0x6a8] sm:$0xff]   ;;  %v5326_v48 = vld [vmem:[%s5535_s10 + $0x660] sm:$0xff]  }
  0xa8   : > { %4834 = vmatprep.subr.bf16.mxu1 %v5267_v49  ;;  %v5327_v49 = vld [vmem:[%s5535_s10 + $0x6e0] sm:$0xff]  }
  0xaa   : > { %4813 = vmatpush3.bf16.msra.mxu0 %v5268_v50  ;;  %v5328_v50 = vld [vmem:[%s5535_s10 + $0x620] sm:$0xff]  }
  0xab   : > { %4835 = vmatpush3.bf16.msra.mxu1 %v5269_v51  ;;  %4814 = vmatprep.subr.bf16.mxu0 %v5270_v52  ;;  %v5329_v51 = vld [vmem:[%s5535_s10 + $0x6a0] sm:$0xff]   ;;  %v5330_v52 = vld [vmem:[%s5535_s10 + $0x658] sm:$0xff]  }
  0xac   : > { %4836 = vmatprep.subr.bf16.mxu1 %v5271_v53  ;;  %v5331_v53 = vld [vmem:[%s5535_s10 + $0x6d8] sm:$0xff]  }
  0xae   : > { %4815 = vmatpush3.bf16.msra.mxu0 %v5272_v54  ;;  %v5332_v54 = vld [vmem:[%s5535_s10 + $0x618] sm:$0xff]  }
  0xaf   : > { %4837 = vmatpush3.bf16.msra.mxu1 %v5273_v55  ;;  %4844 = vmatprep.subr.bf16.mxu0 %v5278_v62  ;;  %v5333_v55 = vld [vmem:[%s5535_s10 + $0x698] sm:$0xff]   ;;  %v5340_v62 = vld [vmem:[%s5535_s10 + $0x608] sm:$0xff]  }
  0xb0   : > { %4866 = vmatprep.subr.bf16.mxu1 %v5279_v63  ;;  %v5341_v63 = vld [vmem:[%s5535_s10 + $0x688] sm:$0xff]  }
  0xb1   : > { %3498 = vmatmul.mubr.bf16.vlgmr.msra.gmra.mxu0 %v4267_v57  ;;  %v5335_v57 = vld [vmem:[%s5535_s10 + $0x6d0] sm:$0xff]  }
  0xb2   : > { %3538 = vmatmul.mubr.bf16.vlgmr.msra.gmra.mxu1 %v4269_v60  ;;  %4845 = vmatpush3.bf16.msra.mxu0 %v5280_v0  ;;  %v5338_v60 = vld [vmem:[%s5535_s10 + $0x648] sm:$0xff]   ;;  %v5342_v0 = vld [vmem:[%s5535_s10 + $0x640] sm:$0xff]  }
  0xb3   : > { %4867 = vmatpush3.bf16.msra.mxu1 %v5281_v1  ;;  %4846 = vmatprep.subr.bf16.mxu0 %v5282_v2  ;;  %v5343_v1 = vld [vmem:[%s5535_s10 + $0x6c0] sm:$0xff]  }
  0xb4   : > { %4868 = vmatprep.subr.bf16.mxu1 %v5283_v3  ;;  %3577 = vmatprep.mubr.bf16.mxu0 %v4272_v33  ;;  %v5344_v2 = vld [vmem:[%s5535_s10 + $0x600] sm:$0xff]   ;;  %v5360_v33 = vld [vmem:[%s5535_s10 + $0x728] sm:$0xff]  }
  0xb5   : > { %3617 = vmatprep.mubr.bf16.mxu1 %v4274_v35  ;;  %v5345_v3 = vld [vmem:[%s5535_s10 + $0x680] sm:$0xff]  }
  0xb6   : > { %4847 = vmatpush3.bf16.msra.mxu0 %v5284_v4  ;;  %v430_v4 = vld [vmem:[%s5571_s14 + $0x60] sm:$0xff] }
  0xb7   : > { %4869 = vmatpush3.bf16.msra.mxu1 %v5285_v5  ;;  %4848 = vmatprep.subr.bf16.mxu0 %v5286_v6  ;;  %v431_v5 = vld [vmem:[%s5571_s14 + $0x68] sm:$0xff]  ;;  %v5362_v35 = vld [vmem:[%s5535_s10 + $0x760] sm:$0xff]  }
  0xb8   : > { %4870 = vmatprep.subr.bf16.mxu1 %v5287_v7 }
  0xba   : > { %4849 = vmatpush3.bf16.msra.mxu0 %v5288_v8  ;;  %v4275_v8 = vcombine.low %v430_v4, %v430_v4 }
  0xbb   : > { %4871 = vmatpush3.bf16.msra.mxu1 %v5289_v9  ;;  %4850 = vmatprep.subr.bf16.mxu0 %v5290_v10  ;;  %v4276_v9 = vcombine.high %v430_v4, %v430_v4  ;;  %v4277_v10 = vcombine.low %v431_v5, %v431_v5 }
  0xbc   : > { %4872 = vmatprep.subr.bf16.mxu1 %v5291_v11  ;;  %v5350_v11 = vld [vmem:[%s5535_s10 + $0x778] sm:$0xff]  }
  0xbe   : > { %4851 = vmatpush3.bf16.msra.mxu0 %v5292_v12  ;;  %v4278_v12 = vcombine.high %v431_v5, %v431_v5 }
  0xbf   : > { %4873 = vmatpush3.bf16.msra.mxu1 %v5293_v13  ;;  %4852 = vmatprep.subr.bf16.mxu0 %v5294_v14  ;;  %v5351_v13 = vld [vmem:[%s5535_s10 + $0x7f8] sm:$0xff]  }
  0xc0   : > { %4874 = vmatprep.subr.bf16.mxu1 %v5295_v15 }
  0xc2   : > { %4853 = vmatpush3.bf16.msra.mxu0 %v5296_v16  ;;  %v5352_v16 = vld [vmem:[%s5535_s10 + $0x738] sm:$0xff]  }
  0xc3   : > { %4875 = vmatpush3.bf16.msra.mxu1 %v5297_v17  ;;  %4854 = vmatprep.subr.bf16.mxu0 %v5298_v18 }
  0xc4   : > { %4876 = vmatprep.subr.bf16.mxu1 %v5299_v19  ;;  %v5353_v19 = vld [vmem:[%s5535_s10 + $0x7b8] sm:$0xff]  }
  0xc6   : > { %4855 = vmatpush3.bf16.msra.mxu0 %v5300_v20  ;;  %v4250_v20 = vld [vmem:[%s392_s17] ss:$0 sm:$0xff]  ;;  %s416_s17 = scalar_lea.vmem %s5936_s8, %s4248_s30 }
  0xc7   : > { %4877 = vmatpush3.bf16.msra.mxu1 %v5301_v21  ;;  %4856 = vmatprep.subr.bf16.mxu0 %v5302_v22 }
  0xc8   : > { %4878 = vmatprep.subr.bf16.mxu1 %v5303_v23 }
  0xca   : > { %4857 = vmatpush3.bf16.msra.mxu0 %v5304_v24  ;;  %v5354_v24 = vld [vmem:[%s5535_s10 + $0x770] sm:$0xff]  }
  0xcb   : > { %4879 = vmatpush3.bf16.msra.mxu1 %v5305_v25  ;;  %4858 = vmatprep.subr.bf16.mxu0 %v5306_v26  ;;  %v5355_v25 = vld [vmem:[%s5535_s10 + $0x7f0] sm:$0xff]  }
  0xcc   : > { %4880 = vmatprep.subr.bf16.mxu1 %v5307_v27 }
  0xce   : > { %4859 = vmatpush3.bf16.msra.mxu0 %v5308_v28 }
  0xcf   : > { %4881 = vmatpush3.bf16.msra.mxu1 %v5309_v29  ;;  %4888 = vmatprep.subr.bf16.mxu0 %v5314_v36  ;;  %v5356_v29 = vld [vmem:[%s5535_s10 + $0x730] sm:$0xff]   ;;  %v5363_v36 = vld [vmem:[%s5535_s10 + $0x7e0] sm:$0xff]  }
  0xd0   : > { %4910 = vmatprep.subr.bf16.mxu1 %v5315_v37  ;;  %v5364_v37 = vld [vmem:[%s5535_s10 + $0x720] sm:$0xff]  }
  0xd1   : > { %3578 = vmatmul.mubr.bf16.vlgmr.msra.gmra.mxu0 %v4271_v32  ;;  %v5359_v32 = vld [vmem:[%s5535_s10 + $0x7e8] sm:$0xff]  }
  0xd2   : > { %3618 = vmatmul.mubr.bf16.vlgmr.msra.gmra.mxu1 %v4273_v34  ;;  %4889 = vmatpush3.bf16.msra.mxu0 %v5316_v38  ;;  %v5361_v34 = vld [vmem:[%s5535_s10 + $0x7a8] sm:$0xff]   ;;  %v5365_v38 = vld [vmem:[%s5535_s10 + $0x7a0] sm:$0xff]  }
  0xd3   : > { %4911 = vmatpush3.bf16.msra.mxu1 %v5317_v39  ;;  %4890 = vmatprep.subr.bf16.mxu0 %v5318_v40  ;;  %v5366_v39 = vld [vmem:[%s5535_s10 + $0x758] sm:$0xff]  }
  0xd4   : > { %4912 = vmatprep.subr.bf16.mxu1 %v5319_v41  ;;  %3657 = vmatprep.mubr.bf16.mxu0 %v4276_v9  ;;  %v5367_v40 = vld [vmem:[%s5535_s10 + $0x7d8] sm:$0xff]  }
  0xd5   : > { %3697 = vmatprep.mubr.bf16.mxu1 %v4278_v12  ;;  %v5368_v41 = vld [vmem:[%s5535_s10 + $0x718] sm:$0xff]  }
  0xd6   : > { %4891 = vmatpush3.bf16.msra.mxu0 %v5320_v42  ;;  %v5369_v42 = vld [vmem:[%s5535_s10 + $0x798] sm:$0xff]  }
  0xd7   : > { %4913 = vmatpush3.bf16.msra.mxu1 %v5321_v43  ;;  %4892 = vmatprep.subr.bf16.mxu0 %v5322_v44  ;;  %v5370_v43 = vld [vmem:[%s5535_s10 + $0x750] sm:$0xff]  }
  0xd8   : > { %4914 = vmatprep.subr.bf16.mxu1 %v5323_v45  ;;  %v5371_v44 = vld [vmem:[%s5535_s10 + $0x7d0] sm:$0xff]  }
  0xd9   : > { %v5372_v45 = vld [vmem:[%s5535_s10 + $0x710] sm:$0xff]  }
  0xda   : > { %4893 = vmatpush3.bf16.msra.mxu0 %v5324_v46  ;;  %v5373_v46 = vld [vmem:[%s5535_s10 + $0x790] sm:$0xff]  }
  0xdb   : > { %4915 = vmatpush3.bf16.msra.mxu1 %v5325_v47  ;;  %4894 = vmatprep.subr.bf16.mxu0 %v5326_v48  ;;  %v5374_v47 = vld [vmem:[%s5535_s10 + $0x748] sm:$0xff]  }
  0xdc   : > { %4916 = vmatprep.subr.bf16.mxu1 %v5327_v49  ;;  %v5375_v48 = vld [vmem:[%s5535_s10 + $0x7c8] sm:$0xff]  }
  0xdd   : > { %v5376_v49 = vld [vmem:[%s5535_s10 + $0x708] sm:$0xff]  }
  0xde   : > { %4895 = vmatpush3.bf16.msra.mxu0 %v5328_v50  ;;  %v5377_v50 = vld [vmem:[%s5535_s10 + $0x788] sm:$0xff]  }
  0xdf   : > { %4917 = vmatpush3.bf16.msra.mxu1 %v5329_v51  ;;  %4896 = vmatprep.subr.bf16.mxu0 %v5330_v52  ;;  %v5378_v51 = vld [vmem:[%s5535_s10 + $0x740] sm:$0xff]  }
  0xe0   : > { %4918 = vmatprep.subr.bf16.mxu1 %v5331_v53  ;;  %v5379_v52 = vld [vmem:[%s5535_s10 + $0x7c0] sm:$0xff]  }
  0xe1   : > { %v5380_v53 = vld [vmem:[%s5535_s10 + $0x700] sm:$0xff]  }
  0xe2   : > { %4897 = vmatpush3.bf16.msra.mxu0 %v5332_v54  ;;  %v5381_v54 = vld [vmem:[%s5535_s10 + $0x780] sm:$0xff]  }
  0xe3   : > { %4919 = vmatpush3.bf16.msra.mxu1 %v5333_v55  ;;  %4898 = vmatprep.subr.bf16.mxu0 %v5334_v56  ;;  %v432_v55 = vld [vmem:[%s5571_s14 + $0x70] sm:$0xff]  ;;  %v433_v56 = vld [vmem:[%s5571_s14 + $0x78] sm:$0xff] }
  0xe4   : > { %4920 = vmatprep.subr.bf16.mxu1 %v5335_v57 }
  0xe6   : > { %4899 = vmatpush3.bf16.msra.mxu0 %v5336_v58 }
  0xe7   : > { %4921 = vmatpush3.bf16.msra.mxu1 %v5337_v59  ;;  %4900 = vmatprep.subr.bf16.mxu0 %v5338_v60  ;;  %v4279_v59 = vcombine.low %v432_v55, %v432_v55  ;;  %v4280_v60 = vcombine.high %v432_v55, %v432_v55 }
  0xe8   : > { %4922 = vmatprep.subr.bf16.mxu1 %v5339_v61  ;;  %v4281_v61 = vcombine.low %v433_v56, %v433_v56 }
  0xea   : > { %4901 = vmatpush3.bf16.msra.mxu0 %v5340_v62  ;;  %v5386_v62 = vld [vmem:[%s5535_s10 + $0x878] sm:$0xff]  }
  0xeb   : > { %4923 = vmatpush3.bf16.msra.mxu1 %v5341_v63  ;;  %4902 = vmatprep.subr.bf16.mxu0 %v5342_v0  ;;  %v4282_v63 = vcombine.high %v433_v56, %v433_v56  ;;  %v5387_v0 = vld [vmem:[%s5535_s10 + $0x8f8] sm:$0xff]  }
  0xec   : > { %4924 = vmatprep.subr.bf16.mxu1 %v5343_v1 }
  0xee   : > { %4903 = vmatpush3.bf16.msra.mxu0 %v5344_v2 }
  0xef   : > { %4925 = vmatpush3.bf16.msra.mxu1 %v5345_v3  ;;  %4932 = vmatprep.subr.bf16.mxu0 %v5350_v11  ;;  %v5388_v3 = vld [vmem:[%s5535_s10 + $0x838] sm:$0xff]   ;;  %v5391_v11 = vld [vmem:[%s5535_s10 + $0x8f0] sm:$0xff]  }
  0xf0   : > { %4954 = vmatprep.subr.bf16.mxu1 %v5351_v13 }
  0xf1   : > { %v4640_v6 = vpop.f32.mrf.mxu0  ;;  %3658 = vmatmul.mubr.bf16.vlgmr.msra.gmra.mxu0 %v4275_v8 }
  0xf2   : > { %v4662_v7 = vpop.f32.mrf.mxu1  ;;  %3698 = vmatmul.mubr.bf16.vlgmr.msra.gmra.mxu1 %v4277_v10  ;;  %4933 = vmatpush3.bf16.msra.mxu0 %v5352_v16  ;;  %v5390_v10 = vld [vmem:[%s5535_s10 + $0x870] sm:$0xff]  }
  0xf3   : > { %v4641_v14 = vpop.f32.mrf.mxu0  ;;  %4955 = vmatpush3.bf16.msra.mxu1 %v5353_v19  ;;  %4934 = vmatprep.subr.bf16.mxu0 %v5354_v24  ;;  %v5393_v16 = vld [vmem:[%s5535_s10 + $0x8b0] sm:$0xff]   ;;  %v5396_v19 = vld [vmem:[%s5535_s10 + $0x828] sm:$0xff]   ;;  %v5401_v24 = vld [vmem:[%s5535_s10 + $0x8a0] sm:$0xff]  }
  0xf4   : > { %v4663_v15 = vpop.f32.mrf.mxu1  ;;  %v4642_v17 = vadd.f32 %v4641_v14, %v4640_v6  ;;  %4956 = vmatprep.subr.bf16.mxu1 %v5355_v25  ;;  %3737 = vmatprep.mubr.bf16.mxu0 %v4280_v60  ;;  %v5389_v6 = vld [vmem:[%s5535_s10 + $0x8b8] sm:$0xff]   ;;  %v5426_v60 = vld [vmem:[%s5535_s10 + $0x970] sm:$0xff]  }
  0xf5   : > { %v4664_v18 = vadd.f32 %v4663_v15, %v4662_v7  ;;  %v4643_v21 = vpop.f32.mrf.mxu0  ;;  %3777 = vmatprep.mubr.bf16.mxu1 %v4282_v63  ;;  %v5392_v15 = vld [vmem:[%s5535_s10 + $0x830] sm:$0xff]   ;;  %v5402_v25 = vld [vmem:[%s5535_s10 + $0x858] sm:$0xff]  }
  0xf6   : > { %v4665_v22 = vpop.f32.mrf.mxu1  ;;  %v3180_v23 = vadd.f32 %v4642_v17, %v4250_v20  ;;  %4935 = vmatpush3.bf16.msra.mxu0 %v5356_v29  ;;  %v5394_v17 = vld [vmem:[%s5535_s10 + $0x868] sm:$0xff]   ;;  %v5398_v21 = vld [vmem:[%s5535_s10 + $0x860] sm:$0xff]   ;;  %v5406_v29 = vld [vmem:[%s5535_s10 + $0x850] sm:$0xff]  }
  0xf7   : > { %v4644_v26 = vpop.f32.mrf.mxu0  ;;  %4957 = vmatpush3.bf16.msra.mxu1 %v5357_v30  ;;  %4936 = vmatprep.subr.bf16.mxu0 %v5358_v31  ;;  %v5397_v20 = vld [vmem:[%s5535_s10 + $0x8a8] sm:$0xff]   ;;  %v5399_v22 = vld [vmem:[%s5535_s10 + $0x8e0] sm:$0xff]   ;;  %v5407_v30 = vld [vmem:[%s5535_s10 + $0x8d0] sm:$0xff]  }
  0xf8   : > { %v4666_v27 = vpop.f32.mrf.mxu1  ;;  %v5791_v28 = vadd.f32 %v4664_v18, %v3180_v23  ;;  %4958 = vmatprep.subr.bf16.mxu1 %v5359_v32  ;;  %v5395_v18 = vld [vmem:[%s5535_s10 + $0x8e8] sm:$0xff]   ;;  %v5400_v23 = vld [vmem:[%s5535_s10 + $0x820] sm:$0xff]   ;;  %v5403_v26 = vld [vmem:[%s5535_s10 + $0x8d8] sm:$0xff]  }
  0xf9   : > { %v5404_v27 = vld [vmem:[%s5535_s10 + $0x818] sm:$0xff]   ;;  %v5408_v31 = vld [vmem:[%s5535_s10 + $0x810] sm:$0xff]  }
  0xfa   : > { %4937 = vmatpush3.bf16.msra.mxu0 %v5360_v33  ;;  %v5409_v32 = vld [vmem:[%s5535_s10 + $0x890] sm:$0xff]   ;;  %v5410_v33 = vld [vmem:[%s5535_s10 + $0x848] sm:$0xff]  }
  0xfb   : > { %4959 = vmatpush3.bf16.msra.mxu1 %v5361_v34  ;;  %4938 = vmatprep.subr.bf16.mxu0 %v5362_v35  ;;  %v5411_v34 = vld [vmem:[%s5535_s10 + $0x8c8] sm:$0xff]   ;;  %v5427_v63 = vld [vmem:[%s5535_s10 + $0x9f0] sm:$0xff]  }
  0xfc   : > { %4960 = vmatprep.subr.bf16.mxu1 %v5363_v36  ;;  %v5412_v35 = vld [vmem:[%s5535_s10 + $0x808] sm:$0xff]  }
  0xfd   : > { %v5413_v36 = vld [vmem:[%s5535_s10 + $0x888] sm:$0xff]  }
  0xfe   : > { %4939 = vmatpush3.bf16.msra.mxu0 %v5364_v37  ;;  %v5414_v37 = vld [vmem:[%s5535_s10 + $0x840] sm:$0xff]  }
  0xff   : > { %4961 = vmatpush3.bf16.msra.mxu1 %v5365_v38  ;;  %4940 = vmatprep.subr.bf16.mxu0 %v5366_v39  ;;  %v5415_v38 = vld [vmem:[%s5535_s10 + $0x8c0] sm:$0xff]  }
 0x100   : > { %4962 = vmatprep.subr.bf16.mxu1 %v5367_v40  ;;  %v5416_v39 = vld [vmem:[%s5535_s10 + $0x800] sm:$0xff]  }
 0x101   : > { %v5417_v40 = vld [vmem:[%s5535_s10 + $0x880] sm:$0xff]  }
 0x102   : > { %4941 = vmatpush3.bf16.msra.mxu0 %v5368_v41  ;;  %v434_v41 = vld [vmem:[%s5571_s14 + $0x80] sm:$0xff] }
 0x103   : > { %4963 = vmatpush3.bf16.msra.mxu1 %v5369_v42  ;;  %4942 = vmatprep.subr.bf16.mxu0 %v5370_v43  ;;  %v4283_v43 = vcombine.low %v434_v41, %v434_v41 }
 0x104   : > { %4964 = vmatprep.subr.bf16.mxu1 %v5371_v44  ;;  %v4284_v44 = vcombine.high %v434_v41, %v434_v41 }
 0x106   : > { %4943 = vmatpush3.bf16.msra.mxu0 %v5372_v45  ;;  %v435_v45 = vld [vmem:[%s5571_s14 + $0x88] sm:$0xff] }
 0x107   : > { %4965 = vmatpush3.bf16.msra.mxu1 %v5373_v46  ;;  %4944 = vmatprep.subr.bf16.mxu0 %v5374_v47  ;;  %v4285_v47 = vcombine.low %v435_v45, %v435_v45 }
 0x108   : > { %4966 = vmatprep.subr.bf16.mxu1 %v5375_v48  ;;  %v4286_v48 = vcombine.high %v435_v45, %v435_v45 }
 0x10a   : > { %4945 = vmatpush3.bf16.msra.mxu0 %v5376_v49  ;;  %v5422_v49 = vld [vmem:[%s5535_s10 + $0x978] sm:$0xff]  }
 0x10b   : > { %4967 = vmatpush3.bf16.msra.mxu1 %v5377_v50  ;;  %4946 = vmatprep.subr.bf16.mxu0 %v5378_v51  ;;  %v5423_v51 = vld [vmem:[%s5535_s10 + $0x9f8] sm:$0xff]  }
 0x10c   : > { %4968 = vmatprep.subr.bf16.mxu1 %v5379_v52 }
 0x10e   : > { %4947 = vmatpush3.bf16.msra.mxu0 %v5380_v53 }
 0x10f   : > { %4969 = vmatpush3.bf16.msra.mxu1 %v5381_v54  ;;  %4976 = vmatprep.subr.bf16.mxu0 %v5386_v62  ;;  %v5424_v54 = vld [vmem:[%s5535_s10 + $0x938] sm:$0xff]  }
 0x110   : > { %4998 = vmatprep.subr.bf16.mxu1 %v5387_v0 }
 0x111   : > { %v4684_v57 = vpop.f32.mrf.mxu0  ;;  %3738 = vmatmul.mubr.bf16.vlgmr.msra.gmra.mxu0 %v4279_v59 }
 0x112   : > { %v4706_v58 = vpop.f32.mrf.mxu1  ;;  %3778 = vmatmul.mubr.bf16.vlgmr.msra.gmra.mxu1 %v4281_v61  ;;  %4977 = vmatpush3.bf16.msra.mxu0 %v5388_v3  ;;  %v5430_v3 = vld [vmem:[%s5535_s10 + $0x968] sm:$0xff]  }
 0x113   : > { %v4685_v1 = vpop.f32.mrf.mxu0  ;;  %4999 = vmatpush3.bf16.msra.mxu1 %v5389_v6  ;;  %4978 = vmatprep.subr.bf16.mxu0 %v5390_v10  ;;  %v5433_v6 = vld [vmem:[%s5535_s10 + $0x9a8] sm:$0xff]   ;;  %v5437_v10 = vld [vmem:[%s5535_s10 + $0x9a0] sm:$0xff]  }
 0x114   : > { %v4707_v2 = vpop.f32.mrf.mxu1  ;;  %v4686_v4 = vadd.f32 %v4685_v1, %v4684_v57  ;;  %5000 = vmatprep.subr.bf16.mxu1 %v5391_v11  ;;  %3817 = vmatprep.mubr.bf16.mxu0 %v4284_v44  ;;  %v5425_v57 = vld [vmem:[%s5535_s10 + $0x9b8] sm:$0xff]   ;;  %v5428_v1 = vld [vmem:[%s5535_s10 + $0x930] sm:$0xff]  }
 0x115   : > { %v4708_v5 = vadd.f32 %v4707_v2, %v4706_v58  ;;  %v4687_v7 = vpop.f32.mrf.mxu0  ;;  %3857 = vmatprep.mubr.bf16.mxu1 %v4286_v48  ;;  %v5429_v2 = vld [vmem:[%s5535_s10 + $0x9b0] sm:$0xff]   ;;  %v5438_v11 = vld [vmem:[%s5535_s10 + $0x958] sm:$0xff]  }
 0x116   : > { %v4709_v8 = vpop.f32.mrf.mxu1  ;;  %v3260_v9 = vadd.f32 %v4686_v4, %v5791_v28  ;;  %4979 = vmatpush3.bf16.msra.mxu0 %v5392_v15  ;;  %v5405_v28 = vld [vmem:[%s5535_s10 + $0x898] sm:$0xff]   ;;  %v5431_v4 = vld [vmem:[%s5535_s10 + $0x9e8] sm:$0xff]   ;;  %v5434_v7 = vld [vmem:[%s5535_s10 + $0x960] sm:$0xff]  }
 0x117   : > { %v4688_v12 = vpop.f32.mrf.mxu0  ;;  %5001 = vmatpush3.bf16.msra.mxu1 %v5393_v16  ;;  %4980 = vmatprep.subr.bf16.mxu0 %v5394_v17  ;;  %v5435_v8 = vld [vmem:[%s5535_s10 + $0x9e0] sm:$0xff]   ;;  %v5442_v15 = vld [vmem:[%s5535_s10 + $0x950] sm:$0xff]  }
 0x118   : > { %v4710_v13 = vpop.f32.mrf.mxu1  ;;  %v5828_v14 = vadd.f32 %v4708_v5, %v3260_v9  ;;  %5002 = vmatprep.subr.bf16.mxu1 %v5395_v18  ;;  %v5432_v5 = vld [vmem:[%s5535_s10 + $0x928] sm:$0xff]   ;;  %v5436_v9 = vld [vmem:[%s5535_s10 + $0x920] sm:$0xff]   ;;  %v5439_v12 = vld [vmem:[%s5535_s10 + $0x9d8] sm:$0xff]  }
 0x119   : > { %v5440_v13 = vld [vmem:[%s5535_s10 + $0x918] sm:$0xff]   ;;  %v5443_v16 = vld [vmem:[%s5535_s10 + $0x9d0] sm:$0xff]  }
 0x11a   : > { %4981 = vmatpush3.bf16.msra.mxu0 %v5396_v19  ;;  %v5444_v17 = vld [vmem:[%s5535_s10 + $0x910] sm:$0xff]   ;;  %v5446_v19 = vld [vmem:[%s5535_s10 + $0x948] sm:$0xff]  }
 0x11b   : > { %5003 = vmatpush3.bf16.msra.mxu1 %v5397_v20  ;;  %4982 = vmatprep.subr.bf16.mxu0 %v5398_v21  ;;  %v5445_v18 = vld [vmem:[%s5535_s10 + $0x990] sm:$0xff]   ;;  %v5447_v20 = vld [vmem:[%s5535_s10 + $0x9c8] sm:$0xff]  }
 0x11c   : > { %5004 = vmatprep.subr.bf16.mxu1 %v5399_v22  ;;  %v5448_v21 = vld [vmem:[%s5535_s10 + $0x908] sm:$0xff]  }
 0x11d   : > { %v5449_v22 = vld [vmem:[%s5535_s10 + $0x988] sm:$0xff]  }
 0x11e   : > { %4983 = vmatpush3.bf16.msra.mxu0 %v5400_v23  ;;  %v5450_v23 = vld [vmem:[%s5535_s10 + $0x940] sm:$0xff]  }
 0x11f   : > { %5005 = vmatpush3.bf16.msra.mxu1 %v5401_v24  ;;  %4984 = vmatprep.subr.bf16.mxu0 %v5402_v25  ;;  %v5451_v24 = vld [vmem:[%s5535_s10 + $0x9c0] sm:$0xff]  }
 0x120   : > { %5006 = vmatprep.subr.bf16.mxu1 %v5403_v26  ;;  %v5452_v25 = vld [vmem:[%s5535_s10 + $0x900] sm:$0xff]  }
 0x121   : > { %v5453_v26 = vld [vmem:[%s5535_s10 + $0x980] sm:$0xff]  }
 0x122   : > { %4985 = vmatpush3.bf16.msra.mxu0 %v5404_v27  ;;  %v436_v27 = vld [vmem:[%s5571_s14 + $0x90] sm:$0xff] }
 0x123   : > { %5007 = vmatpush3.bf16.msra.mxu1 %v5405_v28  ;;  %4986 = vmatprep.subr.bf16.mxu0 %v5406_v29  ;;  %v437_v28 = vld [vmem:[%s5571_s14 + $0x98] sm:$0xff]  ;;  %s408_s14 = scalar_lea.vmem %s5934_s6, %s5938_s28 }
 0x124   : > { %5008 = vmatprep.subr.bf16.mxu1 %v5407_v30  ;;  %v4287_v30 = vcombine.low %v436_v27, %v436_v27 }
 0x126   : > { %4987 = vmatpush3.bf16.msra.mxu0 %v5408_v31  ;;  %v4288_v31 = vcombine.high %v436_v27, %v436_v27 }
 0x127   : > { %5009 = vmatpush3.bf16.msra.mxu1 %v5409_v32  ;;  %4988 = vmatprep.subr.bf16.mxu0 %v5410_v33  ;;  %v4289_v32 = vcombine.low %v437_v28, %v437_v28  ;;  %v4290_v33 = vcombine.high %v437_v28, %v437_v28 }
 0x128   : > { %5010 = vmatprep.subr.bf16.mxu1 %v5411_v34 }
 0x12a   : > { %4989 = vmatpush3.bf16.msra.mxu0 %v5412_v35 }
 0x12b   : > { %5011 = vmatpush3.bf16.msra.mxu1 %v5413_v36  ;;  %4990 = vmatprep.subr.bf16.mxu0 %v5414_v37 }
 0x12c   : > { %5012 = vmatprep.subr.bf16.mxu1 %v5415_v38 }
 0x12e   : > { %4991 = vmatpush3.bf16.msra.mxu0 %v5416_v39 }
 0x12f   : > { %5013 = vmatpush3.bf16.msra.mxu1 %v5417_v40  ;;  %5020 = vmatprep.subr.bf16.mxu0 %v5422_v49 }
 0x130   : > { %5042 = vmatprep.subr.bf16.mxu1 %v5423_v51 }
 0x131   : > { %v4728_v42 = vpop.f32.mrf.mxu0  ;;  %3818 = vmatmul.mubr.bf16.vlgmr.msra.gmra.mxu0 %v4283_v43 }
 0x132   : > { %v4750_v46 = vpop.f32.mrf.mxu1  ;;  %3858 = vmatmul.mubr.bf16.vlgmr.msra.gmra.mxu1 %v4285_v47  ;;  %5021 = vmatpush3.bf16.msra.mxu0 %v5424_v54 }
 0x133   : > { %v4729_v50 = vpop.f32.mrf.mxu0  ;;  %5043 = vmatpush3.bf16.msra.mxu1 %v5425_v57  ;;  %5022 = vmatprep.subr.bf16.mxu0 %v5426_v60 }
 0x134   : > { %v4730_v52 = vadd.f32 %v4729_v50, %v4728_v42  ;;  %v4751_v53 = vpop.f32.mrf.mxu1  ;;  %5044 = vmatprep.subr.bf16.mxu1 %v5427_v63  ;;  %3897 = vmatprep.mubr.bf16.mxu0 %v4288_v31 }
 0x135   : > { %v4752_v55 = vadd.f32 %v4751_v53, %v4750_v46  ;;  %v4731_v56 = vpop.f32.mrf.mxu0  ;;  %3937 = vmatprep.mubr.bf16.mxu1 %v4290_v33 }
 0x136   : > { %v3340_v58 = vadd.f32 %v4730_v52, %v5828_v14  ;;  %v4753_v59 = vpop.f32.mrf.mxu1  ;;  %5023 = vmatpush3.bf16.msra.mxu0 %v5428_v1  ;;  %v5441_v14 = vld [vmem:[%s5535_s10 + $0x998] sm:$0xff]  }
 0x137   : > { %v4732_v61 = vpop.f32.mrf.mxu0  ;;  %5045 = vmatpush3.bf16.msra.mxu1 %v5429_v2  ;;  %5024 = vmatprep.subr.bf16.mxu0 %v5430_v3 }
 0x138   : > { %v5864_v62 = vadd.f32 %v4752_v55, %v3340_v58  ;;  %v4754_v0 = vpop.f32.mrf.mxu1  ;;  %5046 = vmatprep.subr.bf16.mxu1 %v5431_v4 }
 0x13a   : > { %5025 = vmatpush3.bf16.msra.mxu0 %v5432_v5  ;;  %v5458_v5 = vld [vmem:[%s397_s21 + $0x8] sm:$0xff]  }
 0x13b   : > { %5047 = vmatpush3.bf16.msra.mxu1 %v5433_v6  ;;  %5026 = vmatprep.subr.bf16.mxu0 %v5434_v7  ;;  %v5474_v6 = vmov 0.0   ;;  %v5459_v7 = vld [vmem:[%s397_s21] sm:$0xff]  }
 0x13c   : > { %5048 = vmatprep.subr.bf16.mxu1 %v5435_v8  ;;  %v5460_v8 = vld [vmem:[%s5903_s24 + $0x8] sm:$0xff]  }
 0x13e   : > { %5027 = vmatpush3.bf16.msra.mxu0 %v5436_v9 }
 0x13f   : > { %5049 = vmatpush3.bf16.msra.mxu1 %v5437_v10  ;;  %5028 = vmatprep.subr.bf16.mxu0 %v5438_v11 }
 0x140   : > { %5050 = vmatprep.subr.bf16.mxu1 %v5439_v12 }
 0x142   : > { %5029 = vmatpush3.bf16.msra.mxu0 %v5440_v13 }
 0x143   : > { %5051 = vmatpush3.bf16.msra.mxu1 %v5441_v14  ;;  %5030 = vmatprep.subr.bf16.mxu0 %v5442_v15 }
 0x144   : > { %5052 = vmatprep.subr.bf16.mxu1 %v5443_v16 }
 0x146   : > { %5031 = vmatpush3.bf16.msra.mxu0 %v5444_v17 }
 0x147   : > { %5053 = vmatpush3.bf16.msra.mxu1 %v5445_v18  ;;  %5032 = vmatprep.subr.bf16.mxu0 %v5446_v19 }
 0x148   : > { %5054 = vmatprep.subr.bf16.mxu1 %v5447_v20 }
 0x14a   : > { %5033 = vmatpush3.bf16.msra.mxu0 %v5448_v21 }
 0x14b   : > { %5055 = vmatpush3.bf16.msra.mxu1 %v5449_v22  ;;  %5034 = vmatprep.subr.bf16.mxu0 %v5450_v23 }
 0x14c   : > { %5056 = vmatprep.subr.bf16.mxu1 %v5451_v24 }
 0x14e   : > { %5035 = vmatpush3.bf16.msra.mxu0 %v5452_v25 }
 0x14f   : > { %5057 = vmatpush3.bf16.msra.mxu1 %v5453_v26  ;;  %5070 = vmatprep.subr.bf16.mxu0 %v5474_v6 }
 0x150   : > { %5078 = vmatprep.subr.bf16.mxu1 %v5474_v6 }
 0x151   : > { %v4772_v29 = vpop.f32.mrf.mxu0  ;;  %3898 = vmatmul.mubr.bf16.vlgmr.msra.gmra.mxu0 %v4287_v30 }
 0x152   : > { %v4794_v34 = vpop.f32.mrf.mxu1  ;;  %3938 = vmatmul.mubr.bf16.vlgmr.msra.gmra.mxu1 %v4289_v32  ;;  %5071 = vmatpush3.bf16.msra.mxu0 %v5458_v5 }
 0x153   : > { %v4773_v35 = vpop.f32.mrf.mxu0  ;;  %5072 = vmatprep.subr.bf16.mxu0 %v5474_v6  ;;  %5074 = vmatprep.mubr.msk.bf16.mxu0 %vm5475_vm0, %v5474_v6 }
 0x154   : > { %v4774_v36 = vadd.f32 %v4773_v35, %v4772_v29  ;;  %v4795_v37 = vpop.f32.mrf.mxu1  ;;  %5082 = vmatprep.mubr.msk.bf16.mxu1 %vm5475_vm0, %v5474_v6  ;;  %5079 = vmatpush3.bf16.msra.mxu1 %v5460_v8 }
 0x155   : > { %v4796_v38 = vadd.f32 %v4795_v37, %v4794_v34  ;;  %v4775_v39 = vpop.f32.mrf.mxu0  ;;  %5080 = vmatprep.subr.bf16.mxu1 %v5474_v6 }
 0x156   : > { %v3420_v40 = vadd.f32 %v4774_v36, %v5864_v62  ;;  %v4797_v41 = vpop.f32.mrf.mxu1  ;;  %5073 = vmatpush3.bf16.msra.mxu0 %v5459_v7 }
 0x157   : > { %v4776_v42 = vpop.f32.mrf.mxu0 }
 0x158   : > { %v3460_v43 = vadd.f32 %v4796_v38, %v3420_v40  ;;  %v4798_v44 = vpop.f32.mrf.mxu1 }
 0x171   : > { %v4816_v45 = vpop.f32.mrf.mxu0 }
 0x172   : > { %v4838_v46 = vpop.f32.mrf.mxu1 }
 0x173   : > { %v4817_v47 = vpop.f32.mrf.mxu0 }
 0x174   : > { %v4839_v48 = vpop.f32.mrf.mxu1  ;;  %v4818_v49 = vadd.f32 %v4817_v47, %v4816_v45 }
 0x175   : > { %v4840_v50 = vadd.f32 %v4839_v48, %v4838_v46  ;;  %v4819_v51 = vpop.f32.mrf.mxu0 }
 0x176   : > { %v4841_v52 = vpop.f32.mrf.mxu1  ;;  %v3500_v53 = vadd.f32 %v4818_v49, %v3460_v43 }
 0x177   : > { %v4820_v54 = vpop.f32.mrf.mxu0 }
 0x178   : > { %v4842_v55 = vpop.f32.mrf.mxu1  ;;  %v3540_v56 = vadd.f32 %v4840_v50, %v3500_v53 }
 0x191   : > { %v4860_v57 = vpop.f32.mrf.mxu0 }
 0x192   : > { %v4882_v58 = vpop.f32.mrf.mxu1 }
 0x193   : > { %v4861_v59 = vpop.f32.mrf.mxu0 }
 0x194   : > { %v4862_v60 = vadd.f32 %v4861_v59, %v4860_v57  ;;  %v4883_v61 = vpop.f32.mrf.mxu1  ;;  %v5461_v59 = vld [vmem:[%s5903_s24] sm:$0xff]  }
 0x195   : > { %v4884_v62 = vadd.f32 %v4883_v61, %v4882_v58  ;;  %v4863_v63 = vpop.f32.mrf.mxu0  ;;  %5081 = vmatpush3.bf16.msra.mxu1 %v5461_v59 }
 0x196   : > { %v3580_v0 = vadd.f32 %v4862_v60, %v3540_v56  ;;  %v4885_v1 = vpop.f32.mrf.mxu1  ;;  %v4611_v60 = vld [vmem:[%s400_s29] ss:$0 sm:$0xff] }
 0x197   : > { %v4864_v2 = vpop.f32.mrf.mxu0 }
 0x198   : > { %v3620_v3 = vadd.f32 %v4884_v62, %v3580_v0  ;;  %v4886_v4 = vpop.f32.mrf.mxu1 }
 0x199   : > { %v4615_v4 = vld [vmem:[%s408_s14] ss:$0 sm:$0xff] }
 0x1b1   : > { %v4904_v9 = vpop.f32.mrf.mxu0 }
 0x1b2   : > { %v4926_v10 = vpop.f32.mrf.mxu1 }
 0x1b3   : > { %v4905_v11 = vpop.f32.mrf.mxu0 }
 0x1b4   : > { %v4906_v12 = vadd.f32 %v4905_v11, %v4904_v9  ;;  %v4927_v13 = vpop.f32.mrf.mxu1 }
 0x1b5   : > { %v4928_v14 = vadd.f32 %v4927_v13, %v4926_v10  ;;  %v4907_v15 = vpop.f32.mrf.mxu0 }
 0x1b6   : > { %v3660_v16 = vadd.f32 %v4906_v12, %v3620_v3  ;;  %v4929_v17 = vpop.f32.mrf.mxu1 }
 0x1b7   : > { %v4908_v18 = vpop.f32.mrf.mxu0 }
 0x1b8   : > { %v3700_v19 = vadd.f32 %v4928_v14, %v3660_v16  ;;  %v4930_v20 = vpop.f32.mrf.mxu1 }
 0x1d1   : > { %v4948_v21 = vpop.f32.mrf.mxu0 }
 0x1d2   : > { %v4970_v22 = vpop.f32.mrf.mxu1 }
 0x1d3   : > { %v4949_v23 = vpop.f32.mrf.mxu0 }
 0x1d4   : > { %v4971_v24 = vpop.f32.mrf.mxu1  ;;  %v4950_v37 = vadd.f32 %v4949_v23, %v4948_v21 }
 0x1d5   : > { %v4951_v25 = vpop.f32.mrf.mxu0  ;;  %v4972_v39 = vadd.f32 %v4971_v24, %v4970_v22 }
 0x1d6   : > { %v4973_v26 = vpop.f32.mrf.mxu1  ;;  %v3740_v38 = vadd.f32 %v4950_v37, %v3700_v19 }
 0x1d7   : > { %v4952_v27 = vpop.f32.mrf.mxu0 }
 0x1d8   : > { %v4974_v28 = vpop.f32.mrf.mxu1  ;;  %v3780_v41 = vadd.f32 %v4972_v39, %v3740_v38 }
 0x1f1   : > { %v4992_v29 = vpop.f32.mrf.mxu0 }
 0x1f2   : > { %v5014_v30 = vpop.f32.mrf.mxu1 }
 0x1f3   : > { %v4993_v31 = vpop.f32.mrf.mxu0 }
 0x1f4   : > { %v5015_v32 = vpop.f32.mrf.mxu1  ;;  %v4994_v40 = vadd.f32 %v4993_v31, %v4992_v29 }
 0x1f5   : > { %v4995_v33 = vpop.f32.mrf.mxu0  ;;  %v5016_v43 = vadd.f32 %v5015_v32, %v5014_v30 }
 0x1f6   : > { %v5017_v34 = vpop.f32.mrf.mxu1  ;;  %v3820_v42 = vadd.f32 %v4994_v40, %v3780_v41 }
 0x1f7   : > { %v4996_v35 = vpop.f32.mrf.mxu0 }
 0x1f8   : > { %v5018_v36 = vpop.f32.mrf.mxu1  ;;  %v3860_v47 = vadd.f32 %v5016_v43, %v3820_v42 }
 0x211   : > { %v5036_v44 = vpop.f32.mrf.mxu0 }
 0x212   : > { %v5058_v45 = vpop.f32.mrf.mxu1 }
 0x213   : > { %v5037_v46 = vpop.f32.mrf.mxu0 }
 0x214   : > { %v5038_v48 = vadd.f32 %v5037_v46, %v5036_v44  ;;  %v5059_v49 = vpop.f32.mrf.mxu1 }
 0x215   : > { %v5039_v50 = vpop.f32.mrf.mxu0  ;;  %v5060_v52 = vadd.f32 %v5059_v49, %v5058_v45 }
 0x216   : > { %v3900_v51 = vadd.f32 %v5038_v48, %v3860_v47  ;;  %v5061_v53 = vpop.f32.mrf.mxu1 }
 0x217   : > { %v5040_v54 = vpop.f32.mrf.mxu0 }
 0x218   : > { %v3940_v55 = vadd.f32 %v5060_v52, %v3900_v51  ;;  %v5062_v56 = vpop.f32.mrf.mxu1 }
 0x21a   : > { %v3945_v57 = vmax.f32 %v3940_v55, 0.0 }
 0x21c   : > { %v3946_v58 = vpack.c.bf16 %v3945_v57, %v3945_v57 }
 0x21e   : > { %5075 = vmatmul.mubr.msk.bf16.vlgmr.msra.gmra.mxu0 %vm3970_vm1, %v3946_v58 }
 0x2de   : > { %v4008_v61 = vpop.f32.mrf.mxu0 }
 0x2df   : > { %v4009_v62 = vadd.f32 %v4611_v60, %v4008_v61 }
 0x2e0   : > { %v5076_v63 = vpop.f32.mrf.mxu0 }
 0x2e1   : > { %v4014_v0 = vmax.f32 %v4009_v62, 0.0 }
 0x2e2   : > { %v4011_v1 = vpop.f32.mrf.mxu0 }
 0x2e3   : > { %v4015_v2 = vpack.c.bf16 %v4014_v0, %v4014_v0  ;;  %4082 = vst.msk [vmem:[%s412_s11] sm:$0xff] %vm3970_vm1, %v4014_v0 }
 0x2e4   : > { %v5077_v3 = vpop.f32.mrf.mxu0 }
 0x2e5   : > { %5083 = vmatmul.mubr.msk.bf16.vlgmr.msra.gmra.mxu1 %vm3970_vm1, %v4015_v2 }
 0x3a5   : > { %v4076_v5 = vpop.f32.mrf.mxu1 }
 0x3a6   : > { %v4077_v6 = vadd.f32 %v4615_v4, %v4076_v5 }
 0x3a7   : > { %v5084_v7 = vpop.f32.mrf.mxu1 }
 0x3a8   : > { %v4619_v8 = vmul.f32 -1.442695, %v4077_v6 }
 0x3a9   : > { %v4079_v9 = vpop.f32.mrf.mxu1 }
 0x3aa   : > { %5462 = vpow2.f32 %v4619_v8 }
 0x3ab   : > { %v5085_v10 = vpop.f32.mrf.mxu1 }
 0x3b7   : > { %v5463_v11 = vpop.eup %5462 }
 0x3b8   : > { %v4086_v12 = vadd.f32 1.0, %v5463_v11 }
 0x3ba   : > { %5464 = vrcp.f32 %v4086_v12 }
 0x3c7   : > { %v5465_v13 = vpop.eup %5464 }
 0x3c8   : > { %4089 = vst [vmem:[%s416_s17] sm:$0xff] %v5465_v13 }
 0x3c9 PF: > { %s19_s27 = sadd.s32 1, %s5472_s27  }
 0x3ca   : > { %p16_p4 = scmp.ge.s32.totalorder %s19_s27, 5  }
 0x3cc   :  { %18 = sbr.rel (!%p16_p4) target bundleno = 1 (0x1), region = 108 }

// kernel: pasta_res50_forward.5
= control target key start
LH: loop header
LB: loop body
LE: loop exit
PB: predicated region body
PF: predicated region fallthrough
CT: control target
= control target key end

     0   :  { %vm8102_vm0 = vcmask 261120   ;;  %s13716_s1 = inlined_call_operand.vmem [shape: bf16[1024,2048], index: 1, kind: input, shape index: {}]   ;;  %s13717_s0 = inlined_call_operand.vmem [shape: bf16[32,1024], index: 0, kind: input, shape index: {}]   ;;  %s13718_s2 = inlined_call_operand.vmem [shape: f32[1,2048], index: 2, kind: input, shape index: {}]   ;;  %s13719_s3 = inlined_call_operand.vmem [shape: f32[8,32], index: 3, kind: input, shape index: {}]   ;;  %s13720_s4 = inlined_call_operand.vmem [shape: f32[8,2048], index: 4, kind: output, shape index: {}]  }
   0x1   :  { %v145_v0 = vld [vmem:[%s13716_s1 + $0x380] sm:$0xff]  ;;  %v9879_v59 = vld [vmem:[%s13717_s0 + $0x8] sm:$0xff] }
   0x2   :  { %v153_v1 = vld [vmem:[%s13716_s1 + $0x3c0] sm:$0xff]  ;;  %v9884_v60 = vld [vmem:[%s13717_s0 + $0x28] sm:$0xff] }
   0x3   :  { %v401_v2 = vld [vmem:[%s13716_s1 + $0xb80] sm:$0xff]  ;;  %v8823_v3 = vcombine.high %v145_v0, %v153_v1  ;;  %v8822_v5 = vcombine.low %v145_v0, %v153_v1  ;;  %v9894_v63 = vcombine.high %v9879_v59, %v9884_v60 }
   0x4   :  { %v409_v4 = vld [vmem:[%s13716_s1 + $0xbc0] sm:$0xff] }
   0x5   :  { %v129_v6 = vld [vmem:[%s13716_s1 + $0x300] sm:$0xff]  ;;  %v9079_v8 = vcombine.high %v401_v2, %v409_v4  ;;  %v9078_v9 = vcombine.low %v401_v2, %v409_v4  ;;  %6341 = vmatprep.subr.bf16.mxu0 %v8823_v3  ;;  %6426 = vmatprep.mubr.bf16.mxu1 %v9894_v63 }
   0x6   :  { %v137_v7 = vld [vmem:[%s13716_s1 + $0x340] sm:$0xff]  ;;  %6342 = vmatpush1.bf16.msra.mxu0 %v8822_v5 }
   0x7   :  { %v8807_v10 = vcombine.high %v129_v6, %v137_v7  ;;  %v385_v11 = vld [vmem:[%s13716_s1 + $0xb00] sm:$0xff]  ;;  %6394 = vmatprep.subr.bf16.mxu1 %v9079_v8  ;;  %v8806_v18 = vcombine.low %v129_v6, %v137_v7 }
   0x8   :  { %v393_v12 = vld [vmem:[%s13716_s1 + $0xb40] sm:$0xff]  ;;  %6395 = vmatpush1.bf16.msra.mxu1 %v9078_v9 }
   0x9   :  { %v113_v13 = vld [vmem:[%s13716_s1 + $0x280] sm:$0xff]  ;;  %v9063_v14 = vcombine.high %v385_v11, %v393_v12  ;;  %6343 = vmatprep.subr.bf16.mxu0 %v8807_v10  ;;  %v9062_v19 = vcombine.low %v385_v11, %v393_v12 }
   0xa   :  { %v121_v15 = vld [vmem:[%s13716_s1 + $0x2c0] sm:$0xff]  ;;  %6344 = vmatpush1.bf16.msra.mxu0 %v8806_v18 }
   0xb   :  { %v369_v16 = vld [vmem:[%s13716_s1 + $0xa80] sm:$0xff]  ;;  %v8791_v20 = vcombine.high %v113_v13, %v121_v15  ;;  %6396 = vmatprep.subr.bf16.mxu1 %v9063_v14  ;;  %v8790_v26 = vcombine.low %v113_v13, %v121_v15 }
   0xc   :  { %v377_v17 = vld [vmem:[%s13716_s1 + $0xac0] sm:$0xff]  ;;  %6397 = vmatpush1.bf16.msra.mxu1 %v9062_v19 }
   0xd   :  { %v9047_v21 = vcombine.high %v369_v16, %v377_v17  ;;  %v97_v22 = vld [vmem:[%s13716_s1 + $0x200] sm:$0xff]  ;;  %6345 = vmatprep.subr.bf16.mxu0 %v8791_v20  ;;  %v9046_v27 = vcombine.low %v369_v16, %v377_v17 }
   0xe   :  { %v105_v23 = vld [vmem:[%s13716_s1 + $0x240] sm:$0xff]  ;;  %6346 = vmatpush1.bf16.msra.mxu0 %v8790_v26 }
   0xf   :  { %v353_v24 = vld [vmem:[%s13716_s1 + $0xa00] sm:$0xff]  ;;  %v8775_v28 = vcombine.high %v97_v22, %v105_v23  ;;  %6398 = vmatprep.subr.bf16.mxu1 %v9047_v21  ;;  %v8774_v34 = vcombine.low %v97_v22, %v105_v23 }
  0x10   :  { %v361_v25 = vld [vmem:[%s13716_s1 + $0xa40] sm:$0xff]  ;;  %6399 = vmatpush1.bf16.msra.mxu1 %v9046_v27 }
  0x11   :  { %v9031_v29 = vcombine.high %v353_v24, %v361_v25  ;;  %v81_v30 = vld [vmem:[%s13716_s1 + $0x180] sm:$0xff]  ;;  %6347 = vmatprep.subr.bf16.mxu0 %v8775_v28  ;;  %v9030_v35 = vcombine.low %v353_v24, %v361_v25 }
  0x12   :  { %v89_v31 = vld [vmem:[%s13716_s1 + $0x1c0] sm:$0xff]  ;;  %6348 = vmatpush1.bf16.msra.mxu0 %v8774_v34 }
  0x13   :  { %v337_v32 = vld [vmem:[%s13716_s1 + $0x980] sm:$0xff]  ;;  %v8759_v36 = vcombine.high %v81_v30, %v89_v31  ;;  %6400 = vmatprep.subr.bf16.mxu1 %v9031_v29  ;;  %v8758_v42 = vcombine.low %v81_v30, %v89_v31 }
  0x14   :  { %v345_v33 = vld [vmem:[%s13716_s1 + $0x9c0] sm:$0xff]  ;;  %6401 = vmatpush1.bf16.msra.mxu1 %v9030_v35 }
  0x15   :  { %v9015_v37 = vcombine.high %v337_v32, %v345_v33  ;;  %v65_v38 = vld [vmem:[%s13716_s1 + $0x100] sm:$0xff]  ;;  %6349 = vmatprep.subr.bf16.mxu0 %v8759_v36  ;;  %v9014_v43 = vcombine.low %v337_v32, %v345_v33 }
  0x16   :  { %v73_v39 = vld [vmem:[%s13716_s1 + $0x140] sm:$0xff]  ;;  %6350 = vmatpush1.bf16.msra.mxu0 %v8758_v42 }
  0x17   :  { %v321_v40 = vld [vmem:[%s13716_s1 + $0x900] sm:$0xff]  ;;  %v8743_v44 = vcombine.high %v65_v38, %v73_v39  ;;  %6402 = vmatprep.subr.bf16.mxu1 %v9015_v37  ;;  %v8742_v50 = vcombine.low %v65_v38, %v73_v39 }
  0x18   :  { %v329_v41 = vld [vmem:[%s13716_s1 + $0x940] sm:$0xff]  ;;  %6403 = vmatpush1.bf16.msra.mxu1 %v9014_v43 }
  0x19   :  { %v8999_v45 = vcombine.high %v321_v40, %v329_v41  ;;  %v49_v46 = vld [vmem:[%s13716_s1 + $0x80] sm:$0xff]  ;;  %6351 = vmatprep.subr.bf16.mxu0 %v8743_v44  ;;  %v8998_v51 = vcombine.low %v321_v40, %v329_v41 }
  0x1a   :  { %v57_v47 = vld [vmem:[%s13716_s1 + $0xc0] sm:$0xff]  ;;  %6352 = vmatpush1.bf16.msra.mxu0 %v8742_v50 }
  0x1b   :  { %v305_v48 = vld [vmem:[%s13716_s1 + $0x880] sm:$0xff]  ;;  %v8727_v52 = vcombine.high %v49_v46, %v57_v47  ;;  %6404 = vmatprep.subr.bf16.mxu1 %v8999_v45  ;;  %v8726_v0 = vcombine.low %v49_v46, %v57_v47 }
  0x1c   :  { %v313_v49 = vld [vmem:[%s13716_s1 + $0x8c0] sm:$0xff]  ;;  %6405 = vmatpush1.bf16.msra.mxu1 %v8998_v51 }
  0x1d   :  { %v33_v53 = vld [vmem:[%s13716_s1] sm:$0xff]  ;;  %v8983_v56 = vcombine.high %v305_v48, %v313_v49  ;;  %6353 = vmatprep.subr.bf16.mxu0 %v8727_v52  ;;  %v8982_v1 = vcombine.low %v305_v48, %v313_v49 }
  0x1e   :  { %v9862_v54 = vld [vmem:[%s13717_s0] sm:$0xff]  ;;  %6354 = vmatpush1.bf16.msra.mxu0 %v8726_v0 }
  0x1f   :  { %v9867_v55 = vld [vmem:[%s13717_s0 + $0x20] sm:$0xff]  ;;  %6406 = vmatprep.subr.bf16.mxu1 %v8983_v56 }
  0x20   :  { %v41_v57 = vld [vmem:[%s13716_s1 + $0x40] sm:$0xff]  ;;  %v9874_v58 = vcombine.high %v9862_v54, %v9867_v55  ;;  %6407 = vmatpush1.bf16.msra.mxu1 %v8982_v1 }
  0x21   :  { %v289_v61 = vld [vmem:[%s13716_s1 + $0x800] sm:$0xff]  ;;  %v8711_v2 = vcombine.high %v33_v53, %v41_v57  ;;  %v8710_v8 = vcombine.low %v33_v53, %v41_v57 }
  0x22   :  { %v297_v62 = vld [vmem:[%s13716_s1 + $0x840] sm:$0xff]  ;;  %6373 = vmatprep.mubr.bf16.mxu0 %v9874_v58 }
  0x23   :  { %v8967_v3 = vcombine.high %v289_v61, %v297_v62  ;;  %v273_v4 = vld [vmem:[%s13716_s1 + $0x780] sm:$0xff]  ;;  %6355 = vmatprep.subr.bf16.mxu0 %v8711_v2  ;;  %v8966_v9 = vcombine.low %v289_v61, %v297_v62 }
  0x24   :  { %v281_v5 = vld [vmem:[%s13716_s1 + $0x7c0] sm:$0xff]  ;;  %6356 = vmatpush1.bf16.msra.mxu0 %v8710_v8 }
  0x25   :  { %v529_v6 = vld [vmem:[%s13716_s1 + $0xf80] sm:$0xff]  ;;  %v8951_v10 = vcombine.high %v273_v4, %v281_v5  ;;  %6408 = vmatprep.subr.bf16.mxu1 %v8967_v3  ;;  %v8950_v16 = vcombine.low %v273_v4, %v281_v5 }
  0x26   :  { %v537_v7 = vld [vmem:[%s13716_s1 + $0xfc0] sm:$0xff]  ;;  %6409 = vmatpush1.bf16.msra.mxu1 %v8966_v9 }
  0x27   :  { %v9207_v11 = vcombine.high %v529_v6, %v537_v7  ;;  %v257_v12 = vld [vmem:[%s13716_s1 + $0x700] sm:$0xff]  ;;  %6357 = vmatprep.subr.bf16.mxu0 %v8951_v10  ;;  %v9206_v17 = vcombine.low %v529_v6, %v537_v7 }
  0x28   :  { %v265_v13 = vld [vmem:[%s13716_s1 + $0x740] sm:$0xff]  ;;  %6358 = vmatpush2.bf16.msra.mxu0 %v8950_v16 }
  0x29   :  { %v513_v14 = vld [vmem:[%s13716_s1 + $0xf00] sm:$0xff]  ;;  %v8935_v18 = vcombine.high %v257_v12, %v265_v13  ;;  %6410 = vmatprep.subr.bf16.mxu1 %v9207_v11  ;;  %v8934_v24 = vcombine.low %v257_v12, %v265_v13 }
  0x2a   :  { %v521_v15 = vld [vmem:[%s13716_s1 + $0xf40] sm:$0xff]  ;;  %6411 = vmatpush2.bf16.msra.mxu1 %v9206_v17 }
  0x2b   :  { %v9191_v19 = vcombine.high %v513_v14, %v521_v15  ;;  %v241_v20 = vld [vmem:[%s13716_s1 + $0x680] sm:$0xff]  ;;  %6359 = vmatprep.subr.bf16.mxu0 %v8935_v18  ;;  %v9190_v25 = vcombine.low %v513_v14, %v521_v15 }
  0x2c   :  { %v249_v21 = vld [vmem:[%s13716_s1 + $0x6c0] sm:$0xff]  ;;  %6360 = vmatpush2.bf16.msra.mxu0 %v8934_v24 }
  0x2d   :  { %v497_v22 = vld [vmem:[%s13716_s1 + $0xe80] sm:$0xff]  ;;  %v8919_v26 = vcombine.high %v241_v20, %v249_v21  ;;  %6412 = vmatprep.subr.bf16.mxu1 %v9191_v19  ;;  %v8918_v32 = vcombine.low %v241_v20, %v249_v21  ;;  %v10017_v21 = vcombine.low %v9862_v54, %v9867_v55  ;;  %v26_v54 = vld [vmem:[%s13717_s0 + $0x48] sm:$0xff] }
  0x2e   :  { %v505_v23 = vld [vmem:[%s13716_s1 + $0xec0] sm:$0xff]  ;;  %6413 = vmatpush2.bf16.msra.mxu1 %v9190_v25  ;;  %v10030_v25 = vcombine.low %v9879_v59, %v9884_v60  ;;  %v30_v55 = vld [vmem:[%s13717_s0 + $0x68] sm:$0xff] }
  0x2f   :  { %v9175_v27 = vcombine.high %v497_v22, %v505_v23  ;;  %v225_v28 = vld [vmem:[%s13716_s1 + $0x600] sm:$0xff]  ;;  %6361 = vmatprep.subr.bf16.mxu0 %v8919_v26  ;;  %v9174_v33 = vcombine.low %v497_v22, %v505_v23 }
  0x30   :  { %v233_v29 = vld [vmem:[%s13716_s1 + $0x640] sm:$0xff]  ;;  %6362 = vmatpush2.bf16.msra.mxu0 %v8918_v32 }
  0x31   :  { %v481_v30 = vld [vmem:[%s13716_s1 + $0xe00] sm:$0xff]  ;;  %v8903_v34 = vcombine.high %v225_v28, %v233_v29  ;;  %6414 = vmatprep.subr.bf16.mxu1 %v9175_v27  ;;  %v8902_v40 = vcombine.low %v225_v28, %v233_v29 }
  0x32   :  { %v489_v31 = vld [vmem:[%s13716_s1 + $0xe40] sm:$0xff]  ;;  %6415 = vmatpush2.bf16.msra.mxu1 %v9174_v33  ;;  %v10053_v33 = vcombine.high %v26_v54, %v30_v55 }
  0x33   :  { %v9159_v35 = vcombine.high %v481_v30, %v489_v31  ;;  %v209_v36 = vld [vmem:[%s13716_s1 + $0x580] sm:$0xff]  ;;  %6363 = vmatprep.subr.bf16.mxu0 %v8903_v34  ;;  %v9158_v41 = vcombine.low %v481_v30, %v489_v31 }
  0x34   :  { %v217_v37 = vld [vmem:[%s13716_s1 + $0x5c0] sm:$0xff]  ;;  %6364 = vmatpush2.bf16.msra.mxu0 %v8902_v40 }
  0x35   :  { %v465_v38 = vld [vmem:[%s13716_s1 + $0xd80] sm:$0xff]  ;;  %v8887_v42 = vcombine.high %v209_v36, %v217_v37  ;;  %6416 = vmatprep.subr.bf16.mxu1 %v9159_v35  ;;  %v8886_v48 = vcombine.low %v209_v36, %v217_v37 }
  0x36   :  { %v473_v39 = vld [vmem:[%s13716_s1 + $0xdc0] sm:$0xff]  ;;  %6417 = vmatpush2.bf16.msra.mxu1 %v9158_v41 }
  0x37   :  { %v9143_v43 = vcombine.high %v465_v38, %v473_v39  ;;  %v193_v44 = vld [vmem:[%s13716_s1 + $0x500] sm:$0xff]  ;;  %6365 = vmatprep.subr.bf16.mxu0 %v8887_v42  ;;  %v9142_v49 = vcombine.low %v465_v38, %v473_v39 }
  0x38   :  { %v201_v45 = vld [vmem:[%s13716_s1 + $0x540] sm:$0xff]  ;;  %6366 = vmatpush2.bf16.msra.mxu0 %v8886_v48  ;;  %v10092_v48 = vld [vmem:[%s13717_s0 + $0x38] sm:$0xff] }
  0x39   :  { %v449_v46 = vld [vmem:[%s13716_s1 + $0xd00] sm:$0xff]  ;;  %v8871_v50 = vcombine.high %v193_v44, %v201_v45  ;;  %6418 = vmatprep.subr.bf16.mxu1 %v9143_v43  ;;  %v8870_v61 = vcombine.low %v193_v44, %v201_v45  ;;  %v10075_v43 = vld [vmem:[%s13717_s0 + $0x10] sm:$0xff] }
  0x3a   :  { %v457_v47 = vld [vmem:[%s13716_s1 + $0xd40] sm:$0xff]  ;;  %6419 = vmatpush2.bf16.msra.mxu1 %v9142_v49  ;;  %v10080_v44 = vld [vmem:[%s13717_s0 + $0x30] sm:$0xff] }
  0x3b   :  { %v9127_v51 = vcombine.high %v449_v46, %v457_v47  ;;  %v177_v52 = vld [vmem:[%s13716_s1 + $0x480] sm:$0xff]  ;;  %6367 = vmatprep.subr.bf16.mxu0 %v8871_v50  ;;  %v9126_v62 = vcombine.low %v449_v46, %v457_v47  ;;  %v10082_v46 = vcombine.low %v26_v54, %v30_v55  ;;  %v10087_v47 = vld [vmem:[%s13717_s0 + $0x18] sm:$0xff] }
  0x3c   :  { %v185_v53 = vld [vmem:[%s13716_s1 + $0x4c0] sm:$0xff]  ;;  %6368 = vmatpush2.bf16.msra.mxu0 %v8870_v61 }
  0x3d   :  { %v433_v56 = vld [vmem:[%s13716_s1 + $0xc80] sm:$0xff]  ;;  %v8855_v0 = vcombine.high %v177_v52, %v185_v53  ;;  %6420 = vmatprep.subr.bf16.mxu1 %v9127_v51  ;;  %v8854_v6 = vcombine.low %v177_v52, %v185_v53 }
  0x3e   :  { %v441_v57 = vld [vmem:[%s13716_s1 + $0xcc0] sm:$0xff]  ;;  %6421 = vmatpush2.bf16.msra.mxu1 %v9126_v62  ;;  %v10113_v62 = vcombine.high %v10087_v47, %v10092_v48 }
  0x3f   :  { %v9111_v1 = vcombine.high %v433_v56, %v441_v57  ;;  %v161_v2 = vld [vmem:[%s13716_s1 + $0x400] sm:$0xff]  ;;  %6369 = vmatprep.subr.bf16.mxu0 %v8855_v0  ;;  %v9110_v7 = vcombine.low %v433_v56, %v441_v57  ;;  %v10102_v56 = vcombine.high %v10075_v43, %v10080_v44 }
  0x40   :  { %v169_v3 = vld [vmem:[%s13716_s1 + $0x440] sm:$0xff]  ;;  %6370 = vmatpush2.bf16.msra.mxu0 %v8854_v6 }
  0x41   :  { %v417_v4 = vld [vmem:[%s13716_s1 + $0xc00] sm:$0xff]  ;;  %v8839_v8 = vcombine.high %v161_v2, %v169_v3  ;;  %6422 = vmatprep.subr.bf16.mxu1 %v9111_v1  ;;  %v8838_v14 = vcombine.low %v161_v2, %v169_v3 }
  0x42   :  { %v425_v5 = vld [vmem:[%s13716_s1 + $0xc40] sm:$0xff]  ;;  %6423 = vmatpush2.bf16.msra.mxu1 %v9110_v7 }
  0x43   :  { %v9095_v9 = vcombine.high %v417_v4, %v425_v5  ;;  %v657_v10 = vld [vmem:[%s13716_s1 + $0x1380] sm:$0xff]  ;;  %6371 = vmatprep.subr.bf16.mxu0 %v8839_v8  ;;  %v9094_v15 = vcombine.low %v417_v4, %v425_v5 }
  0x44   :  { %v665_v11 = vld [vmem:[%s13716_s1 + $0x13c0] sm:$0xff]  ;;  %6372 = vmatpush2.bf16.msra.mxu0 %v8838_v14 }
  0x45   :  { %v913_v12 = vld [vmem:[%s13716_s1 + $0x1b80] sm:$0xff]  ;;  %v9335_v16 = vcombine.high %v657_v10, %v665_v11  ;;  %6424 = vmatprep.subr.bf16.mxu1 %v9095_v9  ;;  %v9334_v26 = vcombine.low %v657_v10, %v665_v11 }
  0x46   :  { %v921_v13 = vld [vmem:[%s13716_s1 + $0x1bc0] sm:$0xff]  ;;  %6425 = vmatpush2.bf16.msra.mxu1 %v9094_v15 }
  0x47   :  { %v9591_v17 = vcombine.high %v913_v12, %v921_v13  ;;  %v641_v18 = vld [vmem:[%s13716_s1 + $0x1300] sm:$0xff]  ;;  %6447 = vmatprep.subr.bf16.mxu0 %v9335_v16  ;;  %v9590_v27 = vcombine.low %v913_v12, %v921_v13  ;;  %6374 = vmatmul.mubr.bf16.vlgmr.msra.gmra.mxu0 %v10017_v21 }
  0x48   :  { %v649_v19 = vld [vmem:[%s13716_s1 + $0x1340] sm:$0xff]  ;;  %6448 = vmatpush1.bf16.msra.mxu0 %v9334_v26 }
  0x49   :  { %v897_v20 = vld [vmem:[%s13716_s1 + $0x1b00] sm:$0xff]  ;;  %v9319_v28 = vcombine.high %v641_v18, %v649_v19  ;;  %6500 = vmatprep.subr.bf16.mxu1 %v9591_v17  ;;  %6427 = vmatmul.mubr.bf16.vlgmr.msra.gmra.mxu1 %v10030_v25  ;;  %v9318_v34 = vcombine.low %v641_v18, %v649_v19 }
  0x4a   :  { %v905_v22 = vld [vmem:[%s13716_s1 + $0x1b40] sm:$0xff]  ;;  %6501 = vmatpush1.bf16.msra.mxu1 %v9590_v27  ;;  %6436 = vmatprep.mubr.bf16.mxu1 %v10053_v33 }
  0x4b   :  { %v25_v23 = vld [vmem:[%s13717_s0 + $0x40] sm:$0xff]  ;;  %v9575_v29 = vcombine.high %v897_v20, %v905_v22  ;;  %6449 = vmatprep.subr.bf16.mxu0 %v9319_v28  ;;  %v9574_v35 = vcombine.low %v897_v20, %v905_v22 }
  0x4c   :  { %v29_v24 = vld [vmem:[%s13717_s0 + $0x60] sm:$0xff]  ;;  %6450 = vmatpush1.bf16.msra.mxu0 %v9318_v34 }
  0x4d   :  { %v625_v59 = vld [vmem:[%s13716_s1 + $0x1280] sm:$0xff]  ;;  %v10044_v30 = vcombine.high %v25_v23, %v29_v24  ;;  %6502 = vmatprep.subr.bf16.mxu1 %v9575_v29  ;;  %v10069_v42 = vcombine.low %v25_v23, %v29_v24 }
  0x4e   :  { %v633_v60 = vld [vmem:[%s13716_s1 + $0x12c0] sm:$0xff]  ;;  %6503 = vmatpush1.bf16.msra.mxu1 %v9574_v35 }
  0x4f   :  { %v881_v31 = vld [vmem:[%s13716_s1 + $0x1a80] sm:$0xff]  ;;  %v9303_v36 = vcombine.high %v625_v59, %v633_v60  ;;  %6383 = vmatprep.mubr.bf16.mxu0 %v10044_v30  ;;  %v9302_v45 = vcombine.low %v625_v59, %v633_v60 }
  0x50   :  { %v889_v32 = vld [vmem:[%s13716_s1 + $0x1ac0] sm:$0xff]  ;;  %6384 = vmatmul.mubr.bf16.gmra.mxu0 %v10069_v42 }
  0x51   :  { %v9559_v37 = vcombine.high %v881_v31, %v889_v32  ;;  %v609_v38 = vld [vmem:[%s13716_s1 + $0x1200] sm:$0xff]  ;;  %6451 = vmatprep.subr.bf16.mxu0 %v9303_v36  ;;  %v9558_v49 = vcombine.low %v881_v31, %v889_v32  ;;  %6437 = vmatmul.mubr.bf16.gmra.mxu1 %v10082_v46 }
  0x52   :  { %v617_v39 = vld [vmem:[%s13716_s1 + $0x1240] sm:$0xff]  ;;  %6452 = vmatpush1.bf16.msra.mxu0 %v9302_v45  ;;  %6479 = vmatprep.mubr.bf16.mxu0 %v10102_v56 }
  0x53   :  { %v865_v40 = vld [vmem:[%s13716_s1 + $0x1a00] sm:$0xff]  ;;  %v9287_v50 = vcombine.high %v609_v38, %v617_v39  ;;  %6504 = vmatprep.subr.bf16.mxu1 %v9559_v37  ;;  %v9286_v0 = vcombine.low %v609_v38, %v617_v39  ;;  %6532 = vmatprep.mubr.bf16.mxu1 %v10113_v62 }
  0x54   :  { %v873_v41 = vld [vmem:[%s13716_s1 + $0x1a40] sm:$0xff]  ;;  %6505 = vmatpush1.bf16.msra.mxu1 %v9558_v49 }
  0x55   :  { %v9543_v51 = vcombine.high %v865_v40, %v873_v41  ;;  %v593_v52 = vld [vmem:[%s13716_s1 + $0x1180] sm:$0xff]  ;;  %6453 = vmatprep.subr.bf16.mxu0 %v9287_v50  ;;  %v9542_v1 = vcombine.low %v865_v40, %v873_v41 }
  0x56   :  { %v601_v53 = vld [vmem:[%s13716_s1 + $0x11c0] sm:$0xff]  ;;  %6454 = vmatpush1.bf16.msra.mxu0 %v9286_v0 }
  0x57   :  { %v849_v57 = vld [vmem:[%s13716_s1 + $0x1980] sm:$0xff]  ;;  %v9271_v2 = vcombine.high %v593_v52, %v601_v53  ;;  %6506 = vmatprep.subr.bf16.mxu1 %v9543_v51  ;;  %v9270_v8 = vcombine.low %v593_v52, %v601_v53 }
  0x58   :  { %v857_v61 = vld [vmem:[%s13716_s1 + $0x19c0] sm:$0xff]  ;;  %6507 = vmatpush1.bf16.msra.mxu1 %v9542_v1 }
  0x59   :  { %v9527_v3 = vcombine.high %v849_v57, %v857_v61  ;;  %v577_v4 = vld [vmem:[%s13716_s1 + $0x1100] sm:$0xff]  ;;  %6455 = vmatprep.subr.bf16.mxu0 %v9271_v2  ;;  %v9526_v9 = vcombine.low %v849_v57, %v857_v61 }
  0x5a   :  { %v585_v5 = vld [vmem:[%s13716_s1 + $0x1140] sm:$0xff]  ;;  %6456 = vmatpush1.bf16.msra.mxu0 %v9270_v8 }
  0x5b   :  { %v833_v6 = vld [vmem:[%s13716_s1 + $0x1900] sm:$0xff]  ;;  %v9255_v10 = vcombine.high %v577_v4, %v585_v5  ;;  %6508 = vmatprep.subr.bf16.mxu1 %v9527_v3  ;;  %v9254_v16 = vcombine.low %v577_v4, %v585_v5 }
  0x5c   :  { %v841_v7 = vld [vmem:[%s13716_s1 + $0x1940] sm:$0xff]  ;;  %6509 = vmatpush1.bf16.msra.mxu1 %v9526_v9 }
  0x5d   :  { %v9511_v11 = vcombine.high %v833_v6, %v841_v7  ;;  %v561_v12 = vld [vmem:[%s13716_s1 + $0x1080] sm:$0xff]  ;;  %6457 = vmatprep.subr.bf16.mxu0 %v9255_v10  ;;  %v9510_v17 = vcombine.low %v833_v6, %v841_v7 }
  0x5e   :  { %v569_v13 = vld [vmem:[%s13716_s1 + $0x10c0] sm:$0xff]  ;;  %6458 = vmatpush1.bf16.msra.mxu0 %v9254_v16 }
  0x5f   :  { %v817_v14 = vld [vmem:[%s13716_s1 + $0x1880] sm:$0xff]  ;;  %v9239_v18 = vcombine.high %v561_v12, %v569_v13  ;;  %6510 = vmatprep.subr.bf16.mxu1 %v9511_v11  ;;  %v9238_v26 = vcombine.low %v561_v12, %v569_v13 }
  0x60   :  { %v825_v15 = vld [vmem:[%s13716_s1 + $0x18c0] sm:$0xff]  ;;  %6511 = vmatpush1.bf16.msra.mxu1 %v9510_v17 }
  0x61   :  { %v9495_v19 = vcombine.high %v817_v14, %v825_v15  ;;  %v545_v20 = vld [vmem:[%s13716_s1 + $0x1000] sm:$0xff]  ;;  %6459 = vmatprep.subr.bf16.mxu0 %v9239_v18  ;;  %v9494_v54 = vcombine.low %v817_v14, %v825_v15 }
  0x62   :  { %v553_v22 = vld [vmem:[%s13716_s1 + $0x1040] sm:$0xff]  ;;  %6460 = vmatpush1.bf16.msra.mxu0 %v9238_v26 }
  0x63   :  { %v801_v23 = vld [vmem:[%s13716_s1 + $0x1800] sm:$0xff]  ;;  %v9223_v55 = vcombine.high %v545_v20, %v553_v22  ;;  %6512 = vmatprep.subr.bf16.mxu1 %v9495_v19  ;;  %v9222_v31 = vcombine.low %v545_v20, %v553_v22 }
  0x64   :  { %v809_v24 = vld [vmem:[%s13716_s1 + $0x1840] sm:$0xff]  ;;  %6513 = vmatpush1.bf16.msra.mxu1 %v9494_v54 }
  0x65   :  { %v9479_v27 = vcombine.high %v801_v23, %v809_v24  ;;  %v785_v28 = vld [vmem:[%s13716_s1 + $0x1780] sm:$0xff]  ;;  %6461 = vmatprep.subr.bf16.mxu0 %v9223_v55  ;;  %v9478_v32 = vcombine.low %v801_v23, %v809_v24 }
  0x66   :  { %v793_v29 = vld [vmem:[%s13716_s1 + $0x17c0] sm:$0xff]  ;;  %6462 = vmatpush1.bf16.msra.mxu0 %v9222_v31 }
  0x67   :  { %v1041_v59 = vld [vmem:[%s13716_s1 + $0x1f80] sm:$0xff]  ;;  %v9463_v34 = vcombine.high %v785_v28, %v793_v29  ;;  %6514 = vmatprep.subr.bf16.mxu1 %v9479_v27  ;;  %v9462_v40 = vcombine.low %v785_v28, %v793_v29 }
  0x68   :  { %v1049_v60 = vld [vmem:[%s13716_s1 + $0x1fc0] sm:$0xff]  ;;  %6515 = vmatpush1.bf16.msra.mxu1 %v9478_v32 }
  0x69   :  { %v9719_v35 = vcombine.high %v1041_v59, %v1049_v60  ;;  %v769_v36 = vld [vmem:[%s13716_s1 + $0x1700] sm:$0xff]  ;;  %6463 = vmatprep.subr.bf16.mxu0 %v9463_v34  ;;  %v9718_v41 = vcombine.low %v1041_v59, %v1049_v60 }
  0x6a   :  { %v777_v37 = vld [vmem:[%s13716_s1 + $0x1740] sm:$0xff]  ;;  %6464 = vmatpush2.bf16.msra.mxu0 %v9462_v40 }
  0x6b   :  { %v1025_v38 = vld [vmem:[%s13716_s1 + $0x1f00] sm:$0xff]  ;;  %v9447_v45 = vcombine.high %v769_v36, %v777_v37  ;;  %6516 = vmatprep.subr.bf16.mxu1 %v9719_v35  ;;  %v9446_v57 = vcombine.low %v769_v36, %v777_v37 }
  0x6c   :  { %v1033_v39 = vld [vmem:[%s13716_s1 + $0x1f40] sm:$0xff]  ;;  %6517 = vmatpush2.bf16.msra.mxu1 %v9718_v41 }
  0x6d   :  { %v9703_v49 = vcombine.high %v1025_v38, %v1033_v39  ;;  %v753_v50 = vld [vmem:[%s13716_s1 + $0x1680] sm:$0xff]  ;;  %6465 = vmatprep.subr.bf16.mxu0 %v9447_v45  ;;  %v9702_v61 = vcombine.low %v1025_v38, %v1033_v39  ;;  %v146_v45 = vld [vmem:[%s13716_s1 + $0x388] sm:$0xff] }
  0x6e   :  { %v761_v51 = vld [vmem:[%s13716_s1 + $0x16c0] sm:$0xff]  ;;  %6466 = vmatpush2.bf16.msra.mxu0 %v9446_v57 }
  0x6f   :  { %v1009_v52 = vld [vmem:[%s13716_s1 + $0x1e80] sm:$0xff]  ;;  %v9431_v0 = vcombine.high %v753_v50, %v761_v51  ;;  %6518 = vmatprep.subr.bf16.mxu1 %v9703_v49  ;;  %v9430_v6 = vcombine.low %v753_v50, %v761_v51  ;;  %v154_v49 = vld [vmem:[%s13716_s1 + $0x3c8] sm:$0xff] }
  0x70   :  { %v1017_v53 = vld [vmem:[%s13716_s1 + $0x1ec0] sm:$0xff]  ;;  %6519 = vmatpush2.bf16.msra.mxu1 %v9702_v61  ;;  %v402_v50 = vld [vmem:[%s13716_s1 + $0xb88] sm:$0xff]  ;;  %v8825_v57 = vcombine.high %v146_v45, %v154_v49 }
  0x71   :  { %v9687_v1 = vcombine.high %v1009_v52, %v1017_v53  ;;  %v737_v2 = vld [vmem:[%s13716_s1 + $0x1600] sm:$0xff]  ;;  %6467 = vmatprep.subr.bf16.mxu0 %v9431_v0  ;;  %v9686_v7 = vcombine.low %v1009_v52, %v1017_v53  ;;  %v410_v51 = vld [vmem:[%s13716_s1 + $0xbc8] sm:$0xff] }
  0x72   :  { %v745_v3 = vld [vmem:[%s13716_s1 + $0x1640] sm:$0xff]  ;;  %6468 = vmatpush2.bf16.msra.mxu0 %v9430_v6  ;;  %v9081_v61 = vcombine.high %v402_v50, %v410_v51  ;;  %v130_v0 = vld [vmem:[%s13716_s1 + $0x308] sm:$0xff]  ;;  %v31_v6 = vld [vmem:[%s13717_s0 + $0x70] sm:$0xff] }
  0x73   :  { %v993_v4 = vld [vmem:[%s13716_s1 + $0x1e00] sm:$0xff]  ;;  %v9415_v8 = vcombine.high %v737_v2, %v745_v3  ;;  %6520 = vmatprep.subr.bf16.mxu1 %v9687_v1  ;;  %v9414_v14 = vcombine.low %v737_v2, %v745_v3  ;;  %v138_v1 = vld [vmem:[%s13716_s1 + $0x348] sm:$0xff]  ;;  %v10273_v3 = vcombine.low %v10075_v43, %v10080_v44  ;;  %v28_v43 = vld [vmem:[%s13717_s0 + $0x58] sm:$0xff] }
  0x74   :  { %v1001_v5 = vld [vmem:[%s13716_s1 + $0x1e40] sm:$0xff]  ;;  %6521 = vmatpush2.bf16.msra.mxu1 %v9686_v7  ;;  %v386_v2 = vld [vmem:[%s13716_s1 + $0xb08] sm:$0xff]  ;;  %v10286_v7 = vcombine.low %v10087_v47, %v10092_v48  ;;  %v32_v44 = vld [vmem:[%s13717_s0 + $0x78] sm:$0xff] }
  0x75   :  { %v9671_v9 = vcombine.high %v993_v4, %v1001_v5  ;;  %v721_v10 = vld [vmem:[%s13716_s1 + $0x1580] sm:$0xff]  ;;  %6469 = vmatprep.subr.bf16.mxu0 %v9415_v8  ;;  %v9670_v15 = vcombine.low %v993_v4, %v1001_v5  ;;  %v394_v4 = vld [vmem:[%s13716_s1 + $0xb48] sm:$0xff]  ;;  %v27_v5 = vld [vmem:[%s13717_s0 + $0x50] sm:$0xff]  ;;  %v8824_v8 = vcombine.low %v146_v45, %v154_v49 }
  0x76   :  { %v729_v11 = vld [vmem:[%s13716_s1 + $0x15c0] sm:$0xff]  ;;  %6470 = vmatpush2.bf16.msra.mxu0 %v9414_v14  ;;  %v114_v47 = vld [vmem:[%s13716_s1 + $0x288] sm:$0xff] }
  0x77   :  { %v977_v12 = vld [vmem:[%s13716_s1 + $0x1d80] sm:$0xff]  ;;  %v9399_v16 = vcombine.high %v721_v10, %v729_v11  ;;  %6522 = vmatprep.subr.bf16.mxu1 %v9671_v9  ;;  %v9398_v23 = vcombine.low %v721_v10, %v729_v11  ;;  %v9080_v9 = vcombine.low %v402_v50, %v410_v51  ;;  %v8809_v10 = vcombine.high %v130_v0, %v138_v1  ;;  %v122_v48 = vld [vmem:[%s13716_s1 + $0x2c8] sm:$0xff] }
  0x78   :  { %v985_v13 = vld [vmem:[%s13716_s1 + $0x1dc0] sm:$0xff]  ;;  %6523 = vmatpush2.bf16.msra.mxu1 %v9670_v15  ;;  %v9065_v11 = vcombine.high %v386_v2, %v394_v4  ;;  %v378_v14 = vld [vmem:[%s13716_s1 + $0xac8] sm:$0xff]  ;;  %v10309_v15 = vcombine.high %v28_v43, %v32_v44 }
  0x79   :  { %v9655_v17 = vcombine.high %v977_v12, %v985_v13  ;;  %v705_v18 = vld [vmem:[%s13716_s1 + $0x1500] sm:$0xff]  ;;  %6471 = vmatprep.subr.bf16.mxu0 %v9399_v16  ;;  %v9654_v24 = vcombine.low %v977_v12, %v985_v13  ;;  %v10294_v12 = vcombine.high %v27_v5, %v31_v6  ;;  %v370_v13 = vld [vmem:[%s13716_s1 + $0xa88] sm:$0xff]  ;;  %v8808_v16 = vcombine.low %v130_v0, %v138_v1 }
  0x7a   :  { %v713_v19 = vld [vmem:[%s13716_s1 + $0x1540] sm:$0xff]  ;;  %6472 = vmatpush2.bf16.msra.mxu0 %v9398_v23  ;;  %v10319_v23 = vcombine.low %v27_v5, %v31_v6  ;;  %v34_v5 = vld [vmem:[%s13716_s1 + $0x8] sm:$0xff] }
  0x7b   :  { %v961_v20 = vld [vmem:[%s13716_s1 + $0x1d00] sm:$0xff]  ;;  %v9383_v26 = vcombine.high %v705_v18, %v713_v19  ;;  %6524 = vmatprep.subr.bf16.mxu1 %v9655_v17  ;;  %v9382_v59 = vcombine.low %v705_v18, %v713_v19  ;;  %v9064_v17 = vcombine.low %v386_v2, %v394_v4  ;;  %v8793_v18 = vcombine.high %v114_v47, %v122_v48  ;;  %v42_v6 = vld [vmem:[%s13716_s1 + $0x48] sm:$0xff] }
  0x7c   :  { %v969_v22 = vld [vmem:[%s13716_s1 + $0x1d40] sm:$0xff]  ;;  %6525 = vmatpush2.bf16.msra.mxu1 %v9654_v24  ;;  %v9049_v19 = vcombine.high %v370_v13, %v378_v14  ;;  %13737 = vst [vmem:[#allocation2_spill] sm:$0xff] %v10319_v23  ;;  %v354_v24 = vld [vmem:[%s13716_s1 + $0xa08] sm:$0xff] }
  0x7d   :  { %v9639_v54 = vcombine.high %v961_v20, %v969_v22  ;;  %v689_v55 = vld [vmem:[%s13716_s1 + $0x1480] sm:$0xff]  ;;  %6473 = vmatprep.subr.bf16.mxu0 %v9383_v26  ;;  %v9638_v60 = vcombine.low %v961_v20, %v969_v22  ;;  %v98_v20 = vld [vmem:[%s13716_s1 + $0x208] sm:$0xff] }
  0x7e   :  { %v697_v27 = vld [vmem:[%s13716_s1 + $0x14c0] sm:$0xff]  ;;  %6474 = vmatpush2.bf16.msra.mxu0 %v9382_v59  ;;  %v106_v22 = vld [vmem:[%s13716_s1 + $0x248] sm:$0xff] }
  0x7f   :  { %v945_v28 = vld [vmem:[%s13716_s1 + $0x1c80] sm:$0xff]  ;;  %v9367_v31 = vcombine.high %v689_v55, %v697_v27  ;;  %6526 = vmatprep.subr.bf16.mxu1 %v9639_v54  ;;  %v9366_v38 = vcombine.low %v689_v55, %v697_v27  ;;  %v362_v26 = vld [vmem:[%s13716_s1 + $0xa48] sm:$0xff]  ;;  %v8792_v54 = vcombine.low %v114_v47, %v122_v48  ;;  %v10328_v55 = vcombine.low %v28_v43, %v32_v44 }
  0x80   :  { %v953_v29 = vld [vmem:[%s13716_s1 + $0x1cc0] sm:$0xff]  ;;  %6527 = vmatpush2.bf16.msra.mxu1 %v9638_v60  ;;  %v9048_v27 = vcombine.low %v370_v13, %v378_v14  ;;  %v82_v59 = vld [vmem:[%s13716_s1 + $0x188] sm:$0xff] }
  0x81   :  { %v9623_v32 = vcombine.high %v945_v28, %v953_v29  ;;  %v673_v34 = vld [vmem:[%s13716_s1 + $0x1400] sm:$0xff]  ;;  %6475 = vmatprep.subr.bf16.mxu0 %v9367_v31  ;;  %v9622_v39 = vcombine.low %v945_v28, %v953_v29  ;;  %13738 = vst [vmem:[#allocation3_spill] sm:$0xff] %v10328_v55  ;;  %v8777_v28 = vcombine.high %v98_v20, %v106_v22  ;;  %v90_v60 = vld [vmem:[%s13716_s1 + $0x1c8] sm:$0xff] }
  0x82   :  { %v681_v35 = vld [vmem:[%s13716_s1 + $0x1440] sm:$0xff]  ;;  %6476 = vmatpush2.bf16.msra.mxu0 %v9366_v38  ;;  %v9033_v29 = vcombine.high %v354_v24, %v362_v26  ;;  %v338_v31 = vld [vmem:[%s13716_s1 + $0x988] sm:$0xff]  ;;  %v8760_v45 = vcombine.low %v82_v59, %v90_v60 }
  0x83   :  { %v929_v36 = vld [vmem:[%s13716_s1 + $0x1c00] sm:$0xff]  ;;  %v9351_v40 = vcombine.high %v673_v34, %v681_v35  ;;  %6528 = vmatprep.subr.bf16.mxu1 %v9623_v32  ;;  %v9350_v52 = vcombine.low %v673_v34, %v681_v35  ;;  %v346_v32 = vld [vmem:[%s13716_s1 + $0x9c8] sm:$0xff]  ;;  %v8776_v34 = vcombine.low %v98_v20, %v106_v22  ;;  %v9032_v35 = vcombine.low %v354_v24, %v362_v26 }
  0x84   :  { %v937_v37 = vld [vmem:[%s13716_s1 + $0x1c40] sm:$0xff]  ;;  %6529 = vmatpush2.bf16.msra.mxu1 %v9622_v39  ;;  %v66_v38 = vld [vmem:[%s13716_s1 + $0x108] sm:$0xff]  ;;  %v9016_v49 = vcombine.low %v338_v31, %v346_v32 }
  0x85   :  { %v9607_v41 = vcombine.high %v929_v36, %v937_v37  ;;  %6477 = vmatprep.subr.bf16.mxu0 %v9351_v40  ;;  %v9606_v53 = vcombine.low %v929_v36, %v937_v37  ;;  %v8761_v36 = vcombine.high %v82_v59, %v90_v60  ;;  %v9017_v37 = vcombine.high %v338_v31, %v346_v32  ;;  %v74_v39 = vld [vmem:[%s13716_s1 + $0x148] sm:$0xff] }
  0x86   :  { %6478 = vmatpush2.bf16.msra.mxu0 %v9350_v52  ;;  %v322_v40 = vld [vmem:[%s13716_s1 + $0x908] sm:$0xff]  ;;  %v8745_v50 = vcombine.high %v66_v38, %v74_v39  ;;  %v8744_v0 = vcombine.low %v66_v38, %v74_v39 }
  0x87   :  { %6530 = vmatprep.subr.bf16.mxu1 %v9607_v41  ;;  %6553 = vmatprep.subr.bf16.mxu0 %v8825_v57  ;;  %v330_v41 = vld [vmem:[%s13716_s1 + $0x948] sm:$0xff] }
  0x88   :  { %6531 = vmatpush2.bf16.msra.mxu1 %v9606_v53  ;;  %v9001_v51 = vcombine.high %v322_v40, %v330_v41  ;;  %v50_v52 = vld [vmem:[%s13716_s1 + $0x88] sm:$0xff]  ;;  %v9000_v1 = vcombine.low %v322_v40, %v330_v41 }
  0x89   :  { %6606 = vmatprep.subr.bf16.mxu1 %v9081_v61  ;;  %6480 = vmatmul.mubr.bf16.vlgmr.msra.gmra.mxu0 %v10273_v3  ;;  %v58_v53 = vld [vmem:[%s13716_s1 + $0xc8] sm:$0xff] }
  0x8a   :  { %6554 = vmatpush1.bf16.msra.mxu0 %v8824_v8  ;;  %6489 = vmatprep.mubr.bf16.mxu0 %v10294_v12  ;;  %v306_v57 = vld [vmem:[%s13716_s1 + $0x888] sm:$0xff]  ;;  %v8729_v2 = vcombine.high %v50_v52, %v58_v53  ;;  %v8728_v44 = vcombine.low %v50_v52, %v58_v53 }
  0x8b   :  { %6533 = vmatmul.mubr.bf16.vlgmr.msra.gmra.mxu1 %v10286_v7  ;;  %6555 = vmatprep.subr.bf16.mxu0 %v8809_v10  ;;  %v314_v61 = vld [vmem:[%s13716_s1 + $0x8c8] sm:$0xff]  ;;  %v8713_v10 = vcombine.high %v34_v5, %v42_v6 }
  0x8c   :  { %6607 = vmatpush1.bf16.msra.mxu1 %v9080_v9  ;;  %6542 = vmatprep.mubr.bf16.mxu1 %v10309_v15  ;;  %v8985_v4 = vcombine.high %v306_v57, %v314_v61  ;;  %v290_v8 = vld [vmem:[%s13716_s1 + $0x808] sm:$0xff]  ;;  %v8984_v9 = vcombine.low %v306_v57, %v314_v61 }
  0x8d   :  { %6608 = vmatprep.subr.bf16.mxu1 %v9065_v11  ;;  %v298_v43 = vld [vmem:[%s13716_s1 + $0x848] sm:$0xff] }
  0x8e   :  { %6556 = vmatpush1.bf16.msra.mxu0 %v8808_v16  ;;  %v8969_v11 = vcombine.high %v290_v8, %v298_v43  ;;  %v274_v47 = vld [vmem:[%s13716_s1 + $0x788] sm:$0xff]  ;;  %v8712_v16 = vcombine.low %v34_v5, %v42_v6 }
  0x8f   :  { %6557 = vmatprep.subr.bf16.mxu0 %v8793_v18  ;;  %v282_v48 = vld [vmem:[%s13716_s1 + $0x7c8] sm:$0xff] }
  0x90   :  { %6609 = vmatpush1.bf16.msra.mxu1 %v9064_v17  ;;  %v530_v13 = vld [vmem:[%s13716_s1 + $0xf88] sm:$0xff]  ;;  %v8968_v17 = vcombine.low %v290_v8, %v298_v43  ;;  %v8953_v18 = vcombine.high %v274_v47, %v282_v48 }
  0x91   :  { %6610 = vmatprep.subr.bf16.mxu1 %v9049_v19  ;;  %6490 = vmatmul.mubr.bf16.gmra.mxu0 %v10319_v23  ;;  %v538_v14 = vld [vmem:[%s13716_s1 + $0xfc8] sm:$0xff] }
  0x92   :  { %6558 = vmatpush1.bf16.msra.mxu0 %v8792_v54  ;;  %6585 = vmatprep.mubr.bf16.mxu0 %v9874_v58  ;;  %v9209_v19 = vcombine.high %v530_v13, %v538_v14  ;;  %v258_v20 = vld [vmem:[%s13716_s1 + $0x708] sm:$0xff]  ;;  %v8952_v54 = vcombine.low %v274_v47, %v282_v48 }
  0x93   :  { %6543 = vmatmul.mubr.bf16.gmra.mxu1 %v10328_v55  ;;  %6559 = vmatprep.subr.bf16.mxu0 %v8777_v28  ;;  %v266_v22 = vld [vmem:[%s13716_s1 + $0x748] sm:$0xff] }
  0x94   :  { %6611 = vmatpush1.bf16.msra.mxu1 %v9048_v27  ;;  %6638 = vmatprep.mubr.bf16.mxu1 %v9894_v63  ;;  %v514_v24 = vld [vmem:[%s13716_s1 + $0xf08] sm:$0xff]  ;;  %v9208_v27 = vcombine.low %v530_v13, %v538_v14  ;;  %v8937_v28 = vcombine.high %v258_v20, %v266_v22 }
  0x95   :  { %6612 = vmatprep.subr.bf16.mxu1 %v9033_v29  ;;  %v522_v26 = vld [vmem:[%s13716_s1 + $0xf48] sm:$0xff] }
  0x96   :  { %6560 = vmatpush1.bf16.msra.mxu0 %v8776_v34  ;;  %v9193_v29 = vcombine.high %v514_v24, %v522_v26  ;;  %v242_v59 = vld [vmem:[%s13716_s1 + $0x688] sm:$0xff]  ;;  %v8936_v34 = vcombine.low %v258_v20, %v266_v22 }
  0x97   :  { %6561 = vmatprep.subr.bf16.mxu0 %v8761_v36  ;;  %v250_v60 = vld [vmem:[%s13716_s1 + $0x6c8] sm:$0xff] }
  0x98   :  { %6613 = vmatpush1.bf16.msra.mxu1 %v9032_v35  ;;  %v498_v31 = vld [vmem:[%s13716_s1 + $0xe88] sm:$0xff]  ;;  %v9192_v35 = vcombine.low %v514_v24, %v522_v26  ;;  %v8921_v36 = vcombine.high %v242_v59, %v250_v60 }
  0x99   :  { %6614 = vmatprep.subr.bf16.mxu1 %v9017_v37  ;;  %v506_v32 = vld [vmem:[%s13716_s1 + $0xec8] sm:$0xff] }
  0x9a   :  { %6562 = vmatpush1.bf16.msra.mxu0 %v8760_v45  ;;  %v9177_v37 = vcombine.high %v498_v31, %v506_v32  ;;  %v226_v38 = vld [vmem:[%s13716_s1 + $0x608] sm:$0xff]  ;;  %v8920_v45 = vcombine.low %v242_v59, %v250_v60 }
  0x9b   :  { %6563 = vmatprep.subr.bf16.mxu0 %v8745_v50  ;;  %v234_v39 = vld [vmem:[%s13716_s1 + $0x648] sm:$0xff] }
  0x9c   :  { %6615 = vmatpush1.bf16.msra.mxu1 %v9016_v49  ;;  %v482_v40 = vld [vmem:[%s13716_s1 + $0xe08] sm:$0xff]  ;;  %v9176_v49 = vcombine.low %v498_v31, %v506_v32  ;;  %v8905_v50 = vcombine.high %v226_v38, %v234_v39 }
  0x9d   :  { %6616 = vmatprep.subr.bf16.mxu1 %v9001_v51  ;;  %v490_v41 = vld [vmem:[%s13716_s1 + $0xe48] sm:$0xff] }
  0x9e   :  { %6564 = vmatpush1.bf16.msra.mxu0 %v8744_v0  ;;  %v9161_v51 = vcombine.high %v482_v40, %v490_v41  ;;  %v210_v52 = vld [vmem:[%s13716_s1 + $0x588] sm:$0xff]  ;;  %v8904_v0 = vcombine.low %v226_v38, %v234_v39 }
  0x9f   :  { %6565 = vmatprep.subr.bf16.mxu0 %v8729_v2  ;;  %v218_v53 = vld [vmem:[%s13716_s1 + $0x5c8] sm:$0xff] }
  0xa0   :  { %6617 = vmatpush1.bf16.msra.mxu1 %v9000_v1  ;;  %v466_v57 = vld [vmem:[%s13716_s1 + $0xd88] sm:$0xff]  ;;  %v9160_v1 = vcombine.low %v482_v40, %v490_v41  ;;  %v8889_v2 = vcombine.high %v210_v52, %v218_v53 }
  0xa1   :  { %6618 = vmatprep.subr.bf16.mxu1 %v8985_v4  ;;  %v474_v61 = vld [vmem:[%s13716_s1 + $0xdc8] sm:$0xff] }
  0xa2   :  { %6566 = vmatpush1.bf16.msra.mxu0 %v8728_v44  ;;  %v9145_v4 = vcombine.high %v466_v57, %v474_v61  ;;  %v194_v5 = vld [vmem:[%s13716_s1 + $0x508] sm:$0xff]  ;;  %v8888_v44 = vcombine.low %v210_v52, %v218_v53 }
  0xa3   :  { %6567 = vmatprep.subr.bf16.mxu0 %v8713_v10  ;;  %v202_v6 = vld [vmem:[%s13716_s1 + $0x548] sm:$0xff] }
  0xa4   :  { %6619 = vmatpush1.bf16.msra.mxu1 %v8984_v9  ;;  %v450_v8 = vld [vmem:[%s13716_s1 + $0xd08] sm:$0xff]  ;;  %v9144_v9 = vcombine.low %v466_v57, %v474_v61  ;;  %v8873_v10 = vcombine.high %v194_v5, %v202_v6 }
  0xa5   :  { %6620 = vmatprep.subr.bf16.mxu1 %v8969_v11  ;;  %v458_v43 = vld [vmem:[%s13716_s1 + $0xd48] sm:$0xff] }
  0xa6   :  { %6568 = vmatpush1.bf16.msra.mxu0 %v8712_v16  ;;  %v9129_v11 = vcombine.high %v450_v8, %v458_v43  ;;  %v178_v47 = vld [vmem:[%s13716_s1 + $0x488] sm:$0xff]  ;;  %v8872_v16 = vcombine.low %v194_v5, %v202_v6 }
  0xa7   :  { %6569 = vmatprep.subr.bf16.mxu0 %v8953_v18  ;;  %v186_v48 = vld [vmem:[%s13716_s1 + $0x4c8] sm:$0xff] }
  0xa8   :  { %6621 = vmatpush1.bf16.msra.mxu1 %v8968_v17  ;;  %v434_v13 = vld [vmem:[%s13716_s1 + $0xc88] sm:$0xff]  ;;  %v9128_v17 = vcombine.low %v450_v8, %v458_v43  ;;  %v8857_v18 = vcombine.high %v178_v47, %v186_v48 }
  0xa9   :  { %6622 = vmatprep.subr.bf16.mxu1 %v9209_v19  ;;  %v442_v14 = vld [vmem:[%s13716_s1 + $0xcc8] sm:$0xff] }
  0xaa   :  { %6570 = vmatpush2.bf16.msra.mxu0 %v8952_v54  ;;  %v9113_v19 = vcombine.high %v434_v13, %v442_v14  ;;  %v162_v20 = vld [vmem:[%s13716_s1 + $0x408] sm:$0xff]  ;;  %v8856_v54 = vcombine.low %v178_v47, %v186_v48 }
  0xab   :  { %6571 = vmatprep.subr.bf16.mxu0 %v8937_v28  ;;  %v170_v22 = vld [vmem:[%s13716_s1 + $0x448] sm:$0xff] }
  0xac   :  { %6623 = vmatpush2.bf16.msra.mxu1 %v9208_v27  ;;  %v418_v24 = vld [vmem:[%s13716_s1 + $0xc08] sm:$0xff]  ;;  %v9112_v27 = vcombine.low %v434_v13, %v442_v14  ;;  %v8841_v28 = vcombine.high %v162_v20, %v170_v22 }
  0xad   :  { %6624 = vmatprep.subr.bf16.mxu1 %v9193_v29  ;;  %v426_v26 = vld [vmem:[%s13716_s1 + $0xc48] sm:$0xff] }
  0xae   :  { %6572 = vmatpush2.bf16.msra.mxu0 %v8936_v34  ;;  %v9097_v29 = vcombine.high %v418_v24, %v426_v26  ;;  %v658_v59 = vld [vmem:[%s13716_s1 + $0x1388] sm:$0xff]  ;;  %v8840_v34 = vcombine.low %v162_v20, %v170_v22 }
  0xaf   :  { %6573 = vmatprep.subr.bf16.mxu0 %v8921_v36  ;;  %v666_v60 = vld [vmem:[%s13716_s1 + $0x13c8] sm:$0xff] }
  0xb0   :  { %6625 = vmatpush2.bf16.msra.mxu1 %v9192_v35  ;;  %v914_v31 = vld [vmem:[%s13716_s1 + $0x1b88] sm:$0xff]  ;;  %v9096_v35 = vcombine.low %v418_v24, %v426_v26  ;;  %v9337_v36 = vcombine.high %v658_v59, %v666_v60 }
  0xb1   :  { %6626 = vmatprep.subr.bf16.mxu1 %v9177_v37  ;;  %v922_v32 = vld [vmem:[%s13716_s1 + $0x1bc8] sm:$0xff] }
  0xb2   :  { %6574 = vmatpush2.bf16.msra.mxu0 %v8920_v45  ;;  %v9593_v37 = vcombine.high %v914_v31, %v922_v32  ;;  %v642_v38 = vld [vmem:[%s13716_s1 + $0x1308] sm:$0xff]  ;;  %v9336_v45 = vcombine.low %v658_v59, %v666_v60 }
  0xb3   :  { %6575 = vmatprep.subr.bf16.mxu0 %v8905_v50  ;;  %v650_v39 = vld [vmem:[%s13716_s1 + $0x1348] sm:$0xff] }
  0xb4   :  { %6627 = vmatpush2.bf16.msra.mxu1 %v9176_v49  ;;  %v898_v40 = vld [vmem:[%s13716_s1 + $0x1b08] sm:$0xff]  ;;  %v9592_v49 = vcombine.low %v914_v31, %v922_v32  ;;  %v9321_v50 = vcombine.high %v642_v38, %v650_v39 }
  0xb5   :  { %6628 = vmatprep.subr.bf16.mxu1 %v9161_v51  ;;  %v906_v41 = vld [vmem:[%s13716_s1 + $0x1b48] sm:$0xff] }
  0xb6   :  { %6576 = vmatpush2.bf16.msra.mxu0 %v8904_v0  ;;  %v9577_v51 = vcombine.high %v898_v40, %v906_v41  ;;  %v626_v52 = vld [vmem:[%s13716_s1 + $0x1288] sm:$0xff]  ;;  %v9320_v0 = vcombine.low %v642_v38, %v650_v39 }
  0xb7   :  { %6577 = vmatprep.subr.bf16.mxu0 %v8889_v2  ;;  %v634_v53 = vld [vmem:[%s13716_s1 + $0x12c8] sm:$0xff] }
  0xb8   :  { %6629 = vmatpush2.bf16.msra.mxu1 %v9160_v1  ;;  %v882_v57 = vld [vmem:[%s13716_s1 + $0x1a88] sm:$0xff]  ;;  %v9576_v1 = vcombine.low %v898_v40, %v906_v41  ;;  %v9305_v2 = vcombine.high %v626_v52, %v634_v53 }
  0xb9   :  { %6630 = vmatprep.subr.bf16.mxu1 %v9145_v4  ;;  %v890_v61 = vld [vmem:[%s13716_s1 + $0x1ac8] sm:$0xff] }
  0xba   :  { %6578 = vmatpush2.bf16.msra.mxu0 %v8888_v44  ;;  %v9561_v4 = vcombine.high %v882_v57, %v890_v61  ;;  %v610_v5 = vld [vmem:[%s13716_s1 + $0x1208] sm:$0xff]  ;;  %v9304_v44 = vcombine.low %v626_v52, %v634_v53 }
  0xbb   :  { %6579 = vmatprep.subr.bf16.mxu0 %v8873_v10  ;;  %v618_v6 = vld [vmem:[%s13716_s1 + $0x1248] sm:$0xff] }
  0xbc   :  { %6631 = vmatpush2.bf16.msra.mxu1 %v9144_v9  ;;  %v866_v8 = vld [vmem:[%s13716_s1 + $0x1a08] sm:$0xff]  ;;  %v9560_v9 = vcombine.low %v882_v57, %v890_v61  ;;  %v9289_v10 = vcombine.high %v610_v5, %v618_v6 }
  0xbd   :  { %6632 = vmatprep.subr.bf16.mxu1 %v9129_v11  ;;  %v874_v43 = vld [vmem:[%s13716_s1 + $0x1a48] sm:$0xff] }
  0xbe   :  { %6580 = vmatpush2.bf16.msra.mxu0 %v8872_v16  ;;  %v9545_v11 = vcombine.high %v866_v8, %v874_v43  ;;  %v594_v47 = vld [vmem:[%s13716_s1 + $0x1188] sm:$0xff]  ;;  %v9288_v16 = vcombine.low %v610_v5, %v618_v6 }
  0xbf   :  { %6581 = vmatprep.subr.bf16.mxu0 %v8857_v18  ;;  %v602_v48 = vld [vmem:[%s13716_s1 + $0x11c8] sm:$0xff] }
  0xc0   :  { %6633 = vmatpush2.bf16.msra.mxu1 %v9128_v17  ;;  %v850_v13 = vld [vmem:[%s13716_s1 + $0x1988] sm:$0xff]  ;;  %v9544_v17 = vcombine.low %v866_v8, %v874_v43  ;;  %v9273_v18 = vcombine.high %v594_v47, %v602_v48 }
  0xc1   :  { %6634 = vmatprep.subr.bf16.mxu1 %v9113_v19  ;;  %v858_v14 = vld [vmem:[%s13716_s1 + $0x19c8] sm:$0xff] }
  0xc2   :  { %6582 = vmatpush2.bf16.msra.mxu0 %v8856_v54  ;;  %v9529_v19 = vcombine.high %v850_v13, %v858_v14  ;;  %v578_v20 = vld [vmem:[%s13716_s1 + $0x1108] sm:$0xff]  ;;  %v9272_v54 = vcombine.low %v594_v47, %v602_v48 }
  0xc3   :  { %6583 = vmatprep.subr.bf16.mxu0 %v8841_v28  ;;  %v586_v22 = vld [vmem:[%s13716_s1 + $0x1148] sm:$0xff] }
  0xc4   :  { %6635 = vmatpush2.bf16.msra.mxu1 %v9112_v27  ;;  %v834_v24 = vld [vmem:[%s13716_s1 + $0x1908] sm:$0xff]  ;;  %v9528_v27 = vcombine.low %v850_v13, %v858_v14  ;;  %v9257_v28 = vcombine.high %v578_v20, %v586_v22 }
  0xc5   :  { %6636 = vmatprep.subr.bf16.mxu1 %v9097_v29  ;;  %v842_v26 = vld [vmem:[%s13716_s1 + $0x1948] sm:$0xff] }
  0xc6   :  { %6584 = vmatpush2.bf16.msra.mxu0 %v8840_v34  ;;  %v9513_v29 = vcombine.high %v834_v24, %v842_v26  ;;  %v562_v59 = vld [vmem:[%s13716_s1 + $0x1088] sm:$0xff]  ;;  %v9256_v34 = vcombine.low %v578_v20, %v586_v22 }
  0xc7   :  { %6659 = vmatprep.subr.bf16.mxu0 %v9337_v36  ;;  %v570_v60 = vld [vmem:[%s13716_s1 + $0x10c8] sm:$0xff] }
  0xc8   :  { %6637 = vmatpush2.bf16.msra.mxu1 %v9096_v35  ;;  %v818_v31 = vld [vmem:[%s13716_s1 + $0x1888] sm:$0xff]  ;;  %v9512_v35 = vcombine.low %v834_v24, %v842_v26  ;;  %v9241_v36 = vcombine.high %v562_v59, %v570_v60 }
  0xc9   :  { %6712 = vmatprep.subr.bf16.mxu1 %v9593_v37  ;;  %6586 = vmatmul.mubr.bf16.vlgmr.msra.gmra.mxu0 %v10017_v21  ;;  %v826_v32 = vld [vmem:[%s13716_s1 + $0x18c8] sm:$0xff] }
  0xca   :  { %6660 = vmatpush1.bf16.msra.mxu0 %v9336_v45  ;;  %6595 = vmatprep.mubr.bf16.mxu0 %v10044_v30  ;;  %v9497_v37 = vcombine.high %v818_v31, %v826_v32  ;;  %v546_v38 = vld [vmem:[%s13716_s1 + $0x1008] sm:$0xff]  ;;  %v9240_v45 = vcombine.low %v562_v59, %v570_v60 }
  0xcb   :  { %6639 = vmatmul.mubr.bf16.vlgmr.msra.gmra.mxu1 %v10030_v25  ;;  %6661 = vmatprep.subr.bf16.mxu0 %v9321_v50  ;;  %v554_v39 = vld [vmem:[%s13716_s1 + $0x1048] sm:$0xff] }
  0xcc   :  { %6713 = vmatpush1.bf16.msra.mxu1 %v9592_v49  ;;  %6648 = vmatprep.mubr.bf16.mxu1 %v10053_v33  ;;  %v802_v40 = vld [vmem:[%s13716_s1 + $0x1808] sm:$0xff]  ;;  %v9496_v49 = vcombine.low %v818_v31, %v826_v32  ;;  %v9225_v50 = vcombine.high %v546_v38, %v554_v39 }
  0xcd   :  { %6714 = vmatprep.subr.bf16.mxu1 %v9577_v51  ;;  %v810_v41 = vld [vmem:[%s13716_s1 + $0x1848] sm:$0xff] }
  0xce   :  { %6662 = vmatpush1.bf16.msra.mxu0 %v9320_v0  ;;  %v9481_v51 = vcombine.high %v802_v40, %v810_v41  ;;  %v786_v52 = vld [vmem:[%s13716_s1 + $0x1788] sm:$0xff]  ;;  %v9224_v0 = vcombine.low %v546_v38, %v554_v39 }
  0xcf   :  { %6663 = vmatprep.subr.bf16.mxu0 %v9305_v2  ;;  %v794_v53 = vld [vmem:[%s13716_s1 + $0x17c8] sm:$0xff] }
  0xd0   :  { %6715 = vmatpush1.bf16.msra.mxu1 %v9576_v1  ;;  %v1042_v57 = vld [vmem:[%s13716_s1 + $0x1f88] sm:$0xff]  ;;  %v9480_v1 = vcombine.low %v802_v40, %v810_v41  ;;  %v9465_v2 = vcombine.high %v786_v52, %v794_v53 }
  0xd1   :  { %6716 = vmatprep.subr.bf16.mxu1 %v9561_v4  ;;  %6596 = vmatmul.mubr.bf16.gmra.mxu0 %v10069_v42  ;;  %v1050_v61 = vld [vmem:[%s13716_s1 + $0x1fc8] sm:$0xff] }
  0xd2   :  { %6664 = vmatpush1.bf16.msra.mxu0 %v9304_v44  ;;  %6691 = vmatprep.mubr.bf16.mxu0 %v10102_v56  ;;  %v9721_v4 = vcombine.high %v1042_v57, %v1050_v61  ;;  %v770_v5 = vld [vmem:[%s13716_s1 + $0x1708] sm:$0xff]  ;;  %v9464_v44 = vcombine.low %v786_v52, %v794_v53 }
  0xd3   :  { %6649 = vmatmul.mubr.bf16.gmra.mxu1 %v10082_v46  ;;  %6665 = vmatprep.subr.bf16.mxu0 %v9289_v10  ;;  %v778_v6 = vld [vmem:[%s13716_s1 + $0x1748] sm:$0xff] }
  0xd4   :  { %6717 = vmatpush1.bf16.msra.mxu1 %v9560_v9  ;;  %6744 = vmatprep.mubr.bf16.mxu1 %v10113_v62  ;;  %v1026_v8 = vld [vmem:[%s13716_s1 + $0x1f08] sm:$0xff]  ;;  %v9720_v9 = vcombine.low %v1042_v57, %v1050_v61  ;;  %v9449_v10 = vcombine.high %v770_v5, %v778_v6 }
  0xd5   :  { %6718 = vmatprep.subr.bf16.mxu1 %v9545_v11  ;;  %v1034_v43 = vld [vmem:[%s13716_s1 + $0x1f48] sm:$0xff] }
  0xd6   :  { %6666 = vmatpush1.bf16.msra.mxu0 %v9288_v16  ;;  %v9705_v11 = vcombine.high %v1026_v8, %v1034_v43  ;;  %v754_v47 = vld [vmem:[%s13716_s1 + $0x1688] sm:$0xff]  ;;  %v9448_v16 = vcombine.low %v770_v5, %v778_v6 }
  0xd7   :  { %6667 = vmatprep.subr.bf16.mxu0 %v9273_v18  ;;  %v762_v48 = vld [vmem:[%s13716_s1 + $0x16c8] sm:$0xff] }
  0xd8   :  { %6719 = vmatpush1.bf16.msra.mxu1 %v9544_v17  ;;  %v1010_v13 = vld [vmem:[%s13716_s1 + $0x1e88] sm:$0xff]  ;;  %v9704_v17 = vcombine.low %v1026_v8, %v1034_v43  ;;  %v9433_v18 = vcombine.high %v754_v47, %v762_v48 }
  0xd9   :  { %6720 = vmatprep.subr.bf16.mxu1 %v9529_v19  ;;  %v1018_v14 = vld [vmem:[%s13716_s1 + $0x1ec8] sm:$0xff] }
  0xda   :  { %6668 = vmatpush1.bf16.msra.mxu0 %v9272_v54  ;;  %v9689_v19 = vcombine.high %v1010_v13, %v1018_v14  ;;  %v738_v20 = vld [vmem:[%s13716_s1 + $0x1608] sm:$0xff]  ;;  %v9432_v54 = vcombine.low %v754_v47, %v762_v48 }
  0xdb   :  { %6669 = vmatprep.subr.bf16.mxu0 %v9257_v28  ;;  %v746_v22 = vld [vmem:[%s13716_s1 + $0x1648] sm:$0xff] }
  0xdc   :  { %6721 = vmatpush1.bf16.msra.mxu1 %v9528_v27  ;;  %v994_v24 = vld [vmem:[%s13716_s1 + $0x1e08] sm:$0xff]  ;;  %v9688_v27 = vcombine.low %v1010_v13, %v1018_v14  ;;  %v9417_v28 = vcombine.high %v738_v20, %v746_v22  ;;  %v147_v13 = vld [vmem:[%s13716_s1 + $0x390] sm:$0xff] }
  0xdd   :  { %6722 = vmatprep.subr.bf16.mxu1 %v9513_v29  ;;  %v1002_v26 = vld [vmem:[%s13716_s1 + $0x1e48] sm:$0xff]  ;;  %v155_v14 = vld [vmem:[%s13716_s1 + $0x3d0] sm:$0xff] }
  0xde   :  { %6670 = vmatpush1.bf16.msra.mxu0 %v9256_v34  ;;  %v9673_v29 = vcombine.high %v994_v24, %v1002_v26  ;;  %v722_v59 = vld [vmem:[%s13716_s1 + $0x1588] sm:$0xff]  ;;  %v9416_v34 = vcombine.low %v738_v20, %v746_v22  ;;  %v10696_v22 = vld [vmem:[%s13718_s2] sm:$0xff] }
  0xdf   :  { %6671 = vmatprep.subr.bf16.mxu0 %v9241_v36  ;;  %v730_v60 = vld [vmem:[%s13716_s1 + $0x15c8] sm:$0xff] }
  0xe0   :  { %6723 = vmatpush1.bf16.msra.mxu1 %v9512_v35  ;;  %v978_v31 = vld [vmem:[%s13716_s1 + $0x1d88] sm:$0xff]  ;;  %v9672_v35 = vcombine.low %v994_v24, %v1002_v26  ;;  %v9401_v36 = vcombine.high %v722_v59, %v730_v60  ;;  %v8827_v24 = vcombine.high %v147_v13, %v155_v14 }
  0xe1   :  { %6724 = vmatprep.subr.bf16.mxu1 %v9497_v37  ;;  %v986_v32 = vld [vmem:[%s13716_s1 + $0x1dc8] sm:$0xff] }
  0xe2   :  { %6672 = vmatpush1.bf16.msra.mxu0 %v9240_v45  ;;  %v9657_v37 = vcombine.high %v978_v31, %v986_v32  ;;  %v706_v38 = vld [vmem:[%s13716_s1 + $0x1508] sm:$0xff]  ;;  %v9400_v45 = vcombine.low %v722_v59, %v730_v60  ;;  %v395_v59 = vld [vmem:[%s13716_s1 + $0xb50] sm:$0xff] }
  0xe3   :  { %6673 = vmatprep.subr.bf16.mxu0 %v9225_v50  ;;  %v714_v39 = vld [vmem:[%s13716_s1 + $0x1548] sm:$0xff] }
  0xe4   :  { %6725 = vmatpush1.bf16.msra.mxu1 %v9496_v49  ;;  %v962_v40 = vld [vmem:[%s13716_s1 + $0x1d08] sm:$0xff]  ;;  %v9656_v49 = vcombine.low %v978_v31, %v986_v32  ;;  %v9385_v50 = vcombine.high %v706_v38, %v714_v39  ;;  %v8826_v31 = vcombine.low %v147_v13, %v155_v14 }
  0xe5   :  { %6726 = vmatprep.subr.bf16.mxu1 %v9481_v51  ;;  %v970_v41 = vld [vmem:[%s13716_s1 + $0x1d48] sm:$0xff] }
  0xe6   :  { %6674 = vmatpush1.bf16.msra.mxu0 %v9224_v0  ;;  %v9641_v51 = vcombine.high %v962_v40, %v970_v41  ;;  %v690_v52 = vld [vmem:[%s13716_s1 + $0x1488] sm:$0xff]  ;;  %v9384_v0 = vcombine.low %v706_v38, %v714_v39  ;;  %v123_v38 = vld [vmem:[%s13716_s1 + $0x2d0] sm:$0xff] }
  0xe7   :  { %6675 = vmatprep.subr.bf16.mxu0 %v9465_v2  ;;  %v698_v53 = vld [vmem:[%s13716_s1 + $0x14c8] sm:$0xff]  ;;  %v9640_v2 = vcombine.low %v962_v40, %v970_v41  ;;  %v371_v40 = vld [vmem:[%s13716_s1 + $0xa90] sm:$0xff] }
  0xe8   :  { %6727 = vmatpush1.bf16.msra.mxu1 %v9480_v1  ;;  %v946_v57 = vld [vmem:[%s13716_s1 + $0x1c88] sm:$0xff]  ;;  %v1061_v1 = vlaneseq  ;;  %v379_v41 = vld [vmem:[%s13716_s1 + $0xad0] sm:$0xff] }
  0xe9   :  { %6728 = vmatprep.subr.bf16.mxu1 %v9721_v4  ;;  %v954_v61 = vld [vmem:[%s13716_s1 + $0x1cc8] sm:$0xff]  ;;  %v9369_v4 = vcombine.high %v690_v52, %v698_v53 }
  0xea   :  { %6676 = vmatpush2.bf16.msra.mxu0 %v9464_v44  ;;  %v9625_v5 = vcombine.high %v946_v57, %v954_v61  ;;  %v674_v6 = vld [vmem:[%s13716_s1 + $0x1408] sm:$0xff] }
  0xeb   :  { %6677 = vmatprep.subr.bf16.mxu0 %v9449_v10  ;;  %v682_v8 = vld [vmem:[%s13716_s1 + $0x1448] sm:$0xff]  ;;  %v10678_v10 = vshrl.u32 %v1061_v1, 7  ;;  %v9051_v1 = vcombine.high %v371_v40, %v379_v41 }
  0xec   :  { %6729 = vmatpush2.bf16.msra.mxu1 %v9720_v9  ;;  %v930_v43 = vld [vmem:[%s13716_s1 + $0x1c08] sm:$0xff]  ;;  %v9368_v9 = vcombine.low %v690_v52, %v698_v53  ;;  %v9353_v47 = vcombine.high %v674_v6, %v682_v8 }
  0xed   :  { %6730 = vmatprep.subr.bf16.mxu1 %v9705_v11  ;;  %v938_v44 = vld [vmem:[%s13716_s1 + $0x1c48] sm:$0xff]  ;;  %v9624_v11 = vcombine.low %v946_v57, %v954_v61 }
  0xee   :  { %6678 = vmatpush2.bf16.msra.mxu0 %v9448_v16  ;;  %v9609_v48 = vcombine.high %v930_v43, %v938_v44  ;;  %v403_v16 = vld [vmem:[%s13716_s1 + $0xb90] sm:$0xff]  ;;  %v9608_v20 = vcombine.low %v930_v43, %v938_v44 }
  0xef   :  { %6679 = vmatprep.subr.bf16.mxu0 %v9433_v18  ;;  %v9352_v18 = vcombine.low %v674_v6, %v682_v8  ;;  %v355_v6 = vld [vmem:[%s13716_s1 + $0xa10] sm:$0xff] }
  0xf0   :  { %6731 = vmatpush2.bf16.msra.mxu1 %v9704_v17  ;;  %v411_v17 = vld [vmem:[%s13716_s1 + $0xbd0] sm:$0xff] }
  0xf1   :  { %6732 = vmatprep.subr.bf16.mxu1 %v9689_v19  ;;  %v13723_v19 = vsub.s32 0, %v10678_v10  ;;  %v9083_v26 = vcombine.high %v403_v16, %v411_v17  ;;  %v9082_v32 = vcombine.low %v403_v16, %v411_v17  ;;  %v363_v8 = vld [vmem:[%s13716_s1 + $0xa50] sm:$0xff] }
  0xf2   :  { %6680 = vmatpush2.bf16.msra.mxu0 %v9432_v54  ;;  %v13722_v54 = vsub.s32 1, %v10678_v10  ;;  %v9035_v17 = vcombine.high %v355_v6, %v363_v8 }
  0xf3   :  { %6681 = vmatprep.subr.bf16.mxu0 %v9417_v28  ;;  %v139_v28 = vld [vmem:[%s13716_s1 + $0x350] sm:$0xff]  ;;  %v10714_v60 = vrot.slane %v10696_v22, %v13723_v19 }
  0xf4   :  { %6733 = vmatpush2.bf16.msra.mxu1 %v9688_v27  ;;  %v131_v27 = vld [vmem:[%s13716_s1 + $0x310] sm:$0xff] }
  0xf5   :  { %6734 = vmatprep.subr.bf16.mxu1 %v9673_v29  ;;  %v387_v29 = vld [vmem:[%s13716_s1 + $0xb10] sm:$0xff] }
  0xf6   :  { %6682 = vmatpush2.bf16.msra.mxu0 %v9416_v34  ;;  %v8811_v34 = vcombine.high %v131_v27, %v139_v28  ;;  %v9066_v52 = vcombine.low %v387_v29, %v395_v59 }
  0xf7   :  { %6683 = vmatprep.subr.bf16.mxu0 %v9401_v36  ;;  %v9067_v36 = vcombine.high %v387_v29, %v395_v59 }
  0xf8   :  { %6735 = vmatpush2.bf16.msra.mxu1 %v9672_v35  ;;  %v10719_v35 = vrot.slane %v10696_v22, %v13722_v54  ;;  %v60_v54 = vld [vmem:[%s13716_s1 + $0xd8] sm:$0xff] }
  0xf9   :  { %6736 = vmatprep.subr.bf16.mxu1 %v9657_v37  ;;  %v115_v37 = vld [vmem:[%s13716_s1 + $0x290] sm:$0xff] }
  0xfa   :  { %6684 = vmatpush2.bf16.msra.mxu0 %v9400_v45  ;;  %v8795_v53 = vcombine.high %v115_v37, %v123_v38 }
  0xfb   :  { %6685 = vmatprep.subr.bf16.mxu0 %v9385_v50  ;;  %v8810_v50 = vcombine.low %v131_v27, %v139_v28 }
  0xfc   :  { %6737 = vmatpush2.bf16.msra.mxu1 %v9656_v49 }
  0xfd   :  { %6738 = vmatprep.subr.bf16.mxu1 %v9641_v51 }
  0xfe   :  { %6686 = vmatpush2.bf16.msra.mxu0 %v9384_v0 }
  0xff   :  { %6687 = vmatprep.subr.bf16.mxu0 %v9369_v4  ;;  %v107_v4 = vld [vmem:[%s13716_s1 + $0x250] sm:$0xff] }
 0x100   :  { %6739 = vmatpush2.bf16.msra.mxu1 %v9640_v2  ;;  %v99_v2 = vld [vmem:[%s13716_s1 + $0x210] sm:$0xff] }
 0x101   :  { %6740 = vmatprep.subr.bf16.mxu1 %v9625_v5  ;;  %v8779_v13 = vcombine.high %v99_v2, %v107_v4  ;;  %v8778_v28 = vcombine.low %v99_v2, %v107_v4  ;;  %v51_v4 = vld [vmem:[%s13716_s1 + $0x90] sm:$0xff] }
 0x102   :  { %6688 = vmatpush2.bf16.msra.mxu0 %v9368_v9 }
 0x103   :  { %6689 = vmatprep.subr.bf16.mxu0 %v9353_v47 }
 0x104   :  { %6741 = vmatpush2.bf16.msra.mxu1 %v9624_v11  ;;  %v8794_v11 = vcombine.low %v115_v37, %v123_v38  ;;  %v67_v37 = vld [vmem:[%s13716_s1 + $0x110] sm:$0xff] }
 0x105   :  { %6742 = vmatprep.subr.bf16.mxu1 %v9609_v48  ;;  %v9050_v48 = vcombine.low %v371_v40, %v379_v41  ;;  %v75_v38 = vld [vmem:[%s13716_s1 + $0x150] sm:$0xff] }
 0x106   :  { %6690 = vmatpush2.bf16.msra.mxu0 %v9352_v18  ;;  %v83_v18 = vld [vmem:[%s13716_s1 + $0x190] sm:$0xff] }
 0x107   :  { %6765 = vmatprep.subr.bf16.mxu0 %v8827_v24  ;;  %v6375_v39 = vpop.f32.mrf.mxu0  ;;  %v339_v24 = vld [vmem:[%s13716_s1 + $0x990] sm:$0xff] }
 0x108   :  { %6743 = vmatpush2.bf16.msra.mxu1 %v9608_v20  ;;  %v6376_v45 = vadd.f32 %v6375_v39, %v10714_v60  ;;  %v91_v20 = vld [vmem:[%s13716_s1 + $0x1d0] sm:$0xff] }
 0x109   :  { %6818 = vmatprep.subr.bf16.mxu1 %v9083_v26  ;;  %6692 = vmatmul.mubr.bf16.vlgmr.msra.gmra.mxu0 %v10273_v3  ;;  %v6428_v49 = vpop.f32.mrf.mxu1  ;;  %v6377_v51 = vpop.f32.mrf.mxu0  ;;  %v347_v26 = vld [vmem:[%s13716_s1 + $0x9d0] sm:$0xff] }
 0x10a   :  { %6766 = vmatpush1.bf16.msra.mxu0 %v8826_v31  ;;  %v10736_v57 = vadd.f32 %v6428_v49, %v6376_v45  ;;  %v6378_v61 = vadd.f32 %v6377_v51, %v10719_v35  ;;  %6701 = vmatprep.mubr.bf16.mxu0 %v10294_v12  ;;  %v9034_v31 = vcombine.low %v355_v6, %v363_v8  ;;  %v323_v45 = vld [vmem:[%s13716_s1 + $0x910] sm:$0xff] }
 0x10b   :  { %6745 = vmatmul.mubr.bf16.vlgmr.msra.gmra.mxu1 %v10286_v7  ;;  %6767 = vmatprep.subr.bf16.mxu0 %v8811_v34  ;;  %v6430_v0 = vpop.f32.mrf.mxu1  ;;  %v6379_v5 = vpop.f32.mrf.mxu0  ;;  %v331_v49 = vld [vmem:[%s13716_s1 + $0x950] sm:$0xff]  ;;  %v8762_v51 = vcombine.low %v83_v18, %v91_v20 }
 0x10c   :  { %6819 = vmatpush1.bf16.msra.mxu1 %v9082_v32  ;;  %6754 = vmatprep.mubr.bf16.mxu1 %v10309_v15  ;;  %v10753_v43 = vadd.f32 %v6430_v0, %v6378_v61  ;;  %v6380_v44 = vadd.f32 %v6379_v5, %v10714_v60  ;;  %v8763_v32 = vcombine.high %v83_v18, %v91_v20  ;;  %v59_v5 = vld [vmem:[%s13716_s1 + $0xd0] sm:$0xff] }
 0x10d   :  { %6820 = vmatprep.subr.bf16.mxu1 %v9067_v36  ;;  %v6432_v9 = vpop.f32.mrf.mxu1  ;;  %v10756_v47 = vpop.f32.mrf.mxu0  ;;  %v9019_v36 = vcombine.high %v339_v24, %v347_v26  ;;  %v9018_v61 = vcombine.low %v339_v24, %v347_v26  ;;  %v8747_v0 = vcombine.high %v67_v37, %v75_v38  ;;  %v9003_v2 = vcombine.high %v323_v45, %v331_v49  ;;  %v315_v8 = vld [vmem:[%s13716_s1 + $0x8d0] sm:$0xff] }
 0x10e   :  { %6768 = vmatpush1.bf16.msra.mxu0 %v8810_v50  ;;  %v10758_v14 = vadd.f32 %v6432_v9, %v6380_v44  ;;  %v8746_v44 = vcombine.low %v67_v37, %v75_v38  ;;  %v9002_v9 = vcombine.low %v323_v45, %v331_v49  ;;  %v291_v18 = vld [vmem:[%s13716_s1 + $0x810] sm:$0xff]  ;;  %v8730_v24 = vcombine.low %v51_v4, %v59_v5 }
 0x10f   :  { %6769 = vmatprep.subr.bf16.mxu0 %v8795_v53  ;;  %v10760_v16 = vpop.f32.mrf.mxu1  ;;  %v299_v20 = vld [vmem:[%s13716_s1 + $0x850] sm:$0xff] }
 0x110   :  { %6821 = vmatpush1.bf16.msra.mxu1 %v9066_v52  ;;  %v6385_v27 = vpop.f32.mrf.mxu0  ;;  %v515_v45 = vld [vmem:[%s13716_s1 + $0xf10] sm:$0xff] }
 0x111   :  { %6822 = vmatprep.subr.bf16.mxu1 %v9051_v1  ;;  %6702 = vmatmul.mubr.bf16.gmra.mxu0 %v10319_v23  ;;  %v6386_v29 = vadd.f32 %v6385_v27, %v10714_v60  ;;  %v6438_v59 = vpop.f32.mrf.mxu1  ;;  %v523_v49 = vld [vmem:[%s13716_s1 + $0xf50] sm:$0xff] }
 0x112   :  { %6770 = vmatpush1.bf16.msra.mxu0 %v8794_v11  ;;  %v6387_v34 = vpop.f32.mrf.mxu0  ;;  %6797 = vmatprep.mubr.bf16.mxu0 %v9874_v58  ;;  %v8731_v11 = vcombine.high %v51_v4, %v59_v5  ;;  %v507_v4 = vld [vmem:[%s13716_s1 + $0xed0] sm:$0xff] }
 0x113   :  { %6755 = vmatmul.mubr.bf16.gmra.mxu1 %v10328_v55  ;;  %6771 = vmatprep.subr.bf16.mxu0 %v8779_v13  ;;  %v6388_v39 = vadd.f32 %v6387_v34, %v10719_v35  ;;  %v10784_v40 = vadd.f32 %v6438_v59, %v6386_v29  ;;  %v6440_v41 = vpop.f32.mrf.mxu1  ;;  %v35_v13 = vld [vmem:[%s13716_s1 + $0x10] sm:$0xff] }
 0x114   :  { %6823 = vmatpush1.bf16.msra.mxu1 %v9050_v48  ;;  %v6389_v50 = vpop.f32.mrf.mxu0  ;;  %6850 = vmatprep.mubr.bf16.mxu1 %v9894_v63  ;;  %v275_v29 = vld [vmem:[%s13716_s1 + $0x790] sm:$0xff] }
 0x115   :  { %6824 = vmatprep.subr.bf16.mxu1 %v9035_v17  ;;  %v6390_v52 = vadd.f32 %v6389_v50, %v10714_v60  ;;  %v10795_v53 = vadd.f32 %v6440_v41, %v6388_v39  ;;  %v6442_v1 = vpop.f32.mrf.mxu1  ;;  %v307_v60 = vld [vmem:[%s13716_s1 + $0x890] sm:$0xff] }
 0x116   :  { %6772 = vmatpush1.bf16.msra.mxu0 %v8778_v28  ;;  %v8987_v48 = vcombine.high %v307_v60, %v315_v8  ;;  %v43_v17 = vld [vmem:[%s13716_s1 + $0x50] sm:$0xff]  ;;  %v8986_v26 = vcombine.low %v307_v60, %v315_v8  ;;  %v8971_v28 = vcombine.high %v291_v18, %v299_v20  ;;  %v9194_v60 = vcombine.low %v515_v45, %v523_v49 }
 0x117   :  { %6773 = vmatprep.subr.bf16.mxu0 %v8763_v32  ;;  %v10803_v6 = vadd.f32 %v6442_v1, %v6390_v52  ;;  %v8715_v27 = vcombine.high %v35_v13, %v43_v17  ;;  %v283_v59 = vld [vmem:[%s13716_s1 + $0x7d0] sm:$0xff]  ;;  %v8714_v34 = vcombine.low %v35_v13, %v43_v17 }
 0x118   :  { %6825 = vmatpush1.bf16.msra.mxu1 %v9034_v31  ;;  %v531_v31 = vld [vmem:[%s13716_s1 + $0xf90] sm:$0xff]  ;;  %v8955_v37 = vcombine.high %v275_v29, %v283_v59  ;;  %v8954_v50 = vcombine.low %v275_v29, %v283_v59 }
 0x119   :  { %6826 = vmatprep.subr.bf16.mxu1 %v9019_v36  ;;  %v539_v32 = vld [vmem:[%s13716_s1 + $0xfd0] sm:$0xff]  ;;  %v8970_v36 = vcombine.low %v291_v18, %v299_v20 }
 0x11a   :  { %6774 = vmatpush1.bf16.msra.mxu0 %v8762_v51  ;;  %v9211_v38 = vcombine.high %v531_v31, %v539_v32  ;;  %v259_v39 = vld [vmem:[%s13716_s1 + $0x710] sm:$0xff]  ;;  %v9210_v51 = vcombine.low %v531_v31, %v539_v32 }
 0x11b   :  { %6775 = vmatprep.subr.bf16.mxu0 %v8747_v0  ;;  %v267_v41 = vld [vmem:[%s13716_s1 + $0x750] sm:$0xff] }
 0x11c   :  { %6827 = vmatpush1.bf16.msra.mxu1 %v9018_v61  ;;  %v8939_v52 = vcombine.high %v259_v39, %v267_v41  ;;  %v9195_v61 = vcombine.high %v515_v45, %v523_v49  ;;  %v243_v0 = vld [vmem:[%s13716_s1 + $0x690] sm:$0xff]  ;;  %v8938_v5 = vcombine.low %v259_v39, %v267_v41 }
 0x11d   :  { %6828 = vmatprep.subr.bf16.mxu1 %v9003_v2  ;;  %v251_v1 = vld [vmem:[%s13716_s1 + $0x6d0] sm:$0xff] }
 0x11e   :  { %6776 = vmatpush1.bf16.msra.mxu0 %v8746_v44  ;;  %v499_v2 = vld [vmem:[%s13716_s1 + $0xe90] sm:$0xff]  ;;  %v8923_v8 = vcombine.high %v243_v0, %v251_v1  ;;  %v8922_v17 = vcombine.low %v243_v0, %v251_v1 }
 0x11f   :  { %6777 = vmatprep.subr.bf16.mxu0 %v8731_v11  ;;  %v9179_v44 = vcombine.high %v499_v2, %v507_v4  ;;  %v235_v11 = vld [vmem:[%s13716_s1 + $0x650] sm:$0xff]  ;;  %v9178_v18 = vcombine.low %v499_v2, %v507_v4 }
 0x120   :  { %6829 = vmatpush1.bf16.msra.mxu1 %v9002_v9  ;;  %v227_v9 = vld [vmem:[%s13716_s1 + $0x610] sm:$0xff] }
 0x121   :  { %6830 = vmatprep.subr.bf16.mxu1 %v8987_v48  ;;  %v483_v48 = vld [vmem:[%s13716_s1 + $0xe10] sm:$0xff]  ;;  %v8907_v20 = vcombine.high %v227_v9, %v235_v11  ;;  %v8906_v59 = vcombine.low %v227_v9, %v235_v11 }
 0x122   :  { %6778 = vmatpush1.bf16.msra.mxu0 %v8730_v24  ;;  %v491_v13 = vld [vmem:[%s13716_s1 + $0xe50] sm:$0xff] }
 0x123   :  { %6779 = vmatprep.subr.bf16.mxu0 %v8715_v27  ;;  %v9163_v24 = vcombine.high %v483_v48, %v491_v13  ;;  %v219_v27 = vld [vmem:[%s13716_s1 + $0x5d0] sm:$0xff]  ;;  %v9162_v31 = vcombine.low %v483_v48, %v491_v13 }
 0x124   :  { %6831 = vmatpush1.bf16.msra.mxu1 %v8986_v26  ;;  %v211_v26 = vld [vmem:[%s13716_s1 + $0x590] sm:$0xff] }
 0x125   :  { %6832 = vmatprep.subr.bf16.mxu1 %v8971_v28  ;;  %v467_v28 = vld [vmem:[%s13716_s1 + $0xd90] sm:$0xff]  ;;  %v8891_v32 = vcombine.high %v211_v26, %v219_v27  ;;  %v8890_v41 = vcombine.low %v211_v26, %v219_v27 }
 0x126   :  { %6780 = vmatpush1.bf16.msra.mxu0 %v8714_v34  ;;  %v475_v29 = vld [vmem:[%s13716_s1 + $0xdd0] sm:$0xff] }
 0x127   :  { %6781 = vmatprep.subr.bf16.mxu0 %v8955_v37  ;;  %v9147_v34 = vcombine.high %v467_v28, %v475_v29  ;;  %v203_v37 = vld [vmem:[%s13716_s1 + $0x550] sm:$0xff]  ;;  %v9146_v45 = vcombine.low %v467_v28, %v475_v29 }
 0x128   :  { %6833 = vmatpush1.bf16.msra.mxu1 %v8970_v36  ;;  %v195_v36 = vld [vmem:[%s13716_s1 + $0x510] sm:$0xff] }
 0x129   :  { %6834 = vmatprep.subr.bf16.mxu1 %v9211_v38  ;;  %v451_v38 = vld [vmem:[%s13716_s1 + $0xd10] sm:$0xff]  ;;  %v8875_v49 = vcombine.high %v195_v36, %v203_v37  ;;  %v8874_v1 = vcombine.low %v195_v36, %v203_v37 }
 0x12a   :  { %6782 = vmatpush2.bf16.msra.mxu0 %v8954_v50  ;;  %v459_v39 = vld [vmem:[%s13716_s1 + $0xd50] sm:$0xff] }
 0x12b   :  { %6783 = vmatprep.subr.bf16.mxu0 %v8939_v52  ;;  %v9131_v50 = vcombine.high %v451_v38, %v459_v39  ;;  %v187_v52 = vld [vmem:[%s13716_s1 + $0x4d0] sm:$0xff]  ;;  %v9130_v2 = vcombine.low %v451_v38, %v459_v39  ;;  %v10943_v38 = vpop.f32.mrf.mxu0 }
 0x12c   :  { %6835 = vmatpush2.bf16.msra.mxu1 %v9210_v51  ;;  %v179_v51 = vld [vmem:[%s13716_s1 + $0x490] sm:$0xff] }
 0x12d   :  { %6836 = vmatprep.subr.bf16.mxu1 %v9195_v61  ;;  %v435_v61 = vld [vmem:[%s13716_s1 + $0xc90] sm:$0xff]  ;;  %v8859_v4 = vcombine.high %v179_v51, %v187_v52  ;;  %v8858_v11 = vcombine.low %v179_v51, %v187_v52 }
 0x12e   :  { %6784 = vmatpush2.bf16.msra.mxu0 %v8938_v5  ;;  %v443_v0 = vld [vmem:[%s13716_s1 + $0xcd0] sm:$0xff] }
 0x12f   :  { %6785 = vmatprep.subr.bf16.mxu0 %v8923_v8  ;;  %v9115_v5 = vcombine.high %v435_v61, %v443_v0  ;;  %v171_v8 = vld [vmem:[%s13716_s1 + $0x450] sm:$0xff]  ;;  %v9114_v48 = vcombine.low %v435_v61, %v443_v0 }
 0x130   :  { %6837 = vmatpush2.bf16.msra.mxu1 %v9194_v60  ;;  %v163_v60 = vld [vmem:[%s13716_s1 + $0x410] sm:$0xff] }
 0x131   :  { %6838 = vmatprep.subr.bf16.mxu1 %v9179_v44  ;;  %v419_v44 = vld [vmem:[%s13716_s1 + $0xc10] sm:$0xff]  ;;  %v8843_v13 = vcombine.high %v163_v60, %v171_v8  ;;  %v8842_v27 = vcombine.low %v163_v60, %v171_v8 }
 0x132   :  { %6786 = vmatpush2.bf16.msra.mxu0 %v8922_v17  ;;  %v427_v9 = vld [vmem:[%s13716_s1 + $0xc50] sm:$0xff] }
 0x133   :  { %6787 = vmatprep.subr.bf16.mxu0 %v8907_v20  ;;  %v9099_v17 = vcombine.high %v419_v44, %v427_v9  ;;  %v667_v20 = vld [vmem:[%s13716_s1 + $0x13d0] sm:$0xff]  ;;  %v9098_v28 = vcombine.low %v419_v44, %v427_v9 }
 0x134   :  { %6839 = vmatpush2.bf16.msra.mxu1 %v9178_v18  ;;  %v659_v18 = vld [vmem:[%s13716_s1 + $0x1390] sm:$0xff] }
 0x135   :  { %6840 = vmatprep.subr.bf16.mxu1 %v9163_v24  ;;  %v915_v24 = vld [vmem:[%s13716_s1 + $0x1b90] sm:$0xff]  ;;  %v9339_v29 = vcombine.high %v659_v18, %v667_v20  ;;  %v9338_v37 = vcombine.low %v659_v18, %v667_v20 }
 0x136   :  { %6788 = vmatpush2.bf16.msra.mxu0 %v8906_v59  ;;  %v923_v26 = vld [vmem:[%s13716_s1 + $0x1bd0] sm:$0xff] }
 0x137   :  { %6789 = vmatprep.subr.bf16.mxu0 %v8891_v32  ;;  %v9595_v59 = vcombine.high %v915_v24, %v923_v26  ;;  %v651_v32 = vld [vmem:[%s13716_s1 + $0x1350] sm:$0xff]  ;;  %v9594_v39 = vcombine.low %v915_v24, %v923_v26 }
 0x138   :  { %6841 = vmatpush2.bf16.msra.mxu1 %v9162_v31  ;;  %v643_v31 = vld [vmem:[%s13716_s1 + $0x1310] sm:$0xff] }
 0x139   :  { %6842 = vmatprep.subr.bf16.mxu1 %v9147_v34  ;;  %v899_v34 = vld [vmem:[%s13716_s1 + $0x1b10] sm:$0xff] }
 0x13a   :  { %6790 = vmatpush2.bf16.msra.mxu0 %v8890_v41  ;;  %v907_v36 = vld [vmem:[%s13716_s1 + $0x1b50] sm:$0xff]  ;;  %v9323_v41 = vcombine.high %v643_v31, %v651_v32 }
 0x13b   :  { %6791 = vmatprep.subr.bf16.mxu0 %v8875_v49  ;;  %v9579_v49 = vcombine.high %v899_v34, %v907_v36  ;;  %v635_v51 = vld [vmem:[%s13716_s1 + $0x12d0] sm:$0xff]  ;;  %v9578_v60 = vcombine.low %v899_v34, %v907_v36 }
 0x13c   :  { %6843 = vmatpush2.bf16.msra.mxu1 %v9146_v45  ;;  %v10945_v45 = vpop.f32.mrf.mxu1  ;;  %v883_v61 = vld [vmem:[%s13716_s1 + $0x1a90] sm:$0xff] }
 0x13d   :  { %6844 = vmatprep.subr.bf16.mxu1 %v9131_v50  ;;  %v627_v50 = vld [vmem:[%s13716_s1 + $0x1290] sm:$0xff] }
 0x13e   :  { %6792 = vmatpush2.bf16.msra.mxu0 %v8874_v1  ;;  %v891_v0 = vld [vmem:[%s13716_s1 + $0x1ad0] sm:$0xff]  ;;  %v9307_v8 = vcombine.high %v627_v50, %v635_v51 }
 0x13f   :  { %6793 = vmatprep.subr.bf16.mxu0 %v8859_v4  ;;  %v9322_v4 = vcombine.low %v643_v31, %v651_v32  ;;  %v867_v18 = vld [vmem:[%s13716_s1 + $0x1a10] sm:$0xff] }
 0x140   :  { %6845 = vmatpush2.bf16.msra.mxu1 %v9130_v2  ;;  %v595_v36 = vld [vmem:[%s13716_s1 + $0x1190] sm:$0xff] }
 0x141   :  { %6846 = vmatprep.subr.bf16.mxu1 %v9115_v5 }
 0x142   :  { %6794 = vmatpush2.bf16.msra.mxu0 %v8858_v11 }
 0x143   :  { %6795 = vmatprep.subr.bf16.mxu0 %v8843_v13  ;;  %v619_v13 = vld [vmem:[%s13716_s1 + $0x1250] sm:$0xff] }
 0x144   :  { %6847 = vmatpush2.bf16.msra.mxu1 %v9114_v48  ;;  %v9563_v48 = vcombine.high %v883_v61, %v891_v0 }
 0x145   :  { %6848 = vmatprep.subr.bf16.mxu1 %v9099_v17 }
 0x146   :  { %6796 = vmatpush2.bf16.msra.mxu0 %v8842_v27  ;;  %v9306_v27 = vcombine.low %v627_v50, %v635_v51 }
 0x147   :  { %6871 = vmatprep.subr.bf16.mxu0 %v9339_v29  ;;  %v9562_v29 = vcombine.low %v883_v61, %v891_v0 }
 0x148   :  { %6849 = vmatpush2.bf16.msra.mxu1 %v9098_v28 }
 0x149   :  { %6924 = vmatprep.subr.bf16.mxu1 %v9595_v59  ;;  %v6481_v52 = vpop.f32.mrf.mxu0  ;;  %6798 = vmatmul.mubr.bf16.vlgmr.msra.gmra.mxu0 %v10017_v21 }
 0x14a   :  { %v6482_v1 = vadd.f32 %v6481_v52, %v10736_v57  ;;  %6872 = vmatpush1.bf16.msra.mxu0 %v9338_v37  ;;  %v611_v57 = vld [vmem:[%s13716_s1 + $0x1210] sm:$0xff]  ;;  %6807 = vmatprep.mubr.bf16.mxu0 %v10044_v30 }
 0x14b   :  { %v6534_v2 = vpop.f32.mrf.mxu1  ;;  %6851 = vmatmul.mubr.bf16.vlgmr.msra.gmra.mxu1 %v10030_v25  ;;  %v6483_v5 = vpop.f32.mrf.mxu0  ;;  %6873 = vmatprep.subr.bf16.mxu0 %v9323_v41  ;;  %v9291_v59 = vcombine.high %v611_v57, %v619_v13  ;;  %v859_v41 = vld [vmem:[%s13716_s1 + $0x19d0] sm:$0xff]  ;;  %v9290_v51 = vcombine.low %v611_v57, %v619_v13 }
 0x14c   :  { %6925 = vmatpush1.bf16.msra.mxu1 %v9594_v39  ;;  %v10962_v44 = vadd.f32 %v6534_v2, %v6482_v1  ;;  %v6484_v9 = vadd.f32 %v6483_v5, %v10753_v43  ;;  %v875_v43 = vld [vmem:[%s13716_s1 + $0x1a50] sm:$0xff]  ;;  %6860 = vmatprep.mubr.bf16.mxu1 %v10053_v33 }
 0x14d   :  { %v6536_v11 = vpop.f32.mrf.mxu1  ;;  %6926 = vmatprep.subr.bf16.mxu1 %v9579_v49  ;;  %v6485_v17 = vpop.f32.mrf.mxu0  ;;  %v9547_v34 = vcombine.high %v867_v18, %v875_v43  ;;  %v851_v39 = vld [vmem:[%s13716_s1 + $0x1990] sm:$0xff]  ;;  %v9546_v61 = vcombine.low %v867_v18, %v875_v43 }
 0x14e   :  { %13739 = vst [vmem:[#allocation4_spill] sm:$0xff] %v10962_v44  ;;  %v10979_v20 = vadd.f32 %v6536_v11, %v6484_v9  ;;  %v6486_v24 = vadd.f32 %v6485_v17, %v10758_v14  ;;  %6874 = vmatpush1.bf16.msra.mxu0 %v9322_v4  ;;  %v603_v14 = vld [vmem:[%s13716_s1 + $0x11d0] sm:$0xff]  ;;  %v9531_v5 = vcombine.high %v851_v39, %v859_v41 }
 0x14f   :  { %v6538_v26 = vpop.f32.mrf.mxu1  ;;  %v10982_v28 = vpop.f32.mrf.mxu0  ;;  %6875 = vmatprep.subr.bf16.mxu0 %v9307_v8  ;;  %v9275_v0 = vcombine.high %v595_v36, %v603_v14  ;;  %v843_v9 = vld [vmem:[%s13716_s1 + $0x1950] sm:$0xff]  ;;  %v9274_v13 = vcombine.low %v595_v36, %v603_v14  ;;  %v9530_v17 = vcombine.low %v851_v39, %v859_v41 }
 0x150   :  { %13740 = vst [vmem:[#allocation5_spill] sm:$0xff] %v10979_v20  ;;  %6927 = vmatpush1.bf16.msra.mxu1 %v9578_v60  ;;  %v10984_v31 = vadd.f32 %v6538_v26, %v6486_v24  ;;  %v587_v60 = vld [vmem:[%s13716_s1 + $0x1150] sm:$0xff] }
 0x151   :  { %v10986_v32 = vpop.f32.mrf.mxu1  ;;  %6928 = vmatprep.subr.bf16.mxu1 %v9563_v48  ;;  %v6491_v37 = vpop.f32.mrf.mxu0  ;;  %6808 = vmatmul.mubr.bf16.gmra.mxu0 %v10069_v42  ;;  %v563_v26 = vld [vmem:[%s13716_s1 + $0x1090] sm:$0xff] }
 0x152   :  { %13741 = vst [vmem:[#allocation6_spill] sm:$0xff] %v10984_v31  ;;  %v6492_v49 = vadd.f32 %v6491_v37, %v10784_v40  ;;  %6876 = vmatpush1.bf16.msra.mxu0 %v9306_v27  ;;  %v579_v40 = vld [vmem:[%s13716_s1 + $0x1110] sm:$0xff]  ;;  %6903 = vmatprep.mubr.bf16.mxu0 %v10102_v56 }
 0x153   :  { %v6544_v50 = vpop.f32.mrf.mxu1  ;;  %6861 = vmatmul.mubr.bf16.gmra.mxu1 %v10082_v46  ;;  %v6493_v52 = vpop.f32.mrf.mxu0  ;;  %6877 = vmatprep.subr.bf16.mxu0 %v9291_v59  ;;  %v9259_v18 = vcombine.high %v579_v40, %v587_v60  ;;  %v819_v27 = vld [vmem:[%s13716_s1 + $0x1890] sm:$0xff]  ;;  %v9258_v59 = vcombine.low %v579_v40, %v587_v60 }
 0x154   :  { %6929 = vmatpush1.bf16.msra.mxu1 %v9562_v29  ;;  %v6494_v1 = vadd.f32 %v6493_v52, %v10795_v53  ;;  %v11004_v2 = vadd.f32 %v6544_v50, %v6492_v49  ;;  %v835_v53 = vld [vmem:[%s13716_s1 + $0x1910] sm:$0xff]  ;;  %6956 = vmatprep.mubr.bf16.mxu1 %v10113_v62 }
 0x155   :  { %v6546_v4 = vpop.f32.mrf.mxu1  ;;  %6930 = vmatprep.subr.bf16.mxu1 %v9547_v34  ;;  %v6495_v8 = vpop.f32.mrf.mxu0  ;;  %v9515_v24 = vcombine.high %v835_v53, %v843_v9  ;;  %v827_v29 = vld [vmem:[%s13716_s1 + $0x18d0] sm:$0xff]  ;;  %v9514_v34 = vcombine.low %v835_v53, %v843_v9 }
 0x156   :  { %13742 = vst [vmem:[#allocation7_spill] sm:$0xff] %v11004_v2  ;;  %v6496_v11 = vadd.f32 %v6495_v8, %v10803_v6  ;;  %v11021_v48 = vadd.f32 %v6546_v4, %v6494_v1  ;;  %6878 = vmatpush1.bf16.msra.mxu0 %v9290_v51  ;;  %v571_v6 = vld [vmem:[%s13716_s1 + $0x10d0] sm:$0xff]  ;;  %v9499_v14 = vcombine.high %v819_v27, %v827_v29 }
 0x157   :  { %v6548_v57 = vpop.f32.mrf.mxu1  ;;  %6879 = vmatprep.subr.bf16.mxu0 %v9275_v0  ;;  %v9243_v36 = vcombine.high %v563_v26, %v571_v6  ;;  %v547_v37 = vld [vmem:[%s13716_s1 + $0x1010] sm:$0xff]  ;;  %v9242_v50 = vcombine.low %v563_v26, %v571_v6  ;;  %v9498_v51 = vcombine.low %v819_v27, %v827_v29 }
 0x158   :  { %13743 = vst [vmem:[#allocation8_spill] sm:$0xff] %v11021_v48  ;;  %6931 = vmatpush1.bf16.msra.mxu1 %v9546_v61  ;;  %v11023_v43 = vadd.f32 %v6548_v57, %v6496_v11  ;;  %v555_v39 = vld [vmem:[%s13716_s1 + $0x1050] sm:$0xff] }
 0x159   :  { %6932 = vmatprep.subr.bf16.mxu1 %v9531_v5  ;;  %v803_v41 = vld [vmem:[%s13716_s1 + $0x1810] sm:$0xff]  ;;  %v9227_v52 = vcombine.high %v547_v37, %v555_v39  ;;  %v9226_v40 = vcombine.low %v547_v37, %v555_v39 }
 0x15a   :  { %13744 = vst [vmem:[#allocation9_spill] sm:$0xff] %v11023_v43  ;;  %6880 = vmatpush1.bf16.msra.mxu0 %v9274_v13  ;;  %v811_v49 = vld [vmem:[%s13716_s1 + $0x1850] sm:$0xff] }
 0x15b   :  { %6881 = vmatprep.subr.bf16.mxu0 %v9259_v18  ;;  %v9483_v61 = vcombine.high %v803_v41, %v811_v49  ;;  %v787_v0 = vld [vmem:[%s13716_s1 + $0x1790] sm:$0xff]  ;;  %v9482_v60 = vcombine.low %v803_v41, %v811_v49 }
 0x15c   :  { %6933 = vmatpush1.bf16.msra.mxu1 %v9530_v17  ;;  %v795_v1 = vld [vmem:[%s13716_s1 + $0x17d0] sm:$0xff] }
 0x15d   :  { %6934 = vmatprep.subr.bf16.mxu1 %v9515_v24  ;;  %v1043_v4 = vld [vmem:[%s13716_s1 + $0x1f90] sm:$0xff]  ;;  %v9467_v8 = vcombine.high %v787_v0, %v795_v1  ;;  %v9466_v17 = vcombine.low %v787_v0, %v795_v1 }
 0x15e   :  { %6882 = vmatpush1.bf16.msra.mxu0 %v9258_v59  ;;  %v1051_v5 = vld [vmem:[%s13716_s1 + $0x1fd0] sm:$0xff] }
 0x15f   :  { %6883 = vmatprep.subr.bf16.mxu0 %v9243_v36  ;;  %v9723_v53 = vcombine.high %v1043_v4, %v1051_v5  ;;  %v771_v9 = vld [vmem:[%s13716_s1 + $0x1710] sm:$0xff]  ;;  %v9722_v18 = vcombine.low %v1043_v4, %v1051_v5 }
 0x160   :  { %6935 = vmatpush1.bf16.msra.mxu1 %v9514_v34  ;;  %v779_v11 = vld [vmem:[%s13716_s1 + $0x1750] sm:$0xff] }
 0x161   :  { %6936 = vmatprep.subr.bf16.mxu1 %v9499_v14  ;;  %v1027_v57 = vld [vmem:[%s13716_s1 + $0x1f10] sm:$0xff]  ;;  %v9451_v24 = vcombine.high %v771_v9, %v779_v11  ;;  %v9450_v34 = vcombine.low %v771_v9, %v779_v11 }
 0x162   :  { %6884 = vmatpush1.bf16.msra.mxu0 %v9242_v50  ;;  %v1035_v13 = vld [vmem:[%s13716_s1 + $0x1f50] sm:$0xff] }
 0x163   :  { %6885 = vmatprep.subr.bf16.mxu0 %v9227_v52  ;;  %v9707_v26 = vcombine.high %v1027_v57, %v1035_v13  ;;  %v755_v6 = vld [vmem:[%s13716_s1 + $0x1690] sm:$0xff]  ;;  %v9706_v36 = vcombine.low %v1027_v57, %v1035_v13 }
 0x164   :  { %6937 = vmatpush1.bf16.msra.mxu1 %v9498_v51  ;;  %v763_v27 = vld [vmem:[%s13716_s1 + $0x16d0] sm:$0xff] }
 0x165   :  { %6938 = vmatprep.subr.bf16.mxu1 %v9483_v61  ;;  %v1011_v29 = vld [vmem:[%s13716_s1 + $0x1e90] sm:$0xff]  ;;  %v9435_v14 = vcombine.high %v755_v6, %v763_v27  ;;  %v9434_v51 = vcombine.low %v755_v6, %v763_v27 }
 0x166   :  { %6886 = vmatpush1.bf16.msra.mxu0 %v9226_v40  ;;  %v1019_v59 = vld [vmem:[%s13716_s1 + $0x1ed0] sm:$0xff] }
 0x167   :  { %6887 = vmatprep.subr.bf16.mxu0 %v9467_v8  ;;  %v9691_v37 = vcombine.high %v1011_v29, %v1019_v59  ;;  %v739_v39 = vld [vmem:[%s13716_s1 + $0x1610] sm:$0xff]  ;;  %v9690_v52 = vcombine.low %v1011_v29, %v1019_v59 }
 0x168   :  { %6939 = vmatpush1.bf16.msra.mxu1 %v9482_v60  ;;  %v747_v41 = vld [vmem:[%s13716_s1 + $0x1650] sm:$0xff] }
 0x169   :  { %6940 = vmatprep.subr.bf16.mxu1 %v9723_v53  ;;  %v995_v49 = vld [vmem:[%s13716_s1 + $0x1e10] sm:$0xff]  ;;  %v9419_v61 = vcombine.high %v739_v39, %v747_v41  ;;  %v9418_v60 = vcombine.low %v739_v39, %v747_v41 }
 0x16a   :  { %6888 = vmatpush2.bf16.msra.mxu0 %v9466_v17  ;;  %v1003_v50 = vld [vmem:[%s13716_s1 + $0x1e50] sm:$0xff] }
 0x16b   :  { %6889 = vmatprep.subr.bf16.mxu0 %v9451_v24  ;;  %v9675_v0 = vcombine.high %v995_v49, %v1003_v50  ;;  %v723_v1 = vld [vmem:[%s13716_s1 + $0x1590] sm:$0xff]  ;;  %v9674_v8 = vcombine.low %v995_v49, %v1003_v50 }
 0x16c   :  { %6941 = vmatpush2.bf16.msra.mxu1 %v9722_v18  ;;  %v731_v4 = vld [vmem:[%s13716_s1 + $0x15d0] sm:$0xff] }
 0x16d   :  { %6942 = vmatprep.subr.bf16.mxu1 %v9707_v26  ;;  %v979_v5 = vld [vmem:[%s13716_s1 + $0x1d90] sm:$0xff]  ;;  %v9403_v53 = vcombine.high %v723_v1, %v731_v4  ;;  %v9402_v18 = vcombine.low %v723_v1, %v731_v4  ;;  %v148_v4 = vld [vmem:[%s13716_s1 + $0x398] sm:$0xff] }
 0x16e   :  { %6890 = vmatpush2.bf16.msra.mxu0 %v9450_v34  ;;  %v987_v40 = vld [vmem:[%s13716_s1 + $0x1dd0] sm:$0xff] }
 0x16f   :  { %6891 = vmatprep.subr.bf16.mxu0 %v9435_v14  ;;  %v9659_v9 = vcombine.high %v979_v5, %v987_v40  ;;  %v707_v11 = vld [vmem:[%s13716_s1 + $0x1510] sm:$0xff]  ;;  %v9658_v24 = vcombine.low %v979_v5, %v987_v40  ;;  %v156_v5 = vld [vmem:[%s13716_s1 + $0x3d8] sm:$0xff] }
 0x170   :  { %6943 = vmatpush2.bf16.msra.mxu1 %v9706_v36  ;;  %v715_v57 = vld [vmem:[%s13716_s1 + $0x1550] sm:$0xff]  ;;  %v404_v40 = vld [vmem:[%s13716_s1 + $0xb98] sm:$0xff] }
 0x171   :  { %6944 = vmatprep.subr.bf16.mxu1 %v9691_v37  ;;  %v963_v13 = vld [vmem:[%s13716_s1 + $0x1d10] sm:$0xff]  ;;  %v9387_v26 = vcombine.high %v707_v11, %v715_v57  ;;  %v9386_v36 = vcombine.low %v707_v11, %v715_v57  ;;  %v8829_v11 = vcombine.high %v148_v4, %v156_v5 }
 0x172   :  { %6892 = vmatpush2.bf16.msra.mxu0 %v9434_v51  ;;  %v971_v17 = vld [vmem:[%s13716_s1 + $0x1d50] sm:$0xff] }
 0x173   :  { %6893 = vmatprep.subr.bf16.mxu0 %v9419_v61  ;;  %v9643_v6 = vcombine.high %v963_v13, %v971_v17  ;;  %v691_v27 = vld [vmem:[%s13716_s1 + $0x1490] sm:$0xff]  ;;  %v9642_v14 = vcombine.low %v963_v13, %v971_v17  ;;  %v132_v13 = vld [vmem:[%s13716_s1 + $0x318] sm:$0xff] }
 0x174   :  { %6945 = vmatpush2.bf16.msra.mxu1 %v9690_v52  ;;  %v699_v29 = vld [vmem:[%s13716_s1 + $0x14d0] sm:$0xff]  ;;  %v140_v17 = vld [vmem:[%s13716_s1 + $0x358] sm:$0xff] }
 0x175   :  { %6946 = vmatprep.subr.bf16.mxu1 %v9675_v0  ;;  %v947_v59 = vld [vmem:[%s13716_s1 + $0x1c90] sm:$0xff]  ;;  %v9371_v37 = vcombine.high %v691_v27, %v699_v29  ;;  %v9370_v52 = vcombine.low %v691_v27, %v699_v29  ;;  %v11175_v27 = vpop.f32.mrf.mxu0 }
 0x176   :  { %6894 = vmatpush2.bf16.msra.mxu0 %v9418_v60  ;;  %v955_v34 = vld [vmem:[%s13716_s1 + $0x1cd0] sm:$0xff]  ;;  %v412_v60 = vld [vmem:[%s13716_s1 + $0xbd8] sm:$0xff] }
 0x177   :  { %6895 = vmatprep.subr.bf16.mxu0 %v9403_v53  ;;  %v9627_v39 = vcombine.high %v947_v59, %v955_v34  ;;  %v675_v41 = vld [vmem:[%s13716_s1 + $0x1410] sm:$0xff]  ;;  %v9626_v61 = vcombine.low %v947_v59, %v955_v34  ;;  %v13721_v53 = vsub.s32 2, %v10678_v10  ;;  %v9085_v57 = vcombine.high %v404_v40, %v412_v60  ;;  %v11177_v34 = vpop.f32.mrf.mxu1 }
 0x178   :  { %6947 = vmatpush2.bf16.msra.mxu1 %v9674_v8  ;;  %v683_v49 = vld [vmem:[%s13716_s1 + $0x1450] sm:$0xff]  ;;  %v9084_v29 = vcombine.low %v404_v40, %v412_v60  ;;  %v8813_v59 = vcombine.high %v132_v13, %v140_v17  ;;  %v100_v40 = vld [vmem:[%s13716_s1 + $0x218] sm:$0xff] }
 0x179   :  { %6948 = vmatprep.subr.bf16.mxu1 %v9659_v9  ;;  %v931_v50 = vld [vmem:[%s13716_s1 + $0x1c10] sm:$0xff]  ;;  %v9355_v0 = vcombine.high %v675_v41, %v683_v49  ;;  %v9354_v8 = vcombine.low %v675_v41, %v683_v49  ;;  %v380_v41 = vld [vmem:[%s13716_s1 + $0xad8] sm:$0xff] }
 0x17a   :  { %6896 = vmatpush2.bf16.msra.mxu0 %v9402_v18  ;;  %v939_v51 = vld [vmem:[%s13716_s1 + $0x1c50] sm:$0xff]  ;;  %v388_v18 = vld [vmem:[%s13716_s1 + $0xb18] sm:$0xff] }
 0x17b   :  { %6897 = vmatprep.subr.bf16.mxu0 %v9387_v26  ;;  %v9611_v1 = vcombine.high %v931_v50, %v939_v51  ;;  %v9610_v9 = vcombine.low %v931_v50, %v939_v51  ;;  %v11173_v26 = vrot.slane %v10696_v22, %v13721_v53  ;;  %v124_v22 = vld [vmem:[%s13716_s1 + $0x2d8] sm:$0xff]  ;;  %v8812_v51 = vcombine.low %v132_v13, %v140_v17 }
 0x17c   :  { %6949 = vmatpush2.bf16.msra.mxu1 %v9658_v24  ;;  %v396_v24 = vld [vmem:[%s13716_s1 + $0xb58] sm:$0xff] }
 0x17d   :  { %6950 = vmatprep.subr.bf16.mxu1 %v9643_v6  ;;  %v8828_v6 = vcombine.low %v148_v4, %v156_v5  ;;  %v108_v60 = vld [vmem:[%s13716_s1 + $0x258] sm:$0xff] }
 0x17e   :  { %6898 = vmatpush2.bf16.msra.mxu0 %v9386_v36  ;;  %v9069_v36 = vcombine.high %v388_v18, %v396_v24  ;;  %v52_v53 = vld [vmem:[%s13716_s1 + $0x98] sm:$0xff] }
 0x17f   :  { %6899 = vmatprep.subr.bf16.mxu0 %v9371_v37 }
 0x180   :  { %6951 = vmatpush2.bf16.msra.mxu1 %v9642_v14  ;;  %v116_v14 = vld [vmem:[%s13716_s1 + $0x298] sm:$0xff] }
 0x181   :  { %6952 = vmatprep.subr.bf16.mxu1 %v9627_v39  ;;  %v372_v39 = vld [vmem:[%s13716_s1 + $0xa98] sm:$0xff]  ;;  %v8796_v17 = vcombine.low %v116_v14, %v124_v22 }
 0x182   :  { %6900 = vmatpush2.bf16.msra.mxu0 %v9370_v52  ;;  %v9053_v5 = vcombine.high %v372_v39, %v380_v41 }
 0x183   :  { %6901 = vmatprep.subr.bf16.mxu0 %v9355_v0  ;;  %v8797_v0 = vcombine.high %v116_v14, %v124_v22  ;;  %v92_v14 = vld [vmem:[%s13716_s1 + $0x1d8] sm:$0xff] }
 0x184   :  { %6953 = vmatpush2.bf16.msra.mxu1 %v9626_v61  ;;  %v9068_v61 = vcombine.low %v388_v18, %v396_v24  ;;  %v9052_v24 = vcombine.low %v372_v39, %v380_v41  ;;  %v340_v22 = vld [vmem:[%s13716_s1 + $0x998] sm:$0xff] }
 0x185   :  { %6954 = vmatprep.subr.bf16.mxu1 %v9611_v1  ;;  %v348_v39 = vld [vmem:[%s13716_s1 + $0x9d8] sm:$0xff] }
 0x186   :  { %6902 = vmatpush2.bf16.msra.mxu0 %v9354_v8 }
 0x187   :  { %6977 = vmatprep.subr.bf16.mxu0 %v8829_v11  ;;  %v364_v11 = vld [vmem:[%s13716_s1 + $0xa58] sm:$0xff] }
 0x188   :  { %6955 = vmatpush2.bf16.msra.mxu1 %v9610_v9  ;;  %v356_v9 = vld [vmem:[%s13716_s1 + $0xa18] sm:$0xff] }
 0x189   :  { %7030 = vmatprep.subr.bf16.mxu1 %v9085_v57  ;;  %v6587_v37 = vpop.f32.mrf.mxu0  ;;  %6904 = vmatmul.mubr.bf16.vlgmr.msra.gmra.mxu0 %v10273_v3 }
 0x18a   :  { %v6588_v49 = vadd.f32 %v6587_v37, %v11173_v26  ;;  %6978 = vmatpush1.bf16.msra.mxu0 %v8828_v6  ;;  %6913 = vmatprep.mubr.bf16.mxu0 %v10294_v12  ;;  %v8781_v6 = vcombine.high %v100_v40, %v108_v60  ;;  %v84_v37 = vld [vmem:[%s13716_s1 + $0x198] sm:$0xff] }
 0x18b   :  { %v6640_v50 = vpop.f32.mrf.mxu1  ;;  %6957 = vmatmul.mubr.bf16.vlgmr.msra.gmra.mxu1 %v10286_v7  ;;  %v11194_v52 = vpop.f32.mrf.mxu0  ;;  %6979 = vmatprep.subr.bf16.mxu0 %v8813_v59 }
 0x18c   :  { %7031 = vmatpush1.bf16.msra.mxu1 %v9084_v29  ;;  %v11196_v1 = vadd.f32 %v6640_v50, %v6588_v49  ;;  %6966 = vmatprep.mubr.bf16.mxu1 %v10309_v15  ;;  %v8780_v49 = vcombine.low %v100_v40, %v108_v60 }
 0x18d   :  { %v11198_v4 = vpop.f32.mrf.mxu1  ;;  %7032 = vmatprep.subr.bf16.mxu1 %v9069_v36  ;;  %v6591_v8 = vpop.f32.mrf.mxu0  ;;  %v9037_v36 = vcombine.high %v356_v9, %v364_v11 }
 0x18e   :  { %v6592_v57 = vadd.f32 %v6591_v8, %v11173_v26  ;;  %6980 = vmatpush1.bf16.msra.mxu0 %v8812_v51  ;;  %v9021_v8 = vcombine.high %v340_v22, %v348_v39 }
 0x18f   :  { %v6644_v13 = vpop.f32.mrf.mxu1  ;;  %v11215_v18 = vpop.f32.mrf.mxu0  ;;  %6981 = vmatprep.subr.bf16.mxu0 %v8797_v0  ;;  %v8765_v0 = vcombine.high %v84_v37, %v92_v14 }
 0x190   :  { %7033 = vmatpush1.bf16.msra.mxu1 %v9068_v61  ;;  %v11217_v29 = vadd.f32 %v6644_v13, %v6592_v57  ;;  %v9036_v61 = vcombine.low %v356_v9, %v364_v11  ;;  %v68_v57 = vld [vmem:[%s13716_s1 + $0x118] sm:$0xff] }
 0x191   :  { %v11219_v59 = vpop.f32.mrf.mxu1  ;;  %7034 = vmatprep.subr.bf16.mxu1 %v9053_v5  ;;  %6914 = vmatmul.mubr.bf16.gmra.mxu0 %v10319_v23  ;;  %v6597_v41 = vpop.f32.mrf.mxu0  ;;  %v76_v13 = vld [vmem:[%s13716_s1 + $0x158] sm:$0xff] }
 0x192   :  { %6982 = vmatpush1.bf16.msra.mxu0 %v8796_v17  ;;  %v6598_v50 = vadd.f32 %v6597_v41, %v11173_v26  ;;  %7009 = vmatprep.mubr.bf16.mxu0 %v9874_v58  ;;  %v324_v9 = vld [vmem:[%s13716_s1 + $0x918] sm:$0xff]  ;;  %v8749_v41 = vcombine.high %v68_v57, %v76_v13 }
 0x193   :  { %6967 = vmatmul.mubr.bf16.gmra.mxu1 %v10328_v55  ;;  %v6650_v51 = vpop.f32.mrf.mxu1  ;;  %6983 = vmatprep.subr.bf16.mxu0 %v8781_v6  ;;  %v11236_v5 = vpop.f32.mrf.mxu0  ;;  %v332_v11 = vld [vmem:[%s13716_s1 + $0x958] sm:$0xff] }
 0x194   :  { %7035 = vmatpush1.bf16.msra.mxu1 %v9052_v24  ;;  %v11244_v40 = vadd.f32 %v6650_v51, %v6598_v50  ;;  %7062 = vmatprep.mubr.bf16.mxu1 %v9894_v63  ;;  %v8764_v24 = vcombine.low %v84_v37, %v92_v14  ;;  %v9005_v51 = vcombine.high %v324_v9, %v332_v11  ;;  %v316_v37 = vld [vmem:[%s13716_s1 + $0x8d8] sm:$0xff] }
 0x195   :  { %7036 = vmatprep.subr.bf16.mxu1 %v9037_v36  ;;  %v11246_v60 = vpop.f32.mrf.mxu1  ;;  %v6601_v17 = vpop.f32.mrf.mxu0  ;;  %v9020_v36 = vcombine.low %v340_v22, %v348_v39  ;;  %v8748_v14 = vcombine.low %v68_v57, %v76_v13  ;;  %v9004_v22 = vcombine.low %v324_v9, %v332_v11  ;;  %v8733_v39 = vcombine.high %v52_v53, %v60_v54  ;;  %v300_v57 = vld [vmem:[%s13716_s1 + $0x858] sm:$0xff] }
 0x196   :  { %6984 = vmatpush1.bf16.msra.mxu0 %v8780_v49  ;;  %v6602_v6 = vadd.f32 %v6601_v17, %v11173_v26  ;;  %v308_v26 = vld [vmem:[%s13716_s1 + $0x898] sm:$0xff]  ;;  %v8732_v13 = vcombine.low %v52_v53, %v60_v54 }
 0x197   :  { %6985 = vmatprep.subr.bf16.mxu0 %v8765_v0  ;;  %v6654_v50 = vpop.f32.mrf.mxu1  ;;  %v8989_v49 = vcombine.high %v308_v26, %v316_v37  ;;  %v44_v0 = vld [vmem:[%s13716_s1 + $0x58] sm:$0xff]  ;;  %v8988_v9 = vcombine.low %v308_v26, %v316_v37 }
 0x198   :  { %7037 = vmatpush1.bf16.msra.mxu1 %v9036_v61  ;;  %v11263_v19 = vadd.f32 %v6654_v50, %v6602_v6  ;;  %v36_v61 = vld [vmem:[%s13716_s1 + $0x18] sm:$0xff] }
 0x199   :  { %7038 = vmatprep.subr.bf16.mxu1 %v9021_v8  ;;  %v292_v8 = vld [vmem:[%s13716_s1 + $0x818] sm:$0xff]  ;;  %v8717_v11 = vcombine.high %v36_v61, %v44_v0  ;;  %v8716_v53 = vcombine.low %v36_v61, %v44_v0 }
 0x19a   :  { %6986 = vmatpush1.bf16.msra.mxu0 %v8764_v24  ;;  %v8973_v17 = vcombine.high %v292_v8, %v300_v57  ;;  %v276_v24 = vld [vmem:[%s13716_s1 + $0x798] sm:$0xff] }
 0x19b   :  { %6987 = vmatprep.subr.bf16.mxu0 %v8749_v41  ;;  %v284_v6 = vld [vmem:[%s13716_s1 + $0x7d8] sm:$0xff]  ;;  %v8972_v41 = vcombine.low %v292_v8, %v300_v57 }
 0x19c   :  { %7039 = vmatpush1.bf16.msra.mxu1 %v9020_v36  ;;  %v532_v36 = vld [vmem:[%s13716_s1 + $0xf98] sm:$0xff]  ;;  %v8957_v50 = vcombine.high %v276_v24, %v284_v6 }
 0x19d   :  { %7040 = vmatprep.subr.bf16.mxu1 %v9005_v51  ;;  %v540_v54 = vld [vmem:[%s13716_s1 + $0xfd8] sm:$0xff] }
 0x19e   :  { %6988 = vmatpush1.bf16.msra.mxu0 %v8748_v14  ;;  %v9213_v51 = vcombine.high %v532_v36, %v540_v54  ;;  %v260_v26 = vld [vmem:[%s13716_s1 + $0x718] sm:$0xff] }
 0x19f   :  { %6989 = vmatprep.subr.bf16.mxu0 %v8733_v39  ;;  %v268_v37 = vld [vmem:[%s13716_s1 + $0x758] sm:$0xff]  ;;  %v8956_v39 = vcombine.low %v276_v24, %v284_v6 }
 0x1a0   :  { %7041 = vmatpush1.bf16.msra.mxu1 %v9004_v22  ;;  %v516_v14 = vld [vmem:[%s13716_s1 + $0xf18] sm:$0xff]  ;;  %v8941_v61 = vcombine.high %v260_v26, %v268_v37 }
 0x1a1   :  { %7042 = vmatprep.subr.bf16.mxu1 %v8989_v49  ;;  %v524_v22 = vld [vmem:[%s13716_s1 + $0xf58] sm:$0xff]  ;;  %v9212_v49 = vcombine.low %v532_v36, %v540_v54 }
 0x1a2   :  { %6990 = vmatpush1.bf16.msra.mxu0 %v8732_v13  ;;  %v9197_v0 = vcombine.high %v516_v14, %v524_v22  ;;  %v244_v8 = vld [vmem:[%s13716_s1 + $0x698] sm:$0xff] }
 0x1a3   :  { %6991 = vmatprep.subr.bf16.mxu0 %v8717_v11  ;;  %v252_v57 = vld [vmem:[%s13716_s1 + $0x6d8] sm:$0xff]  ;;  %v8940_v11 = vcombine.low %v260_v26, %v268_v37 }
 0x1a4   :  { %7043 = vmatpush1.bf16.msra.mxu1 %v8988_v9  ;;  %v500_v13 = vld [vmem:[%s13716_s1 + $0xe98] sm:$0xff]  ;;  %v8925_v24 = vcombine.high %v244_v8, %v252_v57 }
 0x1a5   :  { %7044 = vmatprep.subr.bf16.mxu1 %v8973_v17  ;;  %v508_v9 = vld [vmem:[%s13716_s1 + $0xed8] sm:$0xff]  ;;  %v9196_v17 = vcombine.low %v516_v14, %v524_v22 }
 0x1a6   :  { %6992 = vmatpush1.bf16.msra.mxu0 %v8716_v53  ;;  %v9181_v6 = vcombine.high %v500_v13, %v508_v9  ;;  %v228_v36 = vld [vmem:[%s13716_s1 + $0x618] sm:$0xff] }
 0x1a7   :  { %6993 = vmatprep.subr.bf16.mxu0 %v8957_v50  ;;  %v236_v54 = vld [vmem:[%s13716_s1 + $0x658] sm:$0xff]  ;;  %v8924_v50 = vcombine.low %v244_v8, %v252_v57 }
 0x1a8   :  { %7045 = vmatpush1.bf16.msra.mxu1 %v8972_v41  ;;  %v484_v53 = vld [vmem:[%s13716_s1 + $0xe18] sm:$0xff]  ;;  %v8909_v26 = vcombine.high %v228_v36, %v236_v54 }
 0x1a9   :  { %7046 = vmatprep.subr.bf16.mxu1 %v9213_v51  ;;  %v492_v41 = vld [vmem:[%s13716_s1 + $0xe58] sm:$0xff]  ;;  %v9180_v51 = vcombine.low %v500_v13, %v508_v9 }
 0x1aa   :  { %6994 = vmatpush2.bf16.msra.mxu0 %v8956_v39  ;;  %v9165_v37 = vcombine.high %v484_v53, %v492_v41  ;;  %v212_v14 = vld [vmem:[%s13716_s1 + $0x598] sm:$0xff] }
 0x1ab   :  { %6995 = vmatprep.subr.bf16.mxu0 %v8941_v61  ;;  %v220_v22 = vld [vmem:[%s13716_s1 + $0x5d8] sm:$0xff]  ;;  %v8908_v61 = vcombine.low %v228_v36, %v236_v54 }
 0x1ac   :  { %7047 = vmatpush2.bf16.msra.mxu1 %v9212_v49  ;;  %v468_v39 = vld [vmem:[%s13716_s1 + $0xd98] sm:$0xff]  ;;  %v8893_v8 = vcombine.high %v212_v14, %v220_v22 }
 0x1ad   :  { %7048 = vmatprep.subr.bf16.mxu1 %v9197_v0  ;;  %v476_v49 = vld [vmem:[%s13716_s1 + $0xdd8] sm:$0xff]  ;;  %v9164_v0 = vcombine.low %v484_v53, %v492_v41 }
 0x1ae   :  { %6996 = vmatpush2.bf16.msra.mxu0 %v8940_v11  ;;  %v9149_v57 = vcombine.high %v468_v39, %v476_v49  ;;  %v196_v13 = vld [vmem:[%s13716_s1 + $0x518] sm:$0xff] }
 0x1af   :  { %6997 = vmatprep.subr.bf16.mxu0 %v8925_v24  ;;  %v204_v9 = vld [vmem:[%s13716_s1 + $0x558] sm:$0xff]  ;;  %v8892_v24 = vcombine.low %v212_v14, %v220_v22 }
 0x1b0   :  { %7049 = vmatpush2.bf16.msra.mxu1 %v9196_v17  ;;  %v452_v11 = vld [vmem:[%s13716_s1 + $0xd18] sm:$0xff]  ;;  %v8877_v36 = vcombine.high %v196_v13, %v204_v9 }
 0x1b1   :  { %7050 = vmatprep.subr.bf16.mxu1 %v9181_v6  ;;  %v460_v17 = vld [vmem:[%s13716_s1 + $0xd58] sm:$0xff]  ;;  %v9148_v6 = vcombine.low %v468_v39, %v476_v49 }
 0x1b2   :  { %6998 = vmatpush2.bf16.msra.mxu0 %v8924_v50  ;;  %v9133_v54 = vcombine.high %v452_v11, %v460_v17  ;;  %v180_v53 = vld [vmem:[%s13716_s1 + $0x498] sm:$0xff] }
 0x1b3   :  { %6999 = vmatprep.subr.bf16.mxu0 %v8909_v26  ;;  %v188_v41 = vld [vmem:[%s13716_s1 + $0x4d8] sm:$0xff]  ;;  %v8876_v26 = vcombine.low %v196_v13, %v204_v9 }
 0x1b4   :  { %7051 = vmatpush2.bf16.msra.mxu1 %v9180_v51  ;;  %v436_v50 = vld [vmem:[%s13716_s1 + $0xc98] sm:$0xff]  ;;  %v8861_v14 = vcombine.high %v180_v53, %v188_v41 }
 0x1b5   :  { %7052 = vmatprep.subr.bf16.mxu1 %v9165_v37  ;;  %v444_v51 = vld [vmem:[%s13716_s1 + $0xcd8] sm:$0xff]  ;;  %v9132_v37 = vcombine.low %v452_v11, %v460_v17 }
 0x1b6   :  { %7000 = vmatpush2.bf16.msra.mxu0 %v8908_v61  ;;  %v9117_v22 = vcombine.high %v436_v50, %v444_v51  ;;  %v164_v39 = vld [vmem:[%s13716_s1 + $0x418] sm:$0xff]  ;;  %v9116_v13 = vcombine.low %v436_v50, %v444_v51 }
 0x1b7   :  { %7001 = vmatprep.subr.bf16.mxu0 %v8893_v8  ;;  %v172_v49 = vld [vmem:[%s13716_s1 + $0x458] sm:$0xff]  ;;  %v13724_v8 = vsub.s32 3, %v10678_v10 }
 0x1b8   :  { %7053 = vmatpush2.bf16.msra.mxu1 %v9164_v0  ;;  %v420_v61 = vld [vmem:[%s13716_s1 + $0xc18] sm:$0xff]  ;;  %v8845_v9 = vcombine.high %v164_v39, %v172_v49 }
 0x1b9   :  { %7054 = vmatprep.subr.bf16.mxu1 %v9149_v57  ;;  %v428_v0 = vld [vmem:[%s13716_s1 + $0xc58] sm:$0xff]  ;;  %v8860_v57 = vcombine.low %v180_v53, %v188_v41  ;;  %v8844_v41 = vcombine.low %v164_v39, %v172_v49 }
 0x1ba   :  { %7002 = vmatpush2.bf16.msra.mxu0 %v8892_v24  ;;  %v9101_v11 = vcombine.high %v420_v61, %v428_v0  ;;  %v660_v17 = vld [vmem:[%s13716_s1 + $0x1398] sm:$0xff]  ;;  %v9100_v50 = vcombine.low %v420_v61, %v428_v0  ;;  %v11416_v0 = vpop.f32.mrf.mxu0 }
 0x1bb   :  { %7003 = vmatprep.subr.bf16.mxu0 %v8877_v36  ;;  %v668_v24 = vld [vmem:[%s13716_s1 + $0x13d8] sm:$0xff] }
 0x1bc   :  { %7055 = vmatpush2.bf16.msra.mxu1 %v9148_v6  ;;  %v916_v6 = vld [vmem:[%s13716_s1 + $0x1b98] sm:$0xff]  ;;  %v9341_v51 = vcombine.high %v660_v17, %v668_v24  ;;  %v9340_v61 = vcombine.low %v660_v17, %v668_v24 }
 0x1bd   :  { %7056 = vmatprep.subr.bf16.mxu1 %v9133_v54  ;;  %v924_v36 = vld [vmem:[%s13716_s1 + $0x1bd8] sm:$0xff]  ;;  %v11395_v54 = vld [vmem:[%s13718_s2] sm:$0xff] }
 0x1be   :  { %7004 = vmatpush2.bf16.msra.mxu0 %v8876_v26  ;;  %v11400_v53 = vrot.slane %v11395_v54, %v13724_v8  ;;  %v9597_v26 = vcombine.high %v916_v6, %v924_v36  ;;  %v908_v39 = vld [vmem:[%s13716_s1 + $0x1b58] sm:$0xff] }
 0x1bf   :  { %7005 = vmatprep.subr.bf16.mxu0 %v8861_v14  ;;  %v652_v14 = vld [vmem:[%s13716_s1 + $0x1358] sm:$0xff] }
 0x1c0   :  { %7057 = vmatpush2.bf16.msra.mxu1 %v9132_v37  ;;  %v644_v37 = vld [vmem:[%s13716_s1 + $0x1318] sm:$0xff]  ;;  %v6590_v49 = vadd.f32 %v11194_v52, %v11400_v53 }
 0x1c1   :  { %7058 = vmatprep.subr.bf16.mxu1 %v9117_v22  ;;  %v900_v22 = vld [vmem:[%s13716_s1 + $0x1b18] sm:$0xff]  ;;  %v9324_v17 = vcombine.low %v644_v37, %v652_v14 }
 0x1c2   :  { %7006 = vmatpush2.bf16.msra.mxu0 %v8860_v57  ;;  %v9596_v57 = vcombine.low %v916_v6, %v924_v36  ;;  %v628_v8 = vld [vmem:[%s13716_s1 + $0x1298] sm:$0xff]  ;;  %v6643_v36 = vadd.f32 %v11198_v4, %v6590_v49 }
 0x1c3   :  { %7007 = vmatprep.subr.bf16.mxu0 %v8845_v9  ;;  %v11418_v9 = vpop.f32.mrf.mxu1  ;;  %v636_v52 = vld [vmem:[%s13716_s1 + $0x12d8] sm:$0xff] }
 0x1c4   :  { %7059 = vmatpush2.bf16.msra.mxu1 %v9116_v13  ;;  %v9325_v13 = vcombine.high %v644_v37, %v652_v14  ;;  %v884_v24 = vld [vmem:[%s13716_s1 + $0x1a98] sm:$0xff]  ;;  %v9580_v14 = vcombine.low %v900_v22, %v908_v39  ;;  %v9309_v44 = vcombine.high %v628_v8, %v636_v52 }
 0x1c5   :  { %7060 = vmatprep.subr.bf16.mxu1 %v9101_v11  ;;  %v9581_v11 = vcombine.high %v900_v22, %v908_v39  ;;  %v892_v6 = vld [vmem:[%s13716_s1 + $0x1ad8] sm:$0xff]  ;;  %v6600_v22 = vadd.f32 %v11236_v5, %v11400_v53  ;;  %v9308_v5 = vcombine.low %v628_v8, %v636_v52 }
 0x1c6   :  { %7008 = vmatpush2.bf16.msra.mxu0 %v8844_v41  ;;  %v9565_v4 = vcombine.high %v884_v24, %v892_v6  ;;  %v868_v49 = vld [vmem:[%s13716_s1 + $0x1a18] sm:$0xff] }
 0x1c7   :  { %7083 = vmatprep.subr.bf16.mxu0 %v9341_v51  ;;  %v852_v8 = vld [vmem:[%s13716_s1 + $0x1998] sm:$0xff] }
 0x1c8   :  { %7061 = vmatpush2.bf16.msra.mxu1 %v9100_v50  ;;  %v6594_v50 = vadd.f32 %v11215_v18, %v11400_v53  ;;  %v612_v18 = vld [vmem:[%s13716_s1 + $0x1218] sm:$0xff] }
 0x1c9   :  { %7136 = vmatprep.subr.bf16.mxu1 %v9597_v26  ;;  %v6693_v41 = vpop.f32.mrf.mxu0  ;;  %7010 = vmatmul.mubr.bf16.vlgmr.msra.gmra.mxu0 %v10017_v21  ;;  %v860_v52 = vld [vmem:[%s13716_s1 + $0x19d8] sm:$0xff] }
 0x1ca   :  { %v6694_v51 = vadd.f32 %v6693_v41, %v11196_v1  ;;  %7084 = vmatpush1.bf16.msra.mxu0 %v9340_v61  ;;  %v620_v1 = vld [vmem:[%s13716_s1 + $0x1258] sm:$0xff]  ;;  %7019 = vmatprep.mubr.bf16.mxu0 %v10044_v30 }
 0x1cb   :  { %v6746_v26 = vpop.f32.mrf.mxu1  ;;  %7063 = vmatmul.mubr.bf16.vlgmr.msra.gmra.mxu1 %v10030_v25  ;;  %v6695_v37 = vpop.f32.mrf.mxu0  ;;  %7085 = vmatprep.subr.bf16.mxu0 %v9325_v13  ;;  %v876_v61 = vld [vmem:[%s13716_s1 + $0x1a58] sm:$0xff] }
 0x1cc   :  { %7137 = vmatpush1.bf16.msra.mxu1 %v9596_v57  ;;  %v11438_v20 = vadd.f32 %v6746_v26, %v6694_v51  ;;  %v6696_v31 = vadd.f32 %v6695_v37, %v6643_v36  ;;  %7072 = vmatprep.mubr.bf16.mxu1 %v10053_v33  ;;  %v6647_v57 = vadd.f32 %v11219_v59, %v6594_v50 }
 0x1cd   :  { %v6748_v2 = vpop.f32.mrf.mxu1  ;;  %7138 = vmatprep.subr.bf16.mxu1 %v9581_v11  ;;  %v6697_v39 = vpop.f32.mrf.mxu0  ;;  %v9564_v51 = vcombine.low %v884_v24, %v892_v6  ;;  %v9293_v26 = vcombine.high %v612_v18, %v620_v1  ;;  %v9549_v43 = vcombine.high %v868_v49, %v876_v61 }
 0x1ce   :  { %13745 = vst [vmem:[#allocation10_spill] sm:$0xff] %v11438_v20  ;;  %v11457_v13 = vadd.f32 %v6748_v2, %v6696_v31  ;;  %v6698_v11 = vadd.f32 %v6697_v39, %v11217_v29  ;;  %7086 = vmatpush1.bf16.msra.mxu0 %v9324_v17  ;;  %v596_v31 = vld [vmem:[%s13716_s1 + $0x1198] sm:$0xff]  ;;  %v6653_v29 = vadd.f32 %v11246_v60, %v6600_v22 }
 0x1cf   :  { %v6750_v41 = vpop.f32.mrf.mxu1  ;;  %v6699_v36 = vpop.f32.mrf.mxu0  ;;  %7087 = vmatprep.subr.bf16.mxu0 %v9309_v44  ;;  %v604_v2 = vld [vmem:[%s13716_s1 + $0x11d8] sm:$0xff]  ;;  %v9292_v44 = vcombine.low %v612_v18, %v620_v1  ;;  %v6604_v17 = vadd.f32 %v11416_v0, %v11400_v53  ;;  %v9533_v39 = vcombine.high %v852_v8, %v860_v52 }
 0x1d0   :  { %13746 = vst [vmem:[#allocation11_spill] sm:$0xff] %v11457_v13  ;;  %7139 = vmatpush1.bf16.msra.mxu1 %v9580_v14  ;;  %v11460_v37 = vadd.f32 %v6750_v41, %v6698_v11  ;;  %v6700_v20 = vadd.f32 %v6699_v36, %v6647_v57  ;;  %v9548_v14 = vcombine.low %v868_v49, %v876_v61  ;;  %v836_v53 = vld [vmem:[%s13716_s1 + $0x1918] sm:$0xff] }
 0x1d1   :  { %v6752_v48 = vpop.f32.mrf.mxu1  ;;  %7140 = vmatprep.subr.bf16.mxu1 %v9565_v4  ;;  %v6703_v59 = vpop.f32.mrf.mxu0  ;;  %7020 = vmatmul.mubr.bf16.gmra.mxu0 %v10069_v42  ;;  %v9277_v4 = vcombine.high %v596_v31, %v604_v2  ;;  %v6657_v0 = vadd.f32 %v11418_v9, %v6604_v17  ;;  %v9276_v11 = vcombine.low %v596_v31, %v604_v2  ;;  %v572_v9 = vld [vmem:[%s13716_s1 + $0x10d8] sm:$0xff] }
 0x1d2   :  { %13747 = vst [vmem:[#allocation12_spill] sm:$0xff] %v11460_v37  ;;  %v11478_v24 = vadd.f32 %v6752_v48, %v6700_v20  ;;  %v6704_v6 = vadd.f32 %v6703_v59, %v11244_v40  ;;  %7088 = vmatpush1.bf16.msra.mxu0 %v9308_v5  ;;  %v580_v20 = vld [vmem:[%s13716_s1 + $0x1118] sm:$0xff]  ;;  %7115 = vmatprep.mubr.bf16.mxu0 %v10102_v56 }
 0x1d3   :  { %v6756_v60 = vpop.f32.mrf.mxu1  ;;  %7073 = vmatmul.mubr.bf16.gmra.mxu1 %v10082_v46  ;;  %v6705_v50 = vpop.f32.mrf.mxu0  ;;  %7089 = vmatprep.subr.bf16.mxu0 %v9293_v26  ;;  %v588_v48 = vld [vmem:[%s13716_s1 + $0x1158] sm:$0xff]  ;;  %v9532_v5 = vcombine.low %v852_v8, %v860_v52 }
 0x1d4   :  { %7141 = vmatpush1.bf16.msra.mxu1 %v9564_v51  ;;  %v6706_v18 = vadd.f32 %v6705_v50, %v6653_v29  ;;  %v11482_v1 = vadd.f32 %v6756_v60, %v6704_v6  ;;  %7168 = vmatprep.mubr.bf16.mxu1 %v10113_v62  ;;  %v9261_v36 = vcombine.high %v580_v20, %v588_v48  ;;  %v820_v31 = vld [vmem:[%s13716_s1 + $0x1898] sm:$0xff] }
 0x1d5   :  { %v6758_v22 = vpop.f32.mrf.mxu1  ;;  %7142 = vmatprep.subr.bf16.mxu1 %v9549_v43  ;;  %v6707_v40 = vpop.f32.mrf.mxu0  ;;  %v844_v43 = vld [vmem:[%s13716_s1 + $0x1958] sm:$0xff]  ;;  %v9260_v8 = vcombine.low %v580_v20, %v588_v48 }
 0x1d6   :  { %v6708_v49 = vadd.f32 %v6707_v40, %v11263_v19  ;;  %v11500_v61 = vadd.f32 %v6758_v22, %v6706_v18  ;;  %7090 = vmatpush1.bf16.msra.mxu0 %v9292_v44  ;;  %v9517_v59 = vcombine.high %v836_v53, %v844_v43  ;;  %v564_v19 = vld [vmem:[%s13716_s1 + $0x1098] sm:$0xff]  ;;  %v9516_v52 = vcombine.low %v836_v53, %v844_v43 }
 0x1d7   :  { %v6760_v57 = vpop.f32.mrf.mxu1  ;;  %v6709_v41 = vpop.f32.mrf.mxu0  ;;  %7091 = vmatprep.subr.bf16.mxu0 %v9277_v4  ;;  %v828_v2 = vld [vmem:[%s13716_s1 + $0x18d8] sm:$0xff]  ;;  %v9245_v17 = vcombine.high %v564_v19, %v572_v9  ;;  %v9244_v18 = vcombine.low %v564_v19, %v572_v9 }
 0x1d8   :  { %7143 = vmatpush1.bf16.msra.mxu1 %v9548_v14  ;;  %v6710_v51 = vadd.f32 %v6709_v41, %v6657_v0  ;;  %v11502_v26 = vadd.f32 %v6760_v57, %v6708_v49  ;;  %v9501_v6 = vcombine.high %v820_v31, %v828_v2  ;;  %v548_v60 = vld [vmem:[%s13716_s1 + $0x1018] sm:$0xff]  ;;  %v9500_v22 = vcombine.low %v820_v31, %v828_v2 }
 0x1d9   :  { %v6762_v29 = vpop.f32.mrf.mxu1  ;;  %7144 = vmatprep.subr.bf16.mxu1 %v9533_v39  ;;  %v556_v50 = vld [vmem:[%s13716_s1 + $0x1058] sm:$0xff] }
 0x1da   :  { %v11516_v44 = vadd.f32 %v6762_v29, %v6710_v51  ;;  %7092 = vmatpush1.bf16.msra.mxu0 %v9276_v11  ;;  %v804_v14 = vld [vmem:[%s13716_s1 + $0x1818] sm:$0xff]  ;;  %v9229_v39 = vcombine.high %v548_v60, %v556_v50  ;;  %v9228_v0 = vcombine.low %v548_v60, %v556_v50 }
 0x1db   :  { %7093 = vmatprep.subr.bf16.mxu0 %v9261_v36  ;;  %v812_v4 = vld [vmem:[%s13716_s1 + $0x1858] sm:$0xff] }
 0x1dc   :  { %7145 = vmatpush1.bf16.msra.mxu1 %v9532_v5  ;;  %v9485_v20 = vcombine.high %v804_v14, %v812_v4  ;;  %v788_v48 = vld [vmem:[%s13716_s1 + $0x1798] sm:$0xff]  ;;  %v9484_v49 = vcombine.low %v804_v14, %v812_v4 }
 0x1dd   :  { %7146 = vmatprep.subr.bf16.mxu1 %v9517_v59  ;;  %v796_v40 = vld [vmem:[%s13716_s1 + $0x17d8] sm:$0xff] }
 0x1de   :  { %7094 = vmatpush1.bf16.msra.mxu0 %v9260_v8  ;;  %v1044_v53 = vld [vmem:[%s13716_s1 + $0x1f98] sm:$0xff]  ;;  %v9469_v57 = vcombine.high %v788_v48, %v796_v40  ;;  %v9468_v29 = vcombine.low %v788_v48, %v796_v40 }
 0x1df   :  { %7095 = vmatprep.subr.bf16.mxu0 %v9245_v17  ;;  %v1052_v43 = vld [vmem:[%s13716_s1 + $0x1fd8] sm:$0xff] }
 0x1e0   :  { %7147 = vmatpush1.bf16.msra.mxu1 %v9516_v52  ;;  %v9725_v11 = vcombine.high %v1044_v53, %v1052_v43  ;;  %v772_v41 = vld [vmem:[%s13716_s1 + $0x1718] sm:$0xff]  ;;  %v9724_v59 = vcombine.low %v1044_v53, %v1052_v43 }
 0x1e1   :  { %7148 = vmatprep.subr.bf16.mxu1 %v9501_v6  ;;  %v780_v5 = vld [vmem:[%s13716_s1 + $0x1758] sm:$0xff] }
 0x1e2   :  { %7096 = vmatpush1.bf16.msra.mxu0 %v9244_v18  ;;  %v1028_v36 = vld [vmem:[%s13716_s1 + $0x1f18] sm:$0xff]  ;;  %v9453_v19 = vcombine.high %v772_v41, %v780_v5  ;;  %v9452_v17 = vcombine.low %v772_v41, %v780_v5 }
 0x1e3   :  { %7097 = vmatprep.subr.bf16.mxu0 %v9229_v39  ;;  %v1036_v51 = vld [vmem:[%s13716_s1 + $0x1f58] sm:$0xff] }
 0x1e4   :  { %7149 = vmatpush1.bf16.msra.mxu1 %v9500_v22  ;;  %v9709_v9 = vcombine.high %v1028_v36, %v1036_v51  ;;  %v756_v31 = vld [vmem:[%s13716_s1 + $0x1698] sm:$0xff]  ;;  %v9708_v6 = vcombine.low %v1028_v36, %v1036_v51 }
 0x1e5   :  { %7150 = vmatprep.subr.bf16.mxu1 %v9485_v20  ;;  %v764_v2 = vld [vmem:[%s13716_s1 + $0x16d8] sm:$0xff] }
 0x1e6   :  { %7098 = vmatpush1.bf16.msra.mxu0 %v9228_v0  ;;  %v1012_v8 = vld [vmem:[%s13716_s1 + $0x1e98] sm:$0xff]  ;;  %v9437_v60 = vcombine.high %v756_v31, %v764_v2  ;;  %v9436_v39 = vcombine.low %v756_v31, %v764_v2 }
 0x1e7   :  { %7099 = vmatprep.subr.bf16.mxu0 %v9469_v57  ;;  %v1020_v52 = vld [vmem:[%s13716_s1 + $0x1ed8] sm:$0xff] }
 0x1e8   :  { %7151 = vmatpush1.bf16.msra.mxu1 %v9484_v49  ;;  %v9693_v50 = vcombine.high %v1012_v8, %v1020_v52  ;;  %v740_v14 = vld [vmem:[%s13716_s1 + $0x1618] sm:$0xff]  ;;  %v9692_v20 = vcombine.low %v1012_v8, %v1020_v52 }
 0x1e9   :  { %7152 = vmatprep.subr.bf16.mxu1 %v9725_v11  ;;  %v748_v4 = vld [vmem:[%s13716_s1 + $0x1658] sm:$0xff] }
 0x1ea   :  { %7100 = vmatpush2.bf16.msra.mxu0 %v9468_v29  ;;  %v996_v18 = vld [vmem:[%s13716_s1 + $0x1e18] sm:$0xff]  ;;  %v9421_v48 = vcombine.high %v740_v14, %v748_v4  ;;  %v9420_v57 = vcombine.low %v740_v14, %v748_v4 }
 0x1eb   :  { %7101 = vmatprep.subr.bf16.mxu0 %v9453_v19  ;;  %v1004_v22 = vld [vmem:[%s13716_s1 + $0x1e58] sm:$0xff] }
 0x1ec   :  { %7153 = vmatpush2.bf16.msra.mxu1 %v9724_v59  ;;  %v9677_v40 = vcombine.high %v996_v18, %v1004_v22  ;;  %v724_v53 = vld [vmem:[%s13716_s1 + $0x1598] sm:$0xff]  ;;  %v9676_v11 = vcombine.low %v996_v18, %v1004_v22 }
 0x1ed   :  { %7154 = vmatprep.subr.bf16.mxu1 %v9709_v9  ;;  %v732_v43 = vld [vmem:[%s13716_s1 + $0x15d8] sm:$0xff] }
 0x1ee   :  { %7102 = vmatpush2.bf16.msra.mxu0 %v9452_v17  ;;  %v980_v0 = vld [vmem:[%s13716_s1 + $0x1d98] sm:$0xff]  ;;  %v9405_v41 = vcombine.high %v724_v53, %v732_v43  ;;  %v9404_v19 = vcombine.low %v724_v53, %v732_v43 }
 0x1ef   :  { %7103 = vmatprep.subr.bf16.mxu0 %v9437_v60  ;;  %v988_v49 = vld [vmem:[%s13716_s1 + $0x1dd8] sm:$0xff] }
 0x1f0   :  { %7155 = vmatpush2.bf16.msra.mxu1 %v9708_v6  ;;  %v9661_v5 = vcombine.high %v980_v0, %v988_v49  ;;  %v708_v36 = vld [vmem:[%s13716_s1 + $0x1518] sm:$0xff]  ;;  %v9660_v9 = vcombine.low %v980_v0, %v988_v49  ;;  %v149_v0 = vld [vmem:[%s13716_s1 + $0x3a0] sm:$0xff] }
 0x1f1   :  { %7156 = vmatprep.subr.bf16.mxu1 %v9693_v50  ;;  %v716_v51 = vld [vmem:[%s13716_s1 + $0x1558] sm:$0xff]  ;;  %v157_v49 = vld [vmem:[%s13716_s1 + $0x3e0] sm:$0xff] }
 0x1f2   :  { %7104 = vmatpush2.bf16.msra.mxu0 %v9436_v39  ;;  %v964_v29 = vld [vmem:[%s13716_s1 + $0x1d18] sm:$0xff]  ;;  %v9389_v31 = vcombine.high %v708_v36, %v716_v51  ;;  %v9388_v60 = vcombine.low %v708_v36, %v716_v51  ;;  %v8831_v51 = vcombine.high %v149_v0, %v157_v49 }
 0x1f3   :  { %7105 = vmatprep.subr.bf16.mxu0 %v9421_v48  ;;  %v972_v59 = vld [vmem:[%s13716_s1 + $0x1d58] sm:$0xff] }
 0x1f4   :  { %7157 = vmatpush2.bf16.msra.mxu1 %v9692_v20  ;;  %v9645_v2 = vcombine.high %v964_v29, %v972_v59  ;;  %v692_v8 = vld [vmem:[%s13716_s1 + $0x1498] sm:$0xff]  ;;  %v9644_v50 = vcombine.low %v964_v29, %v972_v59  ;;  %v13725_v59 = vsub.s32 5, %v10678_v10 }
 0x1f5   :  { %7158 = vmatprep.subr.bf16.mxu1 %v9677_v40  ;;  %v700_v52 = vld [vmem:[%s13716_s1 + $0x14d8] sm:$0xff] }
 0x1f6   :  { %7106 = vmatpush2.bf16.msra.mxu0 %v9420_v57  ;;  %v948_v17 = vld [vmem:[%s13716_s1 + $0x1c98] sm:$0xff]  ;;  %v9373_v14 = vcombine.high %v692_v8, %v700_v52  ;;  %v9372_v48 = vcombine.low %v692_v8, %v700_v52  ;;  %v405_v57 = vld [vmem:[%s13716_s1 + $0xba0] sm:$0xff]  ;;  %v8830_v52 = vcombine.low %v149_v0, %v157_v49 }
 0x1f7   :  { %7107 = vmatprep.subr.bf16.mxu0 %v9405_v41  ;;  %v956_v6 = vld [vmem:[%s13716_s1 + $0x1cd8] sm:$0xff] }
 0x1f8   :  { %7159 = vmatpush2.bf16.msra.mxu1 %v9676_v11  ;;  %v9629_v4 = vcombine.high %v948_v17, %v956_v6  ;;  %v676_v18 = vld [vmem:[%s13716_s1 + $0x1418] sm:$0xff]  ;;  %v9628_v40 = vcombine.low %v948_v17, %v956_v6  ;;  %v413_v11 = vld [vmem:[%s13716_s1 + $0xbe0] sm:$0xff] }
 0x1f9   :  { %7160 = vmatprep.subr.bf16.mxu1 %v9661_v5  ;;  %v684_v22 = vld [vmem:[%s13716_s1 + $0x1458] sm:$0xff]  ;;  %v13726_v5 = vsub.s32 4, %v10678_v10  ;;  %v9087_v29 = vcombine.high %v405_v57, %v413_v11  ;;  %v9086_v17 = vcombine.low %v405_v57, %v413_v11 }
 0x1fa   :  { %7108 = vmatpush2.bf16.msra.mxu0 %v9404_v19  ;;  %v932_v39 = vld [vmem:[%s13716_s1 + $0x1c18] sm:$0xff]  ;;  %v9357_v53 = vcombine.high %v676_v18, %v684_v22  ;;  %v9356_v41 = vcombine.low %v676_v18, %v684_v22  ;;  %v133_v19 = vld [vmem:[%s13716_s1 + $0x320] sm:$0xff] }
 0x1fb   :  { %7109 = vmatprep.subr.bf16.mxu0 %v9389_v31  ;;  %v940_v20 = vld [vmem:[%s13716_s1 + $0x1c58] sm:$0xff]  ;;  %v389_v31 = vld [vmem:[%s13716_s1 + $0xb20] sm:$0xff]  ;;  %v11655_v8 = vrot.slane %v11395_v54, %v13726_v5 }
 0x1fc   :  { %7161 = vmatpush2.bf16.msra.mxu1 %v9660_v9  ;;  %v9613_v43 = vcombine.high %v932_v39, %v940_v20  ;;  %v9612_v36 = vcombine.low %v932_v39, %v940_v20  ;;  %v141_v9 = vld [vmem:[%s13716_s1 + $0x360] sm:$0xff] }
 0x1fd   :  { %7162 = vmatprep.subr.bf16.mxu1 %v9645_v2  ;;  %v397_v2 = vld [vmem:[%s13716_s1 + $0xb60] sm:$0xff]  ;;  %v8815_v6 = vcombine.high %v133_v19, %v141_v9 }
 0x1fe   :  { %7110 = vmatpush2.bf16.msra.mxu0 %v9388_v60  ;;  %v11660_v60 = vrot.slane %v11395_v54, %v13725_v59  ;;  %v373_v22 = vld [vmem:[%s13716_s1 + $0xaa0] sm:$0xff] }
 0x1ff   :  { %7111 = vmatprep.subr.bf16.mxu0 %v9373_v14  ;;  %v117_v14 = vld [vmem:[%s13716_s1 + $0x2a0] sm:$0xff] }
 0x200   :  { %7163 = vmatpush2.bf16.msra.mxu1 %v9644_v50  ;;  %v9071_v50 = vcombine.high %v389_v31, %v397_v2  ;;  %v381_v54 = vld [vmem:[%s13716_s1 + $0xae0] sm:$0xff] }
 0x201   :  { %7164 = vmatprep.subr.bf16.mxu1 %v9629_v4  ;;  %v125_v4 = vld [vmem:[%s13716_s1 + $0x2e0] sm:$0xff]  ;;  %v9055_v11 = vcombine.high %v373_v22, %v381_v54 }
 0x202   :  { %7112 = vmatpush2.bf16.msra.mxu0 %v9372_v48  ;;  %v8814_v48 = vcombine.low %v133_v19, %v141_v9  ;;  %v365_v19 = vld [vmem:[%s13716_s1 + $0xa60] sm:$0xff] }
 0x203   :  { %7113 = vmatprep.subr.bf16.mxu0 %v9357_v53  ;;  %v9070_v53 = vcombine.low %v389_v31, %v397_v2  ;;  %v53_v5 = vld [vmem:[%s13716_s1 + $0xa0] sm:$0xff] }
 0x204   :  { %7165 = vmatpush2.bf16.msra.mxu1 %v9628_v40 }
 0x205   :  { %7166 = vmatprep.subr.bf16.mxu1 %v9613_v43  ;;  %v8799_v43 = vcombine.high %v117_v14, %v125_v4 }
 0x206   :  { %7114 = vmatpush2.bf16.msra.mxu0 %v9356_v41  ;;  %v101_v41 = vld [vmem:[%s13716_s1 + $0x220] sm:$0xff] }
 0x207   :  { %7189 = vmatprep.subr.bf16.mxu0 %v8831_v51 }
 0x208   :  { %7167 = vmatpush2.bf16.msra.mxu1 %v9612_v36  ;;  %v109_v36 = vld [vmem:[%s13716_s1 + $0x260] sm:$0xff] }
 0x209   :  { %7242 = vmatprep.subr.bf16.mxu1 %v9087_v29  ;;  %v6799_v18 = vpop.f32.mrf.mxu0  ;;  %7116 = vmatmul.mubr.bf16.vlgmr.msra.gmra.mxu0 %v10273_v3  ;;  %v357_v29 = vld [vmem:[%s13716_s1 + $0xa20] sm:$0xff] }
 0x20a   :  { %v6800_v39 = vadd.f32 %v6799_v18, %v11655_v8  ;;  %7190 = vmatpush1.bf16.msra.mxu0 %v8830_v52  ;;  %7125 = vmatprep.mubr.bf16.mxu0 %v10294_v12  ;;  %v8798_v52 = vcombine.low %v117_v14, %v125_v4  ;;  %v93_v14 = vld [vmem:[%s13716_s1 + $0x1e0] sm:$0xff] }
 0x20b   :  { %v6852_v20 = vpop.f32.mrf.mxu1  ;;  %7169 = vmatmul.mubr.bf16.vlgmr.msra.gmra.mxu1 %v10286_v7  ;;  %v6801_v40 = vpop.f32.mrf.mxu0  ;;  %7191 = vmatprep.subr.bf16.mxu0 %v8815_v6  ;;  %v9054_v6 = vcombine.low %v373_v22, %v381_v54  ;;  %v341_v4 = vld [vmem:[%s13716_s1 + $0x9a0] sm:$0xff] }
 0x20c   :  { %7243 = vmatpush1.bf16.msra.mxu1 %v9086_v17  ;;  %v11677_v0 = vadd.f32 %v6852_v20, %v6800_v39  ;;  %v6802_v49 = vadd.f32 %v6801_v40, %v11660_v60  ;;  %7178 = vmatprep.mubr.bf16.mxu1 %v10309_v15  ;;  %v9039_v40 = vcombine.high %v357_v29, %v365_v19  ;;  %v349_v22 = vld [vmem:[%s13716_s1 + $0x9e0] sm:$0xff] }
 0x20d   :  { %v6854_v57 = vpop.f32.mrf.mxu1  ;;  %7244 = vmatprep.subr.bf16.mxu1 %v9071_v50  ;;  %v6803_v51 = vpop.f32.mrf.mxu0  ;;  %v8783_v50 = vcombine.high %v101_v41, %v109_v36 }
 0x20e   :  { %v11694_v9 = vadd.f32 %v6854_v57, %v6802_v49  ;;  %v6804_v31 = vadd.f32 %v6803_v51, %v11655_v8  ;;  %7192 = vmatpush1.bf16.msra.mxu0 %v8814_v48  ;;  %v85_v49 = vld [vmem:[%s13716_s1 + $0x1a0] sm:$0xff] }
 0x20f   :  { %v6856_v2 = vpop.f32.mrf.mxu1  ;;  %v6805_v17 = vpop.f32.mrf.mxu0  ;;  %7193 = vmatprep.subr.bf16.mxu0 %v8799_v43  ;;  %v8767_v51 = vcombine.high %v85_v49, %v93_v14 }
 0x210   :  { %7245 = vmatpush1.bf16.msra.mxu1 %v9070_v53  ;;  %v11697_v18 = vadd.f32 %v6856_v2, %v6804_v31  ;;  %v6806_v39 = vadd.f32 %v6805_v17, %v11660_v60  ;;  %v8782_v53 = vcombine.low %v101_v41, %v109_v36  ;;  %v9023_v2 = vcombine.high %v341_v4, %v349_v22  ;;  %v69_v17 = vld [vmem:[%s13716_s1 + $0x120] sm:$0xff] }
 0x211   :  { %v6858_v20 = vpop.f32.mrf.mxu1  ;;  %7246 = vmatprep.subr.bf16.mxu1 %v9055_v11  ;;  %7126 = vmatmul.mubr.bf16.gmra.mxu0 %v10319_v23  ;;  %v6809_v54 = vpop.f32.mrf.mxu0  ;;  %v9038_v11 = vcombine.low %v357_v29, %v365_v19  ;;  %v325_v29 = vld [vmem:[%s13716_s1 + $0x920] sm:$0xff] }
 0x212   :  { %v11713_v48 = vadd.f32 %v6858_v20, %v6806_v39  ;;  %7194 = vmatpush1.bf16.msra.mxu0 %v8798_v52  ;;  %v6810_v43 = vadd.f32 %v6809_v54, %v11655_v8  ;;  %v77_v52 = vld [vmem:[%s13716_s1 + $0x160] sm:$0xff]  ;;  %7221 = vmatprep.mubr.bf16.mxu0 %v9874_v58 }
 0x213   :  { %7179 = vmatmul.mubr.bf16.gmra.mxu1 %v10328_v55  ;;  %v6862_v57 = vpop.f32.mrf.mxu1  ;;  %7195 = vmatprep.subr.bf16.mxu0 %v8783_v50  ;;  %v6811_v31 = vpop.f32.mrf.mxu0  ;;  %v333_v19 = vld [vmem:[%s13716_s1 + $0x960] sm:$0xff]  ;;  %v8766_v50 = vcombine.low %v85_v49, %v93_v14 }
 0x214   :  { %7247 = vmatpush1.bf16.msra.mxu1 %v9054_v6  ;;  %v6812_v41 = vadd.f32 %v6811_v31, %v11660_v60  ;;  %v11724_v36 = vadd.f32 %v6862_v57, %v6810_v43  ;;  %7274 = vmatprep.mubr.bf16.mxu1 %v9894_v63  ;;  %v9022_v43 = vcombine.low %v341_v4, %v349_v22  ;;  %v61_v49 = vld [vmem:[%s13716_s1 + $0xe0] sm:$0xff] }
 0x215   :  { %7248 = vmatprep.subr.bf16.mxu1 %v9039_v40  ;;  %v6864_v39 = vpop.f32.mrf.mxu1  ;;  %v6813_v6 = vpop.f32.mrf.mxu0  ;;  %v8751_v57 = vcombine.high %v69_v17, %v77_v52  ;;  %v9007_v59 = vcombine.high %v325_v29, %v333_v19  ;;  %v309_v4 = vld [vmem:[%s13716_s1 + $0x8a0] sm:$0xff] }
 0x216   :  { %7196 = vmatpush1.bf16.msra.mxu0 %v8782_v53  ;;  %v6814_v20 = vadd.f32 %v6813_v6, %v11655_v8  ;;  %v11735_v40 = vadd.f32 %v6864_v39, %v6812_v41  ;;  %v317_v22 = vld [vmem:[%s13716_s1 + $0x8e0] sm:$0xff]  ;;  %v8735_v41 = vcombine.high %v53_v5, %v61_v49 }
 0x217   :  { %v6866_v54 = vpop.f32.mrf.mxu1  ;;  %7197 = vmatprep.subr.bf16.mxu0 %v8767_v51  ;;  %v6815_v31 = vpop.f32.mrf.mxu0  ;;  %v37_v39 = vld [vmem:[%s13716_s1 + $0x20] sm:$0xff] }
 0x218   :  { %7249 = vmatpush1.bf16.msra.mxu1 %v9038_v11  ;;  %v6816_v8 = vadd.f32 %v6815_v31, %v11660_v60  ;;  %v11744_v14 = vadd.f32 %v6866_v54, %v6814_v20  ;;  %v8750_v11 = vcombine.low %v69_v17, %v77_v52  ;;  %v8991_v60 = vcombine.high %v309_v4, %v317_v22  ;;  %v45_v6 = vld [vmem:[%s13716_s1 + $0x60] sm:$0xff] }
 0x219   :  { %7250 = vmatprep.subr.bf16.mxu1 %v9023_v2  ;;  %v6868_v53 = vpop.f32.mrf.mxu1  ;;  %v9006_v2 = vcombine.low %v325_v29, %v333_v19  ;;  %v293_v17 = vld [vmem:[%s13716_s1 + $0x820] sm:$0xff]  ;;  %v8734_v29 = vcombine.low %v53_v5, %v61_v49  ;;  %v8719_v19 = vcombine.high %v37_v39, %v45_v6 }
 0x21a   :  { %7198 = vmatpush1.bf16.msra.mxu0 %v8766_v50  ;;  %v11752_v51 = vadd.f32 %v6868_v53, %v6816_v8  ;;  %v301_v52 = vld [vmem:[%s13716_s1 + $0x860] sm:$0xff] }
 0x21b   :  { %7199 = vmatprep.subr.bf16.mxu0 %v8751_v57  ;;  %v8975_v50 = vcombine.high %v293_v17, %v301_v52  ;;  %v277_v20 = vld [vmem:[%s13716_s1 + $0x7a0] sm:$0xff]  ;;  %v8718_v57 = vcombine.low %v37_v39, %v45_v6  ;;  %v8974_v31 = vcombine.low %v293_v17, %v301_v52 }
 0x21c   :  { %7251 = vmatpush1.bf16.msra.mxu1 %v9022_v43  ;;  %v285_v54 = vld [vmem:[%s13716_s1 + $0x7e0] sm:$0xff] }
 0x21d   :  { %7252 = vmatprep.subr.bf16.mxu1 %v9007_v59  ;;  %v8990_v59 = vcombine.low %v309_v4, %v317_v22  ;;  %v533_v43 = vld [vmem:[%s13716_s1 + $0xfa0] sm:$0xff]  ;;  %v8959_v49 = vcombine.high %v277_v20, %v285_v54 }
 0x21e   :  { %7200 = vmatpush1.bf16.msra.mxu0 %v8750_v11  ;;  %v541_v5 = vld [vmem:[%s13716_s1 + $0xfe0] sm:$0xff] }
 0x21f   :  { %7201 = vmatprep.subr.bf16.mxu0 %v8735_v41  ;;  %v9215_v8 = vcombine.high %v533_v43, %v541_v5  ;;  %v261_v53 = vld [vmem:[%s13716_s1 + $0x720] sm:$0xff]  ;;  %v9214_v41 = vcombine.low %v533_v43, %v541_v5 }
 0x220   :  { %7253 = vmatpush1.bf16.msra.mxu1 %v9006_v2  ;;  %v269_v4 = vld [vmem:[%s13716_s1 + $0x760] sm:$0xff]  ;;  %v8958_v2 = vcombine.low %v277_v20, %v285_v54 }
 0x221   :  { %7254 = vmatprep.subr.bf16.mxu1 %v8991_v60  ;;  %v517_v22 = vld [vmem:[%s13716_s1 + $0xf20] sm:$0xff]  ;;  %v8943_v60 = vcombine.high %v261_v53, %v269_v4 }
 0x222   :  { %7202 = vmatpush1.bf16.msra.mxu0 %v8734_v29  ;;  %v525_v11 = vld [vmem:[%s13716_s1 + $0xf60] sm:$0xff] }
 0x223   :  { %7203 = vmatprep.subr.bf16.mxu0 %v8719_v19  ;;  %v9199_v39 = vcombine.high %v517_v22, %v525_v11  ;;  %v245_v6 = vld [vmem:[%s13716_s1 + $0x6a0] sm:$0xff]  ;;  %v9198_v19 = vcombine.low %v517_v22, %v525_v11 }
 0x224   :  { %7255 = vmatpush1.bf16.msra.mxu1 %v8990_v59  ;;  %v253_v17 = vld [vmem:[%s13716_s1 + $0x6e0] sm:$0xff]  ;;  %v8942_v59 = vcombine.low %v261_v53, %v269_v4 }
 0x225   :  { %7256 = vmatprep.subr.bf16.mxu1 %v8975_v50  ;;  %v501_v52 = vld [vmem:[%s13716_s1 + $0xea0] sm:$0xff]  ;;  %v8927_v50 = vcombine.high %v245_v6, %v253_v17 }
 0x226   :  { %7204 = vmatpush1.bf16.msra.mxu0 %v8718_v57  ;;  %v509_v29 = vld [vmem:[%s13716_s1 + $0xee0] sm:$0xff] }
 0x227   :  { %7205 = vmatprep.subr.bf16.mxu0 %v8959_v49  ;;  %v9183_v20 = vcombine.high %v501_v52, %v509_v29  ;;  %v229_v54 = vld [vmem:[%s13716_s1 + $0x620] sm:$0xff]  ;;  %v9182_v49 = vcombine.low %v501_v52, %v509_v29 }
 0x228   :  { %7257 = vmatpush1.bf16.msra.mxu1 %v8974_v31  ;;  %v237_v43 = vld [vmem:[%s13716_s1 + $0x660] sm:$0xff]  ;;  %v8926_v31 = vcombine.low %v245_v6, %v253_v17 }
 0x229   :  { %7258 = vmatprep.subr.bf16.mxu1 %v9215_v8  ;;  %v485_v5 = vld [vmem:[%s13716_s1 + $0xe20] sm:$0xff]  ;;  %v8911_v8 = vcombine.high %v229_v54, %v237_v43 }
 0x22a   :  { %7206 = vmatpush2.bf16.msra.mxu0 %v8958_v2  ;;  %v493_v57 = vld [vmem:[%s13716_s1 + $0xe60] sm:$0xff] }
 0x22b   :  { %7207 = vmatprep.subr.bf16.mxu0 %v8943_v60  ;;  %v9167_v53 = vcombine.high %v485_v5, %v493_v57  ;;  %v213_v4 = vld [vmem:[%s13716_s1 + $0x5a0] sm:$0xff]  ;;  %v9166_v60 = vcombine.low %v485_v5, %v493_v57 }
 0x22c   :  { %7259 = vmatpush2.bf16.msra.mxu1 %v9214_v41  ;;  %v221_v22 = vld [vmem:[%s13716_s1 + $0x5e0] sm:$0xff]  ;;  %v8910_v41 = vcombine.low %v229_v54, %v237_v43 }
 0x22d   :  { %7260 = vmatprep.subr.bf16.mxu1 %v9199_v39  ;;  %v469_v11 = vld [vmem:[%s13716_s1 + $0xda0] sm:$0xff]  ;;  %v8895_v39 = vcombine.high %v213_v4, %v221_v22 }
 0x22e   :  { %7208 = vmatpush2.bf16.msra.mxu0 %v8942_v59  ;;  %v477_v2 = vld [vmem:[%s13716_s1 + $0xde0] sm:$0xff] }
 0x22f   :  { %7209 = vmatprep.subr.bf16.mxu0 %v8927_v50  ;;  %v9151_v6 = vcombine.high %v469_v11, %v477_v2  ;;  %v197_v17 = vld [vmem:[%s13716_s1 + $0x520] sm:$0xff]  ;;  %v9150_v50 = vcombine.low %v469_v11, %v477_v2 }
 0x230   :  { %7261 = vmatpush2.bf16.msra.mxu1 %v9198_v19  ;;  %v205_v52 = vld [vmem:[%s13716_s1 + $0x560] sm:$0xff]  ;;  %v8894_v19 = vcombine.low %v213_v4, %v221_v22 }
 0x231   :  { %7262 = vmatprep.subr.bf16.mxu1 %v9183_v20  ;;  %v453_v29 = vld [vmem:[%s13716_s1 + $0xd20] sm:$0xff]  ;;  %v8879_v20 = vcombine.high %v197_v17, %v205_v52 }
 0x232   :  { %7210 = vmatpush2.bf16.msra.mxu0 %v8926_v31  ;;  %v461_v59 = vld [vmem:[%s13716_s1 + $0xd60] sm:$0xff] }
 0x233   :  { %7211 = vmatprep.subr.bf16.mxu0 %v8911_v8  ;;  %v9135_v54 = vcombine.high %v453_v29, %v461_v59  ;;  %v181_v43 = vld [vmem:[%s13716_s1 + $0x4a0] sm:$0xff]  ;;  %v9134_v8 = vcombine.low %v453_v29, %v461_v59 }
 0x234   :  { %7263 = vmatpush2.bf16.msra.mxu1 %v9182_v49  ;;  %v189_v5 = vld [vmem:[%s13716_s1 + $0x4e0] sm:$0xff]  ;;  %v8878_v49 = vcombine.low %v197_v17, %v205_v52 }
 0x235   :  { %7264 = vmatprep.subr.bf16.mxu1 %v9167_v53  ;;  %v437_v57 = vld [vmem:[%s13716_s1 + $0xca0] sm:$0xff]  ;;  %v8863_v53 = vcombine.high %v181_v43, %v189_v5 }
 0x236   :  { %7212 = vmatpush2.bf16.msra.mxu0 %v8910_v41  ;;  %v445_v31 = vld [vmem:[%s13716_s1 + $0xce0] sm:$0xff] }
 0x237   :  { %7213 = vmatprep.subr.bf16.mxu0 %v8895_v39  ;;  %v9119_v4 = vcombine.high %v437_v57, %v445_v31  ;;  %v165_v22 = vld [vmem:[%s13716_s1 + $0x420] sm:$0xff]  ;;  %v9118_v39 = vcombine.low %v437_v57, %v445_v31 }
 0x238   :  { %7265 = vmatpush2.bf16.msra.mxu1 %v9166_v60  ;;  %v173_v11 = vld [vmem:[%s13716_s1 + $0x460] sm:$0xff]  ;;  %v8862_v60 = vcombine.low %v181_v43, %v189_v5 }
 0x239   :  { %7266 = vmatprep.subr.bf16.mxu1 %v9151_v6  ;;  %v421_v2 = vld [vmem:[%s13716_s1 + $0xc20] sm:$0xff]  ;;  %v8847_v6 = vcombine.high %v165_v22, %v173_v11 }
 0x23a   :  { %7214 = vmatpush2.bf16.msra.mxu0 %v8894_v19  ;;  %v429_v41 = vld [vmem:[%s13716_s1 + $0xc60] sm:$0xff] }
 0x23b   :  { %7215 = vmatprep.subr.bf16.mxu0 %v8879_v20  ;;  %v9103_v17 = vcombine.high %v421_v2, %v429_v41  ;;  %v661_v52 = vld [vmem:[%s13716_s1 + $0x13a0] sm:$0xff]  ;;  %v9102_v20 = vcombine.low %v421_v2, %v429_v41 }
 0x23c   :  { %7267 = vmatpush2.bf16.msra.mxu1 %v9150_v50  ;;  %v669_v29 = vld [vmem:[%s13716_s1 + $0x13e0] sm:$0xff]  ;;  %v8846_v50 = vcombine.low %v165_v22, %v173_v11 }
 0x23d   :  { %7268 = vmatprep.subr.bf16.mxu1 %v9135_v54  ;;  %v917_v59 = vld [vmem:[%s13716_s1 + $0x1ba0] sm:$0xff]  ;;  %v9343_v54 = vcombine.high %v661_v52, %v669_v29 }
 0x23e   :  { %7216 = vmatpush2.bf16.msra.mxu0 %v8878_v49  ;;  %v925_v19 = vld [vmem:[%s13716_s1 + $0x1be0] sm:$0xff] }
 0x23f   :  { %7217 = vmatprep.subr.bf16.mxu0 %v8863_v53  ;;  %v9599_v43 = vcombine.high %v917_v59, %v925_v19  ;;  %v645_v5 = vld [vmem:[%s13716_s1 + $0x1320] sm:$0xff]  ;;  %v9598_v53 = vcombine.low %v917_v59, %v925_v19 }
 0x240   :  { %7269 = vmatpush2.bf16.msra.mxu1 %v9134_v8  ;;  %v653_v57 = vld [vmem:[%s13716_s1 + $0x1360] sm:$0xff]  ;;  %v9342_v8 = vcombine.low %v661_v52, %v669_v29 }
 0x241   :  { %7270 = vmatprep.subr.bf16.mxu1 %v9119_v4  ;;  %v901_v31 = vld [vmem:[%s13716_s1 + $0x1b20] sm:$0xff]  ;;  %v9327_v4 = vcombine.high %v645_v5, %v653_v57  ;;  %v9326_v52 = vcombine.low %v645_v5, %v653_v57 }
 0x242   :  { %7218 = vmatpush2.bf16.msra.mxu0 %v8862_v60  ;;  %v909_v49 = vld [vmem:[%s13716_s1 + $0x1b60] sm:$0xff] }
 0x243   :  { %7219 = vmatprep.subr.bf16.mxu0 %v8847_v6  ;;  %v9583_v22 = vcombine.high %v901_v31, %v909_v49  ;;  %v629_v11 = vld [vmem:[%s13716_s1 + $0x12a0] sm:$0xff]  ;;  %v9582_v59 = vcombine.low %v901_v31, %v909_v49 }
 0x244   :  { %7271 = vmatpush2.bf16.msra.mxu1 %v9118_v39  ;;  %v637_v2 = vld [vmem:[%s13716_s1 + $0x12e0] sm:$0xff] }
 0x245   :  { %7272 = vmatprep.subr.bf16.mxu1 %v9103_v17  ;;  %v885_v60 = vld [vmem:[%s13716_s1 + $0x1aa0] sm:$0xff]  ;;  %v9311_v19 = vcombine.high %v629_v11, %v637_v2 }
 0x246   :  { %7220 = vmatpush2.bf16.msra.mxu0 %v8846_v50  ;;  %v893_v39 = vld [vmem:[%s13716_s1 + $0x1ae0] sm:$0xff] }
 0x247   :  { %7295 = vmatprep.subr.bf16.mxu0 %v9343_v54  ;;  %v621_v5 = vld [vmem:[%s13716_s1 + $0x1260] sm:$0xff] }
 0x248   :  { %7273 = vmatpush2.bf16.msra.mxu1 %v9102_v20  ;;  %v869_v31 = vld [vmem:[%s13716_s1 + $0x1a20] sm:$0xff] }
 0x249   :  { %7348 = vmatprep.subr.bf16.mxu1 %v9599_v43  ;;  %v6905_v41 = vpop.f32.mrf.mxu0  ;;  %7222 = vmatmul.mubr.bf16.vlgmr.msra.gmra.mxu0 %v10017_v21  ;;  %v9567_v43 = vcombine.high %v885_v60, %v893_v39 }
 0x24a   :  { %v6906_v6 = vadd.f32 %v6905_v41, %v11677_v0  ;;  %7296 = vmatpush1.bf16.msra.mxu0 %v9342_v8  ;;  %v613_v0 = vld [vmem:[%s13716_s1 + $0x1220] sm:$0xff]  ;;  %7231 = vmatprep.mubr.bf16.mxu0 %v10044_v30  ;;  %v9566_v41 = vcombine.low %v885_v60, %v893_v39 }
 0x24b   :  { %v6958_v17 = vpop.f32.mrf.mxu1  ;;  %7275 = vmatmul.mubr.bf16.vlgmr.msra.gmra.mxu1 %v10030_v25  ;;  %v6907_v29 = vpop.f32.mrf.mxu0  ;;  %7297 = vmatprep.subr.bf16.mxu0 %v9327_v4  ;;  %v9310_v4 = vcombine.low %v629_v11, %v637_v2  ;;  %v853_v2 = vld [vmem:[%s13716_s1 + $0x19a0] sm:$0xff] }
 0x24c   :  { %7349 = vmatpush1.bf16.msra.mxu1 %v9598_v53  ;;  %v11901_v50 = vadd.f32 %v6958_v17, %v6906_v6  ;;  %v6908_v20 = vadd.f32 %v6907_v29, %v11694_v9  ;;  %v877_v9 = vld [vmem:[%s13716_s1 + $0x1a60] sm:$0xff]  ;;  %7284 = vmatprep.mubr.bf16.mxu1 %v10053_v33  ;;  %v9295_v6 = vcombine.high %v613_v0, %v621_v5 }
 0x24d   :  { %v6960_v54 = vpop.f32.mrf.mxu1  ;;  %7350 = vmatprep.subr.bf16.mxu1 %v9583_v22  ;;  %v6909_v57 = vpop.f32.mrf.mxu0  ;;  %v9551_v13 = vcombine.high %v869_v31, %v877_v9 }
 0x24e   :  { %13748 = vst [vmem:[#allocation13_spill] sm:$0xff] %v11901_v50  ;;  %v11918_v49 = vadd.f32 %v6960_v54, %v6908_v20  ;;  %v6910_v8 = vadd.f32 %v6909_v57, %v11697_v18  ;;  %7298 = vmatpush1.bf16.msra.mxu0 %v9326_v52  ;;  %v597_v20 = vld [vmem:[%s13716_s1 + $0x11a0] sm:$0xff]  ;;  %v9550_v54 = vcombine.low %v869_v31, %v877_v9 }
 0x24f   :  { %v6962_v53 = vpop.f32.mrf.mxu1  ;;  %v6911_v22 = vpop.f32.mrf.mxu0  ;;  %7299 = vmatprep.subr.bf16.mxu0 %v9311_v19  ;;  %v605_v18 = vld [vmem:[%s13716_s1 + $0x11e0] sm:$0xff] }
 0x250   :  { %13749 = vst [vmem:[#allocation14_spill] sm:$0xff] %v11918_v49  ;;  %7351 = vmatpush1.bf16.msra.mxu1 %v9582_v59  ;;  %v11921_v17 = vadd.f32 %v6962_v53, %v6910_v8  ;;  %v6912_v29 = vadd.f32 %v6911_v22, %v11713_v48  ;;  %v861_v48 = vld [vmem:[%s13716_s1 + $0x19e0] sm:$0xff]  ;;  %v9294_v59 = vcombine.low %v613_v0, %v621_v5 }
 0x251   :  { %v6964_v50 = vpop.f32.mrf.mxu1  ;;  %7352 = vmatprep.subr.bf16.mxu1 %v9567_v43  ;;  %v6915_v11 = vpop.f32.mrf.mxu0  ;;  %7232 = vmatmul.mubr.bf16.gmra.mxu0 %v10069_v42  ;;  %v9279_v43 = vcombine.high %v597_v20, %v605_v18  ;;  %v589_v0 = vld [vmem:[%s13716_s1 + $0x1160] sm:$0xff]  ;;  %v9278_v22 = vcombine.low %v597_v20, %v605_v18 }
 0x252   :  { %13750 = vst [vmem:[#allocation15_spill] sm:$0xff] %v11921_v17  ;;  %v11937_v60 = vadd.f32 %v6964_v50, %v6912_v29  ;;  %v6916_v39 = vadd.f32 %v6915_v11, %v11724_v36  ;;  %7300 = vmatpush1.bf16.msra.mxu0 %v9310_v4  ;;  %v9535_v50 = vcombine.high %v853_v2, %v861_v48  ;;  %v581_v36 = vld [vmem:[%s13716_s1 + $0x1120] sm:$0xff] }
 0x253   :  { %v6968_v52 = vpop.f32.mrf.mxu1  ;;  %7285 = vmatmul.mubr.bf16.gmra.mxu1 %v10082_v46  ;;  %v6917_v19 = vpop.f32.mrf.mxu0  ;;  %7301 = vmatprep.subr.bf16.mxu0 %v9295_v6  ;;  %v9534_v6 = vcombine.low %v853_v2, %v861_v48  ;;  %v9263_v29 = vcombine.high %v581_v36, %v589_v0  ;;  %v573_v20 = vld [vmem:[%s13716_s1 + $0x10e0] sm:$0xff]  ;;  %v9262_v48 = vcombine.low %v581_v36, %v589_v0 }
 0x254   :  { %13751 = vst [vmem:[#allocation16_spill] sm:$0xff] %v11937_v60  ;;  %7353 = vmatpush1.bf16.msra.mxu1 %v9566_v41  ;;  %v6918_v57 = vadd.f32 %v6917_v19, %v11735_v40  ;;  %v11942_v8 = vadd.f32 %v6968_v52, %v6916_v39  ;;  %7327 = vmatprep.mubr.bf16.mxu0 %v10102_v56  ;;  %v837_v40 = vld [vmem:[%s13716_s1 + $0x1920] sm:$0xff] }
 0x255   :  { %v6970_v53 = vpop.f32.mrf.mxu1  ;;  %7354 = vmatprep.subr.bf16.mxu1 %v9551_v13  ;;  %v6919_v5 = vpop.f32.mrf.mxu0  ;;  %v845_v13 = vld [vmem:[%s13716_s1 + $0x1960] sm:$0xff]  ;;  %7380 = vmatprep.mubr.bf16.mxu1 %v10113_v62 }
 0x256   :  { %13752 = vst [vmem:[#allocation17_spill] sm:$0xff] %v11942_v8  ;;  %v6920_v31 = vadd.f32 %v6919_v5, %v11744_v14  ;;  %v11959_v9 = vadd.f32 %v6970_v53, %v6918_v57  ;;  %7302 = vmatpush1.bf16.msra.mxu0 %v9294_v59  ;;  %v9519_v19 = vcombine.high %v837_v40, %v845_v13  ;;  %v565_v14 = vld [vmem:[%s13716_s1 + $0x10a0] sm:$0xff] }
 0x257   :  { %v6972_v4 = vpop.f32.mrf.mxu1  ;;  %v6921_v41 = vpop.f32.mrf.mxu0  ;;  %7303 = vmatprep.subr.bf16.mxu0 %v9279_v43  ;;  %v821_v18 = vld [vmem:[%s13716_s1 + $0x18a0] sm:$0xff]  ;;  %v9518_v59 = vcombine.low %v837_v40, %v845_v13  ;;  %v9246_v0 = vcombine.low %v565_v14, %v573_v20 }
 0x258   :  { %13753 = vst [vmem:[#allocation18_spill] sm:$0xff] %v11959_v9  ;;  %7355 = vmatpush1.bf16.msra.mxu1 %v9550_v54  ;;  %v6922_v11 = vadd.f32 %v6921_v41, %v11752_v51  ;;  %v11962_v39 = vadd.f32 %v6972_v4, %v6920_v31  ;;  %v829_v51 = vld [vmem:[%s13716_s1 + $0x18e0] sm:$0xff]  ;;  %v9247_v54 = vcombine.high %v565_v14, %v573_v20 }
 0x259   :  { %v6974_v52 = vpop.f32.mrf.mxu1  ;;  %7356 = vmatprep.subr.bf16.mxu1 %v9535_v50  ;;  %v9503_v43 = vcombine.high %v821_v18, %v829_v51  ;;  %v549_v57 = vld [vmem:[%s13716_s1 + $0x1020] sm:$0xff]  ;;  %v9502_v5 = vcombine.low %v821_v18, %v829_v51 }
 0x25a   :  { %13754 = vst [vmem:[#allocation19_spill] sm:$0xff] %v11962_v39  ;;  %v11976_v2 = vadd.f32 %v6974_v52, %v6922_v11  ;;  %7304 = vmatpush1.bf16.msra.mxu0 %v9278_v22  ;;  %v557_v53 = vld [vmem:[%s13716_s1 + $0x1060] sm:$0xff] }
 0x25b   :  { %7305 = vmatprep.subr.bf16.mxu0 %v9263_v29  ;;  %v805_v50 = vld [vmem:[%s13716_s1 + $0x1820] sm:$0xff]  ;;  %v9231_v40 = vcombine.high %v549_v57, %v557_v53 }
 0x25c   :  { %13755 = vst [vmem:[#allocation20_spill] sm:$0xff] %v11976_v2  ;;  %7357 = vmatpush1.bf16.msra.mxu1 %v9534_v6  ;;  %v813_v36 = vld [vmem:[%s13716_s1 + $0x1860] sm:$0xff]  ;;  %v9230_v6 = vcombine.low %v549_v57, %v557_v53  ;;  %v54_v2 = vld [vmem:[%s13716_s1 + $0xa8] sm:$0xff] }
 0x25d   :  { %7358 = vmatprep.subr.bf16.mxu1 %v9519_v19  ;;  %v9487_v13 = vcombine.high %v805_v50, %v813_v36  ;;  %v789_v31 = vld [vmem:[%s13716_s1 + $0x17a0] sm:$0xff]  ;;  %v9486_v29 = vcombine.low %v805_v50, %v813_v36 }
 0x25e   :  { %7306 = vmatpush1.bf16.msra.mxu0 %v9262_v48  ;;  %v797_v4 = vld [vmem:[%s13716_s1 + $0x17e0] sm:$0xff] }
 0x25f   :  { %7307 = vmatprep.subr.bf16.mxu0 %v9247_v54  ;;  %v1045_v22 = vld [vmem:[%s13716_s1 + $0x1fa0] sm:$0xff]  ;;  %v9471_v11 = vcombine.high %v789_v31, %v797_v4  ;;  %v9470_v51 = vcombine.low %v789_v31, %v797_v4 }
 0x260   :  { %7359 = vmatpush1.bf16.msra.mxu1 %v9518_v59  ;;  %v1053_v41 = vld [vmem:[%s13716_s1 + $0x1fe0] sm:$0xff] }
 0x261   :  { %7360 = vmatprep.subr.bf16.mxu1 %v9503_v43  ;;  %v9727_v52 = vcombine.high %v1045_v22, %v1053_v41  ;;  %v773_v19 = vld [vmem:[%s13716_s1 + $0x1720] sm:$0xff]  ;;  %v9726_v48 = vcombine.low %v1045_v22, %v1053_v41 }
 0x262   :  { %7308 = vmatpush1.bf16.msra.mxu0 %v9246_v0  ;;  %v781_v14 = vld [vmem:[%s13716_s1 + $0x1760] sm:$0xff] }
 0x263   :  { %7309 = vmatprep.subr.bf16.mxu0 %v9231_v40  ;;  %v1029_v20 = vld [vmem:[%s13716_s1 + $0x1f20] sm:$0xff]  ;;  %v9455_v59 = vcombine.high %v773_v19, %v781_v14  ;;  %v9454_v36 = vcombine.low %v773_v19, %v781_v14 }
 0x264   :  { %7361 = vmatpush1.bf16.msra.mxu1 %v9502_v5  ;;  %v1037_v18 = vld [vmem:[%s13716_s1 + $0x1f60] sm:$0xff] }
 0x265   :  { %7362 = vmatprep.subr.bf16.mxu1 %v9487_v13  ;;  %v9711_v54 = vcombine.high %v1029_v20, %v1037_v18  ;;  %v757_v43 = vld [vmem:[%s13716_s1 + $0x16a0] sm:$0xff]  ;;  %v9710_v0 = vcombine.low %v1029_v20, %v1037_v18 }
 0x266   :  { %7310 = vmatpush1.bf16.msra.mxu0 %v9230_v6  ;;  %v765_v57 = vld [vmem:[%s13716_s1 + $0x16e0] sm:$0xff] }
 0x267   :  { %7311 = vmatprep.subr.bf16.mxu0 %v9471_v11  ;;  %v1013_v53 = vld [vmem:[%s13716_s1 + $0x1ea0] sm:$0xff]  ;;  %v9439_v5 = vcombine.high %v757_v43, %v765_v57  ;;  %v9438_v41 = vcombine.low %v757_v43, %v765_v57 }
 0x268   :  { %7363 = vmatpush1.bf16.msra.mxu1 %v9486_v29  ;;  %v1021_v50 = vld [vmem:[%s13716_s1 + $0x1ee0] sm:$0xff] }
 0x269   :  { %7364 = vmatprep.subr.bf16.mxu1 %v9727_v52  ;;  %v9695_v40 = vcombine.high %v1013_v53, %v1021_v50  ;;  %v741_v13 = vld [vmem:[%s13716_s1 + $0x1620] sm:$0xff]  ;;  %v9694_v6 = vcombine.low %v1013_v53, %v1021_v50 }
 0x26a   :  { %7312 = vmatpush2.bf16.msra.mxu0 %v9470_v51  ;;  %v749_v31 = vld [vmem:[%s13716_s1 + $0x1660] sm:$0xff] }
 0x26b   :  { %7313 = vmatprep.subr.bf16.mxu0 %v9455_v59  ;;  %v997_v4 = vld [vmem:[%s13716_s1 + $0x1e20] sm:$0xff]  ;;  %v9423_v29 = vcombine.high %v741_v13, %v749_v31  ;;  %v9422_v18 = vcombine.low %v741_v13, %v749_v31 }
 0x26c   :  { %7365 = vmatpush2.bf16.msra.mxu1 %v9726_v48  ;;  %v1005_v22 = vld [vmem:[%s13716_s1 + $0x1e60] sm:$0xff] }
 0x26d   :  { %7366 = vmatprep.subr.bf16.mxu1 %v9711_v54  ;;  %v9679_v11 = vcombine.high %v997_v4, %v1005_v22  ;;  %v725_v52 = vld [vmem:[%s13716_s1 + $0x15a0] sm:$0xff]  ;;  %v9678_v51 = vcombine.low %v997_v4, %v1005_v22 }
 0x26e   :  { %7314 = vmatpush2.bf16.msra.mxu0 %v9454_v36  ;;  %v733_v19 = vld [vmem:[%s13716_s1 + $0x15e0] sm:$0xff] }
 0x26f   :  { %7315 = vmatprep.subr.bf16.mxu0 %v9439_v5  ;;  %v981_v14 = vld [vmem:[%s13716_s1 + $0x1da0] sm:$0xff]  ;;  %v9407_v48 = vcombine.high %v725_v52, %v733_v19  ;;  %v9406_v50 = vcombine.low %v725_v52, %v733_v19 }
 0x270   :  { %7367 = vmatpush2.bf16.msra.mxu1 %v9710_v0  ;;  %v989_v20 = vld [vmem:[%s13716_s1 + $0x1de0] sm:$0xff] }
 0x271   :  { %7368 = vmatprep.subr.bf16.mxu1 %v9695_v40  ;;  %v9663_v59 = vcombine.high %v981_v14, %v989_v20  ;;  %v709_v54 = vld [vmem:[%s13716_s1 + $0x1520] sm:$0xff]  ;;  %v9662_v36 = vcombine.low %v981_v14, %v989_v20 }
 0x272   :  { %7316 = vmatpush2.bf16.msra.mxu0 %v9438_v41  ;;  %v717_v43 = vld [vmem:[%s13716_s1 + $0x1560] sm:$0xff] }
 0x273   :  { %7317 = vmatprep.subr.bf16.mxu0 %v9423_v29  ;;  %v965_v57 = vld [vmem:[%s13716_s1 + $0x1d20] sm:$0xff]  ;;  %v9391_v0 = vcombine.high %v709_v54, %v717_v43  ;;  %v9390_v22 = vcombine.low %v709_v54, %v717_v43  ;;  %v158_v54 = vld [vmem:[%s13716_s1 + $0x3e8] sm:$0xff] }
 0x274   :  { %7369 = vmatpush2.bf16.msra.mxu1 %v9694_v6  ;;  %v973_v53 = vld [vmem:[%s13716_s1 + $0x1d60] sm:$0xff]  ;;  %v406_v43 = vld [vmem:[%s13716_s1 + $0xba8] sm:$0xff] }
 0x275   :  { %7370 = vmatprep.subr.bf16.mxu1 %v9679_v11  ;;  %v9647_v5 = vcombine.high %v965_v57, %v973_v53  ;;  %v693_v40 = vld [vmem:[%s13716_s1 + $0x14a0] sm:$0xff]  ;;  %v9646_v41 = vcombine.low %v965_v57, %v973_v53  ;;  %v414_v57 = vld [vmem:[%s13716_s1 + $0xbe8] sm:$0xff] }
 0x276   :  { %7318 = vmatpush2.bf16.msra.mxu0 %v9422_v18  ;;  %v701_v13 = vld [vmem:[%s13716_s1 + $0x14e0] sm:$0xff] }
 0x277   :  { %7319 = vmatprep.subr.bf16.mxu0 %v9407_v48  ;;  %v949_v31 = vld [vmem:[%s13716_s1 + $0x1ca0] sm:$0xff]  ;;  %v9375_v6 = vcombine.high %v693_v40, %v701_v13  ;;  %v9374_v20 = vcombine.low %v693_v40, %v701_v13  ;;  %v13728_v40 = vsub.s32 7, %v10678_v10  ;;  %v134_v13 = vld [vmem:[%s13716_s1 + $0x328] sm:$0xff] }
 0x278   :  { %7371 = vmatpush2.bf16.msra.mxu1 %v9678_v51  ;;  %v957_v4 = vld [vmem:[%s13716_s1 + $0x1ce0] sm:$0xff] }
 0x279   :  { %7372 = vmatprep.subr.bf16.mxu1 %v9663_v59  ;;  %v9631_v29 = vcombine.high %v949_v31, %v957_v4  ;;  %v677_v11 = vld [vmem:[%s13716_s1 + $0x1420] sm:$0xff]  ;;  %v9630_v18 = vcombine.low %v949_v31, %v957_v4  ;;  %v150_v59 = vld [vmem:[%s13716_s1 + $0x3a8] sm:$0xff] }
 0x27a   :  { %7320 = vmatpush2.bf16.msra.mxu0 %v9406_v50  ;;  %v685_v52 = vld [vmem:[%s13716_s1 + $0x1460] sm:$0xff]  ;;  %v13729_v50 = vsub.s32 6, %v10678_v10  ;;  %v142_v31 = vld [vmem:[%s13716_s1 + $0x368] sm:$0xff] }
 0x27b   :  { %7321 = vmatprep.subr.bf16.mxu0 %v9391_v0  ;;  %v933_v19 = vld [vmem:[%s13716_s1 + $0x1c20] sm:$0xff]  ;;  %v9359_v51 = vcombine.high %v677_v11, %v685_v52  ;;  %v9358_v53 = vcombine.low %v677_v11, %v685_v52  ;;  %v8833_v0 = vcombine.high %v150_v59, %v158_v54  ;;  %v390_v4 = vld [vmem:[%s13716_s1 + $0xb28] sm:$0xff]  ;;  %v9088_v11 = vcombine.low %v406_v43, %v414_v57 }
 0x27c   :  { %7373 = vmatpush2.bf16.msra.mxu1 %v9662_v36  ;;  %v941_v14 = vld [vmem:[%s13716_s1 + $0x1c60] sm:$0xff]  ;;  %v8817_v52 = vcombine.high %v134_v13, %v142_v31 }
 0x27d   :  { %7374 = vmatprep.subr.bf16.mxu1 %v9647_v5  ;;  %v9615_v48 = vcombine.high %v933_v19, %v941_v14  ;;  %v9614_v36 = vcombine.low %v933_v19, %v941_v14  ;;  %v9089_v5 = vcombine.high %v406_v43, %v414_v57  ;;  %v8816_v57 = vcombine.low %v134_v13, %v142_v31  ;;  %v110_v13 = vld [vmem:[%s13716_s1 + $0x268] sm:$0xff] }
 0x27e   :  { %7322 = vmatpush2.bf16.msra.mxu0 %v9390_v22  ;;  %v398_v22 = vld [vmem:[%s13716_s1 + $0xb68] sm:$0xff] }
 0x27f   :  { %7323 = vmatprep.subr.bf16.mxu0 %v9375_v6  ;;  %v9073_v14 = vcombine.high %v390_v4, %v398_v22 }
 0x280   :  { %7375 = vmatpush2.bf16.msra.mxu1 %v9646_v41  ;;  %v9744_v41 = vld [vmem:[%s13718_s2] sm:$0xff] }
 0x281   :  { %7376 = vmatprep.subr.bf16.mxu1 %v9631_v29  ;;  %v12117_v6 = vrot.slane %v9744_v41, %v13729_v50  ;;  %v8832_v29 = vcombine.low %v150_v59, %v158_v54  ;;  %v12121_v19 = vrot.slane %v9744_v41, %v13728_v40  ;;  %v382_v59 = vld [vmem:[%s13716_s1 + $0xae8] sm:$0xff] }
 0x282   :  { %7324 = vmatpush2.bf16.msra.mxu0 %v9374_v20  ;;  %v118_v20 = vld [vmem:[%s13716_s1 + $0x2a8] sm:$0xff] }
 0x283   :  { %7325 = vmatprep.subr.bf16.mxu0 %v9359_v51 }
 0x284   :  { %7377 = vmatpush2.bf16.msra.mxu1 %v9630_v18  ;;  %v126_v18 = vld [vmem:[%s13716_s1 + $0x2e8] sm:$0xff] }
 0x285   :  { %7378 = vmatprep.subr.bf16.mxu1 %v9615_v48  ;;  %v374_v48 = vld [vmem:[%s13716_s1 + $0xaa8] sm:$0xff] }
 0x286   :  { %7326 = vmatpush2.bf16.msra.mxu0 %v9358_v53  ;;  %v9057_v50 = vcombine.high %v374_v48, %v382_v59 }
 0x287   :  { %7401 = vmatprep.subr.bf16.mxu0 %v8833_v0  ;;  %v8801_v0 = vcombine.high %v118_v20, %v126_v18 }
 0x288   :  { %7379 = vmatpush2.bf16.msra.mxu1 %v9614_v36  ;;  %v9072_v36 = vcombine.low %v390_v4, %v398_v22  ;;  %v358_v4 = vld [vmem:[%s13716_s1 + $0xa28] sm:$0xff] }
 0x289   :  { %7454 = vmatprep.subr.bf16.mxu1 %v9089_v5  ;;  %v7011_v51 = vpop.f32.mrf.mxu0  ;;  %7328 = vmatmul.mubr.bf16.vlgmr.msra.gmra.mxu0 %v10273_v3  ;;  %v366_v22 = vld [vmem:[%s13716_s1 + $0xa68] sm:$0xff] }
 0x28a   :  { %v7012_v54 = vadd.f32 %v7011_v51, %v12117_v6  ;;  %7402 = vmatpush1.bf16.msra.mxu0 %v8832_v29  ;;  %7337 = vmatprep.mubr.bf16.mxu0 %v10294_v12  ;;  %v102_v51 = vld [vmem:[%s13716_s1 + $0x228] sm:$0xff]  ;;  %v9041_v60 = vcombine.high %v358_v4, %v366_v22 }
 0x28b   :  { %v7064_v43 = vpop.f32.mrf.mxu1  ;;  %7381 = vmatmul.mubr.bf16.vlgmr.msra.gmra.mxu1 %v10286_v7  ;;  %v7013_v53 = vpop.f32.mrf.mxu0  ;;  %7403 = vmatprep.subr.bf16.mxu0 %v8817_v52 }
 0x28c   :  { %7455 = vmatpush1.bf16.msra.mxu1 %v9088_v11  ;;  %v12138_v5 = vadd.f32 %v7064_v43, %v7012_v54  ;;  %v7014_v41 = vadd.f32 %v7013_v53, %v12121_v19  ;;  %7390 = vmatprep.mubr.bf16.mxu1 %v10309_v15  ;;  %v9056_v43 = vcombine.low %v374_v48, %v382_v59  ;;  %v350_v48 = vld [vmem:[%s13716_s1 + $0x9e8] sm:$0xff] }
 0x28d   :  { %v7066_v40 = vpop.f32.mrf.mxu1  ;;  %7456 = vmatprep.subr.bf16.mxu1 %v9073_v14  ;;  %v7015_v31 = vpop.f32.mrf.mxu0  ;;  %v8800_v14 = vcombine.low %v118_v20, %v126_v18  ;;  %v8785_v53 = vcombine.high %v102_v51, %v110_v13  ;;  %v94_v20 = vld [vmem:[%s13716_s1 + $0x1e8] sm:$0xff] }
 0x28e   :  { %v12155_v29 = vadd.f32 %v7066_v40, %v7014_v41  ;;  %v7016_v11 = vadd.f32 %v7015_v31, %v12117_v6  ;;  %7404 = vmatpush1.bf16.msra.mxu0 %v8816_v57  ;;  %v86_v40 = vld [vmem:[%s13716_s1 + $0x1a8] sm:$0xff]  ;;  %v8784_v57 = vcombine.low %v102_v51, %v110_v13  ;;  %v9040_v41 = vcombine.low %v358_v4, %v366_v22 }
 0x28f   :  { %v7068_v52 = vpop.f32.mrf.mxu1  ;;  %v7017_v54 = vpop.f32.mrf.mxu0  ;;  %7405 = vmatprep.subr.bf16.mxu0 %v8801_v0  ;;  %v342_v18 = vld [vmem:[%s13716_s1 + $0x9a8] sm:$0xff]  ;;  %v8769_v31 = vcombine.high %v86_v40, %v94_v20 }
 0x290   :  { %7457 = vmatpush1.bf16.msra.mxu1 %v9072_v36  ;;  %v12158_v39 = vadd.f32 %v7068_v52, %v7016_v11  ;;  %v7018_v9 = vadd.f32 %v7017_v54, %v12121_v19  ;;  %v9025_v52 = vcombine.high %v342_v18, %v350_v48  ;;  %v70_v54 = vld [vmem:[%s13716_s1 + $0x128] sm:$0xff] }
 0x291   :  { %v7070_v8 = vpop.f32.mrf.mxu1  ;;  %7458 = vmatprep.subr.bf16.mxu1 %v9057_v50  ;;  %7338 = vmatmul.mubr.bf16.gmra.mxu0 %v10319_v23  ;;  %v7021_v50 = vpop.f32.mrf.mxu0  ;;  %v334_v4 = vld [vmem:[%s13716_s1 + $0x968] sm:$0xff] }
 0x292   :  { %v12174_v59 = vadd.f32 %v7070_v8, %v7018_v9  ;;  %7406 = vmatpush1.bf16.msra.mxu0 %v8800_v14  ;;  %v7022_v36 = vadd.f32 %v7021_v50, %v12117_v6  ;;  %v78_v8 = vld [vmem:[%s13716_s1 + $0x168] sm:$0xff]  ;;  %7433 = vmatprep.mubr.bf16.mxu0 %v9874_v58  ;;  %v8768_v14 = vcombine.low %v86_v40, %v94_v20 }
 0x293   :  { %7391 = vmatmul.mubr.bf16.gmra.mxu1 %v10328_v55  ;;  %v7074_v0 = vpop.f32.mrf.mxu1  ;;  %7407 = vmatprep.subr.bf16.mxu0 %v8785_v53  ;;  %v7023_v11 = vpop.f32.mrf.mxu0  ;;  %v9024_v50 = vcombine.low %v342_v18, %v350_v48  ;;  %v318_v20 = vld [vmem:[%s13716_s1 + $0x8e8] sm:$0xff]  ;;  %v8752_v18 = vcombine.low %v70_v54, %v78_v8 }
 0x294   :  { %7459 = vmatpush1.bf16.msra.mxu1 %v9056_v43  ;;  %v7024_v9 = vadd.f32 %v7023_v11, %v12121_v19  ;;  %v12185_v51 = vadd.f32 %v7074_v0, %v7022_v36  ;;  %7486 = vmatprep.mubr.bf16.mxu1 %v9894_v63  ;;  %v8753_v36 = vcombine.high %v70_v54, %v78_v8  ;;  %v302_v54 = vld [vmem:[%s13716_s1 + $0x868] sm:$0xff] }
 0x295   :  { %7460 = vmatprep.subr.bf16.mxu1 %v9041_v60  ;;  %v7076_v13 = vpop.f32.mrf.mxu1  ;;  %v326_v60 = vld [vmem:[%s13716_s1 + $0x928] sm:$0xff]  ;;  %v7025_v22 = vpop.f32.mrf.mxu0 }
 0x296   :  { %7408 = vmatpush1.bf16.msra.mxu0 %v8784_v57  ;;  %v7026_v43 = vadd.f32 %v7025_v22, %v12117_v6  ;;  %v12196_v53 = vadd.f32 %v7076_v13, %v7024_v9  ;;  %v9009_v11 = vcombine.high %v326_v60, %v334_v4  ;;  %v62_v57 = vld [vmem:[%s13716_s1 + $0xe8] sm:$0xff]  ;;  %v9008_v48 = vcombine.low %v326_v60, %v334_v4 }
 0x297   :  { %7409 = vmatprep.subr.bf16.mxu0 %v8769_v31  ;;  %v7078_v0 = vpop.f32.mrf.mxu1  ;;  %v310_v6 = vld [vmem:[%s13716_s1 + $0x8a8] sm:$0xff]  ;;  %v8736_v8 = vcombine.low %v54_v2, %v62_v57 }
 0x298   :  { %13756 = vst [vmem:[#allocation21_spill] sm:$0xff] %v12196_v53  ;;  %7461 = vmatpush1.bf16.msra.mxu1 %v9040_v41  ;;  %v12204_v40 = vadd.f32 %v7078_v0, %v7026_v43  ;;  %v8737_v41 = vcombine.high %v54_v2, %v62_v57  ;;  %v8993_v31 = vcombine.high %v310_v6, %v318_v20  ;;  %v46_v9 = vld [vmem:[%s13716_s1 + $0x68] sm:$0xff] }
 0x299   :  { %7462 = vmatprep.subr.bf16.mxu1 %v9025_v52  ;;  %v38_v52 = vld [vmem:[%s13716_s1 + $0x28] sm:$0xff]  ;;  %v8992_v60 = vcombine.low %v310_v6, %v318_v20 }
 0x29a   :  { %7410 = vmatpush1.bf16.msra.mxu0 %v8768_v14  ;;  %v294_v13 = vld [vmem:[%s13716_s1 + $0x828] sm:$0xff]  ;;  %v8721_v4 = vcombine.high %v38_v52, %v46_v9 }
 0x29b   :  { %7411 = vmatprep.subr.bf16.mxu0 %v8753_v36  ;;  %v8977_v22 = vcombine.high %v294_v13, %v302_v54  ;;  %v278_v14 = vld [vmem:[%s13716_s1 + $0x7a8] sm:$0xff]  ;;  %v8720_v36 = vcombine.low %v38_v52, %v46_v9  ;;  %v8976_v0 = vcombine.low %v294_v13, %v302_v54 }
 0x29c   :  { %7463 = vmatpush1.bf16.msra.mxu1 %v9024_v50  ;;  %v286_v43 = vld [vmem:[%s13716_s1 + $0x7e8] sm:$0xff] }
 0x29d   :  { %7464 = vmatprep.subr.bf16.mxu1 %v9009_v11  ;;  %v534_v50 = vld [vmem:[%s13716_s1 + $0xfa8] sm:$0xff]  ;;  %v8961_v11 = vcombine.high %v278_v14, %v286_v43 }
 0x29e   :  { %7412 = vmatpush1.bf16.msra.mxu0 %v8752_v18  ;;  %v542_v2 = vld [vmem:[%s13716_s1 + $0xfe8] sm:$0xff] }
 0x29f   :  { %7413 = vmatprep.subr.bf16.mxu0 %v8737_v41  ;;  %v9217_v57 = vcombine.high %v534_v50, %v542_v2  ;;  %v262_v6 = vld [vmem:[%s13716_s1 + $0x728] sm:$0xff]  ;;  %v8960_v41 = vcombine.low %v278_v14, %v286_v43 }
 0x2a0   :  { %7465 = vmatpush1.bf16.msra.mxu1 %v9008_v48  ;;  %v270_v20 = vld [vmem:[%s13716_s1 + $0x768] sm:$0xff] }
 0x2a1   :  { %7466 = vmatprep.subr.bf16.mxu1 %v8993_v31  ;;  %v518_v18 = vld [vmem:[%s13716_s1 + $0xf28] sm:$0xff]  ;;  %v9216_v31 = vcombine.low %v534_v50, %v542_v2  ;;  %v8945_v52 = vcombine.high %v262_v6, %v270_v20 }
 0x2a2   :  { %7414 = vmatpush1.bf16.msra.mxu0 %v8736_v8  ;;  %v526_v48 = vld [vmem:[%s13716_s1 + $0xf68] sm:$0xff] }
 0x2a3   :  { %7415 = vmatprep.subr.bf16.mxu0 %v8721_v4  ;;  %v9201_v9 = vcombine.high %v518_v18, %v526_v48  ;;  %v246_v13 = vld [vmem:[%s13716_s1 + $0x6a8] sm:$0xff]  ;;  %v8944_v4 = vcombine.low %v262_v6, %v270_v20 }
 0x2a4   :  { %7467 = vmatpush1.bf16.msra.mxu1 %v8992_v60  ;;  %v254_v54 = vld [vmem:[%s13716_s1 + $0x6e8] sm:$0xff] }
 0x2a5   :  { %7468 = vmatprep.subr.bf16.mxu1 %v8977_v22  ;;  %v502_v8 = vld [vmem:[%s13716_s1 + $0xea8] sm:$0xff]  ;;  %v9200_v22 = vcombine.low %v518_v18, %v526_v48  ;;  %v8929_v14 = vcombine.high %v246_v13, %v254_v54 }
 0x2a6   :  { %7416 = vmatpush1.bf16.msra.mxu0 %v8720_v36  ;;  %v510_v60 = vld [vmem:[%s13716_s1 + $0xee8] sm:$0xff] }
 0x2a7   :  { %7417 = vmatprep.subr.bf16.mxu0 %v8961_v11  ;;  %v9185_v43 = vcombine.high %v502_v8, %v510_v60  ;;  %v230_v50 = vld [vmem:[%s13716_s1 + $0x628] sm:$0xff]  ;;  %v8928_v11 = vcombine.low %v246_v13, %v254_v54 }
 0x2a8   :  { %7469 = vmatpush1.bf16.msra.mxu1 %v8976_v0  ;;  %v238_v2 = vld [vmem:[%s13716_s1 + $0x668] sm:$0xff] }
 0x2a9   :  { %7470 = vmatprep.subr.bf16.mxu1 %v9217_v57  ;;  %v486_v36 = vld [vmem:[%s13716_s1 + $0xe28] sm:$0xff]  ;;  %v9184_v57 = vcombine.low %v502_v8, %v510_v60  ;;  %v8913_v6 = vcombine.high %v230_v50, %v238_v2 }
 0x2aa   :  { %7418 = vmatpush2.bf16.msra.mxu0 %v8960_v41  ;;  %v494_v0 = vld [vmem:[%s13716_s1 + $0xe68] sm:$0xff] }
 0x2ab   :  { %7419 = vmatprep.subr.bf16.mxu0 %v8945_v52  ;;  %v9169_v20 = vcombine.high %v486_v36, %v494_v0  ;;  %v214_v18 = vld [vmem:[%s13716_s1 + $0x5a8] sm:$0xff]  ;;  %v8912_v52 = vcombine.low %v230_v50, %v238_v2 }
 0x2ac   :  { %7471 = vmatpush2.bf16.msra.mxu1 %v9216_v31  ;;  %v222_v48 = vld [vmem:[%s13716_s1 + $0x5e8] sm:$0xff] }
 0x2ad   :  { %7472 = vmatprep.subr.bf16.mxu1 %v9201_v9  ;;  %v470_v41 = vld [vmem:[%s13716_s1 + $0xda8] sm:$0xff]  ;;  %v9168_v9 = vcombine.low %v486_v36, %v494_v0  ;;  %v8897_v13 = vcombine.high %v214_v18, %v222_v48 }
 0x2ae   :  { %7420 = vmatpush2.bf16.msra.mxu0 %v8944_v4  ;;  %v478_v31 = vld [vmem:[%s13716_s1 + $0xde8] sm:$0xff] }
 0x2af   :  { %7421 = vmatprep.subr.bf16.mxu0 %v8929_v14  ;;  %v9153_v54 = vcombine.high %v470_v41, %v478_v31  ;;  %v198_v8 = vld [vmem:[%s13716_s1 + $0x528] sm:$0xff]  ;;  %v8896_v14 = vcombine.low %v214_v18, %v222_v48 }
 0x2b0   :  { %7473 = vmatpush2.bf16.msra.mxu1 %v9200_v22  ;;  %v206_v60 = vld [vmem:[%s13716_s1 + $0x568] sm:$0xff] }
 0x2b1   :  { %7474 = vmatprep.subr.bf16.mxu1 %v9185_v43  ;;  %v454_v4 = vld [vmem:[%s13716_s1 + $0xd28] sm:$0xff]  ;;  %v9152_v43 = vcombine.low %v470_v41, %v478_v31  ;;  %v8881_v50 = vcombine.high %v198_v8, %v206_v60 }
 0x2b2   :  { %7422 = vmatpush2.bf16.msra.mxu0 %v8928_v11  ;;  %v462_v22 = vld [vmem:[%s13716_s1 + $0xd68] sm:$0xff] }
 0x2b3   :  { %7423 = vmatprep.subr.bf16.mxu0 %v8913_v6  ;;  %v9137_v2 = vcombine.high %v454_v4, %v462_v22  ;;  %v182_v36 = vld [vmem:[%s13716_s1 + $0x4a8] sm:$0xff]  ;;  %v8880_v6 = vcombine.low %v198_v8, %v206_v60 }
 0x2b4   :  { %7475 = vmatpush2.bf16.msra.mxu1 %v9184_v57  ;;  %v190_v0 = vld [vmem:[%s13716_s1 + $0x4e8] sm:$0xff] }
 0x2b5   :  { %7476 = vmatprep.subr.bf16.mxu1 %v9169_v20  ;;  %v438_v11 = vld [vmem:[%s13716_s1 + $0xca8] sm:$0xff]  ;;  %v9136_v20 = vcombine.low %v454_v4, %v462_v22  ;;  %v8865_v18 = vcombine.high %v182_v36, %v190_v0 }
 0x2b6   :  { %7424 = vmatpush2.bf16.msra.mxu0 %v8912_v52  ;;  %v446_v57 = vld [vmem:[%s13716_s1 + $0xce8] sm:$0xff] }
 0x2b7   :  { %7425 = vmatprep.subr.bf16.mxu0 %v8897_v13  ;;  %v9121_v48 = vcombine.high %v438_v11, %v446_v57  ;;  %v166_v41 = vld [vmem:[%s13716_s1 + $0x428] sm:$0xff]  ;;  %v8864_v13 = vcombine.low %v182_v36, %v190_v0 }
 0x2b8   :  { %7477 = vmatpush2.bf16.msra.mxu1 %v9168_v9  ;;  %v174_v31 = vld [vmem:[%s13716_s1 + $0x468] sm:$0xff] }
 0x2b9   :  { %7478 = vmatprep.subr.bf16.mxu1 %v9153_v54  ;;  %v422_v52 = vld [vmem:[%s13716_s1 + $0xc28] sm:$0xff]  ;;  %v9120_v54 = vcombine.low %v438_v11, %v446_v57  ;;  %v8849_v8 = vcombine.high %v166_v41, %v174_v31 }
 0x2ba   :  { %7426 = vmatpush2.bf16.msra.mxu0 %v8896_v14  ;;  %v430_v9 = vld [vmem:[%s13716_s1 + $0xc68] sm:$0xff] }
 0x2bb   :  { %7427 = vmatprep.subr.bf16.mxu0 %v8881_v50  ;;  %v9105_v60 = vcombine.high %v422_v52, %v430_v9  ;;  %v662_v4 = vld [vmem:[%s13716_s1 + $0x13a8] sm:$0xff]  ;;  %v8848_v50 = vcombine.low %v166_v41, %v174_v31 }
 0x2bc   :  { %7479 = vmatpush2.bf16.msra.mxu1 %v9152_v43  ;;  %v670_v22 = vld [vmem:[%s13716_s1 + $0x13e8] sm:$0xff] }
 0x2bd   :  { %7480 = vmatprep.subr.bf16.mxu1 %v9137_v2  ;;  %v918_v14 = vld [vmem:[%s13716_s1 + $0x1ba8] sm:$0xff]  ;;  %v9104_v2 = vcombine.low %v422_v52, %v430_v9  ;;  %v9345_v36 = vcombine.high %v662_v4, %v670_v22  ;;  %v12346_v52 = vpop.f32.mrf.mxu1 }
 0x2be   :  { %7428 = vmatpush2.bf16.msra.mxu0 %v8880_v6  ;;  %v926_v43 = vld [vmem:[%s13716_s1 + $0x1be8] sm:$0xff] }
 0x2bf   :  { %7429 = vmatprep.subr.bf16.mxu0 %v8865_v18  ;;  %v9601_v0 = vcombine.high %v918_v14, %v926_v43  ;;  %v646_v11 = vld [vmem:[%s13716_s1 + $0x1328] sm:$0xff]  ;;  %v9344_v18 = vcombine.low %v662_v4, %v670_v22  ;;  %v9600_v41 = vcombine.low %v918_v14, %v926_v43 }
 0x2c0   :  { %7481 = vmatpush2.bf16.msra.mxu1 %v9136_v20  ;;  %v654_v57 = vld [vmem:[%s13716_s1 + $0x1368] sm:$0xff] }
 0x2c1   :  { %7482 = vmatprep.subr.bf16.mxu1 %v9121_v48  ;;  %v902_v6 = vld [vmem:[%s13716_s1 + $0x1b28] sm:$0xff]  ;;  %v12344_v48 = vpop.f32.mrf.mxu0  ;;  %v9329_v31 = vcombine.high %v646_v11, %v654_v57  ;;  %v9328_v43 = vcombine.low %v646_v11, %v654_v57 }
 0x2c2   :  { %7430 = vmatpush2.bf16.msra.mxu0 %v8864_v13  ;;  %v910_v20 = vld [vmem:[%s13716_s1 + $0x1b68] sm:$0xff] }
 0x2c3   :  { %7431 = vmatprep.subr.bf16.mxu0 %v8849_v8  ;;  %v9585_v9 = vcombine.high %v902_v6, %v910_v20  ;;  %v630_v13 = vld [vmem:[%s13716_s1 + $0x12a8] sm:$0xff] }
 0x2c4   :  { %7483 = vmatpush2.bf16.msra.mxu1 %v9120_v54  ;;  %v638_v54 = vld [vmem:[%s13716_s1 + $0x12e8] sm:$0xff] }
 0x2c5   :  { %7484 = vmatprep.subr.bf16.mxu1 %v9105_v60  ;;  %v886_v60 = vld [vmem:[%s13716_s1 + $0x1aa8] sm:$0xff] }
 0x2c6   :  { %7432 = vmatpush2.bf16.msra.mxu0 %v8848_v50  ;;  %v894_v4 = vld [vmem:[%s13716_s1 + $0x1ae8] sm:$0xff] }
 0x2c7   :  { %7507 = vmatprep.subr.bf16.mxu0 %v9345_v36  ;;  %v9313_v36 = vcombine.high %v630_v13, %v638_v54  ;;  %v9569_v49 = vcombine.high %v886_v60, %v894_v4  ;;  %v622_v11 = vld [vmem:[%s13716_s1 + $0x1268] sm:$0xff] }
 0x2c8   :  { %7485 = vmatpush2.bf16.msra.mxu1 %v9104_v2  ;;  %v9584_v2 = vcombine.low %v902_v6, %v910_v20  ;;  %v870_v6 = vld [vmem:[%s13716_s1 + $0x1a28] sm:$0xff] }
 0x2c9   :  { %7560 = vmatprep.subr.bf16.mxu1 %v9601_v0  ;;  %v7117_v8 = vpop.f32.mrf.mxu0  ;;  %7434 = vmatmul.mubr.bf16.vlgmr.msra.gmra.mxu0 %v10017_v21 }
 0x2ca   :  { %v7118_v22 = vadd.f32 %v7117_v8, %v12138_v5  ;;  %7508 = vmatpush1.bf16.msra.mxu0 %v9344_v18  ;;  %v614_v5 = vld [vmem:[%s13716_s1 + $0x1228] sm:$0xff]  ;;  %7443 = vmatprep.mubr.bf16.mxu0 %v10044_v30  ;;  %v9568_v8 = vcombine.low %v886_v60, %v894_v4 }
 0x2cb   :  { %v7170_v14 = vpop.f32.mrf.mxu1  ;;  %7487 = vmatmul.mubr.bf16.vlgmr.msra.gmra.mxu1 %v10030_v25  ;;  %v7119_v50 = vpop.f32.mrf.mxu0  ;;  %7509 = vmatprep.subr.bf16.mxu0 %v9329_v31  ;;  %v9312_v31 = vcombine.low %v630_v13, %v638_v54  ;;  %v854_v13 = vld [vmem:[%s13716_s1 + $0x19a8] sm:$0xff]  ;;  %v9296_v4 = vcombine.low %v614_v5, %v622_v11 }
 0x2cc   :  { %7561 = vmatpush1.bf16.msra.mxu1 %v9600_v41  ;;  %v12363_v0 = vadd.f32 %v7170_v14, %v7118_v22  ;;  %v7120_v53 = vadd.f32 %v7119_v50, %v12155_v29  ;;  %v878_v29 = vld [vmem:[%s13716_s1 + $0x1a68] sm:$0xff]  ;;  %7496 = vmatprep.mubr.bf16.mxu1 %v10053_v33  ;;  %v9297_v22 = vcombine.high %v614_v5, %v622_v11 }
 0x2cd   :  { %v7172_v17 = vpop.f32.mrf.mxu1  ;;  %7562 = vmatprep.subr.bf16.mxu1 %v9585_v9  ;;  %v7121_v57 = vpop.f32.mrf.mxu0  ;;  %v9553_v37 = vcombine.high %v870_v6, %v878_v29  ;;  %v838_v5 = vld [vmem:[%s13716_s1 + $0x1928] sm:$0xff] }
 0x2ce   :  { %13757 = vst [vmem:[#allocation22_spill] sm:$0xff] %v12363_v0  ;;  %v12380_v20 = vadd.f32 %v7172_v17, %v7120_v53  ;;  %v7122_v18 = vadd.f32 %v7121_v57, %v12158_v39  ;;  %7510 = vmatpush1.bf16.msra.mxu0 %v9328_v43  ;;  %v598_v17 = vld [vmem:[%s13716_s1 + $0x11a8] sm:$0xff]  ;;  %v9552_v43 = vcombine.low %v870_v6, %v878_v29 }
 0x2cf   :  { %v7174_v41 = vpop.f32.mrf.mxu1  ;;  %v7123_v9 = vpop.f32.mrf.mxu0  ;;  %7511 = vmatprep.subr.bf16.mxu0 %v9313_v36  ;;  %v606_v39 = vld [vmem:[%s13716_s1 + $0x11e8] sm:$0xff] }
 0x2d0   :  { %13758 = vst [vmem:[#allocation23_spill] sm:$0xff] %v12380_v20  ;;  %7563 = vmatpush1.bf16.msra.mxu1 %v9584_v2  ;;  %v12383_v14 = vadd.f32 %v7174_v41, %v7122_v18  ;;  %v7124_v50 = vadd.f32 %v7123_v9, %v12174_v59  ;;  %v862_v59 = vld [vmem:[%s13716_s1 + $0x19e8] sm:$0xff]  ;;  %v9281_v2 = vcombine.high %v598_v17, %v606_v39 }
 0x2d1   :  { %v7176_v0 = vpop.f32.mrf.mxu1  ;;  %7564 = vmatprep.subr.bf16.mxu1 %v9569_v49  ;;  %v7127_v53 = vpop.f32.mrf.mxu0  ;;  %7444 = vmatmul.mubr.bf16.gmra.mxu0 %v10069_v42  ;;  %v9537_v57 = vcombine.high %v854_v13, %v862_v59  ;;  %v846_v11 = vld [vmem:[%s13716_s1 + $0x1968] sm:$0xff]  ;;  %v9536_v6 = vcombine.low %v854_v13, %v862_v59 }
 0x2d2   :  { %13759 = vst [vmem:[#allocation24_spill] sm:$0xff] %v12383_v14  ;;  %v12399_v49 = vadd.f32 %v7176_v0, %v7124_v50  ;;  %v7128_v54 = vadd.f32 %v7127_v53, %v12185_v51  ;;  %7512 = vmatpush1.bf16.msra.mxu0 %v9312_v31  ;;  %v582_v0 = vld [vmem:[%s13716_s1 + $0x1128] sm:$0xff]  ;;  %7539 = vmatprep.mubr.bf16.mxu0 %v10102_v56 }
 0x2d3   :  { %v7180_v60 = vpop.f32.mrf.mxu1  ;;  %7497 = vmatmul.mubr.bf16.gmra.mxu1 %v10082_v46  ;;  %7513 = vmatprep.subr.bf16.mxu0 %v9297_v22  ;;  %v590_v51 = vld [vmem:[%s13716_s1 + $0x1168] sm:$0xff]  ;;  %v9521_v18 = vcombine.high %v838_v5, %v846_v11  ;;  %v9520_v50 = vcombine.low %v838_v5, %v846_v11 }
 0x2d4   :  { %13760 = vst [vmem:[#allocation25_spill] sm:$0xff] %v12399_v49  ;;  %7565 = vmatpush1.bf16.msra.mxu1 %v9568_v8  ;;  %v12403_v36 = vadd.f32 %v7180_v60, %v7128_v54  ;;  %7592 = vmatprep.mubr.bf16.mxu1 %v10113_v62  ;;  %v9265_v29 = vcombine.high %v582_v0, %v590_v51  ;;  %v566_v41 = vld [vmem:[%s13716_s1 + $0x10a8] sm:$0xff]  ;;  %v103_v49 = vld [vmem:[%s13716_s1 + $0x230] sm:$0xff] }
 0x2d5   :  { %7566 = vmatprep.subr.bf16.mxu1 %v9553_v37  ;;  %v9280_v37 = vcombine.low %v598_v17, %v606_v39  ;;  %v574_v31 = vld [vmem:[%s13716_s1 + $0x10e8] sm:$0xff]  ;;  %v9264_v22 = vcombine.low %v582_v0, %v590_v51 }
 0x2d6   :  { %13761 = vst [vmem:[#allocation26_spill] sm:$0xff] %v12403_v36  ;;  %7514 = vmatpush1.bf16.msra.mxu0 %v9296_v4  ;;  %v822_v9 = vld [vmem:[%s13716_s1 + $0x18a8] sm:$0xff]  ;;  %v9249_v17 = vcombine.high %v566_v41, %v574_v31  ;;  %v9248_v60 = vcombine.low %v566_v41, %v574_v31  ;;  %v208_v36 = vld [vmem:[%s13716_s1 + $0x578] sm:$0xff] }
 0x2d7   :  { %7515 = vmatprep.subr.bf16.mxu0 %v9281_v2  ;;  %v830_v8 = vld [vmem:[%s13716_s1 + $0x18e8] sm:$0xff] }
 0x2d8   :  { %7567 = vmatpush1.bf16.msra.mxu1 %v9552_v43  ;;  %v9505_v39 = vcombine.high %v822_v9, %v830_v8  ;;  %v550_v53 = vld [vmem:[%s13716_s1 + $0x1028] sm:$0xff]  ;;  %v9504_v4 = vcombine.low %v822_v9, %v830_v8 }
 0x2d9   :  { %7568 = vmatprep.subr.bf16.mxu1 %v9537_v57  ;;  %v558_v13 = vld [vmem:[%s13716_s1 + $0x1068] sm:$0xff] }
 0x2da   :  { %7516 = vmatpush1.bf16.msra.mxu0 %v9280_v37  ;;  %v806_v59 = vld [vmem:[%s13716_s1 + $0x1828] sm:$0xff]  ;;  %v9233_v43 = vcombine.high %v550_v53, %v558_v13  ;;  %v9232_v11 = vcombine.low %v550_v53, %v558_v13 }
 0x2db   :  { %7517 = vmatprep.subr.bf16.mxu0 %v9265_v29  ;;  %v814_v54 = vld [vmem:[%s13716_s1 + $0x1868] sm:$0xff] }
 0x2dc   :  { %7569 = vmatpush1.bf16.msra.mxu1 %v9536_v6  ;;  %v9489_v2 = vcombine.high %v806_v59, %v814_v54  ;;  %v790_v57 = vld [vmem:[%s13716_s1 + $0x17a8] sm:$0xff]  ;;  %v9488_v37 = vcombine.low %v806_v59, %v814_v54 }
 0x2dd   :  { %7570 = vmatprep.subr.bf16.mxu1 %v9521_v18  ;;  %v798_v0 = vld [vmem:[%s13716_s1 + $0x17e8] sm:$0xff] }
 0x2de   :  { %7518 = vmatpush1.bf16.msra.mxu0 %v9264_v22  ;;  %v1046_v51 = vld [vmem:[%s13716_s1 + $0x1fa8] sm:$0xff]  ;;  %v9473_v6 = vcombine.high %v790_v57, %v798_v0  ;;  %v9472_v8 = vcombine.low %v790_v57, %v798_v0 }
 0x2df   :  { %7519 = vmatprep.subr.bf16.mxu0 %v9249_v17  ;;  %v1054_v5 = vld [vmem:[%s13716_s1 + $0x1fe8] sm:$0xff] }
 0x2e0   :  { %7571 = vmatpush1.bf16.msra.mxu1 %v9520_v50  ;;  %v9729_v29 = vcombine.high %v1046_v51, %v1054_v5  ;;  %v774_v18 = vld [vmem:[%s13716_s1 + $0x1728] sm:$0xff]  ;;  %v9728_v22 = vcombine.low %v1046_v51, %v1054_v5 }
 0x2e1   :  { %7572 = vmatprep.subr.bf16.mxu1 %v9505_v39  ;;  %v782_v41 = vld [vmem:[%s13716_s1 + $0x1768] sm:$0xff] }
 0x2e2   :  { %7520 = vmatpush1.bf16.msra.mxu0 %v9248_v60  ;;  %v1030_v31 = vld [vmem:[%s13716_s1 + $0x1f28] sm:$0xff]  ;;  %v9457_v50 = vcombine.high %v774_v18, %v782_v41  ;;  %v9456_v54 = vcombine.low %v774_v18, %v782_v41 }
 0x2e3   :  { %7521 = vmatprep.subr.bf16.mxu0 %v9233_v43  ;;  %v1038_v9 = vld [vmem:[%s13716_s1 + $0x1f68] sm:$0xff] }
 0x2e4   :  { %7573 = vmatpush1.bf16.msra.mxu1 %v9504_v4  ;;  %v9713_v17 = vcombine.high %v1030_v31, %v1038_v9  ;;  %v758_v39 = vld [vmem:[%s13716_s1 + $0x16a8] sm:$0xff]  ;;  %v9712_v60 = vcombine.low %v1030_v31, %v1038_v9 }
 0x2e5   :  { %7574 = vmatprep.subr.bf16.mxu1 %v9489_v2  ;;  %v766_v53 = vld [vmem:[%s13716_s1 + $0x16e8] sm:$0xff] }
 0x2e6   :  { %7522 = vmatpush1.bf16.msra.mxu0 %v9232_v11  ;;  %v1014_v13 = vld [vmem:[%s13716_s1 + $0x1ea8] sm:$0xff]  ;;  %v9441_v4 = vcombine.high %v758_v39, %v766_v53  ;;  %v9440_v5 = vcombine.low %v758_v39, %v766_v53 }
 0x2e7   :  { %7523 = vmatprep.subr.bf16.mxu0 %v9473_v6  ;;  %v1022_v59 = vld [vmem:[%s13716_s1 + $0x1ee8] sm:$0xff] }
 0x2e8   :  { %7575 = vmatpush1.bf16.msra.mxu1 %v9488_v37  ;;  %v9697_v43 = vcombine.high %v1014_v13, %v1022_v59  ;;  %v742_v2 = vld [vmem:[%s13716_s1 + $0x1628] sm:$0xff]  ;;  %v9696_v11 = vcombine.low %v1014_v13, %v1022_v59 }
 0x2e9   :  { %7576 = vmatprep.subr.bf16.mxu1 %v9729_v29  ;;  %v750_v57 = vld [vmem:[%s13716_s1 + $0x1668] sm:$0xff] }
 0x2ea   :  { %7524 = vmatpush2.bf16.msra.mxu0 %v9472_v8  ;;  %v998_v0 = vld [vmem:[%s13716_s1 + $0x1e28] sm:$0xff]  ;;  %v9425_v37 = vcombine.high %v742_v2, %v750_v57  ;;  %v9424_v9 = vcombine.low %v742_v2, %v750_v57 }
 0x2eb   :  { %7525 = vmatprep.subr.bf16.mxu0 %v9457_v50  ;;  %v1006_v51 = vld [vmem:[%s13716_s1 + $0x1e68] sm:$0xff] }
 0x2ec   :  { %7577 = vmatpush2.bf16.msra.mxu1 %v9728_v22  ;;  %v9681_v6 = vcombine.high %v998_v0, %v1006_v51  ;;  %v726_v29 = vld [vmem:[%s13716_s1 + $0x15a8] sm:$0xff]  ;;  %v9680_v8 = vcombine.low %v998_v0, %v1006_v51 }
 0x2ed   :  { %7578 = vmatprep.subr.bf16.mxu1 %v9713_v17  ;;  %v734_v18 = vld [vmem:[%s13716_s1 + $0x15e8] sm:$0xff] }
 0x2ee   :  { %7526 = vmatpush2.bf16.msra.mxu0 %v9456_v54  ;;  %v982_v41 = vld [vmem:[%s13716_s1 + $0x1da8] sm:$0xff]  ;;  %v9409_v22 = vcombine.high %v726_v29, %v734_v18  ;;  %v9408_v59 = vcombine.low %v726_v29, %v734_v18 }
 0x2ef   :  { %7527 = vmatprep.subr.bf16.mxu0 %v9441_v4  ;;  %v990_v31 = vld [vmem:[%s13716_s1 + $0x1de8] sm:$0xff] }
 0x2f0   :  { %7579 = vmatpush2.bf16.msra.mxu1 %v9712_v60  ;;  %v9665_v50 = vcombine.high %v982_v41, %v990_v31  ;;  %v710_v17 = vld [vmem:[%s13716_s1 + $0x1528] sm:$0xff]  ;;  %v9664_v54 = vcombine.low %v982_v41, %v990_v31 }
 0x2f1   :  { %7580 = vmatprep.subr.bf16.mxu1 %v9697_v43  ;;  %v718_v39 = vld [vmem:[%s13716_s1 + $0x1568] sm:$0xff] }
 0x2f2   :  { %7528 = vmatpush2.bf16.msra.mxu0 %v9440_v5  ;;  %v966_v53 = vld [vmem:[%s13716_s1 + $0x1d28] sm:$0xff]  ;;  %v9393_v60 = vcombine.high %v710_v17, %v718_v39  ;;  %v9392_v51 = vcombine.low %v710_v17, %v718_v39  ;;  %v151_v17 = vld [vmem:[%s13716_s1 + $0x3b0] sm:$0xff] }
 0x2f3   :  { %7529 = vmatprep.subr.bf16.mxu0 %v9425_v37  ;;  %v974_v13 = vld [vmem:[%s13716_s1 + $0x1d68] sm:$0xff]  ;;  %v159_v39 = vld [vmem:[%s13716_s1 + $0x3f0] sm:$0xff] }
 0x2f4   :  { %7581 = vmatpush2.bf16.msra.mxu1 %v9696_v11  ;;  %v9649_v4 = vcombine.high %v966_v53, %v974_v13  ;;  %v694_v43 = vld [vmem:[%s13716_s1 + $0x14a8] sm:$0xff]  ;;  %v9648_v5 = vcombine.low %v966_v53, %v974_v13  ;;  %v12547_v53 = vpop.f32.mrf.mxu1  ;;  %v407_v13 = vld [vmem:[%s13716_s1 + $0xbb0] sm:$0xff] }
 0x2f5   :  { %7582 = vmatprep.subr.bf16.mxu1 %v9681_v6  ;;  %v702_v2 = vld [vmem:[%s13716_s1 + $0x14e8] sm:$0xff]  ;;  %13762 = vst [vmem:[#allocation27_spill] sm:$0xff] %v12547_v53  ;;  %v176_v53 = vld [vmem:[%s13716_s1 + $0x478] sm:$0xff] }
 0x2f6   :  { %7530 = vmatpush2.bf16.msra.mxu0 %v9424_v9  ;;  %v950_v57 = vld [vmem:[%s13716_s1 + $0x1ca8] sm:$0xff]  ;;  %v9377_v11 = vcombine.high %v694_v43, %v702_v2  ;;  %v9376_v31 = vcombine.low %v694_v43, %v702_v2  ;;  %v12539_v9 = vpop.f32.mrf.mxu0  ;;  %v8835_v2 = vcombine.high %v151_v17, %v159_v39 }
 0x2f7   :  { %7531 = vmatprep.subr.bf16.mxu0 %v9409_v22  ;;  %v958_v0 = vld [vmem:[%s13716_s1 + $0x1ce8] sm:$0xff] }
 0x2f8   :  { %7583 = vmatpush2.bf16.msra.mxu1 %v9680_v8  ;;  %v9633_v37 = vcombine.high %v950_v57, %v958_v0  ;;  %v678_v6 = vld [vmem:[%s13716_s1 + $0x1428] sm:$0xff]  ;;  %v9632_v8 = vcombine.low %v950_v57, %v958_v0  ;;  %v135_v0 = vld [vmem:[%s13716_s1 + $0x330] sm:$0xff] }
 0x2f9   :  { %7584 = vmatprep.subr.bf16.mxu1 %v9665_v50  ;;  %v686_v29 = vld [vmem:[%s13716_s1 + $0x1468] sm:$0xff] }
 0x2fa   :  { %7532 = vmatpush2.bf16.msra.mxu0 %v9408_v59  ;;  %v934_v18 = vld [vmem:[%s13716_s1 + $0x1c28] sm:$0xff]  ;;  %v9361_v22 = vcombine.high %v678_v6, %v686_v29  ;;  %v415_v59 = vld [vmem:[%s13716_s1 + $0xbf0] sm:$0xff] }
 0x2fb   :  { %7533 = vmatprep.subr.bf16.mxu0 %v9393_v60  ;;  %v942_v41 = vld [vmem:[%s13716_s1 + $0x1c68] sm:$0xff]  ;;  %v12555_v60 = vpop.f32.mrf.mxu0  ;;  %v9091_v57 = vcombine.high %v407_v13, %v415_v59 }
 0x2fc   :  { %7585 = vmatpush2.bf16.msra.mxu1 %v9664_v54  ;;  %v9617_v50 = vcombine.high %v934_v18, %v942_v41  ;;  %v9360_v54 = vcombine.low %v678_v6, %v686_v29  ;;  %v1058_v43 = vld [vmem:[%s13718_s2 + $0x8] sm:$0xff]  ;;  %v13763_v6 = vsub.s32 0, %v10678_v10 }
 0x2fd   :  { %7586 = vmatprep.subr.bf16.mxu1 %v9649_v4  ;;  %v9616_v4 = vcombine.low %v934_v18, %v942_v41  ;;  %v8834_v18 = vcombine.low %v151_v17, %v159_v39  ;;  %v12578_v41 = vpop.f32.mrf.mxu0  ;;  %v375_v17 = vld [vmem:[%s13716_s1 + $0xab0] sm:$0xff] }
 0x2fe   :  { %7534 = vmatpush2.bf16.msra.mxu0 %v9392_v51  ;;  %v143_v51 = vld [vmem:[%s13716_s1 + $0x370] sm:$0xff]  ;;  %v12576_v29 = vrot.slane %v1058_v43, %v13763_v6 }
 0x2ff   :  { %7535 = vmatprep.subr.bf16.mxu0 %v9377_v11  ;;  %v391_v11 = vld [vmem:[%s13716_s1 + $0xb30] sm:$0xff] }
 0x300   :  { %7587 = vmatpush2.bf16.msra.mxu1 %v9648_v5  ;;  %v12566_v5 = vpop.f32.mrf.mxu1  ;;  %v383_v39 = vld [vmem:[%s13716_s1 + $0xaf0] sm:$0xff] }
 0x301   :  { %7588 = vmatprep.subr.bf16.mxu1 %v9633_v37  ;;  %v399_v37 = vld [vmem:[%s13716_s1 + $0xb70] sm:$0xff]  ;;  %v9059_v14 = vcombine.high %v375_v17, %v383_v39 }
 0x302   :  { %7536 = vmatpush2.bf16.msra.mxu0 %v9376_v31  ;;  %v9090_v31 = vcombine.low %v407_v13, %v415_v59  ;;  %v12586_v20 = vpop.f32.mrf.mxu1  ;;  %v8818_v59 = vcombine.low %v135_v0, %v143_v51 }
 0x303   :  { %7537 = vmatprep.subr.bf16.mxu0 %v9361_v22  ;;  %v9075_v22 = vcombine.high %v391_v11, %v399_v37 }
 0x304   :  { %7589 = vmatpush2.bf16.msra.mxu1 %v9632_v8  ;;  %v8819_v8 = vcombine.high %v135_v0, %v143_v51  ;;  %v359_v0 = vld [vmem:[%s13716_s1 + $0xa30] sm:$0xff] }
 0x305   :  { %7590 = vmatprep.subr.bf16.mxu1 %v9617_v50  ;;  %v119_v50 = vld [vmem:[%s13716_s1 + $0x2b0] sm:$0xff] }
 0x306   :  { %7538 = vmatpush2.bf16.msra.mxu0 %v9360_v54  ;;  %v127_v54 = vld [vmem:[%s13716_s1 + $0x2f0] sm:$0xff] }
 0x307   :  { %7613 = vmatprep.subr.bf16.mxu0 %v8835_v2  ;;  %v9074_v2 = vcombine.low %v391_v11, %v399_v37  ;;  %v367_v51 = vld [vmem:[%s13716_s1 + $0xa70] sm:$0xff]  ;;  %v8802_v11 = vcombine.low %v119_v50, %v127_v54  ;;  %v9058_v37 = vcombine.low %v375_v17, %v383_v39 }
 0x308   :  { %7591 = vmatpush2.bf16.msra.mxu1 %v9616_v4  ;;  %v9042_v17 = vcombine.low %v359_v0, %v367_v51 }
 0x309   :  { %7666 = vmatprep.subr.bf16.mxu1 %v9091_v57  ;;  %v7223_v43 = vpop.f32.mrf.mxu0  ;;  %7540 = vmatmul.mubr.bf16.vlgmr.msra.gmra.mxu0 %v10273_v3  ;;  %v8803_v57 = vcombine.high %v119_v50, %v127_v54  ;;  %v343_v50 = vld [vmem:[%s13716_s1 + $0x9b0] sm:$0xff] }
 0x30a   :  { %v7224_v13 = vadd.f32 %v7223_v43, %v12576_v29  ;;  %7614 = vmatpush1.bf16.msra.mxu0 %v8834_v18  ;;  %7549 = vmatprep.mubr.bf16.mxu0 %v10294_v12  ;;  %v111_v18 = vld [vmem:[%s13716_s1 + $0x270] sm:$0xff] }
 0x30b   :  { %7593 = vmatmul.mubr.bf16.vlgmr.msra.gmra.mxu1 %v10286_v7  ;;  %v7276_v4 = vpop.f32.mrf.mxu1  ;;  %7615 = vmatprep.subr.bf16.mxu0 %v8819_v8  ;;  %v9043_v8 = vcombine.high %v359_v0, %v367_v51  ;;  %v95_v43 = vld [vmem:[%s13716_s1 + $0x1f0] sm:$0xff] }
 0x30c   :  { %7667 = vmatpush1.bf16.msra.mxu1 %v9090_v31  ;;  %v12597_v6 = vadd.f32 %v7276_v4, %v7224_v13  ;;  %7602 = vmatprep.mubr.bf16.mxu1 %v10309_v15  ;;  %v8787_v31 = vcombine.high %v103_v49, %v111_v18  ;;  %v351_v54 = vld [vmem:[%s13716_s1 + $0x9f0] sm:$0xff] }
 0x30d   :  { %7668 = vmatprep.subr.bf16.mxu1 %v9075_v22  ;;  %v87_v22 = vld [vmem:[%s13716_s1 + $0x1b0] sm:$0xff]  ;;  %v9027_v13 = vcombine.high %v343_v50, %v351_v54 }
 0x30e   :  { %13764 = vst [vmem:[#allocation28_spill] sm:$0xff] %v12597_v6  ;;  %7616 = vmatpush1.bf16.msra.mxu0 %v8818_v59  ;;  %v8771_v39 = vcombine.high %v87_v22, %v95_v43  ;;  %v71_v59 = vld [vmem:[%s13716_s1 + $0x130] sm:$0xff] }
 0x30f   :  { %7617 = vmatprep.subr.bf16.mxu0 %v8803_v57  ;;  %v79_v4 = vld [vmem:[%s13716_s1 + $0x170] sm:$0xff]  ;;  %v8770_v57 = vcombine.low %v87_v22, %v95_v43 }
 0x310   :  { %7669 = vmatpush1.bf16.msra.mxu1 %v9074_v2  ;;  %v335_v2 = vld [vmem:[%s13716_s1 + $0x970] sm:$0xff]  ;;  %v8755_v0 = vcombine.high %v71_v59, %v79_v4  ;;  %v8754_v22 = vcombine.low %v71_v59, %v79_v4 }
 0x311   :  { %7670 = vmatprep.subr.bf16.mxu1 %v9059_v14  ;;  %7550 = vmatmul.mubr.bf16.gmra.mxu0 %v10319_v23  ;;  %v8786_v14 = vcombine.low %v103_v49, %v111_v18  ;;  %v327_v49 = vld [vmem:[%s13716_s1 + $0x930] sm:$0xff]  ;;  %v9026_v18 = vcombine.low %v343_v50, %v351_v54 }
 0x312   :  { %7618 = vmatpush1.bf16.msra.mxu0 %v8802_v11  ;;  %7645 = vmatprep.mubr.bf16.mxu0 %v9874_v58  ;;  %v9011_v51 = vcombine.high %v327_v49, %v335_v2  ;;  %v55_v11 = vld [vmem:[%s13716_s1 + $0xb0] sm:$0xff]  ;;  %v9010_v43 = vcombine.low %v327_v49, %v335_v2 }
 0x313   :  { %7603 = vmatmul.mubr.bf16.gmra.mxu1 %v10328_v55  ;;  %7619 = vmatprep.subr.bf16.mxu0 %v8787_v31  ;;  %v311_v31 = vld [vmem:[%s13716_s1 + $0x8b0] sm:$0xff] }
 0x314   :  { %7671 = vmatpush1.bf16.msra.mxu1 %v9058_v37  ;;  %7698 = vmatprep.mubr.bf16.mxu1 %v9894_v63  ;;  %v63_v37 = vld [vmem:[%s13716_s1 + $0xf0] sm:$0xff] }
 0x315   :  { %7672 = vmatprep.subr.bf16.mxu1 %v9043_v8  ;;  %v319_v8 = vld [vmem:[%s13716_s1 + $0x8f0] sm:$0xff]  ;;  %v8739_v50 = vcombine.high %v55_v11, %v63_v37  ;;  %v8738_v59 = vcombine.low %v55_v11, %v63_v37 }
 0x316   :  { %7620 = vmatpush1.bf16.msra.mxu0 %v8786_v14  ;;  %v8995_v54 = vcombine.high %v311_v31, %v319_v8  ;;  %v39_v14 = vld [vmem:[%s13716_s1 + $0x30] sm:$0xff]  ;;  %v8994_v4 = vcombine.low %v311_v31, %v319_v8 }
 0x317   :  { %7621 = vmatprep.subr.bf16.mxu0 %v8771_v39  ;;  %v295_v39 = vld [vmem:[%s13716_s1 + $0x830] sm:$0xff] }
 0x318   :  { %7673 = vmatpush1.bf16.msra.mxu1 %v9042_v17  ;;  %v47_v17 = vld [vmem:[%s13716_s1 + $0x70] sm:$0xff] }
 0x319   :  { %7674 = vmatprep.subr.bf16.mxu1 %v9027_v13  ;;  %v303_v13 = vld [vmem:[%s13716_s1 + $0x870] sm:$0xff]  ;;  %v8723_v49 = vcombine.high %v39_v14, %v47_v17  ;;  %v8722_v11 = vcombine.low %v39_v14, %v47_v17 }
 0x31a   :  { %7622 = vmatpush1.bf16.msra.mxu0 %v8770_v57  ;;  %v8979_v2 = vcombine.high %v295_v39, %v303_v13  ;;  %v279_v57 = vld [vmem:[%s13716_s1 + $0x7b0] sm:$0xff]  ;;  %v8978_v37 = vcombine.low %v295_v39, %v303_v13 }
 0x31b   :  { %7623 = vmatprep.subr.bf16.mxu0 %v8755_v0  ;;  %v535_v0 = vld [vmem:[%s13716_s1 + $0xfb0] sm:$0xff] }
 0x31c   :  { %7675 = vmatpush1.bf16.msra.mxu1 %v9026_v18  ;;  %v287_v18 = vld [vmem:[%s13716_s1 + $0x7f0] sm:$0xff] }
 0x31d   :  { %7676 = vmatprep.subr.bf16.mxu1 %v9011_v51  ;;  %v543_v51 = vld [vmem:[%s13716_s1 + $0xff0] sm:$0xff]  ;;  %v8963_v31 = vcombine.high %v279_v57, %v287_v18  ;;  %v8962_v14 = vcombine.low %v279_v57, %v287_v18 }
 0x31e   :  { %7624 = vmatpush1.bf16.msra.mxu0 %v8754_v22  ;;  %v9219_v8 = vcombine.high %v535_v0, %v543_v51  ;;  %v263_v22 = vld [vmem:[%s13716_s1 + $0x730] sm:$0xff]  ;;  %v9218_v17 = vcombine.low %v535_v0, %v543_v51 }
 0x31f   :  { %7625 = vmatprep.subr.bf16.mxu0 %v8739_v50  ;;  %v519_v50 = vld [vmem:[%s13716_s1 + $0xf30] sm:$0xff] }
 0x320   :  { %7677 = vmatpush1.bf16.msra.mxu1 %v9010_v43  ;;  %v271_v43 = vld [vmem:[%s13716_s1 + $0x770] sm:$0xff] }
 0x321   :  { %7678 = vmatprep.subr.bf16.mxu1 %v8995_v54  ;;  %v527_v54 = vld [vmem:[%s13716_s1 + $0xf70] sm:$0xff]  ;;  %v8947_v39 = vcombine.high %v263_v22, %v271_v43  ;;  %v8946_v57 = vcombine.low %v263_v22, %v271_v43 }
 0x322   :  { %7626 = vmatpush1.bf16.msra.mxu0 %v8738_v59  ;;  %v9203_v13 = vcombine.high %v519_v50, %v527_v54  ;;  %v247_v59 = vld [vmem:[%s13716_s1 + $0x6b0] sm:$0xff]  ;;  %v9202_v18 = vcombine.low %v519_v50, %v527_v54 }
 0x323   :  { %7627 = vmatprep.subr.bf16.mxu0 %v8723_v49  ;;  %v503_v49 = vld [vmem:[%s13716_s1 + $0xeb0] sm:$0xff] }
 0x324   :  { %7679 = vmatpush1.bf16.msra.mxu1 %v8994_v4  ;;  %v255_v4 = vld [vmem:[%s13716_s1 + $0x6f0] sm:$0xff] }
 0x325   :  { %7680 = vmatprep.subr.bf16.mxu1 %v8979_v2  ;;  %v511_v2 = vld [vmem:[%s13716_s1 + $0xef0] sm:$0xff]  ;;  %v8931_v0 = vcombine.high %v247_v59, %v255_v4  ;;  %v8930_v22 = vcombine.low %v247_v59, %v255_v4 }
 0x326   :  { %7628 = vmatpush1.bf16.msra.mxu0 %v8722_v11  ;;  %v9187_v51 = vcombine.high %v503_v49, %v511_v2  ;;  %v231_v11 = vld [vmem:[%s13716_s1 + $0x630] sm:$0xff]  ;;  %v9186_v43 = vcombine.low %v503_v49, %v511_v2 }
 0x327   :  { %7629 = vmatprep.subr.bf16.mxu0 %v8963_v31  ;;  %v487_v31 = vld [vmem:[%s13716_s1 + $0xe30] sm:$0xff] }
 0x328   :  { %7681 = vmatpush1.bf16.msra.mxu1 %v8978_v37  ;;  %v239_v37 = vld [vmem:[%s13716_s1 + $0x670] sm:$0xff] }
 0x329   :  { %7682 = vmatprep.subr.bf16.mxu1 %v9219_v8  ;;  %v495_v8 = vld [vmem:[%s13716_s1 + $0xe70] sm:$0xff]  ;;  %v8915_v50 = vcombine.high %v231_v11, %v239_v37  ;;  %v8914_v59 = vcombine.low %v231_v11, %v239_v37 }
 0x32a   :  { %7630 = vmatpush2.bf16.msra.mxu0 %v8962_v14  ;;  %v9171_v54 = vcombine.high %v487_v31, %v495_v8  ;;  %v215_v14 = vld [vmem:[%s13716_s1 + $0x5b0] sm:$0xff]  ;;  %v9170_v4 = vcombine.low %v487_v31, %v495_v8 }
 0x32b   :  { %7631 = vmatprep.subr.bf16.mxu0 %v8947_v39  ;;  %v471_v39 = vld [vmem:[%s13716_s1 + $0xdb0] sm:$0xff] }
 0x32c   :  { %7683 = vmatpush2.bf16.msra.mxu1 %v9218_v17  ;;  %v223_v17 = vld [vmem:[%s13716_s1 + $0x5f0] sm:$0xff] }
 0x32d   :  { %7684 = vmatprep.subr.bf16.mxu1 %v9203_v13  ;;  %v479_v13 = vld [vmem:[%s13716_s1 + $0xdf0] sm:$0xff]  ;;  %v8899_v49 = vcombine.high %v215_v14, %v223_v17  ;;  %v8898_v11 = vcombine.low %v215_v14, %v223_v17 }
 0x32e   :  { %7632 = vmatpush2.bf16.msra.mxu0 %v8946_v57  ;;  %v9155_v2 = vcombine.high %v471_v39, %v479_v13  ;;  %v199_v57 = vld [vmem:[%s13716_s1 + $0x530] sm:$0xff]  ;;  %v9154_v37 = vcombine.low %v471_v39, %v479_v13 }
 0x32f   :  { %7633 = vmatprep.subr.bf16.mxu0 %v8931_v0  ;;  %v455_v0 = vld [vmem:[%s13716_s1 + $0xd30] sm:$0xff] }
 0x330   :  { %7685 = vmatpush2.bf16.msra.mxu1 %v9202_v18  ;;  %v207_v18 = vld [vmem:[%s13716_s1 + $0x570] sm:$0xff] }
 0x331   :  { %7686 = vmatprep.subr.bf16.mxu1 %v9187_v51  ;;  %v463_v51 = vld [vmem:[%s13716_s1 + $0xd70] sm:$0xff]  ;;  %v8883_v31 = vcombine.high %v199_v57, %v207_v18  ;;  %v8882_v14 = vcombine.low %v199_v57, %v207_v18 }
 0x332   :  { %7634 = vmatpush2.bf16.msra.mxu0 %v8930_v22  ;;  %v9139_v8 = vcombine.high %v455_v0, %v463_v51  ;;  %v183_v22 = vld [vmem:[%s13716_s1 + $0x4b0] sm:$0xff]  ;;  %v9138_v17 = vcombine.low %v455_v0, %v463_v51 }
 0x333   :  { %7635 = vmatprep.subr.bf16.mxu0 %v8915_v50  ;;  %v439_v50 = vld [vmem:[%s13716_s1 + $0xcb0] sm:$0xff] }
 0x334   :  { %7687 = vmatpush2.bf16.msra.mxu1 %v9186_v43  ;;  %v191_v43 = vld [vmem:[%s13716_s1 + $0x4f0] sm:$0xff] }
 0x335   :  { %7688 = vmatprep.subr.bf16.mxu1 %v9171_v54  ;;  %v447_v54 = vld [vmem:[%s13716_s1 + $0xcf0] sm:$0xff]  ;;  %v8867_v39 = vcombine.high %v183_v22, %v191_v43  ;;  %v8866_v57 = vcombine.low %v183_v22, %v191_v43 }
 0x336   :  { %7636 = vmatpush2.bf16.msra.mxu0 %v8914_v59  ;;  %v9123_v13 = vcombine.high %v439_v50, %v447_v54  ;;  %v167_v59 = vld [vmem:[%s13716_s1 + $0x430] sm:$0xff]  ;;  %v9122_v18 = vcombine.low %v439_v50, %v447_v54 }
 0x337   :  { %7637 = vmatprep.subr.bf16.mxu0 %v8899_v49  ;;  %v423_v49 = vld [vmem:[%s13716_s1 + $0xc30] sm:$0xff] }
 0x338   :  { %7689 = vmatpush2.bf16.msra.mxu1 %v9170_v4  ;;  %v175_v4 = vld [vmem:[%s13716_s1 + $0x470] sm:$0xff] }
 0x339   :  { %7690 = vmatprep.subr.bf16.mxu1 %v9155_v2  ;;  %v431_v2 = vld [vmem:[%s13716_s1 + $0xc70] sm:$0xff]  ;;  %v8851_v0 = vcombine.high %v167_v59, %v175_v4  ;;  %v8850_v22 = vcombine.low %v167_v59, %v175_v4 }
 0x33a   :  { %7638 = vmatpush2.bf16.msra.mxu0 %v8898_v11  ;;  %v9107_v51 = vcombine.high %v423_v49, %v431_v2  ;;  %v663_v11 = vld [vmem:[%s13716_s1 + $0x13b0] sm:$0xff]  ;;  %v9106_v43 = vcombine.low %v423_v49, %v431_v2 }
 0x33b   :  { %7639 = vmatprep.subr.bf16.mxu0 %v8883_v31  ;;  %v919_v31 = vld [vmem:[%s13716_s1 + $0x1bb0] sm:$0xff] }
 0x33c   :  { %7691 = vmatpush2.bf16.msra.mxu1 %v9154_v37  ;;  %v671_v37 = vld [vmem:[%s13716_s1 + $0x13f0] sm:$0xff] }
 0x33d   :  { %7692 = vmatprep.subr.bf16.mxu1 %v9139_v8  ;;  %v927_v8 = vld [vmem:[%s13716_s1 + $0x1bf0] sm:$0xff]  ;;  %v9347_v50 = vcombine.high %v663_v11, %v671_v37  ;;  %v9346_v59 = vcombine.low %v663_v11, %v671_v37 }
 0x33e   :  { %7640 = vmatpush2.bf16.msra.mxu0 %v8882_v14  ;;  %v9603_v54 = vcombine.high %v919_v31, %v927_v8  ;;  %v647_v14 = vld [vmem:[%s13716_s1 + $0x1330] sm:$0xff]  ;;  %v9602_v4 = vcombine.low %v919_v31, %v927_v8 }
 0x33f   :  { %7641 = vmatprep.subr.bf16.mxu0 %v8867_v39  ;;  %v903_v39 = vld [vmem:[%s13716_s1 + $0x1b30] sm:$0xff] }
 0x340   :  { %7693 = vmatpush2.bf16.msra.mxu1 %v9138_v17  ;;  %v655_v17 = vld [vmem:[%s13716_s1 + $0x1370] sm:$0xff] }
 0x341   :  { %7694 = vmatprep.subr.bf16.mxu1 %v9123_v13  ;;  %v911_v13 = vld [vmem:[%s13716_s1 + $0x1b70] sm:$0xff]  ;;  %v9331_v49 = vcombine.high %v647_v14, %v655_v17  ;;  %v9330_v11 = vcombine.low %v647_v14, %v655_v17 }
 0x342   :  { %7642 = vmatpush2.bf16.msra.mxu0 %v8866_v57  ;;  %v9587_v2 = vcombine.high %v903_v39, %v911_v13  ;;  %v631_v57 = vld [vmem:[%s13716_s1 + $0x12b0] sm:$0xff]  ;;  %v9586_v37 = vcombine.low %v903_v39, %v911_v13 }
 0x343   :  { %7643 = vmatprep.subr.bf16.mxu0 %v8851_v0  ;;  %v887_v0 = vld [vmem:[%s13716_s1 + $0x1ab0] sm:$0xff] }
 0x344   :  { %7695 = vmatpush2.bf16.msra.mxu1 %v9122_v18  ;;  %v639_v18 = vld [vmem:[%s13716_s1 + $0x12f0] sm:$0xff] }
 0x345   :  { %7696 = vmatprep.subr.bf16.mxu1 %v9107_v51  ;;  %v895_v51 = vld [vmem:[%s13716_s1 + $0x1af0] sm:$0xff]  ;;  %v9315_v31 = vcombine.high %v631_v57, %v639_v18  ;;  %v9314_v14 = vcombine.low %v631_v57, %v639_v18 }
 0x346   :  { %7644 = vmatpush2.bf16.msra.mxu0 %v8850_v22  ;;  %v9571_v8 = vcombine.high %v887_v0, %v895_v51  ;;  %v615_v22 = vld [vmem:[%s13716_s1 + $0x1230] sm:$0xff]  ;;  %v9570_v17 = vcombine.low %v887_v0, %v895_v51 }
 0x347   :  { %7719 = vmatprep.subr.bf16.mxu0 %v9347_v50  ;;  %v871_v50 = vld [vmem:[%s13716_s1 + $0x1a30] sm:$0xff] }
 0x348   :  { %7697 = vmatpush2.bf16.msra.mxu1 %v9106_v43  ;;  %v623_v43 = vld [vmem:[%s13716_s1 + $0x1270] sm:$0xff] }
 0x349   :  { %7772 = vmatprep.subr.bf16.mxu1 %v9603_v54  ;;  %7646 = vmatmul.mubr.bf16.vlgmr.msra.gmra.mxu0 %v10017_v21  ;;  %v879_v54 = vld [vmem:[%s13716_s1 + $0x1a70] sm:$0xff]  ;;  %v9299_v39 = vcombine.high %v615_v22, %v623_v43  ;;  %v9298_v57 = vcombine.low %v615_v22, %v623_v43 }
 0x34a   :  { %7720 = vmatpush1.bf16.msra.mxu0 %v9346_v59  ;;  %7655 = vmatprep.mubr.bf16.mxu0 %v10044_v30  ;;  %v9555_v13 = vcombine.high %v871_v50, %v879_v54  ;;  %v599_v59 = vld [vmem:[%s13716_s1 + $0x11b0] sm:$0xff]  ;;  %v9554_v18 = vcombine.low %v871_v50, %v879_v54 }
 0x34b   :  { %7699 = vmatmul.mubr.bf16.vlgmr.msra.gmra.mxu1 %v10030_v25  ;;  %7721 = vmatprep.subr.bf16.mxu0 %v9331_v49  ;;  %v855_v49 = vld [vmem:[%s13716_s1 + $0x19b0] sm:$0xff] }
 0x34c   :  { %7773 = vmatpush1.bf16.msra.mxu1 %v9602_v4  ;;  %7708 = vmatprep.mubr.bf16.mxu1 %v10053_v33  ;;  %v607_v4 = vld [vmem:[%s13716_s1 + $0x11f0] sm:$0xff] }
 0x34d   :  { %7774 = vmatprep.subr.bf16.mxu1 %v9587_v2  ;;  %v863_v2 = vld [vmem:[%s13716_s1 + $0x19f0] sm:$0xff]  ;;  %v9283_v0 = vcombine.high %v599_v59, %v607_v4  ;;  %v9282_v22 = vcombine.low %v599_v59, %v607_v4 }
 0x34e   :  { %7722 = vmatpush1.bf16.msra.mxu0 %v9330_v11  ;;  %v9539_v51 = vcombine.high %v855_v49, %v863_v2  ;;  %v583_v11 = vld [vmem:[%s13716_s1 + $0x1130] sm:$0xff]  ;;  %v9538_v43 = vcombine.low %v855_v49, %v863_v2 }
 0x34f   :  { %7723 = vmatprep.subr.bf16.mxu0 %v9315_v31  ;;  %v839_v31 = vld [vmem:[%s13716_s1 + $0x1930] sm:$0xff] }
 0x350   :  { %7775 = vmatpush1.bf16.msra.mxu1 %v9586_v37  ;;  %v591_v37 = vld [vmem:[%s13716_s1 + $0x1170] sm:$0xff] }
 0x351   :  { %7776 = vmatprep.subr.bf16.mxu1 %v9571_v8  ;;  %7656 = vmatmul.mubr.bf16.gmra.mxu0 %v10069_v42  ;;  %v847_v8 = vld [vmem:[%s13716_s1 + $0x1970] sm:$0xff]  ;;  %v9267_v50 = vcombine.high %v583_v11, %v591_v37  ;;  %v9266_v59 = vcombine.low %v583_v11, %v591_v37 }
 0x352   :  { %7724 = vmatpush1.bf16.msra.mxu0 %v9314_v14  ;;  %7751 = vmatprep.mubr.bf16.mxu0 %v10102_v56  ;;  %v9523_v54 = vcombine.high %v839_v31, %v847_v8  ;;  %v567_v14 = vld [vmem:[%s13716_s1 + $0x10b0] sm:$0xff]  ;;  %v9522_v4 = vcombine.low %v839_v31, %v847_v8 }
 0x353   :  { %7709 = vmatmul.mubr.bf16.gmra.mxu1 %v10082_v46  ;;  %7725 = vmatprep.subr.bf16.mxu0 %v9299_v39  ;;  %v823_v39 = vld [vmem:[%s13716_s1 + $0x18b0] sm:$0xff] }
 0x354   :  { %7777 = vmatpush1.bf16.msra.mxu1 %v9570_v17  ;;  %7804 = vmatprep.mubr.bf16.mxu1 %v10113_v62  ;;  %v575_v17 = vld [vmem:[%s13716_s1 + $0x10f0] sm:$0xff] }
 0x355   :  { %7778 = vmatprep.subr.bf16.mxu1 %v9555_v13  ;;  %v831_v13 = vld [vmem:[%s13716_s1 + $0x18f0] sm:$0xff]  ;;  %v9251_v49 = vcombine.high %v567_v14, %v575_v17  ;;  %v9250_v11 = vcombine.low %v567_v14, %v575_v17 }
 0x356   :  { %7726 = vmatpush1.bf16.msra.mxu0 %v9298_v57  ;;  %v9507_v2 = vcombine.high %v823_v39, %v831_v13  ;;  %v551_v57 = vld [vmem:[%s13716_s1 + $0x1030] sm:$0xff]  ;;  %v9506_v37 = vcombine.low %v823_v39, %v831_v13 }
 0x357   :  { %7727 = vmatprep.subr.bf16.mxu0 %v9283_v0  ;;  %v807_v0 = vld [vmem:[%s13716_s1 + $0x1830] sm:$0xff] }
 0x358   :  { %7779 = vmatpush1.bf16.msra.mxu1 %v9554_v18  ;;  %v559_v18 = vld [vmem:[%s13716_s1 + $0x1070] sm:$0xff] }
 0x359   :  { %7780 = vmatprep.subr.bf16.mxu1 %v9539_v51  ;;  %v815_v51 = vld [vmem:[%s13716_s1 + $0x1870] sm:$0xff]  ;;  %v9235_v31 = vcombine.high %v551_v57, %v559_v18  ;;  %v9234_v14 = vcombine.low %v551_v57, %v559_v18 }
 0x35a   :  { %7728 = vmatpush1.bf16.msra.mxu0 %v9282_v22  ;;  %v9491_v8 = vcombine.high %v807_v0, %v815_v51  ;;  %v791_v22 = vld [vmem:[%s13716_s1 + $0x17b0] sm:$0xff]  ;;  %v9490_v17 = vcombine.low %v807_v0, %v815_v51 }
 0x35b   :  { %7729 = vmatprep.subr.bf16.mxu0 %v9267_v50  ;;  %v1047_v50 = vld [vmem:[%s13716_s1 + $0x1fb0] sm:$0xff] }
 0x35c   :  { %7781 = vmatpush1.bf16.msra.mxu1 %v9538_v43  ;;  %v799_v43 = vld [vmem:[%s13716_s1 + $0x17f0] sm:$0xff] }
 0x35d   :  { %7782 = vmatprep.subr.bf16.mxu1 %v9523_v54  ;;  %v1055_v54 = vld [vmem:[%s13716_s1 + $0x1ff0] sm:$0xff]  ;;  %v9475_v39 = vcombine.high %v791_v22, %v799_v43  ;;  %v9474_v57 = vcombine.low %v791_v22, %v799_v43 }
 0x35e   :  { %7730 = vmatpush1.bf16.msra.mxu0 %v9266_v59  ;;  %v9731_v13 = vcombine.high %v1047_v50, %v1055_v54  ;;  %v775_v59 = vld [vmem:[%s13716_s1 + $0x1730] sm:$0xff]  ;;  %v9730_v18 = vcombine.low %v1047_v50, %v1055_v54 }
 0x35f   :  { %7731 = vmatprep.subr.bf16.mxu0 %v9251_v49  ;;  %v1031_v49 = vld [vmem:[%s13716_s1 + $0x1f30] sm:$0xff] }
 0x360   :  { %7783 = vmatpush1.bf16.msra.mxu1 %v9522_v4  ;;  %v783_v4 = vld [vmem:[%s13716_s1 + $0x1770] sm:$0xff] }
 0x361   :  { %7784 = vmatprep.subr.bf16.mxu1 %v9507_v2  ;;  %v1039_v2 = vld [vmem:[%s13716_s1 + $0x1f70] sm:$0xff]  ;;  %v9459_v0 = vcombine.high %v775_v59, %v783_v4  ;;  %v9458_v22 = vcombine.low %v775_v59, %v783_v4 }
 0x362   :  { %7732 = vmatpush1.bf16.msra.mxu0 %v9250_v11  ;;  %v9715_v51 = vcombine.high %v1031_v49, %v1039_v2  ;;  %v759_v11 = vld [vmem:[%s13716_s1 + $0x16b0] sm:$0xff]  ;;  %v9714_v43 = vcombine.low %v1031_v49, %v1039_v2 }
 0x363   :  { %7733 = vmatprep.subr.bf16.mxu0 %v9235_v31  ;;  %v1015_v31 = vld [vmem:[%s13716_s1 + $0x1eb0] sm:$0xff] }
 0x364   :  { %7785 = vmatpush1.bf16.msra.mxu1 %v9506_v37  ;;  %v767_v37 = vld [vmem:[%s13716_s1 + $0x16f0] sm:$0xff] }
 0x365   :  { %7786 = vmatprep.subr.bf16.mxu1 %v9491_v8  ;;  %v1023_v8 = vld [vmem:[%s13716_s1 + $0x1ef0] sm:$0xff]  ;;  %v9443_v50 = vcombine.high %v759_v11, %v767_v37  ;;  %v9442_v59 = vcombine.low %v759_v11, %v767_v37 }
 0x366   :  { %7734 = vmatpush1.bf16.msra.mxu0 %v9234_v14  ;;  %v9699_v54 = vcombine.high %v1015_v31, %v1023_v8  ;;  %v743_v14 = vld [vmem:[%s13716_s1 + $0x1630] sm:$0xff]  ;;  %v9698_v4 = vcombine.low %v1015_v31, %v1023_v8 }
 0x367   :  { %7735 = vmatprep.subr.bf16.mxu0 %v9475_v39  ;;  %v999_v39 = vld [vmem:[%s13716_s1 + $0x1e30] sm:$0xff] }
 0x368   :  { %7787 = vmatpush1.bf16.msra.mxu1 %v9490_v17  ;;  %v751_v17 = vld [vmem:[%s13716_s1 + $0x1670] sm:$0xff] }
 0x369   :  { %7788 = vmatprep.subr.bf16.mxu1 %v9731_v13  ;;  %v1007_v13 = vld [vmem:[%s13716_s1 + $0x1e70] sm:$0xff]  ;;  %v9427_v49 = vcombine.high %v743_v14, %v751_v17  ;;  %v9426_v11 = vcombine.low %v743_v14, %v751_v17 }
 0x36a   :  { %7736 = vmatpush2.bf16.msra.mxu0 %v9474_v57  ;;  %v9683_v2 = vcombine.high %v999_v39, %v1007_v13  ;;  %v727_v57 = vld [vmem:[%s13716_s1 + $0x15b0] sm:$0xff]  ;;  %v9682_v37 = vcombine.low %v999_v39, %v1007_v13 }
 0x36b   :  { %7737 = vmatprep.subr.bf16.mxu0 %v9459_v0  ;;  %v983_v0 = vld [vmem:[%s13716_s1 + $0x1db0] sm:$0xff] }
 0x36c   :  { %7789 = vmatpush2.bf16.msra.mxu1 %v9730_v18  ;;  %v735_v18 = vld [vmem:[%s13716_s1 + $0x15f0] sm:$0xff] }
 0x36d   :  { %7790 = vmatprep.subr.bf16.mxu1 %v9715_v51  ;;  %v991_v51 = vld [vmem:[%s13716_s1 + $0x1df0] sm:$0xff]  ;;  %v9411_v31 = vcombine.high %v727_v57, %v735_v18  ;;  %v9410_v14 = vcombine.low %v727_v57, %v735_v18 }
 0x36e   :  { %7738 = vmatpush2.bf16.msra.mxu0 %v9458_v22  ;;  %v9667_v8 = vcombine.high %v983_v0, %v991_v51  ;;  %v711_v22 = vld [vmem:[%s13716_s1 + $0x1530] sm:$0xff]  ;;  %v9666_v17 = vcombine.low %v983_v0, %v991_v51 }
 0x36f   :  { %7739 = vmatprep.subr.bf16.mxu0 %v9443_v50  ;;  %v967_v50 = vld [vmem:[%s13716_s1 + $0x1d30] sm:$0xff] }
 0x370   :  { %7791 = vmatpush2.bf16.msra.mxu1 %v9714_v43  ;;  %v719_v43 = vld [vmem:[%s13716_s1 + $0x1570] sm:$0xff] }
 0x371   :  { %7792 = vmatprep.subr.bf16.mxu1 %v9699_v54  ;;  %v975_v54 = vld [vmem:[%s13716_s1 + $0x1d70] sm:$0xff]  ;;  %v9395_v39 = vcombine.high %v711_v22, %v719_v43  ;;  %v9394_v57 = vcombine.low %v711_v22, %v719_v43 }
 0x372   :  { %7740 = vmatpush2.bf16.msra.mxu0 %v9442_v59  ;;  %v9651_v13 = vcombine.high %v967_v50, %v975_v54  ;;  %v695_v59 = vld [vmem:[%s13716_s1 + $0x14b0] sm:$0xff]  ;;  %v9650_v18 = vcombine.low %v967_v50, %v975_v54 }
 0x373   :  { %7741 = vmatprep.subr.bf16.mxu0 %v9427_v49  ;;  %v951_v49 = vld [vmem:[%s13716_s1 + $0x1cb0] sm:$0xff] }
 0x374   :  { %7793 = vmatpush2.bf16.msra.mxu1 %v9698_v4  ;;  %v703_v4 = vld [vmem:[%s13716_s1 + $0x14f0] sm:$0xff] }
 0x375   :  { %7794 = vmatprep.subr.bf16.mxu1 %v9683_v2  ;;  %v959_v2 = vld [vmem:[%s13716_s1 + $0x1cf0] sm:$0xff]  ;;  %v9379_v0 = vcombine.high %v695_v59, %v703_v4  ;;  %v9378_v22 = vcombine.low %v695_v59, %v703_v4 }
 0x376   :  { %7742 = vmatpush2.bf16.msra.mxu0 %v9426_v11  ;;  %v9635_v51 = vcombine.high %v951_v49, %v959_v2  ;;  %v679_v11 = vld [vmem:[%s13716_s1 + $0x1430] sm:$0xff]  ;;  %v9634_v43 = vcombine.low %v951_v49, %v959_v2 }
 0x377   :  { %7743 = vmatprep.subr.bf16.mxu0 %v9411_v31  ;;  %v935_v31 = vld [vmem:[%s13716_s1 + $0x1c30] sm:$0xff] }
 0x378   :  { %7795 = vmatpush2.bf16.msra.mxu1 %v9682_v37  ;;  %v687_v37 = vld [vmem:[%s13716_s1 + $0x1470] sm:$0xff] }
 0x379   :  { %7796 = vmatprep.subr.bf16.mxu1 %v9667_v8  ;;  %v943_v8 = vld [vmem:[%s13716_s1 + $0x1c70] sm:$0xff]  ;;  %v9363_v50 = vcombine.high %v679_v11, %v687_v37  ;;  %v9362_v59 = vcombine.low %v679_v11, %v687_v37 }
 0x37a   :  { %7744 = vmatpush2.bf16.msra.mxu0 %v9410_v14  ;;  %v9619_v54 = vcombine.high %v935_v31, %v943_v8  ;;  %v152_v14 = vld [vmem:[%s13716_s1 + $0x3b8] sm:$0xff]  ;;  %v9618_v4 = vcombine.low %v935_v31, %v943_v8 }
 0x37b   :  { %7745 = vmatprep.subr.bf16.mxu0 %v9395_v39  ;;  %v408_v39 = vld [vmem:[%s13716_s1 + $0xbb8] sm:$0xff] }
 0x37c   :  { %7797 = vmatpush2.bf16.msra.mxu1 %v9666_v17  ;;  %v160_v17 = vld [vmem:[%s13716_s1 + $0x3f8] sm:$0xff] }
 0x37d   :  { %7798 = vmatprep.subr.bf16.mxu1 %v9651_v13  ;;  %v416_v13 = vld [vmem:[%s13716_s1 + $0xbf8] sm:$0xff]  ;;  %v8837_v49 = vcombine.high %v152_v14, %v160_v17  ;;  %v8836_v11 = vcombine.low %v152_v14, %v160_v17 }
 0x37e   :  { %7746 = vmatpush2.bf16.msra.mxu0 %v9394_v57  ;;  %v9093_v2 = vcombine.high %v408_v39, %v416_v13  ;;  %v136_v57 = vld [vmem:[%s13716_s1 + $0x338] sm:$0xff]  ;;  %v9092_v37 = vcombine.low %v408_v39, %v416_v13 }
 0x37f   :  { %7747 = vmatprep.subr.bf16.mxu0 %v9379_v0  ;;  %v392_v0 = vld [vmem:[%s13716_s1 + $0xb38] sm:$0xff] }
 0x380   :  { %7799 = vmatpush2.bf16.msra.mxu1 %v9650_v18  ;;  %v144_v18 = vld [vmem:[%s13716_s1 + $0x378] sm:$0xff] }
 0x381   :  { %7800 = vmatprep.subr.bf16.mxu1 %v9635_v51  ;;  %v400_v51 = vld [vmem:[%s13716_s1 + $0xb78] sm:$0xff]  ;;  %v8821_v31 = vcombine.high %v136_v57, %v144_v18  ;;  %v8820_v14 = vcombine.low %v136_v57, %v144_v18 }
 0x382   :  { %7748 = vmatpush2.bf16.msra.mxu0 %v9378_v22  ;;  %v9077_v8 = vcombine.high %v392_v0, %v400_v51  ;;  %v120_v22 = vld [vmem:[%s13716_s1 + $0x2b8] sm:$0xff]  ;;  %v9076_v17 = vcombine.low %v392_v0, %v400_v51 }
 0x383   :  { %7749 = vmatprep.subr.bf16.mxu0 %v9363_v50  ;;  %v376_v50 = vld [vmem:[%s13716_s1 + $0xab8] sm:$0xff] }
 0x384   :  { %7801 = vmatpush2.bf16.msra.mxu1 %v9634_v43  ;;  %v128_v43 = vld [vmem:[%s13716_s1 + $0x2f8] sm:$0xff] }
 0x385   :  { %7802 = vmatprep.subr.bf16.mxu1 %v9619_v54  ;;  %v384_v54 = vld [vmem:[%s13716_s1 + $0xaf8] sm:$0xff]  ;;  %v8805_v39 = vcombine.high %v120_v22, %v128_v43  ;;  %v8804_v57 = vcombine.low %v120_v22, %v128_v43 }
 0x386   :  { %7750 = vmatpush2.bf16.msra.mxu0 %v9362_v59  ;;  %v9061_v13 = vcombine.high %v376_v50, %v384_v54  ;;  %v104_v59 = vld [vmem:[%s13716_s1 + $0x238] sm:$0xff]  ;;  %v9060_v18 = vcombine.low %v376_v50, %v384_v54 }
 0x387   :  { %7825 = vmatprep.subr.bf16.mxu0 %v8837_v49  ;;  %v360_v49 = vld [vmem:[%s13716_s1 + $0xa38] sm:$0xff] }
 0x388   :  { %7803 = vmatpush2.bf16.msra.mxu1 %v9618_v4  ;;  %v112_v4 = vld [vmem:[%s13716_s1 + $0x278] sm:$0xff] }
 0x389   :  { %7878 = vmatprep.subr.bf16.mxu1 %v9093_v2  ;;  %7752 = vmatmul.mubr.bf16.vlgmr.msra.gmra.mxu0 %v10273_v3  ;;  %v368_v2 = vld [vmem:[%s13716_s1 + $0xa78] sm:$0xff]  ;;  %v8789_v0 = vcombine.high %v104_v59, %v112_v4  ;;  %v8788_v22 = vcombine.low %v104_v59, %v112_v4 }
 0x38a   :  { %7826 = vmatpush1.bf16.msra.mxu0 %v8836_v11  ;;  %7761 = vmatprep.mubr.bf16.mxu0 %v10294_v12  ;;  %v9045_v51 = vcombine.high %v360_v49, %v368_v2  ;;  %v88_v11 = vld [vmem:[%s13716_s1 + $0x1b8] sm:$0xff]  ;;  %v9044_v43 = vcombine.low %v360_v49, %v368_v2 }
 0x38b   :  { %7805 = vmatmul.mubr.bf16.vlgmr.msra.gmra.mxu1 %v10286_v7  ;;  %7827 = vmatprep.subr.bf16.mxu0 %v8821_v31  ;;  %v344_v31 = vld [vmem:[%s13716_s1 + $0x9b8] sm:$0xff] }
 0x38c   :  { %7879 = vmatpush1.bf16.msra.mxu1 %v9092_v37  ;;  %7814 = vmatprep.mubr.bf16.mxu1 %v10309_v15  ;;  %v96_v37 = vld [vmem:[%s13716_s1 + $0x1f8] sm:$0xff] }
 0x38d   :  { %7880 = vmatprep.subr.bf16.mxu1 %v9077_v8  ;;  %v352_v8 = vld [vmem:[%s13716_s1 + $0x9f8] sm:$0xff]  ;;  %v8773_v50 = vcombine.high %v88_v11, %v96_v37  ;;  %v8772_v59 = vcombine.low %v88_v11, %v96_v37 }
 0x38e   :  { %7828 = vmatpush1.bf16.msra.mxu0 %v8820_v14  ;;  %v9029_v54 = vcombine.high %v344_v31, %v352_v8  ;;  %v72_v14 = vld [vmem:[%s13716_s1 + $0x138] sm:$0xff]  ;;  %v9028_v4 = vcombine.low %v344_v31, %v352_v8 }
 0x38f   :  { %7829 = vmatprep.subr.bf16.mxu0 %v8805_v39  ;;  %v328_v39 = vld [vmem:[%s13716_s1 + $0x938] sm:$0xff] }
 0x390   :  { %7881 = vmatpush1.bf16.msra.mxu1 %v9076_v17  ;;  %v80_v17 = vld [vmem:[%s13716_s1 + $0x178] sm:$0xff] }
 0x391   :  { %7882 = vmatprep.subr.bf16.mxu1 %v9061_v13  ;;  %7762 = vmatmul.mubr.bf16.gmra.mxu0 %v10319_v23  ;;  %v336_v13 = vld [vmem:[%s13716_s1 + $0x978] sm:$0xff]  ;;  %v8757_v49 = vcombine.high %v72_v14, %v80_v17 }
 0x392   :  { %7830 = vmatpush1.bf16.msra.mxu0 %v8804_v57  ;;  %7857 = vmatprep.mubr.bf16.mxu0 %v9874_v58  ;;  %v9013_v2 = vcombine.high %v328_v39, %v336_v13  ;;  %v56_v58 = vld [vmem:[%s13716_s1 + $0xb8] sm:$0xff] }
 0x393   :  { %7815 = vmatmul.mubr.bf16.gmra.mxu1 %v10328_v55  ;;  %7831 = vmatprep.subr.bf16.mxu0 %v8789_v0  ;;  %v64_v57 = vld [vmem:[%s13716_s1 + $0xf8] sm:$0xff]  ;;  %v8756_v0 = vcombine.low %v72_v14, %v80_v17 }
 0x394   :  { %7883 = vmatpush1.bf16.msra.mxu1 %v9060_v18  ;;  %7910 = vmatprep.mubr.bf16.mxu1 %v9894_v63  ;;  %v312_v63 = vld [vmem:[%s13716_s1 + $0x8b8] sm:$0xff]  ;;  %v8741_v11 = vcombine.high %v56_v58, %v64_v57 }
 0x395   :  { %7884 = vmatprep.subr.bf16.mxu1 %v9045_v51  ;;  %v320_v18 = vld [vmem:[%s13716_s1 + $0x8f8] sm:$0xff]  ;;  %v9012_v51 = vcombine.low %v328_v39, %v336_v13 }
 0x396   :  { %7832 = vmatpush1.bf16.msra.mxu0 %v8788_v22  ;;  %v8997_v37 = vcombine.high %v312_v63, %v320_v18  ;;  %v40_v31 = vld [vmem:[%s13716_s1 + $0x38] sm:$0xff] }
 0x397   :  { %7833 = vmatprep.subr.bf16.mxu0 %v8773_v50  ;;  %v48_v8 = vld [vmem:[%s13716_s1 + $0x78] sm:$0xff]  ;;  %v8740_v50 = vcombine.low %v56_v58, %v64_v57 }
 0x398   :  { %7885 = vmatpush1.bf16.msra.mxu1 %v9044_v43  ;;  %v296_v22 = vld [vmem:[%s13716_s1 + $0x838] sm:$0xff]  ;;  %v8725_v14 = vcombine.high %v40_v31, %v48_v8 }
 0x399   :  { %7886 = vmatprep.subr.bf16.mxu1 %v9029_v54  ;;  %v304_v43 = vld [vmem:[%s13716_s1 + $0x878] sm:$0xff]  ;;  %v8996_v54 = vcombine.low %v312_v63, %v320_v18 }
 0x39a   :  { %7834 = vmatpush1.bf16.msra.mxu0 %v8772_v59  ;;  %v8981_v17 = vcombine.high %v296_v22, %v304_v43  ;;  %v280_v39 = vld [vmem:[%s13716_s1 + $0x7b8] sm:$0xff] }
 0x39b   :  { %7835 = vmatprep.subr.bf16.mxu0 %v8757_v49  ;;  %v288_v13 = vld [vmem:[%s13716_s1 + $0x7f8] sm:$0xff]  ;;  %v8724_v49 = vcombine.low %v40_v31, %v48_v8 }
 0x39c   :  { %7887 = vmatpush1.bf16.msra.mxu1 %v9028_v4  ;;  %v536_v59 = vld [vmem:[%s13716_s1 + $0xfb8] sm:$0xff]  ;;  %v8965_v58 = vcombine.high %v280_v39, %v288_v13 }
 0x39d   :  { %7888 = vmatprep.subr.bf16.mxu1 %v9013_v2  ;;  %v544_v4 = vld [vmem:[%s13716_s1 + $0xff8] sm:$0xff]  ;;  %v8980_v2 = vcombine.low %v296_v22, %v304_v43 }
 0x39e   :  { %7836 = vmatpush1.bf16.msra.mxu0 %v8756_v0  ;;  %v9221_v57 = vcombine.high %v536_v59, %v544_v4  ;;  %v264_v63 = vld [vmem:[%s13716_s1 + $0x738] sm:$0xff] }
 0x39f   :  { %7837 = vmatprep.subr.bf16.mxu0 %v8741_v11  ;;  %v272_v18 = vld [vmem:[%s13716_s1 + $0x778] sm:$0xff]  ;;  %v8964_v11 = vcombine.low %v280_v39, %v288_v13 }
 0x3a0   :  { %7889 = vmatpush1.bf16.msra.mxu1 %v9012_v51  ;;  %v520_v0 = vld [vmem:[%s13716_s1 + $0xf38] sm:$0xff]  ;;  %v8949_v31 = vcombine.high %v264_v63, %v272_v18 }
 0x3a1   :  { %7890 = vmatprep.subr.bf16.mxu1 %v8997_v37  ;;  %v528_v51 = vld [vmem:[%s13716_s1 + $0xf78] sm:$0xff]  ;;  %v9220_v37 = vcombine.low %v536_v59, %v544_v4 }
 0x3a2   :  { %7838 = vmatpush1.bf16.msra.mxu0 %v8740_v50  ;;  %v9205_v8 = vcombine.high %v520_v0, %v528_v51  ;;  %v248_v22 = vld [vmem:[%s13716_s1 + $0x6b8] sm:$0xff]  ;;  %v13095_v50 = vpop.f32.mrf.mxu0  ;;  %v9204_v39 = vcombine.low %v520_v0, %v528_v51 }
 0x3a3   :  { %7839 = vmatprep.subr.bf16.mxu0 %v8725_v14  ;;  %v256_v43 = vld [vmem:[%s13716_s1 + $0x6f8] sm:$0xff] }
 0x3a4   :  { %7891 = vmatpush1.bf16.msra.mxu1 %v8996_v54  ;;  %v504_v54 = vld [vmem:[%s13716_s1 + $0xeb8] sm:$0xff]  ;;  %v8933_v13 = vcombine.high %v248_v22, %v256_v43 }
 0x3a5   :  { %7892 = vmatprep.subr.bf16.mxu1 %v8981_v17  ;;  %v512_v14 = vld [vmem:[%s13716_s1 + $0xef8] sm:$0xff]  ;;  %v8948_v17 = vcombine.low %v264_v63, %v272_v18  ;;  %v8932_v63 = vcombine.low %v248_v22, %v256_v43 }
 0x3a6   :  { %7840 = vmatpush1.bf16.msra.mxu0 %v8724_v49  ;;  %v9189_v59 = vcombine.high %v504_v54, %v512_v14  ;;  %v232_v4 = vld [vmem:[%s13716_s1 + $0x638] sm:$0xff]  ;;  %v9188_v18 = vcombine.low %v504_v54, %v512_v14 }
 0x3a7   :  { %7841 = vmatprep.subr.bf16.mxu0 %v8965_v58  ;;  %v240_v49 = vld [vmem:[%s13716_s1 + $0x678] sm:$0xff] }
 0x3a8   :  { %7893 = vmatpush1.bf16.msra.mxu1 %v8980_v2  ;;  %v13109_v2 = vpop.f32.mrf.mxu0  ;;  %v488_v58 = vld [vmem:[%s13716_s1 + $0xe38] sm:$0xff]  ;;  %v8917_v0 = vcombine.high %v232_v4, %v240_v49  ;;  %v8916_v54 = vcombine.low %v232_v4, %v240_v49 }
 0x3a9   :  { %7894 = vmatprep.subr.bf16.mxu1 %v9221_v57  ;;  %v496_v57 = vld [vmem:[%s13716_s1 + $0xe78] sm:$0xff] }
 0x3aa   :  { %7842 = vmatpush2.bf16.msra.mxu0 %v8964_v11  ;;  %v9173_v51 = vcombine.high %v488_v58, %v496_v57  ;;  %v216_v11 = vld [vmem:[%s13716_s1 + $0x5b8] sm:$0xff] }
 0x3ab   :  { %7843 = vmatprep.subr.bf16.mxu0 %v8949_v31  ;;  %v13123_v31 = vpop.f32.mrf.mxu1  ;;  %v472_v22 = vld [vmem:[%s13716_s1 + $0xdb8] sm:$0xff] }
 0x3ac   :  { %7895 = vmatpush2.bf16.msra.mxu1 %v9220_v37  ;;  %v224_v37 = vld [vmem:[%s13716_s1 + $0x5f8] sm:$0xff]  ;;  %13765 = vst [vmem:[#allocation29_spill] sm:$0xff] %v13123_v31 }
 0x3ad   :  { %7896 = vmatprep.subr.bf16.mxu1 %v9205_v8  ;;  %v13125_v8 = vpop.f32.mrf.mxu0  ;;  %v480_v43 = vld [vmem:[%s13716_s1 + $0xdf8] sm:$0xff]  ;;  %v13141_v6 = vpop.f32.mrf.mxu1 }
 0x3ae   :  { %7844 = vmatpush2.bf16.msra.mxu0 %v8948_v17  ;;  %v9172_v17 = vcombine.low %v488_v58, %v496_v57  ;;  %13766 = vst [vmem:[#allocation30_spill] sm:$0xff] %v13141_v6  ;;  %v456_v4 = vld [vmem:[%s13716_s1 + $0xd38] sm:$0xff]  ;;  %v8900_v58 = vcombine.low %v216_v11, %v224_v37 }
 0x3af   :  { %7845 = vmatprep.subr.bf16.mxu0 %v8933_v13  ;;  %v13133_v14 = vpop.f32.mrf.mxu0  ;;  %v9157_v13 = vcombine.high %v472_v22, %v480_v43  ;;  %v464_v49 = vld [vmem:[%s13716_s1 + $0xd78] sm:$0xff]  ;;  %v13157_v31 = vpop.f32.mrf.mxu1 }
 0x3b0   :  { %7897 = vmatpush2.bf16.msra.mxu1 %v9204_v39  ;;  %v8901_v39 = vcombine.high %v216_v11, %v224_v37  ;;  %v192_v6 = vld [vmem:[%s13716_s1 + $0x4f8] sm:$0xff]  ;;  %13767 = vst [vmem:[#allocation31_spill] sm:$0xff] %v13157_v31 }
 0x3b1   :  { %7898 = vmatprep.subr.bf16.mxu1 %v9189_v59  ;;  %v200_v59 = vld [vmem:[%s13716_s1 + $0x538] sm:$0xff]  ;;  %v13149_v57 = vpop.f32.mrf.mxu0 }
 0x3b2   :  { %7846 = vmatpush2.bf16.msra.mxu0 %v8932_v63  ;;  %v9156_v63 = vcombine.low %v472_v22, %v480_v43  ;;  %v440_v11 = vld [vmem:[%s13716_s1 + $0xcb8] sm:$0xff]  ;;  %v8884_v22 = vcombine.low %v200_v59, %v208_v36  ;;  %v13165_v43 = vpop.f32.mrf.mxu1 }
 0x3b3   :  { %7847 = vmatprep.subr.bf16.mxu0 %v8917_v0  ;;  %v9141_v0 = vcombine.high %v456_v4, %v464_v49  ;;  %v448_v37 = vld [vmem:[%s13716_s1 + $0xcf8] sm:$0xff]  ;;  %13768 = vst [vmem:[#allocation32_spill] sm:$0xff] %v13165_v43 }
 0x3b4   :  { %7899 = vmatpush2.bf16.msra.mxu1 %v9188_v18  ;;  %v8885_v18 = vcombine.high %v200_v59, %v208_v36  ;;  %v168_v31 = vld [vmem:[%s13716_s1 + $0x438] sm:$0xff] }
 0x3b5   :  { %7900 = vmatprep.subr.bf16.mxu1 %v9173_v51  ;;  %v184_v51 = vld [vmem:[%s13716_s1 + $0x4b8] sm:$0xff] }
 0x3b6   :  { %7848 = vmatpush2.bf16.msra.mxu0 %v8916_v54  ;;  %v13167_v54 = vpop.f32.mrf.mxu0  ;;  %v424_v36 = vld [vmem:[%s13716_s1 + $0xc38] sm:$0xff] }
 0x3b7   :  { %7849 = vmatprep.subr.bf16.mxu0 %v8901_v39  ;;  %v8869_v39 = vcombine.high %v184_v51, %v192_v6  ;;  %v432_v59 = vld [vmem:[%s13716_s1 + $0xc78] sm:$0xff] }
 0x3b8   :  { %7901 = vmatpush2.bf16.msra.mxu1 %v9172_v17  ;;  %v9140_v17 = vcombine.low %v456_v4, %v464_v49  ;;  %v8868_v4 = vcombine.low %v184_v51, %v192_v6  ;;  %v13181_v49 = vpop.f32.mrf.mxu1  ;;  %v664_v43 = vld [vmem:[%s13716_s1 + $0x13b8] sm:$0xff] }
 0x3b9   :  { %7902 = vmatprep.subr.bf16.mxu1 %v9157_v13  ;;  %v9125_v13 = vcombine.high %v440_v11, %v448_v37  ;;  %13769 = vst [vmem:[#allocation33_spill] sm:$0xff] %v13181_v49  ;;  %v672_v55 = vld [vmem:[%s13716_s1 + $0x13f8] sm:$0xff] }
 0x3ba   :  { %7850 = vmatpush2.bf16.msra.mxu0 %v8900_v58  ;;  %v13183_v58 = vpop.f32.mrf.mxu0  ;;  %v920_v6 = vld [vmem:[%s13716_s1 + $0x1bb8] sm:$0xff] }
 0x3bb   :  { %7851 = vmatprep.subr.bf16.mxu0 %v8885_v18  ;;  %v8853_v18 = vcombine.high %v168_v31, %v176_v53  ;;  %v928_v51 = vld [vmem:[%s13716_s1 + $0x1bf8] sm:$0xff] }
 0x3bc   :  { %7903 = vmatpush2.bf16.msra.mxu1 %v9156_v63  ;;  %v9124_v63 = vcombine.low %v440_v11, %v448_v37  ;;  %v8852_v11 = vcombine.low %v168_v31, %v176_v53  ;;  %v13199_v37 = vpop.f32.mrf.mxu1  ;;  %v656_v49 = vld [vmem:[%s13716_s1 + $0x1378] sm:$0xff] }
 0x3bd   :  { %7904 = vmatprep.subr.bf16.mxu1 %v9141_v0  ;;  %v9109_v0 = vcombine.high %v424_v36, %v432_v59  ;;  %13771 = vst [vmem:[#allocation35_spill] sm:$0xff] %v13199_v37  ;;  %v904_v53 = vld [vmem:[%s13716_s1 + $0x1b38] sm:$0xff] }
 0x3be   :  { %7852 = vmatpush2.bf16.msra.mxu0 %v8884_v22  ;;  %v13191_v22 = vpop.f32.mrf.mxu0  ;;  %v912_v31 = vld [vmem:[%s13716_s1 + $0x1b78] sm:$0xff] }
 0x3bf   :  { %7853 = vmatprep.subr.bf16.mxu0 %v8869_v39  ;;  %13770 = vst [vmem:[#allocation34_spill] sm:$0xff] %v13191_v22  ;;  %v9349_v39 = vcombine.high %v664_v43, %v672_v55  ;;  %v648_v22 = vld [vmem:[%s13716_s1 + $0x1338] sm:$0xff] }
 0x3c0   :  { %7905 = vmatpush2.bf16.msra.mxu1 %v9140_v17  ;;  %v9108_v17 = vcombine.low %v424_v36, %v432_v59  ;;  %v13207_v23 = vpop.f32.mrf.mxu0  ;;  %v9348_v36 = vcombine.low %v664_v43, %v672_v55  ;;  %v13215_v59 = vpop.f32.mrf.mxu1  ;;  %v888_v55 = vld [vmem:[%s13716_s1 + $0x1ab8] sm:$0xff] }
 0x3c1   :  { %7906 = vmatprep.subr.bf16.mxu1 %v9125_v13  ;;  %v9605_v13 = vcombine.high %v920_v6, %v928_v51  ;;  %13772 = vst [vmem:[#allocation36_spill] sm:$0xff] %v13207_v23  ;;  %v640_v23 = vld [vmem:[%s13716_s1 + $0x12f8] sm:$0xff] }
 0x3c2   :  { %7854 = vmatpush2.bf16.msra.mxu0 %v8868_v4  ;;  %v9604_v4 = vcombine.low %v920_v6, %v928_v51  ;;  %v13223_v37 = vpop.f32.mrf.mxu1  ;;  %v896_v43 = vld [vmem:[%s13716_s1 + $0x1af8] sm:$0xff]  ;;  %v9332_v6 = vcombine.low %v648_v22, %v656_v49  ;;  %v9588_v51 = vcombine.low %v904_v53, %v912_v31 }
 0x3c3   :  { %7855 = vmatprep.subr.bf16.mxu0 %v8853_v18  ;;  %v9589_v18 = vcombine.high %v904_v53, %v912_v31  ;;  %13773 = vst [vmem:[#allocation37_spill] sm:$0xff] %v13223_v37  ;;  %v9572_v31 = vcombine.low %v888_v55, %v896_v43 }
 0x3c4   :  { %7907 = vmatpush2.bf16.msra.mxu1 %v9124_v63  ;;  %v9333_v63 = vcombine.high %v648_v22, %v656_v49  ;;  %v13242_v37 = vpop.f32.mrf.mxu1  ;;  %v872_v49 = vld [vmem:[%s13716_s1 + $0x1a38] sm:$0xff] }
 0x3c5   :  { %7908 = vmatprep.subr.bf16.mxu1 %v9109_v0  ;;  %v632_v0 = vld [vmem:[%s13716_s1 + $0x12b8] sm:$0xff]  ;;  %13774 = vst [vmem:[#allocation38_spill] sm:$0xff] %v13242_v37 }
 0x3c6   :  { %7856 = vmatpush2.bf16.msra.mxu0 %v8852_v11  ;;  %v13225_v11 = vpop.f32.mrf.mxu0  ;;  %v880_v22 = vld [vmem:[%s13716_s1 + $0x1a78] sm:$0xff]  ;;  %v9316_v53 = vcombine.low %v632_v0, %v640_v23 }
 0x3c7   :  { %7931 = vmatprep.subr.bf16.mxu0 %v9349_v39  ;;  %v9573_v39 = vcombine.high %v888_v55, %v896_v43  ;;  %v9556_v55 = vcombine.low %v872_v49, %v880_v22 }
 0x3c8   :  { %7909 = vmatpush2.bf16.msra.mxu1 %v9108_v17  ;;  %v9317_v17 = vcombine.high %v632_v0, %v640_v23  ;;  %v864_v23 = vld [vmem:[%s13716_s1 + $0x19f8] sm:$0xff] }
 0x3c9   :  { %7984 = vmatprep.subr.bf16.mxu1 %v9605_v13  ;;  %7858 = vmatmul.mubr.bf16.vlgmr.msra.gmra.mxu0 %v10017_v21  ;;  %v616_v21 = vld [vmem:[%s13716_s1 + $0x1238] sm:$0xff] }
 0x3ca   :  { %7932 = vmatpush1.bf16.msra.mxu0 %v9348_v36  ;;  %v624_v13 = vld [vmem:[%s13716_s1 + $0x1278] sm:$0xff]  ;;  %7867 = vmatprep.mubr.bf16.mxu0 %v10044_v30  ;;  %v9557_v36 = vcombine.high %v872_v49, %v880_v22 }
 0x3cb   :  { %7911 = vmatmul.mubr.bf16.vlgmr.msra.gmra.mxu1 %v10030_v25  ;;  %7933 = vmatprep.subr.bf16.mxu0 %v9333_v63  ;;  %v13244_v25 = vpop.f32.mrf.mxu0  ;;  %v9301_v30 = vcombine.high %v616_v21, %v624_v13  ;;  %v608_v63 = vld [vmem:[%s13716_s1 + $0x11f8] sm:$0xff]  ;;  %v9300_v0 = vcombine.low %v616_v21, %v624_v13 }
 0x3cc   :  { %7985 = vmatpush1.bf16.msra.mxu1 %v9604_v4  ;;  %7920 = vmatprep.mubr.bf16.mxu1 %v10053_v33  ;;  %v600_v4 = vld [vmem:[%s13716_s1 + $0x11b8] sm:$0xff] }
 0x3cd   :  { %7986 = vmatprep.subr.bf16.mxu1 %v9589_v18  ;;  %v13259_v18 = vpop.f32.mrf.mxu1  ;;  %v13261_v37 = vpop.f32.mrf.mxu0  ;;  %v856_v33 = vld [vmem:[%s13716_s1 + $0x19b8] sm:$0xff]  ;;  %v9285_v43 = vcombine.high %v600_v4, %v608_v63  ;;  %v9284_v13 = vcombine.low %v600_v4, %v608_v63 }
 0x3ce   :  { %7934 = vmatpush1.bf16.msra.mxu0 %v9332_v6  ;;  %13775 = vst [vmem:[#allocation39_spill] sm:$0xff] %v13259_v18  ;;  %13776 = vst [vmem:[#allocation40_spill] sm:$0xff] %v13261_v37  ;;  %v9541_v6 = vcombine.high %v856_v33, %v864_v23  ;;  %v848_v21 = vld [vmem:[%s13716_s1 + $0x1978] sm:$0xff] }
 0x3cf   :  { %7935 = vmatprep.subr.bf16.mxu0 %v9317_v17  ;;  %v592_v17 = vld [vmem:[%s13716_s1 + $0x1178] sm:$0xff] }
 0x3d0   :  { %7987 = vmatpush1.bf16.msra.mxu1 %v9588_v51  ;;  %v584_v51 = vld [vmem:[%s13716_s1 + $0x1138] sm:$0xff] }
 0x3d1   :  { %7988 = vmatprep.subr.bf16.mxu1 %v9573_v39  ;;  %7868 = vmatmul.mubr.bf16.gmra.mxu0 %v10069_v42  ;;  %v13278_v42 = vpop.f32.mrf.mxu1  ;;  %v13280_v39 = vpop.f32.mrf.mxu0  ;;  %v9269_v22 = vcombine.high %v584_v51, %v592_v17  ;;  %v832_v4 = vld [vmem:[%s13716_s1 + $0x18f8] sm:$0xff]  ;;  %v9268_v63 = vcombine.low %v584_v51, %v592_v17 }
 0x3d2   :  { %7936 = vmatpush1.bf16.msra.mxu0 %v9316_v53  ;;  %7963 = vmatprep.mubr.bf16.mxu0 %v10102_v56  ;;  %13777 = vst [vmem:[#allocation41_spill] sm:$0xff] %v13278_v42  ;;  %v9540_v56 = vcombine.low %v856_v33, %v864_v23  ;;  %v808_v51 = vld [vmem:[%s13716_s1 + $0x1838] sm:$0xff] }
 0x3d3   :  { %7921 = vmatmul.mubr.bf16.gmra.mxu1 %v10082_v46  ;;  %7937 = vmatprep.subr.bf16.mxu0 %v9301_v30  ;;  %v840_v46 = vld [vmem:[%s13716_s1 + $0x1938] sm:$0xff]  ;;  %v13289_v49 = vpop.f32.mrf.mxu1 }
 0x3d4   :  { %7989 = vmatpush1.bf16.msra.mxu1 %v9572_v31  ;;  %8016 = vmatprep.mubr.bf16.mxu1 %v10113_v62  ;;  %13778 = vst [vmem:[#allocation42_spill] sm:$0xff] %v13289_v49  ;;  %v9525_v53 = vcombine.high %v840_v46, %v848_v21  ;;  %v568_v31 = vld [vmem:[%s13716_s1 + $0x10b8] sm:$0xff]  ;;  %v9524_v23 = vcombine.low %v840_v46, %v848_v21 }
 0x3d5   :  { %7990 = vmatprep.subr.bf16.mxu1 %v9557_v36  ;;  %v576_v30 = vld [vmem:[%s13716_s1 + $0x10f8] sm:$0xff]  ;;  %v13297_v36 = vpop.f32.mrf.mxu0  ;;  %v13305_v33 = vpop.f32.mrf.mxu1 }
 0x3d6   :  { %7938 = vmatpush1.bf16.msra.mxu0 %v9300_v0  ;;  %13779 = vst [vmem:[#allocation43_spill] sm:$0xff] %v13297_v36  ;;  %v824_v62 = vld [vmem:[%s13716_s1 + $0x18b8] sm:$0xff]  ;;  %13780 = vst [vmem:[#allocation44_spill] sm:$0xff] %v13305_v33  ;;  %v9253_v0 = vcombine.high %v568_v31, %v576_v30  ;;  %v9252_v46 = vcombine.low %v568_v31, %v576_v30 }
 0x3d7   :  { %7939 = vmatprep.subr.bf16.mxu0 %v9285_v43  ;;  %v552_v43 = vld [vmem:[%s13716_s1 + $0x1038] sm:$0xff]  ;;  %v13313_v18 = vpop.f32.mrf.mxu0  ;;  %v13321_v21 = vpop.f32.mrf.mxu1 }
 0x3d8   :  { %7991 = vmatpush1.bf16.msra.mxu1 %v9556_v55  ;;  %v9509_v55 = vcombine.high %v824_v62, %v832_v4  ;;  %13781 = vst [vmem:[#allocation45_spill] sm:$0xff] %v13313_v18  ;;  %v816_v17 = vld [vmem:[%s13716_s1 + $0x1878] sm:$0xff]  ;;  %13782 = vst [vmem:[#allocation46_spill] sm:$0xff] %v13321_v21 }
 0x3d9   :  { %7992 = vmatprep.subr.bf16.mxu1 %v9541_v6  ;;  %v560_v6 = vld [vmem:[%s13716_s1 + $0x1078] sm:$0xff] }
 0x3da   :  { %7940 = vmatpush1.bf16.msra.mxu0 %v9284_v13  ;;  %v13323_v13 = vpop.f32.mrf.mxu0  ;;  %v792_v42 = vld [vmem:[%s13716_s1 + $0x17b8] sm:$0xff] }
 0x3db   :  { %7941 = vmatprep.subr.bf16.mxu0 %v9269_v22  ;;  %13783 = vst [vmem:[#allocation47_spill] sm:$0xff] %v13323_v13  ;;  %v9237_v22 = vcombine.high %v552_v43, %v560_v6  ;;  %v800_v49 = vld [vmem:[%s13716_s1 + $0x17f8] sm:$0xff] }
 0x3dc   :  { %7993 = vmatpush1.bf16.msra.mxu1 %v9540_v56  ;;  %v9508_v56 = vcombine.low %v824_v62, %v832_v4  ;;  %v1048_v31 = vld [vmem:[%s13716_s1 + $0x1fb8] sm:$0xff]  ;;  %v9236_v62 = vcombine.low %v552_v43, %v560_v6  ;;  %v13337_v4 = vpop.f32.mrf.mxu1 }
 0x3dd   :  { %7994 = vmatprep.subr.bf16.mxu1 %v9525_v53  ;;  %v9493_v53 = vcombine.high %v808_v51, %v816_v17  ;;  %v1056_v30 = vld [vmem:[%s13716_s1 + $0x1ff8] sm:$0xff]  ;;  %13784 = vst [vmem:[#allocation48_spill] sm:$0xff] %v13337_v4 }
 0x3de   :  { %7942 = vmatpush1.bf16.msra.mxu0 %v9268_v63  ;;  %v13339_v63 = vpop.f32.mrf.mxu0  ;;  %v776_v21 = vld [vmem:[%s13716_s1 + $0x1738] sm:$0xff] }
 0x3df   :  { %7943 = vmatprep.subr.bf16.mxu0 %v9253_v0  ;;  %13785 = vst [vmem:[#allocation49_spill] sm:$0xff] %v13339_v63  ;;  %v9477_v0 = vcombine.high %v792_v42, %v800_v49  ;;  %v784_v13 = vld [vmem:[%s13716_s1 + $0x1778] sm:$0xff] }
 0x3e0   :  { %7995 = vmatpush1.bf16.msra.mxu1 %v9524_v23  ;;  %v9492_v23 = vcombine.low %v808_v51, %v816_v17  ;;  %v1032_v43 = vld [vmem:[%s13716_s1 + $0x1f38] sm:$0xff]  ;;  %v9476_v51 = vcombine.low %v792_v42, %v800_v49  ;;  %v13355_v17 = vpop.f32.mrf.mxu0 }
 0x3e1   :  { %7996 = vmatprep.subr.bf16.mxu1 %v9509_v55  ;;  %v9733_v55 = vcombine.high %v1048_v31, %v1056_v30  ;;  %v1040_v6 = vld [vmem:[%s13716_s1 + $0x1f78] sm:$0xff]  ;;  %13787 = vst [vmem:[#allocation51_spill] sm:$0xff] %v13355_v17 }
 0x3e2   :  { %7944 = vmatpush1.bf16.msra.mxu0 %v9252_v46  ;;  %v13347_v46 = vpop.f32.mrf.mxu1  ;;  %v768_v4 = vld [vmem:[%s13716_s1 + $0x16f8] sm:$0xff] }
 0x3e3   :  { %7945 = vmatprep.subr.bf16.mxu0 %v9237_v22  ;;  %13786 = vst [vmem:[#allocation50_spill] sm:$0xff] %v13347_v46  ;;  %v9461_v22 = vcombine.high %v776_v21, %v784_v13  ;;  %v760_v46 = vld [vmem:[%s13716_s1 + $0x16b8] sm:$0xff] }
 0x3e4   :  { %7997 = vmatpush1.bf16.msra.mxu1 %v9508_v56  ;;  %v9732_v56 = vcombine.low %v1048_v31, %v1056_v30  ;;  %v13363_v63 = vpop.f32.mrf.mxu1  ;;  %v1016_v42 = vld [vmem:[%s13716_s1 + $0x1eb8] sm:$0xff]  ;;  %v9460_v31 = vcombine.low %v776_v21, %v784_v13  ;;  %v13371_v30 = vpop.f32.mrf.mxu0 }
 0x3e5   :  { %7998 = vmatprep.subr.bf16.mxu1 %v9493_v53  ;;  %v9717_v53 = vcombine.high %v1032_v43, %v1040_v6  ;;  %13788 = vst [vmem:[#allocation52_spill] sm:$0xff] %v13363_v63  ;;  %v1024_v49 = vld [vmem:[%s13716_s1 + $0x1ef8] sm:$0xff]  ;;  %13789 = vst [vmem:[#allocation53_spill] sm:$0xff] %v13371_v30 }
 0x3e6   :  { %7946 = vmatpush1.bf16.msra.mxu0 %v9236_v62  ;;  %v9716_v62 = vcombine.low %v1032_v43, %v1040_v6  ;;  %v752_v63 = vld [vmem:[%s13716_s1 + $0x1678] sm:$0xff]  ;;  %v13379_v33 = vpop.f32.mrf.mxu1  ;;  %v9444_v43 = vcombine.low %v760_v46, %v768_v4  ;;  %v9700_v6 = vcombine.low %v1016_v42, %v1024_v49 }
 0x3e7   :  { %7947 = vmatprep.subr.bf16.mxu0 %v9477_v0  ;;  %v9701_v0 = vcombine.high %v1016_v42, %v1024_v49  ;;  %13790 = vst [vmem:[#allocation54_spill] sm:$0xff] %v13379_v33  ;;  %v1000_v21 = vld [vmem:[%s13716_s1 + $0x1e38] sm:$0xff] }
 0x3e8   :  { %7999 = vmatpush1.bf16.msra.mxu1 %v9492_v23  ;;  %v9445_v23 = vcombine.high %v760_v46, %v768_v4  ;;  %v1008_v13 = vld [vmem:[%s13716_s1 + $0x1e78] sm:$0xff]  ;;  %v13395_v17 = vpop.f32.mrf.mxu1 }
 0x3e9   :  { %8000 = vmatprep.subr.bf16.mxu1 %v9733_v55  ;;  %v744_v55 = vld [vmem:[%s13716_s1 + $0x1638] sm:$0xff]  ;;  %13791 = vst [vmem:[#allocation55_spill] sm:$0xff] %v13395_v17 }
 0x3ea   :  { %7948 = vmatpush2.bf16.msra.mxu0 %v9476_v51  ;;  %v13381_v51 = vpop.f32.mrf.mxu0  ;;  %v736_v33 = vld [vmem:[%s13716_s1 + $0x15f8] sm:$0xff]  ;;  %v9428_v42 = vcombine.low %v744_v55, %v752_v63  ;;  %v13405_v49 = vpop.f32.mrf.mxu1 }
 0x3eb   :  { %7949 = vmatprep.subr.bf16.mxu0 %v9461_v22  ;;  %v9685_v22 = vcombine.high %v1000_v21, %v1008_v13  ;;  %v984_v4 = vld [vmem:[%s13716_s1 + $0x1db8] sm:$0xff]  ;;  %13792 = vst [vmem:[#allocation56_spill] sm:$0xff] %v13405_v49 }
 0x3ec   :  { %8001 = vmatpush2.bf16.msra.mxu1 %v9732_v56  ;;  %v9429_v56 = vcombine.high %v744_v55, %v752_v63  ;;  %v13397_v36 = vpop.f32.mrf.mxu0  ;;  %v992_v46 = vld [vmem:[%s13716_s1 + $0x1df8] sm:$0xff] }
 0x3ed   :  { %8002 = vmatprep.subr.bf16.mxu1 %v9717_v53  ;;  %v728_v53 = vld [vmem:[%s13716_s1 + $0x15b8] sm:$0xff] }
 0x3ee   :  { %7950 = vmatpush2.bf16.msra.mxu0 %v9460_v31  ;;  %v9684_v31 = vcombine.low %v1000_v21, %v1008_v13  ;;  %v720_v17 = vld [vmem:[%s13716_s1 + $0x1578] sm:$0xff]  ;;  %v13413_v30 = vpop.f32.mrf.mxu0  ;;  %v9412_v21 = vcombine.low %v728_v53, %v736_v33  ;;  %v6392_v13 = vadd.f32 %v10943_v38, %v10719_v35 }
 0x3ef   :  { %7951 = vmatprep.subr.bf16.mxu0 %v9445_v23  ;;  %v9669_v23 = vcombine.high %v984_v4, %v992_v46  ;;  %v968_v63 = vld [vmem:[%s13716_s1 + $0x1d38] sm:$0xff] }
 0x3f0   :  { %8003 = vmatpush2.bf16.msra.mxu1 %v9716_v62  ;;  %v9413_v62 = vcombine.high %v728_v53, %v736_v33  ;;  %v976_v55 = vld [vmem:[%s13716_s1 + $0x1d78] sm:$0xff]  ;;  %v13431_v33 = vpop.f32.mrf.mxu0 }
 0x3f1   :  { %8004 = vmatprep.subr.bf16.mxu1 %v9701_v0  ;;  %v712_v0 = vld [vmem:[%s13716_s1 + $0x1538] sm:$0xff] }
 0x3f2   :  { %7952 = vmatpush2.bf16.msra.mxu0 %v9444_v43  ;;  %v13423_v43 = vpop.f32.mrf.mxu1  ;;  %v696_v49 = vld [vmem:[%s13716_s1 + $0x14b8] sm:$0xff] }
 0x3f3   :  { %7953 = vmatprep.subr.bf16.mxu0 %v9429_v56  ;;  %13793 = vst [vmem:[#allocation57_spill] sm:$0xff] %v13423_v43  ;;  %v9397_v56 = vcombine.high %v712_v0, %v720_v17  ;;  %v952_v38 = vld [vmem:[%s13716_s1 + $0x1cb8] sm:$0xff] }
 0x3f4   :  { %8005 = vmatpush2.bf16.msra.mxu1 %v9700_v6  ;;  %v9668_v6 = vcombine.low %v984_v4, %v992_v46  ;;  %v960_v53 = vld [vmem:[%s13716_s1 + $0x1cf8] sm:$0xff]  ;;  %v9396_v4 = vcombine.low %v712_v0, %v720_v17  ;;  %v6445_v46 = vadd.f32 %v10945_v45, %v6392_v13  ;;  %v6382_v45 = vadd.f32 %v10756_v47, %v10719_v35 }
 0x3f5   :  { %8006 = vmatprep.subr.bf16.mxu1 %v9685_v22  ;;  %v9653_v22 = vcombine.high %v968_v63, %v976_v55  ;;  %v9637_v18 = vcombine.high %v952_v38, %v960_v53  ;;  %v680_v37 = vld [vmem:[%s13716_s1 + $0x1438] sm:$0xff] }
 0x3f6   :  { %7954 = vmatpush2.bf16.msra.mxu0 %v9428_v42  ;;  %v704_v42 = vld [vmem:[%s13716_s1 + $0x14f8] sm:$0xff]  ;;  %v6498_v0 = vadd.f32 %v11175_v27, %v6445_v46  ;;  %v6435_v27 = vadd.f32 %v10760_v16, %v6382_v45  ;;  %v8088_v16 = vmax.f32 %v11516_v44, 0.0  ;;  %v13797_v44 = vld [vmem:[#allocation7_spill] sm:$0xff] }
 0x3f7   :  { %7955 = vmatprep.subr.bf16.mxu0 %v9413_v62  ;;  %v13442_v62 = vpop.f32.mrf.mxu0  ;;  %v9381_v43 = vcombine.high %v696_v49, %v704_v42  ;;  %v688_v17 = vld [vmem:[%s13716_s1 + $0x1478] sm:$0xff] }
 0x3f8   :  { %8007 = vmatpush2.bf16.msra.mxu1 %v9684_v31  ;;  %v13440_v31 = vpop.f32.mrf.mxu1  ;;  %13794 = vst [vmem:[#allocation58_spill] sm:$0xff] %v13442_v62  ;;  %v9365_v35 = vcombine.high %v680_v37, %v688_v17  ;;  %v9364_v62 = vcombine.low %v680_v37, %v688_v17  ;;  %v13796_v17 = vld [vmem:[#allocation8_spill] sm:$0xff] }
 0x3f9   :  { %8008 = vmatprep.subr.bf16.mxu1 %v9669_v23  ;;  %v9652_v23 = vcombine.low %v968_v63, %v976_v55  ;;  %v936_v63 = vld [vmem:[%s13716_s1 + $0x1c38] sm:$0xff] }
 0x3fa   :  { %7956 = vmatpush2.bf16.msra.mxu0 %v9412_v21  ;;  %v944_v55 = vld [vmem:[%s13716_s1 + $0x1c78] sm:$0xff]  ;;  %v9380_v21 = vcombine.low %v696_v49, %v704_v42  ;;  %v13459_v13 = vpop.f32.mrf.mxu1  ;;  %v6488_v49 = vadd.f32 %v10982_v28, %v6435_v27 }
 0x3fb   :  { %7957 = vmatprep.subr.bf16.mxu0 %v9397_v56  ;;  %v9636_v56 = vcombine.low %v952_v38, %v960_v53  ;;  %v9621_v47 = vcombine.high %v936_v63, %v944_v55  ;;  %v13795_v28 = vld [vmem:[#allocation9_spill] sm:$0xff] }
 0x3fc   :  { %8009 = vmatpush2.bf16.msra.mxu1 %v9668_v6  ;;  %v13461_v6 = vpop.f32.mrf.mxu0  ;;  %v13465_v46 = vpop.f32.mrf.mxu1  ;;  %v8085_v53 = vmax.f32 %v13795_v28, 0.0  ;;  %v13806_v28 = vld [vmem:[#allocation14_spill] sm:$0xff] }
 0x3fd   :  { %8010 = vmatprep.subr.bf16.mxu1 %v9653_v22  ;;  %v6551_v22 = vadd.f32 %v11177_v34, %v6498_v0  ;;  %v6541_v34 = vadd.f32 %v10986_v32, %v6488_v49  ;;  %v8072_v32 = vmax.f32 %v11500_v61, 0.0  ;;  %v13499_v61 = vld [vmem:[%s13718_s2 + $0x8] sm:$0xff] }
 0x3fe   :  { %7958 = vmatpush2.bf16.msra.mxu0 %v9396_v4  ;;  %v13468_v42 = vpop.f32.mrf.mxu0  ;;  %v9620_v4 = vcombine.low %v936_v63, %v944_v55  ;;  %v13472_v38 = vpop.f32.mrf.mxu1 }
 0x3ff   :  { %7959 = vmatprep.subr.bf16.mxu0 %v9381_v43  ;;  %v7028_v43 = vadd.f32 %v12344_v48, %v12121_v19  ;;  %v8070_v19 = vmax.f32 %v13796_v17, 0.0  ;;  %v8087_v48 = vmax.f32 %v11502_v26, 0.0  ;;  %v8054_v63 = vmax.f32 %v6541_v34, 0.0  ;;  %v13798_v26 = vld [vmem:[#allocation6_spill] sm:$0xff] }
 0x400   :  { %8011 = vmatpush2.bf16.msra.mxu1 %v9652_v23  ;;  %v13476_v37 = vpop.f32.mrf.mxu0  ;;  %v13482_v45 = vpop.f32.mrf.mxu1 }
 0x401   :  { %8012 = vmatprep.subr.bf16.mxu1 %v9637_v18  ;;  %v8086_v18 = vmax.f32 %v6551_v22, 0.0  ;;  %v7081_v23 = vadd.f32 %v12346_v52, %v7028_v43  ;;  %v8071_v52 = vmax.f32 %v11482_v1, 0.0 }
 0x402   :  { %7960 = vmatpush2.bf16.msra.mxu0 %v9380_v21  ;;  %v13490_v55 = vpop.f32.mrf.mxu0  ;;  %v8053_v21 = vmax.f32 %v13798_v26, 0.0  ;;  %v13506_v22 = vpop.f32.mrf.mxu1 }
 0x403   :  { %7961 = vmatprep.subr.bf16.mxu0 %v9365_v35  ;;  %v7134_v0 = vadd.f32 %v12578_v41, %v7081_v23  ;;  %v13800_v41 = vld [vmem:[#allocation5_spill] sm:$0xff]  ;;  %v13807_v23 = vld [vmem:[#allocation15_spill] sm:$0xff] }
 0x404   :  { %8013 = vmatpush2.bf16.msra.mxu1 %v9636_v56  ;;  %v7132_v56 = vadd.f32 %v12555_v60, %v12204_v40  ;;  %v8038_v35 = vmax.f32 %v13800_v41, 0.0  ;;  %v13803_v60 = vld [vmem:[#allocation10_spill] sm:$0xff]  ;;  %v8057_v17 = vmax.f32 %v13807_v23, 0.0  ;;  %v13850_v23 = vld [vmem:[#allocation41_spill] sm:$0xff] }
 0x405   :  { %8014 = vmatprep.subr.bf16.mxu1 %v9621_v47  ;;  %v13801_v47 = vld [vmem:[#allocation12_spill] sm:$0xff]  ;;  %v8039_v49 = vmax.f32 %v13803_v60, 0.0 }
 0x406   :  { %7962 = vmatpush2.bf16.msra.mxu0 %v9364_v62  ;;  %v8069_v62 = vmax.f32 %v13797_v44, 0.0  ;;  %v8055_v27 = vmax.f32 %v13801_v47, 0.0  ;;  %v13517_v44 = vpop.f32.mrf.mxu0 }
 0x407   :  { %8130 = vmatprep.subr.mxu0 %v8086_v18  ;;  %v7187_v18 = vadd.f32 %v12586_v20, %v7134_v0  ;;  %v13523_v20 = vadd.f32 %v12566_v5, %v7132_v56  ;;  %v7238_v56 = vadd.f32 %v13167_v54, %v12576_v29 }
 0x408   :  { %8015 = vmatpush2.bf16.msra.mxu1 %v9620_v4  ;;  %v13804_v4 = vld [vmem:[#allocation11_spill] sm:$0xff] }
 0x409   :  { %8201 = vmatprep.subr.mxu1 %v8088_v16  ;;  %7964 = vmatmul.mubr.bf16.vlgmr.msra.gmra.mxu0 %v10273_v3  ;;  %v8056_v3 = vmax.f32 %v11478_v24, 0.0  ;;  %v13802_v24 = vld [vmem:[#allocation4_spill] sm:$0xff]  ;;  %v8040_v43 = vmax.f32 %v13804_v4, 0.0  ;;  %v13805_v16 = vld [vmem:[#allocation13_spill] sm:$0xff]  ;;  %v8092_v5 = vmax.f32 %v7187_v18, 0.0  ;;  %v13735_v4 = vmov 0.0  }
 0x40a   :  { %8131 = vmatpush1.msra.mxu0 %v8085_v53  ;;  %v8037_v40 = vmax.f32 %v13802_v24, 0.0  ;;  %v8041_v34 = vmax.f32 %v13805_v16, 0.0  ;;  %v8042_v53 = vmax.f32 %v13806_v28, 0.0  ;;  %7973 = vmatprep.mubr.bf16.mxu0 %v10294_v12  ;;  %v13811_v12 = vld [vmem:[#allocation2_spill] sm:$0xff]  ;;  %v7555_v24 = vpop.f32.mrf.mxu0  ;;  %v13852_v28 = vmov 0.0  }
 0x40b   :  { %8017 = vmatmul.mubr.bf16.vlgmr.msra.gmra.mxu1 %v10286_v7  ;;  %8132 = vmatprep.subr.mxu0 %v8070_v19  ;;  %v13799_v7 = vsub.s32 1, %v10678_v10  ;;  %v13808_v19 = vld [vmem:[#allocation21_spill] sm:$0xff]  ;;  %v13854_v16 = vld [vmem:[#allocation38_spill] sm:$0xff] }
 0x40c   :  { %8202 = vmatpush1.msra.mxu1 %v8087_v48  ;;  %8133 = vmatpush1.msra.mxu0 %v8069_v62  ;;  %v7130_v48 = vadd.f32 %v12539_v9, %v13808_v19  ;;  %v13519_v62 = vpop.f32.mrf.mxu1  ;;  %v7228_v9 = vadd.f32 %v13109_v2, %v12576_v29  ;;  %v13812_v2 = vld [vmem:[#allocation16_spill] sm:$0xff]  ;;  %v13820_v19 = vld [vmem:[#allocation30_spill] sm:$0xff] }
 0x40d   :  { %v1100_v1 = vrot.slane %v13499_v61, %v13799_v7  ;;  %8203 = vmatprep.subr.mxu1 %v8072_v32  ;;  %8134 = vmatprep.subr.mxu0 %v8054_v63  ;;  %v13809_v32 = vld [vmem:[#allocation20_spill] sm:$0xff]  ;;  %v8058_v41 = vmax.f32 %v13812_v2, 0.0 }
 0x40e   :  { %8204 = vmatpush1.msra.mxu1 %v8071_v52  ;;  %8135 = vmatpush1.msra.mxu0 %v8053_v21  ;;  %v8090_v63 = vmax.f32 %v13809_v32, 0.0  ;;  %v13810_v52 = vsub.s32 3, %v10678_v10  ;;  %v7281_v32 = vadd.f32 %v13820_v19, %v7228_v9 }
 0x40f   :  { %8205 = vmatprep.subr.mxu1 %v8056_v3  ;;  %8136 = vmatprep.subr.mxu0 %v8038_v35  ;;  %v7226_v0 = vadd.f32 %v13095_v50, %v1100_v1  ;;  %v7230_v21 = vadd.f32 %v13125_v8, %v1100_v1  ;;  %v7236_v3 = vadd.f32 %v13149_v57, %v1100_v1  ;;  %v13813_v8 = vld [vmem:[#allocation17_spill] sm:$0xff]  ;;  %v13814_v57 = vld [vmem:[#allocation18_spill] sm:$0xff] }
 0x410   :  { %8206 = vmatpush1.msra.mxu1 %v8055_v27  ;;  %v1108_v26 = vrot.slane %v13499_v61, %v13810_v52  ;;  %8026 = vmatprep.mubr.bf16.mxu1 %v10309_v15  ;;  %v7234_v50 = vadd.f32 %v13133_v14, %v12576_v29  ;;  %v7240_v7 = vadd.f32 %v13183_v58, %v1100_v1  ;;  %v8073_v35 = vmax.f32 %v13813_v8, 0.0  ;;  %v13815_v15 = vld [vmem:[#allocation19_spill] sm:$0xff] }
 0x411   :  { %8207 = vmatprep.subr.mxu1 %v8040_v43  ;;  %8137 = vmatpush1.msra.mxu0 %v8037_v40  ;;  %v8074_v47 = vmax.f32 %v13814_v57, 0.0  ;;  %v8089_v27 = vmax.f32 %v13815_v15, 0.0  ;;  %v13545_v40 = vpop.f32.mrf.mxu1  ;;  %v13816_v14 = vld [vmem:[#allocation3_spill] sm:$0xff]  ;;  %v8091_v58 = vmax.f32 %v13523_v20, 0.0  ;;  %v13818_v1 = vsub.s32 2, %v10678_v10  ;;  %v13819_v43 = vld [vmem:[#allocation29_spill] sm:$0xff] }
 0x412   :  { %8208 = vmatpush1.msra.mxu1 %v8039_v49  ;;  %7974 = vmatmul.mubr.bf16.gmra.mxu0 %v13811_v12  ;;  %v13817_v29 = vld [vmem:[#allocation27_spill] sm:$0xff]  ;;  %v7452_v49 = vadd.f32 %v13431_v33, %v1108_v26  ;;  %v7279_v18 = vadd.f32 %v13819_v43, %v7226_v0  ;;  %v13822_v12 = vld [vmem:[#allocation33_spill] sm:$0xff]  ;;  %v13823_v20 = vld [vmem:[#allocation32_spill] sm:$0xff]  ;;  %v7293_v33 = vadd.f32 %v13215_v59, %v7240_v7 }
 0x413   :  { %8027 = vmatmul.mubr.bf16.gmra.mxu1 %v13816_v14  ;;  %8272 = vmatprep.subr.mxu0 %v8090_v63  ;;  %v7183_v54 = vadd.f32 %v13817_v29, %v7130_v48  ;;  %v1104_v60 = vrot.slane %v13499_v61, %v13818_v1  ;;  %v13821_v52 = vld [vmem:[#allocation31_spill] sm:$0xff]  ;;  %v7289_v48 = vadd.f32 %v13822_v12, %v7236_v3  ;;  %v13825_v14 = vld [vmem:[#allocation28_spill] sm:$0xff]  ;;  %v13826_v29 = vld [vmem:[#allocation34_spill] sm:$0xff]  ;;  %v7608_v3 = vpop.f32.mrf.mxu1 }
 0x414   :  { %8343 = vmatprep.subr.mxu1 %v8092_v5  ;;  %8170 = vmatprep.mubr.f32.mxu0 %v13735_v4  ;;  %v7283_v63 = vadd.f32 %v13821_v52, %v7230_v21  ;;  %v7287_v8 = vadd.f32 %v13823_v20, %v7234_v50  ;;  %v13824_v57 = vld [vmem:[#allocation35_spill] sm:$0xff]  ;;  %v13566_v1 = vadd.f32 %v13826_v29, %v13825_v14  ;;  %v7557_v21 = vpop.f32.mrf.mxu0  ;;  %v13573_v50 = vld [vmem:[%s13719_s3] sm:$0xff]  ;;  %v13829_v52 = vld [vmem:[#allocation45_spill] sm:$0xff] }
 0x415   :  { %8241 = vmatprep.mubr.f32.mxu1 %v13735_v4  ;;  %v7291_v15 = vadd.f32 %v13824_v57, %v7238_v56  ;;  %v7450_v5 = vadd.f32 %v13413_v30, %v1104_v60  ;;  %v7342_v0 = vadd.f32 %v13280_v39, %v7289_v48  ;;  %v7448_v9 = vadd.f32 %v13397_v36, %v1108_v26  ;;  %v13827_v56 = vld [vmem:[#allocation36_spill] sm:$0xff]  ;;  %v13830_v48 = vld [vmem:[#allocation53_spill] sm:$0xff]  ;;  %v13831_v57 = vld [vmem:[#allocation43_spill] sm:$0xff] }
 0x416   :  { %v13576_v59 = vadd.f32 %v13827_v56, %v7279_v18  ;;  %v7334_v30 = vadd.f32 %v13225_v11, %v7281_v32  ;;  %v7446_v7 = vadd.f32 %v13381_v51, %v1104_v60  ;;  %v7505_v43 = vadd.f32 %v13459_v13, %v7452_v49  ;;  %v13828_v36 = vld [vmem:[#allocation40_spill] sm:$0xff]  ;;  %v13832_v29 = vld [vmem:[#allocation51_spill] sm:$0xff]  ;;  %v13835_v32 = vld [vmem:[#allocation57_spill] sm:$0xff] }
 0x417   :  { %v7336_v39 = vadd.f32 %v13244_v25, %v7283_v63  ;;  %v7340_v19 = vadd.f32 %v13828_v36, %v7287_v8  ;;  %v7346_v12 = vadd.f32 %v13829_v52, %v7293_v33  ;;  %v7442_v20 = vadd.f32 %v13830_v48, %v1108_v26  ;;  %v13833_v51 = vld [vmem:[#allocation44_spill] sm:$0xff]  ;;  %v13834_v25 = vld [vmem:[#allocation49_spill] sm:$0xff]  ;;  %v7610_v8 = vpop.f32.mrf.mxu1  ;;  %v13841_v48 = vld [vmem:[#allocation55_spill] sm:$0xff] }
 0x418   :  { %v7344_v14 = vadd.f32 %v13831_v57, %v7291_v15  ;;  %v7440_v4 = vadd.f32 %v13832_v29, %v1104_v60  ;;  %v7503_v18 = vadd.f32 %v13440_v31, %v7450_v5  ;;  %v7558_v56 = vadd.f32 %v7557_v21, %v7505_v43  ;;  %v13836_v15 = vld [vmem:[#allocation26_spill] sm:$0xff]  ;;  %v13837_v31 = vld [vmem:[#allocation47_spill] sm:$0xff]  ;;  %v13838_v21 = vld [vmem:[#allocation56_spill] sm:$0xff] }
 0x419   :  { %v8076_v11 = vmax.f32 %v7183_v54, 0.0  ;;  %v13591_v13 = vadd.f32 %v13833_v51, %v7342_v0  ;;  %v7438_v49 = vadd.f32 %v13834_v25, %v1108_v26  ;;  %v7501_v63 = vadd.f32 %v13835_v32, %v7448_v9  ;;  %v13839_v54 = vld [vmem:[#allocation25_spill] sm:$0xff]  ;;  %v13840_v52 = vld [vmem:[#allocation48_spill] sm:$0xff]  ;;  %v13843_v51 = vld [vmem:[#allocation54_spill] sm:$0xff] }
 0x41a   :  { %9734 = vmatmul.mubr.msk.f32.vlgmr.msra.gmra.mxu0 %vm8102_vm0, %v13573_v50  ;;  %v8075_v33 = vmax.f32 %v13836_v15, 0.0  ;;  %v7436_v5 = vadd.f32 %v13837_v31, %v1104_v60  ;;  %v7499_v43 = vadd.f32 %v13838_v21, %v7446_v7  ;;  %v7556_v36 = vadd.f32 %v7555_v24, %v7503_v18 }
 0x41b   :  { %9735 = vmatmul.mubr.msk.f32.vlgmr.msra.gmra.mxu1 %vm8102_vm0, %v13573_v50  ;;  %8273 = vmatpush1.msra.mxu0 %v8089_v27  ;;  %v8060_v0 = vmax.f32 %v13839_v54, 0.0  ;;  %v7399_v26 = vadd.f32 %v13840_v52, %v7346_v12  ;;  %v7495_v9 = vadd.f32 %v13841_v48, %v7442_v20  ;;  %v7554_v57 = vadd.f32 %v13517_v44, %v7501_v63  ;;  %v13842_v27 = vld [vmem:[#allocation24_spill] sm:$0xff]  ;;  %v13851_v63 = vld [vmem:[#allocation58_spill] sm:$0xff]  ;;  %v7700_v52 = vpop.f32.mrf.mxu1 }
 0x41c   :  { %8344 = vmatpush1.msra.mxu1 %v8091_v58  ;;  %8274 = vmatprep.subr.mxu0 %v8074_v47  ;;  %v8059_v29 = vmax.f32 %v13842_v27, 0.0  ;;  %v7493_v25 = vadd.f32 %v13843_v51, %v7440_v4  ;;  %v7552_v60 = vadd.f32 %v13490_v55, %v7499_v43  ;;  %v7611_v7 = vadd.f32 %v7610_v8, %v7558_v56  ;;  %v13844_v47 = vld [vmem:[#allocation23_spill] sm:$0xff]  ;;  %v13845_v58 = vld [vmem:[#allocation46_spill] sm:$0xff]  ;;  %v13846_v20 = vld [vmem:[#allocation52_spill] sm:$0xff] }
 0x41d   :  { %8345 = vmatprep.subr.mxu1 %v8076_v11  ;;  %8275 = vmatpush1.msra.mxu0 %v8073_v35  ;;  %v8044_v24 = vmax.f32 %v13844_v47, 0.0  ;;  %v7397_v12 = vadd.f32 %v13845_v58, %v7344_v14  ;;  %v7491_v18 = vadd.f32 %v13846_v20, %v7438_v49  ;;  %v7548_v44 = vadd.f32 %v13476_v37, %v7495_v9  ;;  %v13847_v35 = vld [vmem:[#allocation22_spill] sm:$0xff]  ;;  %v7702_v48 = vpop.f32.mrf.mxu1 }
 0x41e   :  { %8346 = vmatpush1.msra.mxu1 %v8075_v33  ;;  %8276 = vmatprep.subr.mxu0 %v8058_v41  ;;  %v8043_v4 = vmax.f32 %v13847_v35, 0.0  ;;  %v13848_v55 = vld [vmem:[#allocation50_spill] sm:$0xff]  ;;  %v7546_v11 = vadd.f32 %v13468_v42, %v7493_v25  ;;  %v7609_v2 = vadd.f32 %v7608_v3, %v7556_v36  ;;  %v8094_v49 = vmax.f32 %v7399_v26, 0.0 }
 0x41f   :  { %8347 = vmatprep.subr.mxu1 %v8060_v0  ;;  %8277 = vmatpush1.msra.mxu0 %v8057_v17  ;;  %v7489_v56 = vadd.f32 %v13848_v55, %v7436_v5  ;;  %v13849_v41 = vld [vmem:[#allocation42_spill] sm:$0xff]  ;;  %v7544_v37 = vadd.f32 %v13461_v6, %v7491_v18  ;;  %v7607_v32 = vadd.f32 %v13545_v40, %v7554_v57  ;;  %v8096_v8 = vmax.f32 %v7611_v7, 0.0  ;;  %v7704_v57 = vpop.f32.mrf.mxu1 }
 0x420   :  { %8348 = vmatpush1.msra.mxu1 %v8059_v29  ;;  %8278 = vmatprep.subr.mxu0 %v8042_v53  ;;  %v7393_v14 = vadd.f32 %v13849_v41, %v7340_v19  ;;  %v7389_v17 = vadd.f32 %v13850_v23, %v7336_v39  ;;  %v7605_v3 = vadd.f32 %v13519_v62, %v7552_v60  ;;  %v13853_v53 = vld [vmem:[#allocation39_spill] sm:$0xff]  ;;  %v8093_v15 = vmax.f32 %v7397_v12, 0.0 }
 0x421   :  { %8349 = vmatprep.subr.mxu1 %v8044_v24  ;;  %8279 = vmatpush1.msra.mxu0 %v8041_v34  ;;  %v7542_v42 = vadd.f32 %v13851_v63, %v7489_v56  ;;  %v7387_v19 = vadd.f32 %v13853_v53, %v7334_v30  ;;  %v7601_v6 = vadd.f32 %v13506_v22, %v7548_v44  ;;  %v8078_v40 = vmax.f32 %v13591_v13, 0.0  ;;  %v13855_v30 = vld [vmem:[#allocation37_spill] sm:$0xff]  ;;  %v7706_v29 = vpop.f32.mrf.mxu1 }
 0x422   :  { %8350 = vmatpush1.msra.mxu1 %v8043_v4  ;;  %8312 = vmatprep.mubr.f32.mxu0 %v13852_v28  ;;  %v7385_v34 = vadd.f32 %v13854_v16, %v13576_v59  ;;  %v7599_v39 = vadd.f32 %v13482_v45, %v7546_v11  ;;  %v8095_v62 = vmax.f32 %v7609_v2, 0.0  ;;  %v7383_v33 = vadd.f32 %v13855_v30, %v13566_v1 }
 0x423   :  { %8383 = vmatprep.mubr.f32.mxu1 %v13852_v28  ;;  %8414 = vmatprep.subr.mxu0 %v8094_v49  ;;  %v8077_v31 = vmax.f32 %v7393_v14, 0.0  ;;  %v7597_v22 = vadd.f32 %v13472_v38, %v7544_v37  ;;  %v8080_v5 = vmax.f32 %v7607_v32, 0.0  ;;  %v8062_v59 = vmax.f32 %v7389_v17, 0.0  ;;  %v7710_v25 = vpop.f32.mrf.mxu1 }
 0x424   :  { %8485 = vmatprep.subr.mxu1 %v8096_v8  ;;  %9736 = vmatmul.mubr.msk.f32.vlgmr.msra.gmra.mxu0 %vm8102_vm0, %v13573_v50  ;;  %v7595_v13 = vadd.f32 %v13465_v46, %v7542_v42  ;;  %v8079_v45 = vmax.f32 %v7605_v3, 0.0  ;;  %v8061_v21 = vmax.f32 %v7387_v19, 0.0  ;;  %v8064_v43 = vmax.f32 %v7601_v6, 0.0  ;;  %v7647_v46 = vpop.f32.mrf.mxu0 }
 0x425   :  { %9737 = vmatmul.mubr.msk.f32.vlgmr.msra.gmra.mxu1 %vm8102_vm0, %v13573_v50  ;;  %8415 = vmatpush1.msra.mxu0 %v8093_v15  ;;  %v8046_v36 = vmax.f32 %v7385_v34, 0.0  ;;  %v8063_v1 = vmax.f32 %v7599_v39, 0.0  ;;  %v8045_v38 = vmax.f32 %v7383_v33, 0.0  ;;  %v8048_v54 = vmax.f32 %v7597_v22, 0.0  ;;  %v7712_v7 = vpop.f32.mrf.mxu1 }
 0x426   :  { %8486 = vmatpush1.msra.mxu1 %v8095_v62  ;;  %8416 = vmatprep.subr.mxu0 %v8078_v40  ;;  %v8047_v0 = vmax.f32 %v7595_v13, 0.0  ;;  %v7649_v26 = vpop.f32.mrf.mxu0  ;;  %v13856_v55 = vsub.s32 4, %v10678_v10  ;;  %v13857_v11 = vsub.s32 5, %v10678_v10 }
 0x427   :  { %8487 = vmatprep.subr.mxu1 %v8080_v5  ;;  %8417 = vmatpush1.msra.mxu0 %v8077_v31  ;;  %v7714_v24 = vpop.f32.mrf.mxu1 }
 0x428   :  { %8488 = vmatpush1.msra.mxu1 %v8079_v45  ;;  %8418 = vmatprep.subr.mxu0 %v8062_v59  ;;  %v7651_v9 = vpop.f32.mrf.mxu0  ;;  %v1112_v56 = vrot.slane %v13499_v61, %v13856_v55  ;;  %v1116_v2 = vrot.slane %v13499_v61, %v13857_v11 }
 0x429   :  { %8489 = vmatprep.subr.mxu1 %v8064_v43  ;;  %8419 = vmatpush1.msra.mxu0 %v8061_v21  ;;  %v7716_v12 = vpop.f32.mrf.mxu1 }
 0x42a   :  { %8490 = vmatpush1.msra.mxu1 %v8063_v1  ;;  %8420 = vmatprep.subr.mxu0 %v8046_v36  ;;  %v7653_v27 = vpop.f32.mrf.mxu0  ;;  %v7652_v8 = vadd.f32 %v7651_v9, %v1112_v56  ;;  %v7650_v53 = vadd.f32 %v7649_v26, %v1116_v2  ;;  %v7648_v16 = vadd.f32 %v7647_v46, %v1112_v56 }
 0x42b   :  { %8491 = vmatprep.subr.mxu1 %v8048_v54  ;;  %8421 = vmatpush1.msra.mxu0 %v8045_v38  ;;  %v7654_v63 = vadd.f32 %v7653_v27, %v1116_v2 }
 0x42c   :  { %8492 = vmatpush1.msra.mxu1 %v8047_v0  ;;  %8454 = vmatprep.mubr.f32.mxu0 %v13852_v28  ;;  %v7657_v51 = vpop.f32.mrf.mxu0  ;;  %v7705_v22 = vadd.f32 %v7704_v57, %v7652_v8  ;;  %v7703_v13 = vadd.f32 %v7702_v48, %v7650_v53  ;;  %v7701_v36 = vadd.f32 %v7700_v52, %v7648_v16  ;;  %v13858_v53 = vsub.s32 6, %v10678_v10 }
 0x42d   :  { %9738 = vmatmul.mubr.msk.f32.vlgmr.msra.gmra.mxu0 %vm8102_vm0, %v13573_v50  ;;  %8525 = vmatprep.mubr.f32.mxu1 %v13852_v28  ;;  %v7658_v23 = vadd.f32 %v7657_v51, %v1112_v56  ;;  %v7707_v39 = vadd.f32 %v7706_v29, %v7654_v63 }
 0x42e   :  { %9739 = vmatmul.mubr.msk.f32.vlgmr.msra.gmra.mxu1 %vm8102_vm0, %v13573_v50  ;;  %8596 = vmatprep.mubr.f32.mxu0 %v13852_v28  ;;  %v7659_v60 = vpop.f32.mrf.mxu0 }
 0x42f   :  { %8667 = vmatprep.mubr.f32.mxu1 %v13852_v28  ;;  %v7660_v49 = vadd.f32 %v7659_v60, %v1116_v2  ;;  %v7711_v34 = vadd.f32 %v7710_v25, %v7658_v23 }
 0x430   :  { %v7661_v47 = vpop.f32.mrf.mxu0 }
 0x431   :  { %v7662_v37 = vadd.f32 %v7661_v47, %v1112_v56  ;;  %v7713_v19 = vadd.f32 %v7712_v7, %v7660_v49 }
 0x432   :  { %v7663_v58 = vpop.f32.mrf.mxu0 }
 0x433   :  { %v7664_v42 = vadd.f32 %v7663_v58, %v1116_v2  ;;  %v7715_v15 = vadd.f32 %v7714_v24, %v7662_v37 }
 0x435   :  { %v7717_v62 = vadd.f32 %v7716_v12, %v7664_v42 }
 0x449   :  { %v7753_v20 = vpop.f32.mrf.mxu0 }
 0x44a   :  { %v7754_v26 = vadd.f32 %v7753_v20, %v7701_v36 }
 0x44b   :  { %v7806_v18 = vpop.f32.mrf.mxu1  ;;  %v7755_v44 = vpop.f32.mrf.mxu0 }
 0x44c   :  { %v7756_v54 = vadd.f32 %v7755_v44, %v7703_v13  ;;  %v7807_v7 = vadd.f32 %v7806_v18, %v7754_v26 }
 0x44d   :  { %v7808_v35 = vpop.f32.mrf.mxu1  ;;  %v7757_v4 = vpop.f32.mrf.mxu0 }
 0x44e   :  { %v7758_v1 = vadd.f32 %v7757_v4, %v7705_v22  ;;  %v7809_v60 = vadd.f32 %v7808_v35, %v7756_v54  ;;  %v8049_v58 = vmax.f32 %v7807_v7, 0.0 }
 0x44f   :  { %v7810_v41 = vpop.f32.mrf.mxu1  ;;  %v7759_v14 = vpop.f32.mrf.mxu0 }
 0x450   :  { %v7760_v45 = vadd.f32 %v7759_v14, %v7707_v39  ;;  %v7811_v51 = vadd.f32 %v7810_v41, %v7758_v1  ;;  %v8050_v24 = vmax.f32 %v7809_v60, 0.0 }
 0x451   :  { %v7812_v32 = vpop.f32.mrf.mxu1  ;;  %v7763_v17 = vpop.f32.mrf.mxu0 }
 0x452   :  { %v7764_v5 = vadd.f32 %v7763_v17, %v7711_v34  ;;  %v7813_v27 = vadd.f32 %v7812_v32, %v7760_v45  ;;  %v8065_v52 = vmax.f32 %v7811_v51, 0.0 }
 0x453   :  { %v7816_v3 = vpop.f32.mrf.mxu1  ;;  %v7765_v28 = vpop.f32.mrf.mxu0 }
 0x454   :  { %v7766_v30 = vadd.f32 %v7765_v28, %v7713_v19  ;;  %v7817_v9 = vadd.f32 %v7816_v3, %v7764_v5  ;;  %v8066_v47 = vmax.f32 %v7813_v27, 0.0  ;;  %v1120_v19 = vrot.slane %v13499_v61, %v13858_v53 }
 0x455   :  { %v7818_v6 = vpop.f32.mrf.mxu1  ;;  %v7767_v40 = vpop.f32.mrf.mxu0 }
 0x456   :  { %v7768_v33 = vadd.f32 %v7767_v40, %v7715_v15  ;;  %v7819_v0 = vadd.f32 %v7818_v6, %v7766_v30  ;;  %v8081_v48 = vmax.f32 %v7817_v9, 0.0  ;;  %v13859_v15 = vsub.s32 7, %v10678_v10 }
 0x457   :  { %v7820_v31 = vpop.f32.mrf.mxu1  ;;  %v7769_v59 = vpop.f32.mrf.mxu0 }
 0x458   :  { %v7770_v21 = vadd.f32 %v7769_v59, %v7717_v62  ;;  %v7821_v38 = vadd.f32 %v7820_v31, %v7768_v33  ;;  %v8082_v57 = vmax.f32 %v7819_v0, 0.0  ;;  %v1124_v6 = vrot.slane %v13499_v61, %v13859_v15 }
 0x459   :  { %v7822_v43 = vpop.f32.mrf.mxu1 }
 0x45a   :  { %v7823_v46 = vadd.f32 %v7822_v43, %v7770_v21  ;;  %v8097_v25 = vmax.f32 %v7821_v38, 0.0 }
 0x45c   :  { %v8098_v29 = vmax.f32 %v7823_v46, 0.0 }
 0x45e   :  { %8556 = vmatprep.subr.mxu0 %v8098_v29 }
 0x45f   :  { %8557 = vmatpush1.msra.mxu0 %v8097_v25 }
 0x460   :  { %8558 = vmatprep.subr.mxu0 %v8082_v57 }
 0x461   :  { %8559 = vmatpush1.msra.mxu0 %v8081_v48 }
 0x462   :  { %8560 = vmatprep.subr.mxu0 %v8066_v47 }
 0x463   :  { %8561 = vmatpush1.msra.mxu0 %v8065_v52 }
 0x464   :  { %8562 = vmatprep.subr.mxu0 %v8050_v24 }
 0x465   :  { %8563 = vmatpush1.msra.mxu0 %v8049_v58 }
 0x466   :  { %9740 = vmatmul.mubr.msk.f32.vlgmr.msra.gmra.mxu0 %vm8102_vm0, %v13573_v50 }
 0x489   :  { %v7859_v12 = vpop.f32.mrf.mxu0 }
 0x48a   :  { %v7860_v36 = vadd.f32 %v7859_v12, %v1120_v19 }
 0x48b   :  { %v7912_v20 = vpop.f32.mrf.mxu1  ;;  %v7861_v44 = vpop.f32.mrf.mxu0 }
 0x48c   :  { %v7862_v13 = vadd.f32 %v7861_v44, %v1124_v6  ;;  %v7913_v57 = vadd.f32 %v7912_v20, %v7860_v36 }
 0x48d   :  { %v7914_v35 = vpop.f32.mrf.mxu1  ;;  %v7863_v18 = vpop.f32.mrf.mxu0 }
 0x48e   :  { %v7864_v5 = vadd.f32 %v7863_v18, %v1120_v19  ;;  %v7915_v29 = vadd.f32 %v7914_v35, %v7862_v13 }
 0x48f   :  { %v7916_v4 = vpop.f32.mrf.mxu1  ;;  %v7865_v55 = vpop.f32.mrf.mxu0 }
 0x490   :  { %v7866_v33 = vadd.f32 %v7865_v55, %v1124_v6  ;;  %v7917_v26 = vadd.f32 %v7916_v4, %v7864_v5 }
 0x491   :  { %v7918_v56 = vpop.f32.mrf.mxu1  ;;  %v7869_v11 = vpop.f32.mrf.mxu0 }
 0x492   :  { %v7870_v62 = vadd.f32 %v7869_v11, %v1120_v19  ;;  %v7919_v38 = vadd.f32 %v7918_v56, %v7866_v33 }
 0x493   :  { %v7922_v2 = vpop.f32.mrf.mxu1  ;;  %v7871_v41 = vpop.f32.mrf.mxu0 }
 0x494   :  { %v7872_v40 = vadd.f32 %v7871_v41, %v1124_v6  ;;  %v7923_v1 = vadd.f32 %v7922_v2, %v7870_v62 }
 0x495   :  { %v7924_v14 = vpop.f32.mrf.mxu1  ;;  %v7873_v49 = vpop.f32.mrf.mxu0 }
 0x496   :  { %v7874_v39 = vadd.f32 %v7873_v49, %v1120_v19  ;;  %v7925_v45 = vadd.f32 %v7924_v14, %v7872_v40 }
 0x497   :  { %v7926_v37 = vpop.f32.mrf.mxu1  ;;  %v7875_v32 = vpop.f32.mrf.mxu0 }
 0x498   :  { %v7876_v31 = vadd.f32 %v7875_v32, %v1124_v6  ;;  %v7927_v21 = vadd.f32 %v7926_v37, %v7874_v39 }
 0x499   :  { %v7928_v23 = vpop.f32.mrf.mxu1 }
 0x49a   :  { %v7929_v61 = vadd.f32 %v7928_v23, %v7876_v31 }
 0x4c9   :  { %v7965_v17 = vpop.f32.mrf.mxu0 }
 0x4ca   :  { %v7966_v44 = vadd.f32 %v7965_v17, %v7913_v57 }
 0x4cb   :  { %v8018_v63 = vpop.f32.mrf.mxu1  ;;  %v7967_v42 = vpop.f32.mrf.mxu0 }
 0x4cc   :  { %v7968_v52 = vadd.f32 %v7967_v42, %v7915_v29  ;;  %v8019_v14 = vadd.f32 %v8018_v63, %v7966_v44 }
 0x4cd   :  { %v8020_v3 = vpop.f32.mrf.mxu1  ;;  %v7969_v8 = vpop.f32.mrf.mxu0 }
 0x4ce   :  { %v7970_v7 = vadd.f32 %v7969_v8, %v7917_v26  ;;  %v8021_v2 = vadd.f32 %v8020_v3, %v7968_v52  ;;  %v8051_v17 = vmax.f32 %v8019_v14, 0.0 }
 0x4cf   :  { %v8022_v28 = vpop.f32.mrf.mxu1  ;;  %v7971_v16 = vpop.f32.mrf.mxu0 }
 0x4d0   :  { %v7972_v51 = vadd.f32 %v7971_v16, %v7919_v38  ;;  %v8023_v56 = vadd.f32 %v8022_v28, %v7970_v7  ;;  %v8052_v23 = vmax.f32 %v8021_v2, 0.0 }
 0x4d1   :  { %v8024_v34 = vpop.f32.mrf.mxu1 }
 0x4d2   :  { %v7975_v30 = vpop.f32.mrf.mxu0  ;;  %v8025_v4 = vadd.f32 %v8024_v34, %v7972_v51  ;;  %v8067_v32 = vmax.f32 %v8023_v56, 0.0 }
 0x4d3   :  { %v8028_v22 = vpop.f32.mrf.mxu1  ;;  %v7976_v9 = vadd.f32 %v7975_v30, %v7923_v1 }
 0x4d4   :  { %v7977_v59 = vpop.f32.mrf.mxu0  ;;  %v8068_v37 = vmax.f32 %v8025_v4, 0.0 }
 0x4d5   :  { %v8030_v43 = vpop.f32.mrf.mxu1  ;;  %v7978_v54 = vadd.f32 %v7977_v59, %v7925_v45  ;;  %v8029_v18 = vadd.f32 %v8028_v22, %v7976_v9 }
 0x4d6   :  { %v7979_v10 = vpop.f32.mrf.mxu0 }
 0x4d7   :  { %v7980_v0 = vadd.f32 %v7979_v10, %v7927_v21  ;;  %v8032_v46 = vpop.f32.mrf.mxu1  ;;  %v8031_v24 = vadd.f32 %v8030_v43, %v7978_v54  ;;  %v8083_v49 = vmax.f32 %v8029_v18, 0.0 }
 0x4d8   :  { %v7981_v27 = vpop.f32.mrf.mxu0 }
 0x4d9   :  { %v7982_v25 = vadd.f32 %v7981_v27, %v7929_v61  ;;  %v8034_v60 = vpop.f32.mrf.mxu1  ;;  %v8033_v48 = vadd.f32 %v8032_v46, %v7980_v0  ;;  %v8084_v41 = vmax.f32 %v8031_v24, 0.0 }
 0x4da   :  { %v8172_v47 = vpop.f32.mrf.mxu0 }
 0x4db   :  { %v8035_v58 = vadd.f32 %v8034_v60, %v7982_v25  ;;  %8674 = vst [vmem:[%s13720_s4] sm:$0xff] %v8172_v47  ;;  %v8243_v12 = vpop.f32.mrf.mxu1  ;;  %v8099_v11 = vmax.f32 %v8033_v48, 0.0 }
 0x4dc   :  { %8676 = vst [vmem:[%s13720_s4 + $0x10] sm:$0xff] %v8243_v12  ;;  %v8174_v35 = vpop.f32.mrf.mxu0 }
 0x4dd   :  { %v8100_v20 = vmax.f32 %v8035_v58, 0.0  ;;  %8675 = vst [vmem:[%s13720_s4 + $0x8] sm:$0xff] %v8174_v35  ;;  %v8245_v55 = vpop.f32.mrf.mxu1 }
 0x4de   :  { %8677 = vst [vmem:[%s13720_s4 + $0x18] sm:$0xff] %v8245_v55 }
 0x4df   :  { %8627 = vmatprep.subr.mxu1 %v8100_v20 }
 0x4e0   :  { %8628 = vmatpush1.msra.mxu1 %v8099_v11 }
 0x4e1   :  { %8629 = vmatprep.subr.mxu1 %v8084_v41 }
 0x4e2   :  { %8630 = vmatpush1.msra.mxu1 %v8083_v49 }
 0x4e3   :  { %8631 = vmatprep.subr.mxu1 %v8068_v37 }
 0x4e4   :  { %8632 = vmatpush1.msra.mxu1 %v8067_v32  ;;  %v8314_v42 = vpop.f32.mrf.mxu0 }
 0x4e5   :  { %8633 = vmatprep.subr.mxu1 %v8052_v23  ;;  %8678 = vst [vmem:[%s13720_s4 + $0x20] sm:$0xff] %v8314_v42  ;;  %v8385_v3 = vpop.f32.mrf.mxu1 }
 0x4e6   :  { %8634 = vmatpush1.msra.mxu1 %v8051_v17  ;;  %8680 = vst [vmem:[%s13720_s4 + $0x30] sm:$0xff] %v8385_v3  ;;  %v8316_v63 = vpop.f32.mrf.mxu0 }
 0x4e7   :  { %9741 = vmatmul.mubr.msk.f32.vlgmr.msra.gmra.mxu1 %vm8102_vm0, %v13573_v50  ;;  %8679 = vst [vmem:[%s13720_s4 + $0x28] sm:$0xff] %v8316_v63  ;;  %v8387_v8 = vpop.f32.mrf.mxu1 }
 0x4e8   :  { %8681 = vst [vmem:[%s13720_s4 + $0x38] sm:$0xff] %v8387_v8 }
 0x4ed   :  { %v8456_v28 = vpop.f32.mrf.mxu0 }
 0x4ee   :  { %8682 = vst [vmem:[%s13720_s4 + $0x40] sm:$0xff] %v8456_v28  ;;  %v8527_v53 = vpop.f32.mrf.mxu1 }
 0x4ef   :  { %8684 = vst [vmem:[%s13720_s4 + $0x50] sm:$0xff] %v8527_v53  ;;  %v8458_v50 = vpop.f32.mrf.mxu0 }
 0x4f0   :  { %8683 = vst [vmem:[%s13720_s4 + $0x48] sm:$0xff] %v8458_v50  ;;  %v8529_v19 = vpop.f32.mrf.mxu1 }
 0x4f1   :  { %8685 = vst [vmem:[%s13720_s4 + $0x58] sm:$0xff] %v8529_v19 }
 0x526   :  { %v8598_v15 = vpop.f32.mrf.mxu0 }
 0x527   :  { %8686 = vst [vmem:[%s13720_s4 + $0x60] sm:$0xff] %v8598_v15 }
 0x528   :  { %v8600_v6 = vpop.f32.mrf.mxu0 }
 0x529   :  { %8687 = vst [vmem:[%s13720_s4 + $0x68] sm:$0xff] %v8600_v6 }
 0x5a7   :  { %v8669_v16 = vpop.f32.mrf.mxu1 }
 0x5a8   :  { %8688 = vst [vmem:[%s13720_s4 + $0x70] sm:$0xff] %v8669_v16 }
 0x5a9   :  { %v8671_v34 = vpop.f32.mrf.mxu1 }
 0x5aa   :  { %8689 = vst [vmem:[%s13720_s4 + $0x78] sm:$0xff] %v8671_v34 }

</bundles_post_ra>
